<compile_context>
chip_gen: v7x
topology: tpu7x:2x2x1
jax: 0.10.0
libtpu: 0.0.40
codegen_flags: <defaults>
</compile_context>

<pallas_src>
import functools

import jax
import jax.numpy as jnp
from jax.experimental import pallas as pl
from jax.experimental.pallas import tpu as pltpu


def _round_up(x, m):
    return (x + m - 1) // m * m


def _cdiv(a, b):
    return -(-a // b)


def _pick_row_tile(OH, W8, target=512):
    """Largest row tile (multiple of W8) dividing OH*W8 with at most `target` rows."""
    rpt = 1
    for d in range(1, OH + 1):
        if OH % d == 0 and d * W8 <= max(target, W8):
            rpt = d
    return rpt * W8, OH // rpt


# ----------------------------------------------------------------------------
# Kernel: tiled bf16 GEMM with fused per-tile BN statistics
# ----------------------------------------------------------------------------
def _gemm_stats_kernel(a_ref, b_ref, o_ref, s_ref, acc_ref):
    k = pl.program_id(2)

    @pl.when(k == 0)
    def _init():
        acc_ref[...] = jnp.zeros_like(acc_ref)

    acc_ref[...] += jnp.dot(a_ref[...], b_ref[...],
                            preferred_element_type=jnp.float32)

    @pl.when(k == pl.num_programs(2) - 1)
    def _finish():
        acc = acc_ref[...]
        o_ref[...] = acc.astype(o_ref.dtype)
        s_ref[0, 0:1, :] = jnp.sum(acc, axis=0, keepdims=True)
        s_ref[0, 1:2, :] = jnp.sum(acc * acc, axis=0, keepdims=True)


def matmul_stats(a, b):
    """(M,K)@(K,C) in bf16 on the MXU, f32 accumulation.

    Returns (y (Mp,C) bf16, per-M-tile channel sum/sum-sq (nm, 2, C) f32).
    Zero-padded M/K rows contribute exactly 0 to the statistics.
    """
    M, K = a.shape
    C = b.shape[1]
    n_m = _cdiv(M, 256)
    TM = min(256, _round_up(_cdiv(M, n_m), 16))      # adaptive: no 256-padding of tiny M
    Mp = _round_up(M, TM)
    nm = Mp // TM
    TN = min(C, 256)
    if nm * (C // TN) < 2 and C > 128:               # keep >=2 parallel programs
        TN = 128
    Kp = _round_up(K, 128)
    TK = 256 if Kp % 256 == 0 else 128
    a = jnp.pad(a.astype(jnp.bfloat16), ((0, Mp - M), (0, Kp - K)))
    b = jnp.pad(b.astype(jnp.bfloat16), ((0, Kp - K), (0, 0)))
    nn, nk = C // TN, Kp // TK

    y, stats = pl.pallas_call(
        _gemm_stats_kernel,
        out_shape=(jax.ShapeDtypeStruct((Mp, C), jnp.bfloat16),
                   jax.ShapeDtypeStruct((nm, 2, C), jnp.float32)),
        grid_spec=pltpu.PrefetchScalarGridSpec(
            num_scalar_prefetch=0,
            grid=(nm, nn, nk),
            in_specs=[pl.BlockSpec((TM, TK), lambda i, j, k: (i, k)),
                      pl.BlockSpec((TK, TN), lambda i, j, k: (k, j))],
            out_specs=(pl.BlockSpec((TM, TN), lambda i, j, k: (i, j)),
                       pl.BlockSpec((1, 2, TN), lambda i, j, k: (i, 0, j))),
            scratch_shapes=[pltpu.VMEM((TM, TN), jnp.float32)]),
        compiler_params=pltpu.CompilerParams(
            dimension_semantics=("parallel", "parallel", "arbitrary")),
    )(a, b)
    return y, stats


# ----------------------------------------------------------------------------
# Kernel: direct (im2col-free) 3x3 stride-1 conv + fused BN statistics
# ----------------------------------------------------------------------------
def _make_conv3x3_kernel(OW, W8, TMrow):
    Lwin = TMrow + 2 * W8 + 8
    Lshift = TMrow + 2 * W8

    def kernel(x_ref, w_ref, o_ref, s_ref, acc_ref):
        base = pl.multiple_of(pl.program_id(1) * TMrow, W8)
        # One aligned dynamic window load per tile; kw shifts are static value slices
        # (2 unaligned relayouts per tile instead of 6), kh slices are 8-aligned.
        xwin = x_ref[0, pl.ds(base, Lwin), :]
        first = True
        for kw in range(3):
            xs = xwin[kw:kw + Lshift]
            for kh in range(3):
                lhs = xs[kh * W8:kh * W8 + TMrow]
                d = jnp.dot(lhs, w_ref[kh, kw],
                            preferred_element_type=jnp.float32)
                if first:
                    acc_ref[...] = d
                    first = False
                else:
                    acc_ref[...] += d
        acc = acc_ref[...]
        o_ref[0] = acc.astype(o_ref.dtype)
        # Mask the padded (junk) output columns out of the BN statistics.
        col = jax.lax.broadcasted_iota(jnp.int32, (TMrow, 1), 0) % W8
        yv = jnp.where(col < OW, acc, 0.0)
        s_ref[0, 0, 0:1, :] = jnp.sum(yv, axis=0, keepdims=True)
        s_ref[0, 0, 1:2, :] = jnp.sum(yv * yv, axis=0, keepdims=True)

    return kernel


def conv3x3_s1_direct(x, w):
    """3x3 / stride-1 / pad-1 conv without im2col (bf16 MXU, f32 accumulation).

    The zero-padded input is flattened per sample to rows of length W8 (>= W+2, multiple
    of 8); each of the 9 taps is a shifted window of that flat array.  Per-channel
    sum / sum-of-squares over the valid positions are emitted for train-mode BatchNorm.
    """
    N, H, W, Cin = x.shape
    Cout = w.shape[3]
    OH, OW = H, W
    W8 = _round_up(OW + 2, 8)
    Mo = OH * W8
    Lin = (OH + 2) * W8 + 8                 # extra zero rows cover tap overreach
    TMrow, nr = _pick_row_tile(OH, W8)
    TCo = min(Cout, 256)
    if nr * (Cout // TCo) < 2 and Cout > 128:
        TCo = 128

    xb = x.astype(jnp.bfloat16)
    xp = jnp.pad(xb, ((0, 0), (1, 1), (1, W8 - OW - 1), (0, 0)))
    xf = xp.reshape(N, (OH + 2) * W8, Cin)
    xf = jnp.pad(xf, ((0, 0), (0, Lin - (OH + 2) * W8), (0, 0)))
    wb = w.astype(jnp.bfloat16)

    yf, stats = pl.pallas_call(
        _make_conv3x3_kernel(OW, W8, TMrow),
        out_shape=(jax.ShapeDtypeStruct((N, Mo, Cout), jnp.bfloat16),
                   jax.ShapeDtypeStruct((N, nr, 2, Cout), jnp.float32)),
        grid_spec=pltpu.PrefetchScalarGridSpec(
            num_scalar_prefetch=0,
            grid=(N, nr, Cout // TCo),
            in_specs=[pl.BlockSpec((1, Lin, Cin), lambda n, r, j: (n, 0, 0)),
                      pl.BlockSpec((3, 3, Cin, TCo),
                                   lambda n, r, j: (0, 0, 0, j))],
            out_specs=(pl.BlockSpec((1, TMrow, TCo), lambda n, r, j: (n, r, j)),
                       pl.BlockSpec((1, 1, 2, TCo),
                                    lambda n, r, j: (n, r, 0, j))),
            scratch_shapes=[pltpu.VMEM((TMrow, TCo), jnp.float32)]),
        compiler_params=pltpu.CompilerParams(
            dimension_semantics=("parallel", "parallel", "parallel")),
    )(xf, wb)
    y = yf.reshape(N, OH, W8, Cout)[:, :, :OW, :]
    return y, jnp.sum(stats, axis=(0, 1))


# ----------------------------------------------------------------------------
# Kernel: gridded BatchNorm apply (+ residual with optional fused BN affine, + ReLU)
# ----------------------------------------------------------------------------
def _make_bn_kernel(inv_count, eps, relu, res_mode):
    def affine(s, g, b):
        mean = s[0:1, :] * inv_count
        var = jnp.maximum(s[1:2, :] * inv_count - mean * mean, 0.0)
        scale = g * jax.lax.rsqrt(var + eps)
        shift = b - mean * scale
        return scale, shift

    if res_mode == 0:
        def kernel(y_ref, s_ref, g_ref, b_ref, o_ref):
            scale, shift = affine(s_ref[...], g_ref[...], b_ref[...])
            out = y_ref[...].astype(jnp.float32) * scale + shift
            if relu:
                out = jnp.maximum(out, 0.0)
            o_ref[...] = out.astype(o_ref.dtype)
    elif res_mode == 1:
        def kernel(y_ref, s_ref, g_ref, b_ref, r_ref, o_ref):
            scale, shift = affine(s_ref[...], g_ref[...], b_ref[...])
            out = y_ref[...].astype(jnp.float32) * scale + shift
            out = out + r_ref[...].astype(jnp.float32)
            if relu:
                out = jnp.maximum(out, 0.0)
            o_ref[...] = out.astype(o_ref.dtype)
    else:
        def kernel(y_ref, s_ref, g_ref, b_ref, r_ref, sd_ref, gd_ref, bd_ref,
                   o_ref):
            scale, shift = affine(s_ref[...], g_ref[...], b_ref[...])
            scale_d, shift_d = affine(sd_ref[...], gd_ref[...], bd_ref[...])
            out = y_ref[...].astype(jnp.float32) * scale + shift
            out = out + (r_ref[...].astype(jnp.float32) * scale_d + shift_d)
            if relu:
                out = jnp.maximum(out, 0.0)
            o_ref[...] = out.astype(o_ref.dtype)
    return kernel


def bn_apply(y, sums, gamma, beta, *, count, relu,
             residual=None, residual_bn=None, eps=1e-5):
    """Train-mode BatchNorm [+ residual, optionally with its own BN affine] [+ ReLU].

    Stores bf16.  For C == 64 two rows are packed into the 128-wide lane dim so this
    memory-bound pass uses full-width, unmasked stores.
    """
    M, C = y.shape
    pack = (C == 64 and M % 2 == 0)
    if pack:
        Cp, Mp_ = 128, M // 2
        tile2 = lambda p: jnp.concatenate([p, p], axis=-1)
        y = y.reshape(Mp_, Cp)
        sums = tile2(sums)
        gamma, beta = tile2(gamma), tile2(beta)
        if residual is not None:
            residual = residual.reshape(Mp_, Cp)
        if residual_bn is not None:
            sd, gd, bd = residual_bn
            residual_bn = (tile2(sd), tile2(gd), tile2(bd))
    else:
        Cp, Mp_ = C, M

    res_mode = 0
    if residual is not None:
        res_mode = 2 if residual_bn is not None else 1

    bytes_per_row = 2 * Cp
    target = max(256, (1 << 20) // bytes_per_row)     # ~1 MiB blocks
    half = max(16, _round_up(_cdiv(Mp_, 2), 16))       # but keep >=2 programs
    TMB = min(_round_up(target, 16), half)

    in_specs = [pl.BlockSpec((TMB, Cp), lambda i: (i, 0)),
                pl.BlockSpec((2, Cp), lambda i: (0, 0)),
                pl.BlockSpec((1, Cp), lambda i: (0, 0)),
                pl.BlockSpec((1, Cp), lambda i: (0, 0))]
    args = [y, sums, gamma.reshape(1, Cp), beta.reshape(1, Cp)]
    if res_mode >= 1:
        in_specs.append(pl.BlockSpec((TMB, Cp), lambda i: (i, 0)))
        args.append(residual)
    if res_mode == 2:
        sd, gd, bd = residual_bn
        in_specs += [pl.BlockSpec((2, Cp), lambda i: (0, 0)),
                     pl.BlockSpec((1, Cp), lambda i: (0, 0)),
                     pl.BlockSpec((1, Cp), lambda i: (0, 0))]
        args += [sd, gd.reshape(1, Cp), bd.reshape(1, Cp)]

    out = pl.pallas_call(
        _make_bn_kernel(1.0 / float(count), eps, relu, res_mode),
        out_shape=jax.ShapeDtypeStruct((Mp_, Cp), jnp.bfloat16),
        grid_spec=pltpu.PrefetchScalarGridSpec(
            num_scalar_prefetch=0,
            grid=(pl.cdiv(Mp_, TMB),),
            in_specs=in_specs,
            out_specs=pl.BlockSpec((TMB, Cp), lambda i: (i, 0))),
        compiler_params=pltpu.CompilerParams(
            dimension_semantics=("parallel",)),
    )(*args)
    if pack:
        out = out.reshape(M, C)
    return out


# ----------------------------------------------------------------------------
# Kernel: MaxPool2d(3, stride=2, padding=1) via parity-phase decomposition (row-tiled)
# ----------------------------------------------------------------------------
def _make_maxpool_kernel(W8, TMrow):
    offs = ((0, 1, W8, W8 + 1), (0, W8), (0, 1), (0,))
    Lwin = TMrow + W8 + 8

    def kernel(p00_ref, p01_ref, p10_ref, p11_ref, o_ref):
        base = pl.multiple_of(pl.program_id(1) * TMrow, W8)
        refs = (p00_ref, p01_ref, p10_ref, p11_ref)
        r = None
        for ref, offsets in zip(refs, offs):
            win = ref[0, pl.ds(base, Lwin), :]
            for off in offsets:
                v = win[off:off + TMrow]
                r = v if r is None else jnp.maximum(r, v)
        o_ref[0] = r

    return kernel


def maxpool_3x3_s2(x):
    N, H, W, C = x.shape
    OH = (H + 2 - 3) // 2 + 1
    OW = (W + 2 - 3) // 2 + 1
    W8 = _round_up(OW + 1, 8)
    Mo = OH * W8
    Lin = (OH + 1) * W8 + 8
    TMrow, nr = _pick_row_tile(OH, W8)

    xb = x.astype(jnp.bfloat16)
    xp = jnp.pad(xb, ((0, 0), (1, 1), (1, 1), (0, 0)),
                 constant_values=-jnp.inf)
    phases = []
    for a in (0, 1):
        for b in (0, 1):
            ph = xp[:, a::2, b::2, :][:, :OH + 1, :OW + 1, :]
            ph = jnp.pad(ph, ((0, 0), (0, 0), (0, W8 - (OW + 1)), (0, 0)))
            ph = ph.reshape(N, (OH + 1) * W8, C)
            ph = jnp.pad(ph, ((0, 0), (0, Lin - (OH + 1) * W8), (0, 0)))
            phases.append(ph)

    yf = pl.pallas_call(
        _make_maxpool_kernel(W8, TMrow),
        out_shape=jax.ShapeDtypeStruct((N, Mo, C), jnp.bfloat16),
        grid_spec=pltpu.PrefetchScalarGridSpec(
            num_scalar_prefetch=0, grid=(N, nr),
            in_specs=[pl.BlockSpec((1, Lin, C), lambda n, r: (n, 0, 0))] * 4,
            out_specs=pl.BlockSpec((1, TMrow, C), lambda n, r: (n, r, 0))),
        compiler_params=pltpu.CompilerParams(
            dimension_semantics=("parallel", "parallel")),
    )(*phases)
    return yf.reshape(N, OH, W8, C)[:, :, :OW, :]


# ----------------------------------------------------------------------------
# im2col (bf16, JAX glue) for the few strided convs (7x7 stem, 3x3 stride-2)
# ----------------------------------------------------------------------------
def _im2col(x, ksize, stride, padding):
    N, H, W, Cin = x.shape
    OH = (H + 2 * padding - ksize) // stride + 1
    OW = (W + 2 * padding - ksize) // stride + 1
    xp = jnp.pad(x, ((0, 0), (padding, padding), (padding, padding), (0, 0)))
    cols = []
    for kh in range(ksize):
        for kw in range(ksize):
            cols.append(xp[:, kh:kh + stride * (OH - 1) + 1:stride,
                           kw:kw + stride * (OW - 1) + 1:stride, :])
    patches = jnp.concatenate(cols, axis=-1)
    return patches.reshape(N * OH * OW, ksize * ksize * Cin), (N, OH, OW)


# ----------------------------------------------------------------------------
# Conv + BN wrappers
# ----------------------------------------------------------------------------
def conv_gemm_raw(x, w, *, stride, padding):
    """Conv via GEMM (1x1 or im2col).  Returns (y2d bf16 (M,Cout), sums, (N,OH,OW))."""
    ksize = w.shape[0]
    cin = x.shape[-1]
    cout = w.shape[3]
    xb = x.astype(jnp.bfloat16)
    if ksize == 1:
        xs = xb[:, ::stride, ::stride, :] if stride > 1 else xb
        N, OH, OW, _ = xs.shape
        a = xs.reshape(N * OH * OW, cin)
    else:
        a, (N, OH, OW) = _im2col(xb, ksize, stride, padding)
    wm = w.reshape(ksize * ksize * cin, cout)
    m = N * OH * OW
    y_pad, stats = matmul_stats(a, wm)
    return y_pad[:m], jnp.sum(stats, axis=0), (N, OH, OW)


def conv_bn_gemm(x, w, gamma, beta, *, stride, padding, relu):
    y2d, sums, (N, OH, OW) = conv_gemm_raw(x, w, stride=stride, padding=padding)
    cout = w.shape[3]
    out = bn_apply(y2d, sums, gamma, beta, count=N * OH * OW, relu=relu)
    return out.reshape(N, OH, OW, cout)


def conv3x3_bn(x, w, gamma, beta, *, relu):
    y4, sums = conv3x3_s1_direct(x, w)
    N, OH, OW, cout = y4.shape
    m = N * OH * OW
    out = bn_apply(y4.reshape(m, cout), sums, gamma, beta, count=m, relu=relu)
    return out.reshape(N, OH, OW, cout)


# ----------------------------------------------------------------------------
# Model blocks
# ----------------------------------------------------------------------------
@jax.jit
def stem_fwd(x, w, g, b):
    out = conv_bn_gemm(x, w, g, b, stride=2, padding=3, relu=True)
    return maxpool_3x3_s2(out)


@functools.partial(jax.jit, static_argnames=("stride",))
def residual_block_fwd(x, bp, *, stride):
    if stride == 1:
        out1 = conv3x3_bn(x, bp["w1"], bp["g1"], bp["b1"], relu=True)
    else:
        out1 = conv_bn_gemm(x, bp["w1"], bp["g1"], bp["b1"],
                            stride=stride, padding=1, relu=True)

    y4, sums2 = conv3x3_s1_direct(out1, bp["w2"])
    N, OH, OW, cout = y4.shape
    m = N * OH * OW
    y2d = y4.reshape(m, cout)

    if "wd" in bp:
        # Downsample branch: raw 1x1 conv; its BN affine is fused into the same
        # elementwise pass as the main BN + residual add + ReLU.
        res2d, sums_d, _ = conv_gemm_raw(x, bp["wd"], stride=stride, padding=0)
        out = bn_apply(y2d, sums2, bp["g2"], bp["b2"], count=m, relu=True,
                       residual=res2d,
                       residual_bn=(sums_d, bp["gd"], bp["bd"]))
    else:
        out = bn_apply(y2d, sums2, bp["g2"], bp["b2"], count=m, relu=True,
                       residual=x.reshape(m, cout))
    return out.reshape(N, OH, OW, cout)


def _make_head_kernel(inv_hw):
    def kernel(x_ref, w_ref, b_ref, o_ref):
        xv = x_ref[0].astype(jnp.float32)
        avg = jnp.sum(xv, axis=0, keepdims=True) * inv_hw
        o_ref[...] = (jnp.dot(avg, w_ref[...],
                              preferred_element_type=jnp.float32)
                      + b_ref[...])
    return kernel


@jax.jit
def head_fwd(x, fc_w, fc_b):
    """AvgPool2d(7) fused with Linear(512, num_classes) (+ bias)."""
    N, H, W, C = x.shape
    nc = fc_w.shape[1]
    xr = x.reshape(N, H * W, C)
    return pl.pallas_call(
        _make_head_kernel(1.0 / float(H * W)),
        out_shape=jax.ShapeDtypeStruct((N, nc), jnp.float32),
        grid_spec=pltpu.PrefetchScalarGridSpec(
            num_scalar_prefetch=0, grid=(N,),
            in_specs=[pl.BlockSpec((1, H * W, C), lambda n: (n, 0, 0)),
                      pl.BlockSpec((C, nc), lambda n: (0, 0)),
                      pl.BlockSpec((1, nc), lambda n: (0, 0))],
            out_specs=pl.BlockSpec((1, nc), lambda n: (n, 0))),
        compiler_params=pltpu.CompilerParams(
            dimension_semantics=("parallel",)),
    )(xr, fc_w, fc_b.reshape(1, nc))


def resnet_forward(params, x_nchw):
    x = jnp.transpose(x_nchw, (0, 2, 3, 1)).astype(jnp.float32)   # NCHW -> NHWC
    x = stem_fwd(x, params["stem"]["w"], params["stem"]["g"], params["stem"]["b"])
    layer_strides = (1, 2, 2, 2)
    for layer, stride0 in zip(params["layers"], layer_strides):
        for bi, bp in enumerate(layer):
            x = residual_block_fwd(x, bp, stride=stride0 if bi == 0 else 1)
    return head_fwd(x, params["fc_w"], params["fc_b"])


# ----------------------------------------------------------------------------
# Deterministic parameter init (shapes match BaselineResnet.__init__)
# ----------------------------------------------------------------------------
def init_params(key, blocks=(3, 4, 6, 3), num_classes=2):
    counter = [0]

    def nk():
        counter[0] += 1
        return jax.random.fold_in(key, counter[0])

    def conv_w(cin, cout, ksize):
        fan_in = cin * ksize * ksize
        return jax.random.normal(nk(), (ksize, ksize, cin, cout),
                                 jnp.float32) * jnp.sqrt(2.0 / fan_in)

    def bn(c):
        return jnp.ones((c,), jnp.float32), jnp.zeros((c,), jnp.float32)

    params = {"stem": {}}
    params["stem"]["w"] = conv_w(3, 64, 7)
    params["stem"]["g"], params["stem"]["b"] = bn(64)

    layers = []
    in_c = 64
    cfg = [(64, 1), (128, 2), (256, 2), (512, 2)]
    for (out_c, _stride), nblk in zip(cfg, blocks):
        layer = []
        for bi in range(nblk):
            cin = in_c if bi == 0 else out_c
            bp = {"w1": conv_w(cin, out_c, 3)}
            bp["g1"], bp["b1"] = bn(out_c)
            bp["w2"] = conv_w(out_c, out_c, 3)
            bp["g2"], bp["b2"] = bn(out_c)
            if bi == 0:
                # NOTE: `_make_layer` always attaches a downsample to the first block
                # (the `self.inChannel != -1` condition is always true).
                bp["wd"] = conv_w(cin, out_c, 1)
                bp["gd"], bp["bd"] = bn(out_c)
            layer.append(bp)
        layers.append(layer)
        in_c = out_c
    params["layers"] = layers

    limit = 1.0 / jnp.sqrt(512.0)
    params["fc_w"] = jax.random.uniform(nk(), (512, num_classes),
                                        jnp.float32, -limit, limit)
    params["fc_b"] = jax.random.uniform(nk(), (num_classes,),
                                        jnp.float32, -limit, limit)
    return params


# ----------------------------------------------------------------------------
if __name__ == "__main__":
    key = jax.random.PRNGKey(0)
    # The architecture (AvgPool2d(7) after 5 stride-2 stages feeding Linear(512, .))
    # requires 224x224 inputs; batch is kept at 1 to stay small.
    x = jax.random.normal(key, (1, 3, 224, 224), jnp.float32)

    params = init_params(jax.random.PRNGKey(0))
    out = resnet_forward(params, x)
    out = jax.block_until_ready(out)

    assert out.shape == (1, 2), out.shape
    assert bool(jnp.all(jnp.isfinite(out)))
    print("KERNEL_OK")
</pallas_src>

<mosaic_0001>
module attributes {stable_mosaic.version = 11 : i64} {
  func.func @_gemm_stats_kernel(%arg0: i32, %arg1: i32, %arg2: i32, %arg3: memref<256x256xbf16, #tpu.memory_space<vmem>>, %arg4: memref<256x64xbf16, #tpu.memory_space<vmem>>, %arg5: memref<256x64xbf16, #tpu.memory_space<vmem>>, %arg6: memref<1x2x64xf32, #tpu.memory_space<vmem>>, %arg7: memref<256x64xf32, #tpu.memory_space<vmem>>) attributes {dimension_semantics = [#tpu.dimension_semantics<parallel>, #tpu.dimension_semantics<parallel>, #tpu.dimension_semantics<arbitrary>], iteration_bounds = array<i64: 49, 1, 1>, scalar_prefetch = 0 : i64, scratch_operands = 1 : i64, tpu.core_type = #tpu.core_type<tc>, window_params = [{transform_indices = @transform_0, window_bounds = array<i64: 256, 256>}, {transform_indices = @transform_1, window_bounds = array<i64: 256, 64>}, {transform_indices = @transform_2, window_bounds = array<i64: 256, 64>}, {transform_indices = @transform_3, window_bounds = array<i64: 1, 2, 64>}]} {
    %c0_i32 = arith.constant 0 : i32
    %0 = arith.cmpi eq, %arg2, %c0_i32 : i32
    %1 = arith.extui %0 : i1 to i32
    %c0_i32_0 = arith.constant 0 : i32
    %2 = arith.cmpi ne, %1, %c0_i32_0 : i32
    scf.if %2 {
      %cst_10 = arith.constant 0.000000e+00 : f32
      %12 = vector.broadcast %cst_10 : f32 to vector<256x64xf32>
      %c0_11 = arith.constant 0 : index
      %c0_12 = arith.constant 0 : index
      %13 = vector.load %arg7[%c0_11, %c0_12] : memref<256x64xf32, #tpu.memory_space<vmem>>, vector<256x64xf32>
      tpu.vector_store %arg7[%c0_11, %c0_12], %12 {strides = array<i32>} : memref<256x64xf32, #tpu.memory_space<vmem>>, vector<256x64xf32>,
    } else {
    }
    %c0 = arith.constant 0 : index
    %c0_1 = arith.constant 0 : index
    %3 = vector.load %arg7[%c0, %c0_1] : memref<256x64xf32, #tpu.memory_space<vmem>>, vector<256x64xf32>
    %c0_2 = arith.constant 0 : index
    %c0_3 = arith.constant 0 : index
    %4 = vector.load %arg3[%c0_2, %c0_3] : memref<256x256xbf16, #tpu.memory_space<vmem>>, vector<256x256xbf16>
    %c0_4 = arith.constant 0 : index
    %c0_5 = arith.constant 0 : index
    %5 = vector.load %arg4[%c0_4, %c0_5] : memref<256x64xbf16, #tpu.memory_space<vmem>>, vector<256x64xbf16>
    %cst = arith.constant dense<0.000000e+00> : vector<256x64xf32>
    %6 = tpu.matmul %4, %5, %cst {dimension_numbers = #tpu.dot_dimension_numbers<[1], [0], [0], [1], [0, 0, 1, 1], [], []>} : vector<256x256xbf16>, vector<256x64xbf16>, vector<256x64xf32> -> vector<256x64xf32>
    %7 = arith.addf %3, %6 : vector<256x64xf32>
    %c0_6 = arith.constant 0 : index
    %c0_7 = arith.constant 0 : index
    %8 = vector.load %arg7[%c0_6, %c0_7] : memref<256x64xf32, #tpu.memory_space<vmem>>, vector<256x64xf32>
    tpu.vector_store %arg7[%c0_6, %c0_7], %7 {strides = array<i32>} : memref<256x64xf32, #tpu.memory_space<vmem>>, vector<256x64xf32>,
    %c0_i32_8 = arith.constant 0 : i32
    %9 = arith.cmpi eq, %arg2, %c0_i32_8 : i32
    %10 = arith.extui %9 : i1 to i32
    %c0_i32_9 = arith.constant 0 : i32
    %11 = arith.cmpi ne, %10, %c0_i32_9 : i32
    scf.if %11 {
      %c0_10 = arith.constant 0 : index
      %c0_11 = arith.constant 0 : index
      %12 = vector.load %arg7[%c0_10, %c0_11] : memref<256x64xf32, #tpu.memory_space<vmem>>, vector<256x64xf32>
      %13 = arith.truncf %12 : vector<256x64xf32> to vector<256x64xbf16>
      %c0_12 = arith.constant 0 : index
      %c0_13 = arith.constant 0 : index
      %14 = vector.load %arg5[%c0_12, %c0_13] : memref<256x64xbf16, #tpu.memory_space<vmem>>, vector<256x64xbf16>
      tpu.vector_store %arg5[%c0_12, %c0_13], %13 {strides = array<i32>} : memref<256x64xbf16, #tpu.memory_space<vmem>>, vector<256x64xbf16>,
      %cst_14 = arith.constant dense<0.000000e+00> : vector<64xf32>
      %15 = vector.multi_reduction <add>, %12, %cst_14 [0] : vector<256x64xf32> to vector<64xf32>
      %16 = vector.shape_cast %15 : vector<64xf32> to vector<1x64xf32>
      %c0_15 = arith.constant 0 : index
      %c0_16 = arith.constant 0 : index
      %c0_17 = arith.constant 0 : index
      %17 = vector.load %arg6[%c0_15, %c0_16, %c0_17] : memref<1x2x64xf32, #tpu.memory_space<vmem>>, vector<1x1x64xf32>
      %18 = vector.shape_cast %17 : vector<1x1x64xf32> to vector<1x64xf32>
      %19 = vector.shape_cast %16 : vector<1x64xf32> to vector<1x1x64xf32>
      tpu.vector_store %arg6[%c0_15, %c0_16, %c0_17], %19 {strides = array<i32>} : memref<1x2x64xf32, #tpu.memory_space<vmem>>, vector<1x1x64xf32>,
      %20 = arith.mulf %12, %12 : vector<256x64xf32>
      %cst_18 = arith.constant dense<0.000000e+00> : vector<64xf32>
      %21 = vector.multi_reduction <add>, %20, %cst_18 [0] : vector<256x64xf32> to vector<64xf32>
      %22 = vector.shape_cast %21 : vector<64xf32> to vector<1x64xf32>
      %c0_19 = arith.constant 0 : index
      %c1 = arith.constant 1 : index
      %c0_20 = arith.constant 0 : index
      %23 = vector.load %arg6[%c0_19, %c1, %c0_20] : memref<1x2x64xf32, #tpu.memory_space<vmem>>, vector<1x1x64xf32>
      %24 = vector.shape_cast %23 : vector<1x1x64xf32> to vector<1x64xf32>
      %25 = vector.shape_cast %22 : vector<1x64xf32> to vector<1x1x64xf32>
      tpu.vector_store %arg6[%c0_19, %c1, %c0_20], %25 {strides = array<i32>} : memref<1x2x64xf32, #tpu.memory_space<vmem>>, vector<1x1x64xf32>,
    } else {
    }
    return
  }
  func.func @transform_0(%arg0: i32, %arg1: i32, %arg2: i32) -> (i32, i32) {
    %c0_i32 = arith.constant 0 : i32
    return %arg0, %arg2 : i32, i32
  }
  func.func @transform_1(%arg0: i32, %arg1: i32, %arg2: i32) -> (i32, i32) {
    %c0_i32 = arith.constant 0 : i32
    return %arg2, %arg1 : i32, i32
  }
  func.func @transform_2(%arg0: i32, %arg1: i32, %arg2: i32) -> (i32, i32) {
    %c0_i32 = arith.constant 0 : i32
    return %arg0, %arg1 : i32, i32
  }
  func.func @transform_3(%arg0: i32, %arg1: i32, %arg2: i32) -> (i32, i32, i32) {
    %c0_i32 = arith.constant 0 : i32
    %c0_i32_0 = arith.constant 0 : i32
    return %arg0, %c0_i32, %arg1 : i32, i32, i32
  }
}

module attributes {stable_mosaic.version = 11 : i64} {
  func.func @kernel(%arg0: i32, %arg1: memref<3136x128xbf16, #tpu.memory_space<vmem>>, %arg2: memref<2x128xf32, #tpu.memory_space<vmem>>, %arg3: memref<1x128xf32, #tpu.memory_space<vmem>>, %arg4: memref<1x128xf32, #tpu.memory_space<vmem>>, %arg5: memref<3136x128xbf16, #tpu.memory_space<vmem>>) attributes {dimension_semantics = [#tpu.dimension_semantics<parallel>], iteration_bounds = array<i64: 2>, scalar_prefetch = 0 : i64, scratch_operands = 0 : i64, tpu.core_type = #tpu.core_type<tc>, window_params = [{transform_indices = @transform_0, window_bounds = array<i64: 3136, 128>}, {pipeline_mode = #tpu.pipeline_mode<synchronous>, transform_indices = @transform_1, window_bounds = array<i64: 2, 128>}, {pipeline_mode = #tpu.pipeline_mode<synchronous>, transform_indices = @transform_2, window_bounds = array<i64: 1, 128>}, {pipeline_mode = #tpu.pipeline_mode<synchronous>, transform_indices = @transform_3, window_bounds = array<i64: 1, 128>}, {transform_indices = @transform_4, window_bounds = array<i64: 3136, 128>}]} {
    %c0 = arith.constant 0 : index
    %c0_0 = arith.constant 0 : index
    %0 = vector.load %arg2[%c0, %c0_0] : memref<2x128xf32, #tpu.memory_space<vmem>>, vector<2x128xf32>
    %c0_1 = arith.constant 0 : index
    %c0_2 = arith.constant 0 : index
    %1 = vector.load %arg3[%c0_1, %c0_2] : memref<1x128xf32, #tpu.memory_space<vmem>>, vector<1x128xf32>
    %c0_3 = arith.constant 0 : index
    %c0_4 = arith.constant 0 : index
    %2 = vector.load %arg4[%c0_3, %c0_4] : memref<1x128xf32, #tpu.memory_space<vmem>>, vector<1x128xf32>
    %3 = vector.extract_strided_slice %0 {offsets = [0, 0], sizes = [1, 128], strides = [1, 1]} : vector<2x128xf32> to vector<1x128xf32>
    %cst = arith.constant 7.97193861E-5 : f32
    %4 = vector.broadcast %cst : f32 to vector<1x128xf32>
    %5 = arith.mulf %3, %4 : vector<1x128xf32>
    %6 = vector.extract_strided_slice %0 {offsets = [1, 0], sizes = [1, 128], strides = [1, 1]} : vector<2x128xf32> to vector<1x128xf32>
    %cst_5 = arith.constant 7.97193861E-5 : f32
    %7 = vector.broadcast %cst_5 : f32 to vector<1x128xf32>
    %8 = arith.mulf %6, %7 : vector<1x128xf32>
    %9 = arith.mulf %5, %5 : vector<1x128xf32>
    %10 = arith.subf %8, %9 : vector<1x128xf32>
    %cst_6 = arith.constant 0.000000e+00 : f32
    %11 = vector.broadcast %cst_6 : f32 to vector<1x128xf32>
    %12 = arith.maximumf %10, %11 : vector<1x128xf32>
    %cst_7 = arith.constant 9.99999974E-6 : f32
    %13 = vector.broadcast %cst_7 : f32 to vector<1x128xf32>
    %14 = arith.addf %12, %13 : vector<1x128xf32>
    %15 = math.rsqrt %14 : vector<1x128xf32>
    %16 = arith.mulf %1, %15 : vector<1x128xf32>
    %17 = arith.mulf %5, %16 : vector<1x128xf32>
    %18 = arith.subf %2, %17 : vector<1x128xf32>
    %c0_8 = arith.constant 0 : index
    %c0_9 = arith.constant 0 : index
    %19 = vector.load %arg1[%c0_8, %c0_9] : memref<3136x128xbf16, #tpu.memory_space<vmem>>, vector<3136x128xbf16>
    %20 = arith.extf %19 : vector<3136x128xbf16> to vector<3136x128xf32>
    %21 = vector.broadcast %16 : vector<1x128xf32> to vector<3136x128xf32>
    %22 = arith.mulf %20, %21 : vector<3136x128xf32>
    %23 = vector.broadcast %18 : vector<1x128xf32> to vector<3136x128xf32>
    %24 = arith.addf %22, %23 : vector<3136x128xf32>
    %cst_10 = arith.constant 0.000000e+00 : f32
    %25 = vector.broadcast %cst_10 : f32 to vector<3136x128xf32>
    %26 = arith.maximumf %24, %25 : vector<3136x128xf32>
    %27 = arith.truncf %26 : vector<3136x128xf32> to vector<3136x128xbf16>
    %c0_11 = arith.constant 0 : index
    %c0_12 = arith.constant 0 : index
    %28 = vector.load %arg5[%c0_11, %c0_12] : memref<3136x128xbf16, #tpu.memory_space<vmem>>, vector<3136x128xbf16>
    tpu.vector_store %arg5[%c0_11, %c0_12], %27 {strides = array<i32>} : memref<3136x128xbf16, #tpu.memory_space<vmem>>, vector<3136x128xbf16>,
    return
  }
  func.func @transform_0(%arg0: i32) -> (i32, i32) {
    %c0_i32 = arith.constant 0 : i32
    %c0_i32_0 = arith.constant 0 : i32
    return %arg0, %c0_i32 : i32, i32
  }
  func.func @transform_1(%arg0: i32) -> (i32, i32) {
    %c0_i32 = arith.constant 0 : i32
    %c0_i32_0 = arith.constant 0 : i32
    %c0_i32_1 = arith.constant 0 : i32
    return %c0_i32, %c0_i32_0 : i32, i32
  }
  func.func @transform_2(%arg0: i32) -> (i32, i32) {
    %c0_i32 = arith.constant 0 : i32
    %c0_i32_0 = arith.constant 0 : i32
    %c0_i32_1 = arith.constant 0 : i32
    return %c0_i32, %c0_i32_0 : i32, i32
  }
  func.func @transform_3(%arg0: i32) -> (i32, i32) {
    %c0_i32 = arith.constant 0 : i32
    %c0_i32_0 = arith.constant 0 : i32
    %c0_i32_1 = arith.constant 0 : i32
    return %c0_i32, %c0_i32_0 : i32, i32
  }
  func.func @transform_4(%arg0: i32) -> (i32, i32) {
    %c0_i32 = arith.constant 0 : i32
    %c0_i32_0 = arith.constant 0 : i32
    return %arg0, %c0_i32 : i32, i32
  }
}

module attributes {stable_mosaic.version = 11 : i64} {
  func.func @kernel(%arg0: i32, %arg1: i32, %arg2: memref<1x3656x64xbf16, #tpu.memory_space<vmem>>, %arg3: memref<1x3656x64xbf16, #tpu.memory_space<vmem>>, %arg4: memref<1x3656x64xbf16, #tpu.memory_space<vmem>>, %arg5: memref<1x3656x64xbf16, #tpu.memory_space<vmem>>, %arg6: memref<1x512x64xbf16, #tpu.memory_space<vmem>>) attributes {dimension_semantics = [#tpu.dimension_semantics<parallel>, #tpu.dimension_semantics<parallel>], iteration_bounds = array<i64: 1, 7>, scalar_prefetch = 0 : i64, scratch_operands = 0 : i64, tpu.core_type = #tpu.core_type<tc>, window_params = [{transform_indices = @transform_0, window_bounds = array<i64: 1, 3656, 64>}, {transform_indices = @transform_1, window_bounds = array<i64: 1, 3656, 64>}, {transform_indices = @transform_2, window_bounds = array<i64: 1, 3656, 64>}, {transform_indices = @transform_3, window_bounds = array<i64: 1, 3656, 64>}, {transform_indices = @transform_4, window_bounds = array<i64: 1, 512, 64>}]} {
    %c512_i32 = arith.constant 512 : i32
    %0 = arith.muli %arg1, %c512_i32 : i32
    %1 = tpu.assume_multiple %0, 64 : i32
    %c0 = arith.constant 0 : index
    %2 = arith.index_cast %1 : i32 to index
    %c0_0 = arith.constant 0 : index
    %3 = vector.load %arg2[%c0, %2, %c0_0] : memref<1x3656x64xbf16, #tpu.memory_space<vmem>>, vector<1x584x64xbf16>
    %4 = vector.shape_cast %3 : vector<1x584x64xbf16> to vector<584x64xbf16>
    %5 = vector.extract_strided_slice %4 {offsets = [0, 0], sizes = [512, 64], strides = [1, 1]} : vector<584x64xbf16> to vector<512x64xbf16>
    %6 = vector.extract_strided_slice %4 {offsets = [1, 0], sizes = [512, 64], strides = [1, 1]} : vector<584x64xbf16> to vector<512x64xbf16>
    %7 = arith.maximumf %5, %6 : vector<512x64xbf16>
    %8 = vector.extract_strided_slice %4 {offsets = [64, 0], sizes = [512, 64], strides = [1, 1]} : vector<584x64xbf16> to vector<512x64xbf16>
    %9 = arith.maximumf %7, %8 : vector<512x64xbf16>
    %10 = vector.extract_strided_slice %4 {offsets = [65, 0], sizes = [512, 64], strides = [1, 1]} : vector<584x64xbf16> to vector<512x64xbf16>
    %11 = arith.maximumf %9, %10 : vector<512x64xbf16>
    %c0_1 = arith.constant 0 : index
    %12 = arith.index_cast %1 : i32 to index
    %c0_2 = arith.constant 0 : index
    %13 = vector.load %arg3[%c0_1, %12, %c0_2] : memref<1x3656x64xbf16, #tpu.memory_space<vmem>>, vector<1x584x64xbf16>
    %14 = vector.shape_cast %13 : vector<1x584x64xbf16> to vector<584x64xbf16>
    %15 = vector.extract_strided_slice %14 {offsets = [0, 0], sizes = [512, 64], strides = [1, 1]} : vector<584x64xbf16> to vector<512x64xbf16>
    %16 = arith.maximumf %11, %15 : vector<512x64xbf16>
    %17 = vector.extract_strided_slice %14 {offsets = [64, 0], sizes = [512, 64], strides = [1, 1]} : vector<584x64xbf16> to vector<512x64xbf16>
    %18 = arith.maximumf %16, %17 : vector<512x64xbf16>
    %c0_3 = arith.constant 0 : index
    %19 = arith.index_cast %1 : i32 to index
    %c0_4 = arith.constant 0 : index
    %20 = vector.load %arg4[%c0_3, %19, %c0_4] : memref<1x3656x64xbf16, #tpu.memory_space<vmem>>, vector<1x584x64xbf16>
    %21 = vector.shape_cast %20 : vector<1x584x64xbf16> to vector<584x64xbf16>
    %22 = vector.extract_strided_slice %21 {offsets = [0, 0], sizes = [512, 64], strides = [1, 1]} : vector<584x64xbf16> to vector<512x64xbf16>
    %23 = arith.maximumf %18, %22 : vector<512x64xbf16>
    %24 = vector.extract_strided_slice %21 {offsets = [1, 0], sizes = [512, 64], strides = [1, 1]} : vector<584x64xbf16> to vector<512x64xbf16>
    %25 = arith.maximumf %23, %24 : vector<512x64xbf16>
    %c0_5 = arith.constant 0 : index
    %26 = arith.index_cast %1 : i32 to index
    %c0_6 = arith.constant 0 : index
    %27 = vector.load %arg5[%c0_5, %26, %c0_6] : memref<1x3656x64xbf16, #tpu.memory_space<vmem>>, vector<1x584x64xbf16>
    %28 = vector.shape_cast %27 : vector<1x584x64xbf16> to vector<584x64xbf16>
    %29 = vector.extract_strided_slice %28 {offsets = [0, 0], sizes = [512, 64], strides = [1, 1]} : vector<584x64xbf16> to vector<512x64xbf16>
    %30 = arith.maximumf %25, %29 : vector<512x64xbf16>
    %c0_7 = arith.constant 0 : index
    %c0_8 = arith.constant 0 : index
    %c0_9 = arith.constant 0 : index
    %31 = vector.load %arg6[%c0_7, %c0_8, %c0_9] : memref<1x512x64xbf16, #tpu.memory_space<vmem>>, vector<1x512x64xbf16>
    %32 = vector.shape_cast %31 : vector<1x512x64xbf16> to vector<512x64xbf16>
    %33 = vector.shape_cast %30 : vector<512x64xbf16> to vector<1x512x64xbf16>
    tpu.vector_store %arg6[%c0_7, %c0_8, %c0_9], %33 {strides = array<i32>} : memref<1x512x64xbf16, #tpu.memory_space<vmem>>, vector<1x512x64xbf16>,
    return
  }
  func.func @transform_0(%arg0: i32, %arg1: i32) -> (i32, i32, i32) {
    %c0_i32 = arith.constant 0 : i32
    %c0_i32_0 = arith.constant 0 : i32
    %c0_i32_1 = arith.constant 0 : i32
    return %arg0, %c0_i32, %c0_i32_0 : i32, i32, i32
  }
  func.func @transform_1(%arg0: i32, %arg1: i32) -> (i32, i32, i32) {
    %c0_i32 = arith.constant 0 : i32
    %c0_i32_0 = arith.constant 0 : i32
    %c0_i32_1 = arith.constant 0 : i32
    return %arg0, %c0_i32, %c0_i32_0 : i32, i32, i32
  }
  func.func @transform_2(%arg0: i32, %arg1: i32) -> (i32, i32, i32) {
    %c0_i32 = arith.constant 0 : i32
    %c0_i32_0 = arith.constant 0 : i32
    %c0_i32_1 = arith.constant 0 : i32
    return %arg0, %c0_i32, %c0_i32_0 : i32, i32, i32
  }
  func.func @transform_3(%arg0: i32, %arg1: i32) -> (i32, i32, i32) {
    %c0_i32 = arith.constant 0 : i32
    %c0_i32_0 = arith.constant 0 : i32
    %c0_i32_1 = arith.constant 0 : i32
    return %arg0, %c0_i32, %c0_i32_0 : i32, i32, i32
  }
  func.func @transform_4(%arg0: i32, %arg1: i32) -> (i32, i32, i32) {
    %c0_i32 = arith.constant 0 : i32
    %c0_i32_0 = arith.constant 0 : i32
    return %arg0, %arg1, %c0_i32 : i32, i32, i32
  }
}

</mosaic_0001>

<bundles_post_ra>
// kernel: stem_fwd.3
= control target key start
LH: loop header
LB: loop body
LE: loop exit
PB: predicated region body
PF: predicated region fallthrough
CT: control target
= control target key end

     0   :  { %s1789_s12 = smov 0   ;;  %s1791_s13 = smov 0   ;;  %s2250_s0 = inlined_call_operand.vmem [shape: bf16[12544,256], index: 0, kind: input, shape index: {}]   ;;  %s2251_s1 = inlined_call_operand.vmem [shape: bf16[256,64], index: 1, kind: input, shape index: {}]   ;;  %s2252_s2 = inlined_call_operand.vmem [shape: bf16[12544,64], index: 2, kind: output, shape index: {0}]   ;;  %s2253_s3 = inlined_call_operand.vmem [shape: f32[49,2,64], index: 3, kind: output, shape index: {1}]  }
   0x1   :  { %s1793_s14 = smov 0  }
   0x2 LB: > { %s33_s15 = sadd.s32 1, %s1762_s13  ;;  %p1405_p0 = scmp.ge.s32.totalorder %s1766_s14, 1  ;;  %s1766_s14 = sphi %s1793_s14, %s14_s14   ;;  %s1762_s13 = sphi %s1791_s13, %s2255_s13   ;;  %s1758_s12 = sphi %s1789_s12, %s2254_s12  }
   0x3   : > { %p35_p1 = scmp.ge.s32.totalorder %s33_s15, 49  ;;  %p188_p2 = scmp.lt.s32.totalorder %s1766_s14, 50 }
   0x5   : > { %s2257_s15 = smov (%p35_p1, %s33_s15), 0  ;;  %p189_p3 = pnand %p1405_p0, %p188_p2 }
   0x6   : > { %v1680_v0 = vld [vmem:[%s2251_s1 + $0x40] sm:$0xff] (!%p189_p3)   ;;  %s1406_s18 = sshll.u32 (!%p189_p3), %s1758_s12, 5  ;;  %v1682_v2 = vld [vmem:[%s2251_s1 + $0x48] sm:$0xff] (!%p189_p3)   ;;  %v1684_v4 = vld [vmem:[%s2251_s1 + $0x50] sm:$0xff] (!%p189_p3)   ;;  %vm277_vm0 = vcmask (!%p189_p3), 523264   ;;  %v1768_v48 = vmov (!%p189_p3), 0.0  }
   0x7   : > { %192 = sbr.rel (%p189_p3) target bundleno = 373 (0x175), region = 28  ;;  %v1681_v1 = vld [vmem:[%s2251_s1] sm:$0xff] (!%p189_p3)   ;;  %1527 = vmatprep.subr.bf16.mxu0 (!%p189_p3), %v1680_v0  ;;  %1639 = vmatprep.subr.bf16.mxu1 (!%p189_p3), %v1680_v0  ;;  %v1683_v3 = vld [vmem:[%s2251_s1 + $0x8] sm:$0xff] (!%p189_p3)   ;;  %p237_p4 = scmp.lt.s32.totalorder (!%p189_p3), %s1406_s18, 1567  ;;  %v1685_v5 = vld [vmem:[%s2251_s1 + $0x10] sm:$0xff] (!%p189_p3)   ;;  %278 = vst.msk [vmem:[#allocation2] sm:$0xff] (!%p189_p3), %vm277_vm0, %v1768_v48 }
   0x8   : > { %1528 = vmatpush3.bf16.msra.mxu0 (!%p189_p3), %v1681_v1  ;;  %1647 = vmatpush3.bf16.msra.mxu1 (!%p189_p3), %v1681_v1  ;;  %v1686_v6 = vld [vmem:[%s2251_s1 + $0x58] sm:$0xff] (!%p189_p3)   ;;  %v1688_v8 = vld [vmem:[%s2251_s1 + $0x60] sm:$0xff] (!%p189_p3)   ;;  %v1690_v10 = vld [vmem:[%s2251_s1 + $0x68] sm:$0xff] (!%p189_p3)   ;;  %279 = vst.msk [vmem:[#allocation2 + $0x8] sm:$0xff] (!%p189_p3), %vm277_vm0, %v1768_v48  ;;  %vm1051_vm1 = vcmask (!%p189_p3), 519168   ;;  %p265_p5 = scmp.lt.s32.totalorder (!%p189_p3), %s1758_s12, 48 }
   0x9   : > { %1529 = vmatprep.subr.bf16.mxu0 (!%p189_p3), %v1682_v2  ;;  %1640 = vmatprep.subr.bf16.mxu1 (!%p189_p3), %v1682_v2  ;;  %v1687_v7 = vld [vmem:[%s2251_s1 + $0x18] sm:$0xff] (!%p189_p3)   ;;  %v1689_v9 = vld [vmem:[%s2251_s1 + $0x20] sm:$0xff] (!%p189_p3)   ;;  %v1691_v12 = vld [vmem:[%s2251_s1 + $0x28] sm:$0xff] (!%p189_p3)   ;;  %280 = vst.msk [vmem:[#allocation2 + $0x10] sm:$0xff] (!%p189_p3), %vm277_vm0, %v1768_v48  ;;  %vm1153_vm2 = vcmask (!%p189_p3), 516096  }
   0xa   : > { %v1692_v13 = vld [vmem:[%s2251_s1 + $0x70] sm:$0xff] (!%p189_p3)   ;;  %v1694_v16 = vld [vmem:[%s2251_s1 + $0x78] sm:$0xff] (!%p189_p3)   ;;  %281 = vst.msk [vmem:[#allocation2 + $0x18] sm:$0xff] (!%p189_p3), %vm277_vm0, %v1768_v48  ;;  %282 = vst.msk [vmem:[#allocation2 + $0x20] sm:$0xff] (!%p189_p3), %vm277_vm0, %v1768_v48 }
   0xb   : > { %v1693_v15 = vld [vmem:[%s2251_s1 + $0x30] sm:$0xff] (!%p189_p3)   ;;  %v1695_v17 = vld [vmem:[%s2251_s1 + $0x38] sm:$0xff] (!%p189_p3)   ;;  %283 = vst.msk [vmem:[#allocation2 + $0x28] sm:$0xff] (!%p189_p3), %vm277_vm0, %v1768_v48  ;;  %284 = vst.msk [vmem:[#allocation2 + $0x30] sm:$0xff] (!%p189_p3), %vm277_vm0, %v1768_v48 }
   0xc   : > { %1530 = vmatpush3.bf16.msra.mxu0 (!%p189_p3), %v1683_v3  ;;  %1648 = vmatpush3.bf16.msra.mxu1 (!%p189_p3), %v1683_v3  ;;  %285 = vst.msk [vmem:[#allocation2 + $0x38] sm:$0xff] (!%p189_p3), %vm277_vm0, %v1768_v48  ;;  %286 = vst.msk [vmem:[#allocation2 + $0x40] sm:$0xff] (!%p189_p3), %vm277_vm0, %v1768_v48 }
   0xd   : > { %1531 = vmatprep.subr.bf16.mxu0 (!%p189_p3), %v1684_v4  ;;  %1641 = vmatprep.subr.bf16.mxu1 (!%p189_p3), %v1684_v4  ;;  %287 = vst.msk [vmem:[#allocation2 + $0x48] sm:$0xff] (!%p189_p3), %vm277_vm0, %v1768_v48  ;;  %288 = vst.msk [vmem:[#allocation2 + $0x50] sm:$0xff] (!%p189_p3), %vm277_vm0, %v1768_v48 }
   0xe   : > { %s2259_s18 = smov (!%p237_p4, %s1406_s18), 1567  ;;  %289 = vst.msk [vmem:[#allocation2 + $0x58] sm:$0xff] %vm277_vm0, %v1768_v48  ;;  %290 = vst.msk [vmem:[#allocation2 + $0x60] sm:$0xff] %vm277_vm0, %v1768_v48  ;;  %v310_v50 = vld [vmem:[#allocation2] sm:$0xff]  ;;  %s2261_s12 = smov (!%p265_p5, %s1758_s12), 48 }
   0xf   : > { %s1494_s6 = sshll.u32 %s2259_s18, 3  ;;  %291 = vst.msk [vmem:[#allocation2 + $0x68] sm:$0xff] %vm277_vm0, %v1768_v48  ;;  %292 = vst.msk [vmem:[#allocation2 + $0x70] sm:$0xff] %vm277_vm0, %v1768_v48  ;;  %v311_v57 = vld [vmem:[#allocation2 + $0x8] sm:$0xff]  ;;  %s1410_s4 = sshll.u32 %s2259_s18, 2 }
  0x10   : > { %1532 = vmatpush3.bf16.msra.mxu0 %v1685_v5  ;;  %1649 = vmatpush3.bf16.msra.mxu1 %v1685_v5  ;;  %s1843_s11 = scalar_lea.vmem %s2250_s0, %s1494_s6  ;;  %293 = vst.msk [vmem:[#allocation2 + $0x78] sm:$0xff] %vm277_vm0, %v1768_v48  ;;  %294 = vst.msk [vmem:[#allocation2 + $0x80] sm:$0xff] %vm277_vm0, %v1768_v48  ;;  %s1938_s7 = scalar_lea.vmem %s2252_s2, %s1410_s4 }
  0x11   : > { %1533 = vmatprep.subr.bf16.mxu0 %v1686_v6  ;;  %1642 = vmatprep.subr.bf16.mxu1 %v1686_v6  ;;  %v1698_v11 = vld [vmem:[%s1843_s11 + $0x4] ss:$8 sps:$4 sm:$0xff]   ;;  %v1696_v18 = vld [vmem:[%s1843_s11] ss:$8 sps:$4 sm:$0xff]   ;;  %v1699_v19 = vld [vmem:[%s1843_s11 + $0x14] ss:$8 sps:$4 sm:$0xff]  }
  0x12   : > { %694 = vmatprep.mubr.bf16.mxu0 %v1698_v11  ;;  %v1710_v14 = vld [vmem:[%s1843_s11 + $0x84] ss:$8 sps:$4 sm:$0xff]   ;;  %v1708_v20 = vld [vmem:[%s1843_s11 + $0x80] ss:$8 sps:$4 sm:$0xff]   ;;  %v1714_v21 = vld [vmem:[%s1843_s11 + $0x94] ss:$8 sps:$4 sm:$0xff]  }
  0x13   : > { %758 = vmatprep.mubr.bf16.mxu1 %v1710_v14  ;;  %v1701_v22 = vld [vmem:[%s1843_s11 + $0x10] ss:$8 sps:$4 sm:$0xff]   ;;  %v1702_v23 = vld [vmem:[%s1843_s11 + $0x24] ss:$8 sps:$4 sm:$0xff]   ;;  %v1704_v26 = vld [vmem:[%s1843_s11 + $0x20] ss:$8 sps:$4 sm:$0xff]  }
  0x14   : > { %1534 = vmatpush3.bf16.msra.mxu0 %v1687_v7  ;;  %1650 = vmatpush3.bf16.msra.mxu1 %v1687_v7  ;;  %v1716_v24 = vld [vmem:[%s1843_s11 + $0x90] ss:$8 sps:$4 sm:$0xff]   ;;  %v1720_v25 = vld [vmem:[%s1843_s11 + $0xa4] ss:$8 sps:$4 sm:$0xff]   ;;  %v1705_v27 = vld [vmem:[%s1843_s11 + $0x34] ss:$8 sps:$4 sm:$0xff]  }
  0x15   : > { %1535 = vmatprep.subr.bf16.mxu0 %v1688_v8  ;;  %1643 = vmatprep.subr.bf16.mxu1 %v1688_v8  ;;  %v1722_v28 = vld [vmem:[%s1843_s11 + $0xa0] ss:$8 sps:$4 sm:$0xff]   ;;  %v1726_v29 = vld [vmem:[%s1843_s11 + $0xb4] ss:$8 sps:$4 sm:$0xff]   ;;  %v1707_v30 = vld [vmem:[%s1843_s11 + $0x30] ss:$8 sps:$4 sm:$0xff]  }
  0x16   : > { %v1711_v31 = vld [vmem:[%s1843_s11 + $0x44] ss:$8 sps:$4 sm:$0xff]   ;;  %v1728_v32 = vld [vmem:[%s1843_s11 + $0xb0] ss:$8 sps:$4 sm:$0xff]   ;;  %v1713_v34 = vld [vmem:[%s1843_s11 + $0x40] ss:$8 sps:$4 sm:$0xff]  }
  0x17   : > { %v1732_v33 = vld [vmem:[%s1843_s11 + $0xc4] ss:$8 sps:$4 sm:$0xff]   ;;  %v1717_v35 = vld [vmem:[%s1843_s11 + $0x54] ss:$8 sps:$4 sm:$0xff]   ;;  %v1734_v36 = vld [vmem:[%s1843_s11 + $0xc0] ss:$8 sps:$4 sm:$0xff]  }
  0x18   : > { %1536 = vmatpush3.bf16.msra.mxu0 %v1689_v9  ;;  %1651 = vmatpush3.bf16.msra.mxu1 %v1689_v9  ;;  %v1735_v37 = vld [vmem:[%s1843_s11 + $0xd4] ss:$8 sps:$4 sm:$0xff]   ;;  %v1719_v38 = vld [vmem:[%s1843_s11 + $0x50] ss:$8 sps:$4 sm:$0xff]   ;;  %v1723_v39 = vld [vmem:[%s1843_s11 + $0x64] ss:$8 sps:$4 sm:$0xff]  }
  0x19   : > { %1537 = vmatprep.subr.bf16.mxu0 %v1690_v10  ;;  %1644 = vmatprep.subr.bf16.mxu1 %v1690_v10  ;;  %v1737_v40 = vld [vmem:[%s1843_s11 + $0xd0] ss:$8 sps:$4 sm:$0xff]   ;;  %v1738_v41 = vld [vmem:[%s1843_s11 + $0xe4] ss:$8 sps:$4 sm:$0xff]   ;;  %v1725_v42 = vld [vmem:[%s1843_s11 + $0x60] ss:$8 sps:$4 sm:$0xff]  }
  0x1a   : > { %v1729_v43 = vld [vmem:[%s1843_s11 + $0x74] ss:$8 sps:$4 sm:$0xff]   ;;  %v1740_v44 = vld [vmem:[%s1843_s11 + $0xe0] ss:$8 sps:$4 sm:$0xff]   ;;  %v1731_v46 = vld [vmem:[%s1843_s11 + $0x70] ss:$8 sps:$4 sm:$0xff]  }
  0x1b   : > { %v1741_v45 = vld [vmem:[%s1843_s11 + $0xf4] ss:$8 sps:$4 sm:$0xff]   ;;  %v1743_v47 = vld [vmem:[%s1843_s11 + $0xf0] ss:$8 sps:$4 sm:$0xff]   ;;  %295 = vst.msk [vmem:[#allocation2 + $0x88] sm:$0xff] %vm277_vm0, %v1768_v48  ;;  %296 = vst.msk [vmem:[#allocation2 + $0x90] sm:$0xff] %vm277_vm0, %v1768_v48 }
  0x1c   : > { %1538 = vmatpush3.bf16.msra.mxu0 %v1691_v12  ;;  %1652 = vmatpush3.bf16.msra.mxu1 %v1691_v12  ;;  %297 = vst.msk [vmem:[#allocation2 + $0x98] sm:$0xff] %vm277_vm0, %v1768_v48  ;;  %298 = vst.msk [vmem:[#allocation2 + $0xa0] sm:$0xff] %vm277_vm0, %v1768_v48  ;;  %v326_v55 = vld [vmem:[#allocation2 + $0x80] sm:$0xff]  ;;  %v312_v6 = vld [vmem:[#allocation2 + $0x10] sm:$0xff]  ;;  %s1411_s18 = sshll.u32 %s2261_s12, 1 }
  0x1d   : > { %1539 = vmatprep.subr.bf16.mxu0 %v1692_v13  ;;  %1645 = vmatprep.subr.bf16.mxu1 %v1692_v13  ;;  %299 = vst.msk [vmem:[#allocation2 + $0xa8] sm:$0xff] %vm277_vm0, %v1768_v48  ;;  %300 = vst.msk [vmem:[#allocation2 + $0xb0] sm:$0xff] %vm277_vm0, %v1768_v48  ;;  %v313_v13 = vld [vmem:[#allocation2 + $0x18] sm:$0xff]  ;;  %s271_s10 = scalar_lea.vmem %s2253_s3, %s1411_s18 }
  0x1e   : > { %301 = vst.msk [vmem:[#allocation2 + $0xb8] sm:$0xff] %vm277_vm0, %v1768_v48  ;;  %302 = vst.msk [vmem:[#allocation2 + $0xc0] sm:$0xff] %vm277_vm0, %v1768_v48 }
  0x1f   : > { %303 = vst.msk [vmem:[#allocation2 + $0xc8] sm:$0xff] %vm277_vm0, %v1768_v48  ;;  %304 = vst.msk [vmem:[#allocation2 + $0xd0] sm:$0xff] %vm277_vm0, %v1768_v48 }
  0x20   : > { %1540 = vmatpush3.bf16.msra.mxu0 %v1693_v15  ;;  %1653 = vmatpush3.bf16.msra.mxu1 %v1693_v15  ;;  %305 = vst.msk [vmem:[#allocation2 + $0xd8] sm:$0xff] %vm277_vm0, %v1768_v48  ;;  %306 = vst.msk [vmem:[#allocation2 + $0xe0] sm:$0xff] %vm277_vm0, %v1768_v48 }
  0x21   : > { %1541 = vmatprep.subr.bf16.mxu0 %v1694_v16  ;;  %1646 = vmatprep.subr.bf16.mxu1 %v1694_v16  ;;  %307 = vst.msk [vmem:[#allocation2 + $0xe8] sm:$0xff] %vm277_vm0, %v1768_v48  ;;  %308 = vst.msk [vmem:[#allocation2 + $0xf0] sm:$0xff] %vm277_vm0, %v1768_v48 }
  0x22   : > { %309 = vst.msk [vmem:[#allocation2 + $0xf8] sm:$0xff] %vm277_vm0, %v1768_v48  ;;  %v327_v63 = vld [vmem:[#allocation2 + $0x88] sm:$0xff]  ;;  %v328_v11 = vld [vmem:[#allocation2 + $0x90] sm:$0xff] }
  0x24   : > { %1542 = vmatpush3.bf16.msra.mxu0 %v1695_v17  ;;  %1654 = vmatpush3.bf16.msra.mxu1 %v1695_v17 }
  0x27   : > { %695 = vmatmul.mubr.bf16.vlgmr.msra.gmra.mrb[0].mxu0 %v1696_v18  ;;  %759 = vmatmul.mubr.bf16.vlgmr.msra.gmra.mrb[0].mxu1 %v1708_v20 }
  0x28   : > { %702 = vmatprep.mubr.bf16.mxu0 %v1699_v19  ;;  %766 = vmatprep.mubr.bf16.mxu1 %v1714_v21  ;;  %v329_v19 = vld [vmem:[#allocation2 + $0x98] sm:$0xff] }
  0x2f   : > { %703 = vmatmul.mubr.bf16.gmra.mrb[4].mxu0 %v1701_v22  ;;  %767 = vmatmul.mubr.bf16.gmra.mrb[4].mxu1 %v1716_v24 }
  0x30   : > { %710 = vmatprep.mubr.bf16.mxu0 %v1702_v23  ;;  %774 = vmatprep.mubr.bf16.mxu1 %v1720_v25 }
  0x37   : > { %711 = vmatmul.mubr.bf16.gmra.mrb[8].mxu0 %v1704_v26  ;;  %775 = vmatmul.mubr.bf16.gmra.mrb[8].mxu1 %v1722_v28 }
  0x38   : > { %718 = vmatprep.mubr.bf16.mxu0 %v1705_v27  ;;  %782 = vmatprep.mubr.bf16.mxu1 %v1726_v29 }
  0x3f   : > { %719 = vmatmul.mubr.bf16.gmra.mrb[12].mxu0 %v1707_v30  ;;  %783 = vmatmul.mubr.bf16.gmra.mrb[12].mxu1 %v1728_v32 }
  0x40   : > { %726 = vmatprep.mubr.bf16.mxu0 %v1711_v31  ;;  %790 = vmatprep.mubr.bf16.mxu1 %v1732_v33  ;;  %v314_v33 = vld [vmem:[#allocation2 + $0x20] sm:$0xff] }
  0x47   : > { %727 = vmatmul.mubr.bf16.gmra.mrb[16].mxu0 %v1713_v34  ;;  %791 = vmatmul.mubr.bf16.gmra.mrb[16].mxu1 %v1734_v36 }
  0x48   : > { %734 = vmatprep.mubr.bf16.mxu0 %v1717_v35  ;;  %798 = vmatprep.mubr.bf16.mxu1 %v1735_v37 }
  0x4f   : > { %735 = vmatmul.mubr.bf16.gmra.mrb[20].mxu0 %v1719_v38  ;;  %799 = vmatmul.mubr.bf16.gmra.mrb[20].mxu1 %v1737_v40 }
  0x50   : > { %742 = vmatprep.mubr.bf16.mxu0 %v1723_v39  ;;  %806 = vmatprep.mubr.bf16.mxu1 %v1738_v41  ;;  %v330_v39 = vld [vmem:[#allocation2 + $0xa0] sm:$0xff]  ;;  %v315_v41 = vld [vmem:[#allocation2 + $0x28] sm:$0xff] }
  0x57   : > { %743 = vmatmul.mubr.bf16.gmra.mrb[24].mxu0 %v1725_v42  ;;  %807 = vmatmul.mubr.bf16.gmra.mrb[24].mxu1 %v1740_v44 }
  0x58   : > { %750 = vmatprep.mubr.bf16.mxu0 %v1729_v43  ;;  %814 = vmatprep.mubr.bf16.mxu1 %v1741_v45 }
  0x5f   : > { %751 = vmatmul.mubr.bf16.gmra.mrb[28].mxu0 %v1731_v46  ;;  %815 = vmatmul.mubr.bf16.gmra.mrb[28].mxu1 %v1743_v47 }
  0xfa   : > { %v1543_v49 = vpop.f32.mrb[0].mxu0  ;;  %v1591_v52 = vpop.f32.mrb[0].mxu1 }
  0xfb   : > { %v1544_v51 = vpop.f32.mrb[1].mxu0  ;;  %v1592_v56 = vpop.f32.mrb[1].mxu1 }
  0xfc   : > { %v1545_v53 = vadd.f32 %v1544_v51, %v1543_v49  ;;  %v1546_v54 = vpop.f32.mrb[2].mxu0  ;;  %v1593_v59 = vadd.f32 %v1592_v56, %v1591_v52  ;;  %v1594_v60 = vpop.f32.mrb[2].mxu1 }
  0xfd   : > { %v1547_v58 = vpop.f32.mrb[3].mxu0  ;;  %v1595_v0 = vpop.f32.mrb[3].mxu1 }
  0xfe   : > { %v823_v61 = vadd.f32 %v1545_v53, %v310_v50  ;;  %v1548_v62 = vadd.f32 %v1547_v58, %v1546_v54  ;;  %v839_v1 = vadd.f32 %v1593_v59, %v326_v55  ;;  %v1596_v2 = vadd.f32 %v1595_v0, %v1594_v60  ;;  %v331_v59 = vld [vmem:[#allocation2 + $0xa8] sm:$0xff]  ;;  %v316_v60 = vld [vmem:[#allocation2 + $0x30] sm:$0xff] }
 0x100   : > { %856 = vst.msk [vmem:[#allocation2] sm:$0xff] %vm277_vm0, %v823_v61  ;;  %v824_v3 = vadd.f32 %v1548_v62, %v311_v57  ;;  %872 = vst.msk [vmem:[#allocation2 + $0x80] sm:$0xff] %vm277_vm0, %v839_v1  ;;  %v840_v4 = vadd.f32 %v1596_v2, %v327_v63  ;;  %v332_v2 = vld [vmem:[#allocation2 + $0xb0] sm:$0xff] }
 0x102   : > { %857 = vst.msk [vmem:[#allocation2 + $0x8] sm:$0xff] %vm277_vm0, %v824_v3  ;;  %v1549_v5 = vpop.f32.mrb[4].mxu0  ;;  %873 = vst.msk [vmem:[#allocation2 + $0x88] sm:$0xff] %vm277_vm0, %v840_v4  ;;  %v1597_v8 = vpop.f32.mrb[4].mxu1  ;;  %v317_v4 = vld [vmem:[#allocation2 + $0x38] sm:$0xff] }
 0x103   : > { %v1550_v7 = vpop.f32.mrb[5].mxu0  ;;  %v1598_v12 = vpop.f32.mrb[5].mxu1 }
 0x104   : > { %v1551_v9 = vadd.f32 %v1550_v7, %v1549_v5  ;;  %v1552_v10 = vpop.f32.mrb[6].mxu0  ;;  %v1599_v15 = vadd.f32 %v1598_v12, %v1597_v8  ;;  %v1600_v16 = vpop.f32.mrb[6].mxu1 }
 0x105   : > { %v1553_v14 = vpop.f32.mrb[7].mxu0  ;;  %v1601_v20 = vpop.f32.mrb[7].mxu1 }
 0x106   : > { %v825_v17 = vadd.f32 %v1551_v9, %v312_v6  ;;  %v1554_v18 = vadd.f32 %v1553_v14, %v1552_v10  ;;  %v841_v22 = vadd.f32 %v1599_v15, %v328_v11  ;;  %v1602_v23 = vadd.f32 %v1601_v20, %v1600_v16 }
 0x107   : > { %v1940_v21 = vld [vmem:[#allocation2] sm:$0xff] }
 0x108   : > { %v1495_v24 = vpack.c.bf16 %v1940_v21, %v1940_v21  ;;  %858 = vst.msk [vmem:[#allocation2 + $0x10] sm:$0xff] %vm277_vm0, %v825_v17  ;;  %v826_v25 = vadd.f32 %v1554_v18, %v313_v13  ;;  %v1945_v26 = vld [vmem:[#allocation2 + $0x80] sm:$0xff]  ;;  %874 = vst.msk [vmem:[#allocation2 + $0x90] sm:$0xff] %vm277_vm0, %v841_v22  ;;  %v842_v29 = vadd.f32 %v1602_v23, %v329_v19  ;;  %v333_v23 = vld [vmem:[#allocation2 + $0xb8] sm:$0xff] }
 0x109   : > { %v1947_v27 = vld [vmem:[#allocation2 + $0x8] sm:$0xff]  ;;  %v1511_v28 = vpack.c.bf16 %v1945_v26, %v1945_v26  ;;  %v1155_v13 = vmul.f32 %v1940_v21, %v1940_v21 }
 0x10a   : > { %1052 = vst.msk [vmem:[%s1938_s7] sm:$0xf] %vm1051_vm1, %v1495_v24  ;;  %v1496_v30 = vpack.c.bf16 %v1947_v27, %v1947_v27  ;;  %v1555_v31 = vpop.f32.mrb[8].mxu0  ;;  %v1957_v32 = vld [vmem:[#allocation2 + $0x88] sm:$0xff]  ;;  %v1603_v36 = vpop.f32.mrb[8].mxu1  ;;  %v1156_v9 = vmul.f32 %v1947_v27, %v1947_v27  ;;  %v1085_v17 = vsel %vm277_vm0, %v1947_v27, 0.0 }
 0x10b   : > { %859 = vst.msk [vmem:[#allocation2 + $0x18] sm:$0xff] %vm277_vm0, %v826_v25  ;;  %v1556_v34 = vpop.f32.mrb[9].mxu0  ;;  %v1512_v35 = vpack.c.bf16 %v1957_v32, %v1957_v32  ;;  %875 = vst.msk [vmem:[#allocation2 + $0x98] sm:$0xff] %vm277_vm0, %v842_v29  ;;  %v1604_v40 = vpop.f32.mrb[9].mxu1 }
 0x10c   : > { %1068 = vst.msk [vmem:[%s1938_s7 + $0x40] sm:$0xf] %vm1051_vm1, %v1511_v28  ;;  %1053 = vst.msk [vmem:[%s1938_s7 + $0x4] sm:$0xf] %vm1051_vm1, %v1496_v30  ;;  %v1557_v37 = vadd.f32 %v1556_v34, %v1555_v31  ;;  %v1558_v38 = vpop.f32.mrb[10].mxu0  ;;  %v1605_v43 = vadd.f32 %v1604_v40, %v1603_v36  ;;  %v1606_v44 = vpop.f32.mrb[10].mxu1 }
 0x10d   : > { %v1559_v42 = vpop.f32.mrb[11].mxu0  ;;  %1069 = vst.msk [vmem:[%s1938_s7 + $0x44] sm:$0xf] %vm1051_vm1, %v1512_v35  ;;  %v1607_v47 = vpop.f32.mrb[11].mxu1  ;;  %v1084_v28 = vsel %vm277_vm0, %v1940_v21, 0.0  ;;  %v1188_v27 = vsel %vm277_vm0, %v1156_v9, 0.0 }
 0x10e   : > { %v827_v45 = vadd.f32 %v1557_v37, %v314_v33  ;;  %v1560_v46 = vadd.f32 %v1559_v42, %v1558_v38  ;;  %v843_v49 = vadd.f32 %v1605_v43, %v330_v39  ;;  %v1608_v50 = vadd.f32 %v1607_v47, %v1606_v44  ;;  %v318_v34 = vld [vmem:[#allocation2 + $0x40] sm:$0xff] }
 0x10f   : > { %v893_v48 = vld [vmem:[#allocation2 + $0x10] sm:$0xff]  ;;  %v1086_v33 = vadd.f32 %v1085_v17, %v1084_v28  ;;  %v1187_v37 = vsel %vm277_vm0, %v1155_v13, 0.0  ;;  %v334_v42 = vld [vmem:[#allocation2 + $0xc0] sm:$0xff] }
 0x110   : > { %v1497_v51 = vpack.c.bf16 %v893_v48, %v893_v48  ;;  %860 = vst.msk [vmem:[#allocation2 + $0x20] sm:$0xff] %vm277_vm0, %v827_v45  ;;  %v828_v52 = vadd.f32 %v1560_v46, %v315_v41  ;;  %v1969_v53 = vld [vmem:[#allocation2 + $0x90] sm:$0xff]  ;;  %876 = vst.msk [vmem:[#allocation2 + $0xa0] sm:$0xff] %vm277_vm0, %v843_v49  ;;  %v844_v6 = vadd.f32 %v1608_v50, %v331_v59  ;;  %v1087_v29 = vsel %vm277_vm0, %v893_v48, 0.0  ;;  %v319_v46 = vld [vmem:[#allocation2 + $0x48] sm:$0xff] }
 0x111   : > { %v1513_v55 = vpack.c.bf16 %v1969_v53, %v1969_v53  ;;  %v1157_v18 = vmul.f32 %v893_v48, %v893_v48  ;;  %v1189_v44 = vadd.f32 %v1188_v27, %v1187_v37  ;;  %v1088_v45 = vadd.f32 %v1087_v29, %v1086_v33  ;;  %v321_v29 = vld [vmem:[#allocation2 + $0x58] sm:$0xff] }
 0x112   : > { %v1971_v54 = vld [vmem:[#allocation2 + $0x18] sm:$0xff]  ;;  %1054 = vst.msk [vmem:[%s1938_s7 + $0x8] sm:$0xf] %vm1051_vm1, %v1497_v51  ;;  %v1561_v57 = vpop.f32.mrb[12].mxu0  ;;  %v1609_v63 = vpop.f32.mrb[12].mxu1 }
 0x113   : > { %v1498_v56 = vpack.c.bf16 %v1971_v54, %v1971_v54  ;;  %861 = vst.msk [vmem:[#allocation2 + $0x28] sm:$0xff] %vm277_vm0, %v828_v52  ;;  %v1981_v58 = vld [vmem:[#allocation2 + $0x98] sm:$0xff]  ;;  %v1562_v61 = vpop.f32.mrb[13].mxu0  ;;  %v1610_v3 = vpop.f32.mrb[13].mxu1  ;;  %877 = vst.msk [vmem:[#allocation2 + $0xa8] sm:$0xff] %vm277_vm0, %v844_v6  ;;  %v1190_v38 = vsel %vm277_vm0, %v1157_v18, 0.0  ;;  %v1158_v39 = vmul.f32 %v1971_v54, %v1971_v54 }
 0x114   : > { %1070 = vst.msk [vmem:[%s1938_s7 + $0x48] sm:$0xf] %vm1051_vm1, %v1513_v55  ;;  %v1514_v62 = vpack.c.bf16 %v1981_v58, %v1981_v58  ;;  %v1563_v0 = vadd.f32 %v1562_v61, %v1561_v57  ;;  %v1564_v1 = vpop.f32.mrb[14].mxu0  ;;  %v1611_v7 = vadd.f32 %v1610_v3, %v1609_v63  ;;  %v1612_v8 = vpop.f32.mrb[14].mxu1  ;;  %v1089_v50 = vsel %vm277_vm0, %v1971_v54, 0.0 }
 0x115   : > { %1055 = vst.msk [vmem:[%s1938_s7 + $0xc] sm:$0xf] %vm1051_vm1, %v1498_v56  ;;  %v1565_v5 = vpop.f32.mrb[15].mxu0  ;;  %v1613_v12 = vpop.f32.mrb[15].mxu1  ;;  %v1191_v59 = vadd.f32 %v1190_v38, %v1189_v44  ;;  %v1192_v63 = vsel %vm277_vm0, %v1158_v39, 0.0  ;;  %v1090_v3 = vadd.f32 %v1089_v50, %v1088_v45 }
 0x116   : > { %1071 = vst.msk [vmem:[%s1938_s7 + $0x4c] sm:$0xf] %vm1051_vm1, %v1514_v62  ;;  %v829_v10 = vadd.f32 %v1563_v0, %v316_v60  ;;  %v1566_v11 = vadd.f32 %v1565_v5, %v1564_v1  ;;  %v845_v15 = vadd.f32 %v1611_v7, %v332_v2  ;;  %v1614_v16 = vadd.f32 %v1613_v12, %v1612_v8  ;;  %v320_v12 = vld [vmem:[#allocation2 + $0x50] sm:$0xff] }
 0x117   : > { %v895_v14 = vld [vmem:[#allocation2 + $0x20] sm:$0xff] }
 0x118   : > { %v1499_v19 = vpack.c.bf16 %v895_v14, %v895_v14  ;;  %862 = vst.msk [vmem:[#allocation2 + $0x30] sm:$0xff] %vm277_vm0, %v829_v10  ;;  %v830_v20 = vadd.f32 %v1566_v11, %v317_v4  ;;  %v1999_v22 = vld [vmem:[#allocation2 + $0xa0] sm:$0xff]  ;;  %878 = vst.msk [vmem:[#allocation2 + $0xb0] sm:$0xff] %vm277_vm0, %v845_v15  ;;  %v846_v36 = vadd.f32 %v1614_v16, %v333_v23  ;;  %v1091_v0 = vsel %vm277_vm0, %v895_v14, 0.0 }
 0x119   : > { %v1515_v25 = vpack.c.bf16 %v1999_v22, %v1999_v22  ;;  %v1159_v51 = vmul.f32 %v895_v14, %v895_v14  ;;  %v1193_v10 = vadd.f32 %v1192_v63, %v1191_v59  ;;  %v1092_v11 = vadd.f32 %v1091_v0, %v1090_v3  ;;  %v335_v14 = vld [vmem:[#allocation2 + $0xc8] sm:$0xff] }
 0x11a   : > { %v2001_v24 = vld [vmem:[#allocation2 + $0x28] sm:$0xff]  ;;  %1056 = vst.msk [vmem:[%s1938_s7 + $0x10] sm:$0xf] %vm1051_vm1, %v1499_v19  ;;  %v1567_v31 = vpop.f32.mrb[16].mxu0  ;;  %v1615_v21 = vpop.f32.mrb[16].mxu1 }
 0x11b   : > { %v1500_v30 = vpack.c.bf16 %v2001_v24, %v2001_v24  ;;  %863 = vst.msk [vmem:[#allocation2 + $0x38] sm:$0xff] %vm277_vm0, %v830_v20  ;;  %v1568_v35 = vpop.f32.mrb[17].mxu0  ;;  %v1616_v43 = vpop.f32.mrb[17].mxu1  ;;  %879 = vst.msk [vmem:[#allocation2 + $0xb8] sm:$0xff] %vm277_vm0, %v846_v36  ;;  %v2026_v56 = vld [vmem:[#allocation2 + $0xa8] sm:$0xff]  ;;  %v1160_v4 = vmul.f32 %v2001_v24, %v2001_v24  ;;  %v1194_v7 = vsel %vm277_vm0, %v1159_v51, 0.0 }
 0x11c   : > { %1072 = vst.msk [vmem:[%s1938_s7 + $0x50] sm:$0xf] %vm1051_vm1, %v1515_v25  ;;  %v1569_v40 = vadd.f32 %v1568_v35, %v1567_v31  ;;  %v1570_v41 = vpop.f32.mrb[18].mxu0  ;;  %v1617_v48 = vadd.f32 %v1616_v43, %v1615_v21  ;;  %v1618_v49 = vpop.f32.mrb[18].mxu1  ;;  %v1516_v61 = vpack.c.bf16 %v2026_v56, %v2026_v56  ;;  %v1093_v17 = vsel %vm277_vm0, %v2001_v24, 0.0  ;;  %v337_v51 = vld [vmem:[#allocation2 + $0xd8] sm:$0xff] }
 0x11d   : > { %1057 = vst.msk [vmem:[%s1938_s7 + $0x14] sm:$0xf] %vm1051_vm1, %v1500_v30  ;;  %v1571_v47 = vpop.f32.mrb[19].mxu0  ;;  %v1619_v57 = vpop.f32.mrb[19].mxu1  ;;  %v1195_v28 = vadd.f32 %v1194_v7, %v1193_v10  ;;  %v1196_v27 = vsel %vm277_vm0, %v1160_v4, 0.0  ;;  %v1094_v37 = vadd.f32 %v1093_v17, %v1092_v11 }
 0x11e   : > { %v831_v52 = vadd.f32 %v1569_v40, %v318_v34  ;;  %v1572_v55 = vadd.f32 %v1571_v47, %v1570_v41  ;;  %v847_v62 = vadd.f32 %v1617_v48, %v334_v42  ;;  %1073 = vst.msk [vmem:[%s1938_s7 + $0x54] sm:$0xf] %vm1051_vm1, %v1516_v61  ;;  %v1620_v15 = vadd.f32 %v1619_v57, %v1618_v49  ;;  %v322_v61 = vld [vmem:[#allocation2 + $0x60] sm:$0xff] }
 0x11f   : > { %v897_v60 = vld [vmem:[#allocation2 + $0x30] sm:$0xff]  ;;  %v1197_v47 = vadd.f32 %v1196_v27, %v1195_v28 }
 0x120   : > { %v1501_v1 = vpack.c.bf16 %v897_v60, %v897_v60  ;;  %864 = vst.msk [vmem:[#allocation2 + $0x40] sm:$0xff] %vm277_vm0, %v831_v52  ;;  %v832_v54 = vadd.f32 %v1572_v55, %v319_v46  ;;  %v2033_v2 = vld [vmem:[#allocation2 + $0xb0] sm:$0xff]  ;;  %880 = vst.msk [vmem:[#allocation2 + $0xc0] sm:$0xff] %vm277_vm0, %v847_v62  ;;  %v1161_v18 = vmul.f32 %v897_v60, %v897_v60  ;;  %v1095_v24 = vsel %vm277_vm0, %v897_v60, 0.0 }
 0x121   : > { %v1517_v6 = vpack.c.bf16 %v2033_v2, %v2033_v2  ;;  %v848_v36 = vadd.f32 %v1620_v15, %v335_v14  ;;  %v336_v46 = vld [vmem:[#allocation2 + $0xd0] sm:$0xff]  ;;  %v1096_v48 = vadd.f32 %v1095_v24, %v1094_v37  ;;  %v339_v24 = vld [vmem:[#allocation2 + $0xe8] sm:$0xff] }
 0x122   : > { %v898_v5 = vld [vmem:[#allocation2 + $0x38] sm:$0xff]  ;;  %1058 = vst.msk [vmem:[%s1938_s7 + $0x18] sm:$0xf] %vm1051_vm1, %v1501_v1  ;;  %v1573_v9 = vpop.f32.mrb[20].mxu0  ;;  %v1621_v16 = vpop.f32.mrb[20].mxu1  ;;  %v1198_v41 = vsel %vm277_vm0, %v1161_v18, 0.0 }
 0x123   : > { %v1502_v8 = vpack.c.bf16 %v898_v5, %v898_v5  ;;  %865 = vst.msk [vmem:[#allocation2 + $0x48] sm:$0xff] %vm277_vm0, %v832_v54  ;;  %v1574_v13 = vpop.f32.mrb[21].mxu0  ;;  %v2052_v23 = vld [vmem:[#allocation2 + $0xb8] sm:$0xff]  ;;  %v1622_v25 = vpop.f32.mrb[21].mxu1  ;;  %v1162_v42 = vmul.f32 %v898_v5, %v898_v5  ;;  %881 = vst.msk [vmem:[#allocation2 + $0xc8] sm:$0xff] %vm277_vm0, %v848_v36  ;;  %v1097_v52 = vsel %vm277_vm0, %v898_v5, 0.0  ;;  %v1199_v60 = vadd.f32 %v1198_v41, %v1197_v47 }
 0x124   : > { %1074 = vst.msk [vmem:[%s1938_s7 + $0x58] sm:$0xf] %vm1051_vm1, %v1517_v6  ;;  %v1575_v19 = vadd.f32 %v1574_v13, %v1573_v9  ;;  %v1576_v20 = vpop.f32.mrb[22].mxu0  ;;  %v1518_v31 = vpack.c.bf16 %v2052_v23, %v2052_v23  ;;  %v1624_v33 = vpop.f32.mrb[22].mxu1  ;;  %v1623_v39 = vadd.f32 %v1622_v25, %v1621_v16  ;;  %v338_v6 = vld [vmem:[#allocation2 + $0xe0] sm:$0xff]  ;;  %v323_v9 = vld [vmem:[#allocation2 + $0x68] sm:$0xff] }
 0x125   : > { %1059 = vst.msk [vmem:[%s1938_s7 + $0x1c] sm:$0xf] %vm1051_vm1, %v1502_v8  ;;  %v1577_v30 = vpop.f32.mrb[23].mxu0  ;;  %v1625_v21 = vpop.f32.mrb[23].mxu1  ;;  %v1200_v1 = vsel %vm277_vm0, %v1162_v42, 0.0  ;;  %v1098_v8 = vadd.f32 %v1097_v52, %v1096_v48  ;;  %v324_v42 = vld [vmem:[#allocation2 + $0x70] sm:$0xff] }
 0x126   : > { %v833_v34 = vadd.f32 %v1575_v19, %v320_v12  ;;  %v1578_v35 = vadd.f32 %v1577_v30, %v1576_v20  ;;  %1075 = vst.msk [vmem:[%s1938_s7 + $0x5c] sm:$0xf] %vm1051_vm1, %v1518_v31  ;;  %v1626_v40 = vadd.f32 %v1625_v21, %v1624_v33  ;;  %v849_v63 = vadd.f32 %v1623_v39, %v336_v46 }
 0x127   : > { %v899_v38 = vld [vmem:[#allocation2 + $0x40] sm:$0xff]  ;;  %v1201_v18 = vadd.f32 %v1200_v1, %v1199_v60 }
 0x128   : > { %v1503_v43 = vpack.c.bf16 %v899_v38, %v899_v38  ;;  %866 = vst.msk [vmem:[#allocation2 + $0x50] sm:$0xff] %vm277_vm0, %v833_v34  ;;  %v834_v44 = vadd.f32 %v1578_v35, %v321_v29  ;;  %v2062_v45 = vld [vmem:[#allocation2 + $0xc0] sm:$0xff]  ;;  %v1163_v55 = vmul.f32 %v899_v38, %v899_v38  ;;  %v1099_v54 = vsel %vm277_vm0, %v899_v38, 0.0  ;;  %882 = vst.msk [vmem:[#allocation2 + $0xd0] sm:$0xff] %vm277_vm0, %v849_v63 }
 0x129   : > { %v1519_v50 = vpack.c.bf16 %v2062_v45, %v2062_v45  ;;  %v850_v5 = vadd.f32 %v1626_v40, %v337_v51  ;;  %v1100_v19 = vadd.f32 %v1099_v54, %v1098_v8 }
 0x12a   : > { %v900_v49 = vld [vmem:[#allocation2 + $0x48] sm:$0xff]  ;;  %1060 = vst.msk [vmem:[%s1938_s7 + $0x20] sm:$0xf] %vm1051_vm1, %v1503_v43  ;;  %v1579_v59 = vpop.f32.mrb[24].mxu0  ;;  %v1627_v0 = vpop.f32.mrb[24].mxu1  ;;  %v1202_v13 = vsel %vm277_vm0, %v1163_v55, 0.0 }
 0x12b   : > { %v1504_v57 = vpack.c.bf16 %v900_v49, %v900_v49  ;;  %867 = vst.msk [vmem:[#allocation2 + $0x58] sm:$0xff] %vm277_vm0, %v834_v44  ;;  %v1580_v62 = vpop.f32.mrb[25].mxu0  ;;  %v1628_v7 = vpop.f32.mrb[25].mxu1  ;;  %v1164_v14 = vmul.f32 %v900_v49, %v900_v49  ;;  %883 = vst.msk [vmem:[#allocation2 + $0xd8] sm:$0xff] %vm277_vm0, %v850_v5  ;;  %v2080_v25 = vld [vmem:[#allocation2 + $0xc8] sm:$0xff]  ;;  %v1101_v29 = vsel %vm277_vm0, %v900_v49, 0.0  ;;  %v1203_v34 = vadd.f32 %v1202_v13, %v1201_v18 }
 0x12c   : > { %1076 = vst.msk [vmem:[%s1938_s7 + $0x60] sm:$0xf] %vm1051_vm1, %v1519_v50  ;;  %v1581_v3 = vadd.f32 %v1580_v62, %v1579_v59  ;;  %v1582_v4 = vpop.f32.mrb[26].mxu0  ;;  %v1629_v11 = vadd.f32 %v1628_v7, %v1627_v0  ;;  %v1630_v12 = vpop.f32.mrb[26].mxu1  ;;  %v1520_v36 = vpack.c.bf16 %v2080_v25, %v2080_v25  ;;  %v1102_v40 = vadd.f32 %v1101_v29, %v1100_v19  ;;  %v341_v18 = vld [vmem:[#allocation2 + $0xf8] sm:$0xff] }
 0x12d   : > { %1061 = vst.msk [vmem:[%s1938_s7 + $0x24] sm:$0xf] %vm1051_vm1, %v1504_v57  ;;  %v1583_v10 = vpop.f32.mrb[27].mxu0  ;;  %v1631_v17 = vpop.f32.mrb[27].mxu1  ;;  %v1204_v21 = vsel %vm277_vm0, %v1164_v14, 0.0  ;;  %v325_v57 = vld [vmem:[#allocation2 + $0x78] sm:$0xff] }
 0x12e   : > { %v835_v15 = vadd.f32 %v1581_v3, %v322_v61  ;;  %v1584_v16 = vadd.f32 %v1583_v10, %v1582_v4  ;;  %v851_v28 = vadd.f32 %v1629_v11, %v338_v6  ;;  %v1632_v27 = vadd.f32 %v1631_v17, %v1630_v12  ;;  %1077 = vst.msk [vmem:[%s1938_s7 + $0x64] sm:$0xf] %vm1051_vm1, %v1520_v36  ;;  %v340_v14 = vld [vmem:[#allocation2 + $0xf0] sm:$0xff] }
 0x12f   : > { %v901_v20 = vld [vmem:[#allocation2 + $0x50] sm:$0xff]  ;;  %v1205_v52 = vadd.f32 %v1204_v21, %v1203_v34 }
 0x130   : > { %v1505_v30 = vpack.c.bf16 %v901_v20, %v901_v20  ;;  %v1165_v31 = vmul.f32 %v901_v20, %v901_v20  ;;  %868 = vst.msk [vmem:[#allocation2 + $0x60] sm:$0xff] %vm277_vm0, %v835_v15  ;;  %v836_v33 = vadd.f32 %v1584_v16, %v323_v9  ;;  %884 = vst.msk [vmem:[#allocation2 + $0xe0] sm:$0xff] %vm277_vm0, %v851_v28  ;;  %v1103_v37 = vsel %vm277_vm0, %v901_v20, 0.0  ;;  %v2097_v50 = vld [vmem:[#allocation2 + $0xd0] sm:$0xff] }
 0x131   : > { %v852_v44 = vadd.f32 %v1632_v27, %v339_v24  ;;  %v1104_v55 = vadd.f32 %v1103_v37, %v1102_v40  ;;  %v1521_v60 = vpack.c.bf16 %v2097_v50, %v2097_v50 }
 0x132   : > { %v902_v35 = vld [vmem:[#allocation2 + $0x58] sm:$0xff]  ;;  %1062 = vst.msk [vmem:[%s1938_s7 + $0x28] sm:$0xf] %vm1051_vm1, %v1505_v30  ;;  %v1585_v39 = vpop.f32.mrb[28].mxu0  ;;  %v1633_v46 = vpop.f32.mrb[28].mxu1  ;;  %v1206_v47 = vsel %vm277_vm0, %v1165_v31, 0.0 }
 0x133   : > { %v1506_v38 = vpack.c.bf16 %v902_v35, %v902_v35  ;;  %869 = vst.msk [vmem:[#allocation2 + $0x68] sm:$0xff] %vm277_vm0, %v836_v33  ;;  %v1166_v41 = vmul.f32 %v902_v35, %v902_v35  ;;  %v1586_v43 = vpop.f32.mrb[29].mxu0  ;;  %v1634_v51 = vpop.f32.mrb[29].mxu1  ;;  %v2101_v61 = vld [vmem:[#allocation2 + $0xd8] sm:$0xff]  ;;  %885 = vst.msk [vmem:[#allocation2 + $0xe8] sm:$0xff] %vm277_vm0, %v852_v44  ;;  %v1105_v63 = vsel %vm277_vm0, %v902_v35, 0.0  ;;  %v1207_v4 = vadd.f32 %v1206_v47, %v1205_v52 }
 0x134   : > { %v1587_v48 = vadd.f32 %v1586_v43, %v1585_v39  ;;  %v1588_v49 = vpop.f32.mrb[30].mxu0  ;;  %v1636_v62 = vpop.f32.mrb[30].mxu1  ;;  %v1522_v54 = vpack.c.bf16 %v2101_v61, %v2101_v61  ;;  %1078 = vst.msk [vmem:[%s1938_s7 + $0x68] sm:$0xf] %vm1051_vm1, %v1521_v60  ;;  %v1635_v7 = vadd.f32 %v1634_v51, %v1633_v46  ;;  %v1106_v15 = vadd.f32 %v1105_v63, %v1104_v55 }
 0x135   : > { %1063 = vst.msk [vmem:[%s1938_s7 + $0x2c] sm:$0xf] %vm1051_vm1, %v1506_v38  ;;  %v1589_v59 = vpop.f32.mrb[31].mxu0  ;;  %v1637_v3 = vpop.f32.mrb[31].mxu1  ;;  %v1208_v5 = vsel %vm277_vm0, %v1166_v41, 0.0  ;;  %v1171_v41 = vmul.f32 %v1945_v26, %v1945_v26  ;;  %v1115_v55 = vsel %vm277_vm0, %v1945_v26, 0.0 }
 0x136   : > { %v837_v0 = vadd.f32 %v1587_v48, %v324_v42  ;;  %v1590_v1 = vadd.f32 %v1589_v59, %v1588_v49  ;;  %v1638_v8 = vadd.f32 %v1637_v3, %v1636_v62  ;;  %1079 = vst.msk [vmem:[%s1938_s7 + $0x6c] sm:$0xf] %vm1051_vm1, %v1522_v54  ;;  %v1209_v27 = vadd.f32 %v1208_v5, %v1207_v4 }
 0x137   : > { %v903_v6 = vld [vmem:[#allocation2 + $0x60] sm:$0xff]  ;;  %v853_v30 = vadd.f32 %v1635_v7, %v340_v14  ;;  %v1218_v54 = vsel %vm277_vm0, %v1171_v41, 0.0  ;;  %v1117_v26 = vsel %vm277_vm0, %v1957_v32, 0.0  ;;  %v1173_v3 = vmul.f32 %v1969_v53, %v1969_v53 }
 0x138   : > { %v1507_v9 = vpack.c.bf16 %v903_v6, %v903_v6  ;;  %v1107_v10 = vsel %vm277_vm0, %v903_v6, 0.0  ;;  %v1167_v11 = vmul.f32 %v903_v6, %v903_v6  ;;  %870 = vst.msk [vmem:[#allocation2 + $0x70] sm:$0xff] %vm277_vm0, %v837_v0  ;;  %v838_v12 = vadd.f32 %v1590_v1, %v325_v57  ;;  %v2114_v13 = vld [vmem:[#allocation2 + $0xe0] sm:$0xff] }
 0x139   : > { %v1523_v17 = vpack.c.bf16 %v2114_v13, %v2114_v13  ;;  %v1108_v29 = vadd.f32 %v1107_v10, %v1106_v15  ;;  %v854_v24 = vadd.f32 %v1638_v8, %v341_v18  ;;  %886 = vst.msk [vmem:[#allocation2 + $0xf0] sm:$0xff] %vm277_vm0, %v853_v30  ;;  %v1172_v57 = vmul.f32 %v1957_v32, %v1957_v32 }
 0x13a   : > { %v904_v16 = vld [vmem:[#allocation2 + $0x68] sm:$0xff]  ;;  %1064 = vst.msk [vmem:[%s1938_s7 + $0x30] sm:$0xf] %vm1051_vm1, %v1507_v9  ;;  %v1210_v19 = vsel %vm277_vm0, %v1167_v11, 0.0  ;;  %v1119_v8 = vsel %vm277_vm0, %v1969_v53, 0.0  ;;  %v1174_v9 = vmul.f32 %v1981_v58, %v1981_v58  ;;  %v1222_v11 = vsel %vm277_vm0, %v1173_v3, 0.0 }
 0x13b   : > { %v1508_v20 = vpack.c.bf16 %v904_v16, %v904_v16  ;;  %v1168_v28 = vmul.f32 %v904_v16, %v904_v16  ;;  %871 = vst.msk [vmem:[#allocation2 + $0x78] sm:$0xff] %vm277_vm0, %v838_v12  ;;  %v1109_v31 = vsel %vm277_vm0, %v904_v16, 0.0  ;;  %v2127_v33 = vld [vmem:[#allocation2 + $0xe8] sm:$0xff]  ;;  %v1211_v34 = vadd.f32 %v1210_v19, %v1209_v27  ;;  %887 = vst.msk [vmem:[#allocation2 + $0xf8] sm:$0xff] %vm277_vm0, %v854_v24 }
 0x13c   : > { %1080 = vst.msk [vmem:[%s1938_s7 + $0x70] sm:$0xf] %vm1051_vm1, %v1523_v17  ;;  %v1524_v35 = vpack.c.bf16 %v2127_v33, %v2127_v33  ;;  %v1110_v21 = vadd.f32 %v1109_v31, %v1108_v29  ;;  %v1220_v7 = vsel %vm277_vm0, %v1172_v57, 0.0  ;;  %v1121_v12 = vsel %vm277_vm0, %v1981_v58, 0.0 }
 0x13d   : > { %1065 = vst.msk [vmem:[%s1938_s7 + $0x34] sm:$0xf] %vm1051_vm1, %v1508_v20  ;;  %v1212_v36 = vsel %vm277_vm0, %v1168_v28, 0.0  ;;  %v1175_v14 = vmul.f32 %v1999_v22, %v1999_v22  ;;  %v1224_v17 = vsel %vm277_vm0, %v1174_v9, 0.0  ;;  %v1123_v53 = vsel %vm277_vm0, %v1999_v22, 0.0 }
 0x13e   : > { %1081 = vst.msk [vmem:[%s1938_s7 + $0x74] sm:$0xf] %vm1051_vm1, %v1524_v35  ;;  %v1213_v42 = vadd.f32 %v1212_v36, %v1211_v34  ;;  %v1176_v18 = vmul.f32 %v2026_v56, %v2026_v56  ;;  %v1125_v58 = vsel %vm277_vm0, %v2026_v56, 0.0  ;;  %v1177_v27 = vmul.f32 %v2033_v2, %v2033_v2 }
 0x13f   : > { %v905_v37 = vld [vmem:[#allocation2 + $0x70] sm:$0xff]  ;;  %v1226_v28 = vsel %vm277_vm0, %v1175_v14, 0.0  ;;  %v1127_v22 = vsel %vm277_vm0, %v2033_v2, 0.0  ;;  %v1178_v24 = vmul.f32 %v2052_v23, %v2052_v23  ;;  %v1129_v56 = vsel %vm277_vm0, %v2052_v23, 0.0 }
 0x140   : > { %v1509_v38 = vpack.c.bf16 %v905_v37, %v905_v37  ;;  %v1111_v39 = vsel %vm277_vm0, %v905_v37, 0.0  ;;  %v1169_v40 = vmul.f32 %v905_v37, %v905_v37  ;;  %v2150_v60 = vld [vmem:[#allocation2 + $0xf0] sm:$0xff]  ;;  %v1228_v31 = vsel %vm277_vm0, %v1176_v18, 0.0 }
 0x141   : > { %v1112_v43 = vadd.f32 %v1111_v39, %v1110_v21  ;;  %v1525_v0 = vpack.c.bf16 %v2150_v60, %v2150_v60  ;;  %v1230_v36 = vsel %vm277_vm0, %v1177_v27, 0.0  ;;  %v1179_v21 = vmul.f32 %v2062_v45, %v2062_v45 }
 0x142   : > { %v906_v44 = vld [vmem:[#allocation2 + $0x78] sm:$0xff]  ;;  %1066 = vst.msk [vmem:[%s1938_s7 + $0x38] sm:$0xf] %vm1051_vm1, %v1509_v38  ;;  %v1214_v46 = vsel %vm277_vm0, %v1169_v40, 0.0  ;;  %v1232_v39 = vsel %vm277_vm0, %v1178_v24, 0.0  ;;  %v1131_v2 = vsel %vm277_vm0, %v2062_v45, 0.0  ;;  %v1180_v40 = vmul.f32 %v2080_v25, %v2080_v25 }
 0x143   : > { %v1510_v47 = vpack.c.bf16 %v906_v44, %v906_v44  ;;  %v1113_v48 = vsel %vm277_vm0, %v906_v44, 0.0  ;;  %v1170_v49 = vmul.f32 %v906_v44, %v906_v44  ;;  %v1215_v51 = vadd.f32 %v1214_v46, %v1213_v42  ;;  %v2154_v1 = vld [vmem:[#allocation2 + $0xf8] sm:$0xff]  ;;  %1082 = vst.msk [vmem:[%s1938_s7 + $0x78] sm:$0xf] %vm1051_vm1, %v1525_v0 }
 0x144   : > { %v1114_v52 = vadd.f32 %v1113_v48, %v1112_v43  ;;  %v1526_v4 = vpack.c.bf16 %v2154_v1, %v2154_v1  ;;  %v1234_v43 = vsel %vm277_vm0, %v1179_v21, 0.0  ;;  %v1133_v23 = vsel %vm277_vm0, %v2080_v25, 0.0 }
 0x145   : > { %1067 = vst.msk [vmem:[%s1938_s7 + $0x3c] sm:$0xf] %vm1051_vm1, %v1510_v47  ;;  %v1216_v59 = vsel %vm277_vm0, %v1170_v49, 0.0  ;;  %v1181_v44 = vmul.f32 %v2097_v50, %v2097_v50  ;;  %v1236_v48 = vsel %vm277_vm0, %v1180_v40, 0.0  ;;  %v1135_v45 = vsel %vm277_vm0, %v2097_v50, 0.0 }
 0x146   : > { %v1116_v62 = vadd.f32 %v1115_v55, %v1114_v52  ;;  %v1217_v63 = vadd.f32 %v1216_v59, %v1215_v51  ;;  %1083 = vst.msk [vmem:[%s1938_s7 + $0x7c] sm:$0xf] %vm1051_vm1, %v1526_v4  ;;  %v1182_v49 = vmul.f32 %v2101_v61, %v2101_v61  ;;  %v1137_v25 = vsel %vm277_vm0, %v2101_v61, 0.0 }
 0x147   : > { %v1238_v55 = vsel %vm277_vm0, %v1181_v44, 0.0  ;;  %v1183_v57 = vmul.f32 %v2114_v13, %v2114_v13  ;;  %v1139_v50 = vsel %vm277_vm0, %v2114_v13, 0.0  ;;  %v1184_v0 = vmul.f32 %v2127_v33, %v2127_v33 }
 0x148   : > { %v1118_v5 = vadd.f32 %v1117_v26, %v1116_v62  ;;  %v1219_v6 = vadd.f32 %v1218_v54, %v1217_v63  ;;  %v1240_v63 = vsel %vm277_vm0, %v1182_v49, 0.0  ;;  %v1185_v54 = vmul.f32 %v2150_v60, %v2150_v60 }
 0x149   : > { %v1242_v61 = vsel %vm277_vm0, %v1183_v57, 0.0  ;;  %v1141_v4 = vsel %vm277_vm0, %v2127_v33, 0.0  ;;  %v1186_v9 = vmul.f32 %v2154_v1, %v2154_v1 }
 0x14a   : > { %v1120_v32 = vadd.f32 %v1119_v8, %v1118_v5  ;;  %v1221_v10 = vadd.f32 %v1220_v7, %v1219_v6  ;;  %v1143_v5 = vsel %vm277_vm0, %v2150_v60, 0.0  ;;  %v1244_v7 = vsel %vm277_vm0, %v1184_v0, 0.0 }
 0x14b   : > { %v1246_v8 = vsel %vm277_vm0, %v1185_v54, 0.0  ;;  %v1248_v14 = vsel %vm277_vm0, %v1186_v9, 0.0 }
 0x14c   : > { %v1122_v15 = vadd.f32 %v1121_v12, %v1120_v32  ;;  %v1223_v16 = vadd.f32 %v1222_v11, %v1221_v10  ;;  %v1145_v11 = vsel %vm277_vm0, %v2154_v1, 0.0 }
 0x14e   : > { %v1225_v19 = vadd.f32 %v1224_v17, %v1223_v16  ;;  %v1124_v20 = vadd.f32 %v1123_v53, %v1122_v15 }
 0x150   : > { %v1126_v29 = vadd.f32 %v1125_v58, %v1124_v20  ;;  %v1227_v30 = vadd.f32 %v1226_v28, %v1225_v19 }
 0x152   : > { %v1128_v34 = vadd.f32 %v1127_v22, %v1126_v29  ;;  %v1229_v35 = vadd.f32 %v1228_v31, %v1227_v30 }
 0x154   : > { %v1130_v37 = vadd.f32 %v1129_v56, %v1128_v34  ;;  %v1231_v38 = vadd.f32 %v1230_v36, %v1229_v35 }
 0x156   : > { %v1132_v41 = vadd.f32 %v1131_v2, %v1130_v37  ;;  %v1233_v42 = vadd.f32 %v1232_v39, %v1231_v38 }
 0x158   : > { %v1235_v46 = vadd.f32 %v1234_v43, %v1233_v42  ;;  %v1134_v47 = vadd.f32 %v1133_v23, %v1132_v41 }
 0x15a   : > { %v1237_v51 = vadd.f32 %v1236_v48, %v1235_v46  ;;  %v1136_v52 = vadd.f32 %v1135_v45, %v1134_v47 }
 0x15c   : > { %v1239_v59 = vadd.f32 %v1238_v55, %v1237_v51  ;;  %v1138_v62 = vadd.f32 %v1137_v25, %v1136_v52 }
 0x15e   : > { %v1241_v26 = vadd.f32 %v1240_v63, %v1239_v59  ;;  %v1140_v3 = vadd.f32 %v1139_v50, %v1138_v62 }
 0x160   : > { %v1243_v6 = vadd.f32 %v1242_v61, %v1241_v26  ;;  %v1142_v13 = vadd.f32 %v1141_v4, %v1140_v3 }
 0x162   : > { %v1245_v32 = vadd.f32 %v1244_v7, %v1243_v6  ;;  %v1144_v10 = vadd.f32 %v1143_v5, %v1142_v13 }
 0x164   : > { %v1247_v12 = vadd.f32 %v1246_v8, %v1245_v32  ;;  %v1146_v33 = vadd.f32 %v1145_v11, %v1144_v10 }
 0x166   : > { %v1147_v60 = vrot.slane %v1146_v33, 4  ;;  %v1249_v15 = vadd.f32 %v1248_v14, %v1247_v12 }
 0x168   : > { %v1148_v16 = vadd.f32 %v1147_v60, %v1146_v33  ;;  %v1250_v17 = vrot.slane %v1249_v15, 4 }
 0x16a   : > { %v1149_v53 = vrot.slane %v1148_v16, 2  ;;  %v1251_v18 = vadd.f32 %v1250_v17, %v1249_v15 }
 0x16c   : > { %v1150_v19 = vadd.f32 %v1149_v53, %v1148_v16  ;;  %v1252_v20 = vrot.slane %v1251_v18, 2 }
 0x16e   : > { %v1151_v28 = vrot.slane %v1150_v19, 1  ;;  %v1253_v58 = vadd.f32 %v1252_v20, %v1251_v18 }
 0x170   : > { %v1152_v1 = vadd.f32 %v1151_v28, %v1150_v19  ;;  %v1254_v27 = vrot.slane %v1253_v58, 1 }
 0x172   : > { %1154 = vst.msk [vmem:[%s271_s10] sm:$0x1] %vm1153_vm2, %v1152_v1  ;;  %v1255_v29 = vadd.f32 %v1254_v27, %v1253_v58 }
 0x174   : > { %1256 = vst.msk [vmem:[%s271_s10 + $0x1] sm:$0x1] %vm1153_vm2, %v1255_v29 }
 0x175 PF: > { %s14_s14 = sadd.s32 1, %s1766_s14   ;;  %s2254_s12 = smov %s1762_s13 }
 0x176   : > { %p11_p6 = scmp.ge.s32.totalorder %s14_s14, 51   ;;  %s2255_s13 = smov %s2257_s15 }
 0x178   :  { %13 = sbr.rel (!%p11_p6) target bundleno = 2 (0x2), region = 81 }

// kernel: stem_fwd.4
= control target key start
LH: loop header
LB: loop body
LE: loop exit
PB: predicated region body
PF: predicated region fallthrough
CT: control target
= control target key end

     0   :  { %s7213_s15 = smov 0   ;;  %s8814_s0 = inlined_call_operand.vmem [shape: bf16[6272,128], index: 0, kind: input, shape index: {}]   ;;  %s8815_s1 = inlined_call_operand.vmem [shape: f32[2,128], index: 1, kind: input, shape index: {}]   ;;  %s8816_s2 = inlined_call_operand.vmem [shape: f32[1,128], index: 2, kind: input, shape index: {}]   ;;  %s8817_s3 = inlined_call_operand.vmem [shape: f32[1,128], index: 3, kind: input, shape index: {}]   ;;  %s8818_s4 = inlined_call_operand.vmem [shape: bf16[6272,128], index: 4, kind: output, shape index: {}]  }
   0x1 LB: > { %s4221_s16 = sadd.s32 4294967295, %s7185_s15   ;;  %p4225_p0 = scmp.ge.s32.totalorder %s7185_s15, 1  ;;  %s7185_s15 = sphi %s7213_s15, %s14_s15  }
   0x2   : > { %p163_p1 = scmp.lt.s32.totalorder %s7185_s15, 3 }
   0x4   : > { %p164_p2 = pnand %p4225_p0, %p163_p1 }
   0x6   : > { %167 = sbr.rel (%p164_p2) target bundleno = 492 (0x1ec), region = 36 }
   0xd   : > { %s189_s17 = smul.u32 392, %s4221_s16  ;;  %v201_v0 = vld [vmem:[%s8815_s1] sm:$0x3]  ;;  %v217_v1 = vlaneseq  ;;  %v7187_v3 = vmov 1966171168  }
   0xe   : > { %v7224_v2 = vmul.f32 7.9719386e-05, %v201_v0  ;;  %v215_v4 = vunpack.c.l.s4 %v7187_v3  ;;  %v202_v43 = vld [vmem:[%s8816_s2] sm:$0x1] }
   0xf   : > { %p190_p3 = scmp.lt.s32.totalorder %s189_s17, 783  ;;  %v7230_v7 = vshrl.u32 %v217_v1, 7  ;;  %v203_v47 = vld [vmem:[%s8817_s3] sm:$0x1] }
  0x10   : > { %v205_v5 = vmul.f32 %v7224_v2, %v7224_v2  ;;  %v216_v6 = vunpack.c.0.s8 %v215_v4 }
  0x11   : > { %s8920_s17 = smov (!%p190_p3, %s189_s17), 783  ;;  %v1020_v12 = vsub.s32 0, %v7230_v7 }
  0x12   : > { %v207_v8 = vrot.slane %v205_v5, 7  ;;  %s4226_s20 = sshll.u32 %s8920_s17, 2  ;;  %v7242_v10 = vsub.s32 %v216_v6, %v7230_v7 }
  0x13   : > { %s7238_s23 = scalar_lea.vmem %s8814_s0, %s4226_s20  ;;  %s7546_s30 = scalar_lea.vmem %s8818_s4, %s4226_s20 }
  0x14   : > { %v209_v9 = vsub.f32 %v7224_v2, %v207_v8  ;;  %v7245_v11 = vld [vmem:[%s7238_s23] sm:$0xff]   ;;  %v7249_v13 = vld [vmem:[%s7238_s23 + $0x8] sm:$0xff]   ;;  %v7252_v14 = vld [vmem:[%s7238_s23 + $0x10] sm:$0xff]  }
  0x15   : > { %v5016_v16 = vunpack.c.l.bf16 %v7245_v11  ;;  %v5017_v17 = vunpack.c.h.bf16 %v7245_v11  ;;  %v5020_v18 = vunpack.c.l.bf16 %v7249_v13  ;;  %v7258_v19 = vld [vmem:[%s7238_s23 + $0x18] sm:$0xff]   ;;  %v7261_v20 = vld [vmem:[%s7238_s23 + $0x20] sm:$0xff]   ;;  %v7264_v21 = vld [vmem:[%s7238_s23 + $0x28] sm:$0xff]   ;;  %v8828_v31 = vunpack.c.h.bf16 %v7249_v13 }
  0x16   : > { %v210_v15 = vmax.f32 %v209_v9, 0.0  ;;  %v7271_v26 = vld [vmem:[%s7238_s23 + $0x30] sm:$0xff]   ;;  %v7274_v27 = vld [vmem:[%s7238_s23 + $0x38] sm:$0xff]   ;;  %v7277_v28 = vld [vmem:[%s7238_s23 + $0x40] sm:$0xff]   ;;  %v8831_v11 = vunpack.c.l.bf16 %v7258_v19  ;;  %v8832_v13 = vunpack.c.h.bf16 %v7258_v19  ;;  %v8835_v36 = vunpack.c.l.bf16 %v7264_v21 }
  0x17   : > { %v7283_v33 = vld [vmem:[%s7238_s23 + $0x48] sm:$0xff]   ;;  %v7286_v34 = vld [vmem:[%s7238_s23 + $0x50] sm:$0xff]   ;;  %v7293_v39 = vld [vmem:[%s7238_s23 + $0x58] sm:$0xff]   ;;  %v8836_v7 = vunpack.c.h.bf16 %v7264_v21  ;;  %v8837_v19 = vunpack.c.l.bf16 %v7271_v26 }
  0x18   : > { %v211_v29 = vadd.f32 1e-05, %v210_v15  ;;  %v7296_v40 = vld [vmem:[%s7238_s23 + $0x60] sm:$0xff]   ;;  %v7302_v44 = vld [vmem:[%s7238_s23 + $0x68] sm:$0xff]   ;;  %v7305_v45 = vld [vmem:[%s7238_s23 + $0x70] sm:$0xff]  }
  0x19   : > { %v7312_v50 = vld [vmem:[%s7238_s23 + $0x78] sm:$0xff]   ;;  %v7315_v51 = vld [vmem:[%s7238_s23 + $0x80] sm:$0xff]   ;;  %v7322_v56 = vld [vmem:[%s7238_s23 + $0x88] sm:$0xff]  }
  0x1a   : > { %7177 = vrsqrt.f32 %v211_v29  ;;  %v7325_v57 = vld [vmem:[%s7238_s23 + $0x90] sm:$0xff]   ;;  %v7332_v62 = vld [vmem:[%s7238_s23 + $0x98] sm:$0xff]   ;;  %v7335_v63 = vld [vmem:[%s7238_s23 + $0xa0] sm:$0xff]  }
  0x1b   : > { %v7342_v5 = vld [vmem:[%s7238_s23 + $0xa8] sm:$0xff]   ;;  %v7345_v6 = vld [vmem:[%s7238_s23 + $0xb0] sm:$0xff]   ;;  %v7352_v1 = vld [vmem:[%s7238_s23 + $0xb8] sm:$0xff]  }
  0x1c   : > { %v7355_v0 = vld [vmem:[%s7238_s23 + $0xc0] sm:$0xff]   ;;  %v7362_v60 = vld [vmem:[%s7238_s23 + $0xc8] sm:$0xff]   ;;  %v7365_v9 = vld [vmem:[%s7238_s23 + $0xd0] sm:$0xff]  }
  0x1d   : > { %v7372_v58 = vld [vmem:[%s7238_s23 + $0xd8] sm:$0xff]   ;;  %v7375_v3 = vld [vmem:[%s7238_s23 + $0xe0] sm:$0xff]   ;;  %v7382_v54 = vld [vmem:[%s7238_s23 + $0xe8] sm:$0xff]  }
  0x1e   : > { %v7389_v53 = vld [vmem:[%s7238_s23 + $0xf0] sm:$0xff]   ;;  %v7392_v61 = vld [vmem:[%s7238_s23 + $0xf8] sm:$0xff]   ;;  %v7399_v49 = vld [vmem:[%s7238_s23 + $0x100] sm:$0xff]  }
  0x1f   : > { %v7402_v15 = vld [vmem:[%s7238_s23 + $0x108] sm:$0xff]   ;;  %v7409_v46 = vld [vmem:[%s7238_s23 + $0x110] sm:$0xff]   ;;  %v7412_v29 = vld [vmem:[%s7238_s23 + $0x118] sm:$0xff]  }
  0x20   : > { %v7419_v42 = vld [vmem:[%s7238_s23 + $0x120] sm:$0xff]   ;;  %v7425_v4 = vld [vmem:[%s7238_s23 + $0x128] sm:$0xff]   ;;  %v7428_v38 = vld [vmem:[%s7238_s23 + $0x130] sm:$0xff]  }
  0x21   : > { %v7438_v59 = vld [vmem:[%s7238_s23 + $0x138] sm:$0xff]   ;;  %v7441_v41 = vld [vmem:[%s7238_s23 + $0x140] sm:$0xff]   ;;  %v7448_v32 = vld [vmem:[%s7238_s23 + $0x148] sm:$0xff]  }
  0x22   : > { %v7464_v25 = vld [vmem:[%s7238_s23 + $0x160] sm:$0xff]   ;;  %v7467_v24 = vld [vmem:[%s7238_s23 + $0x168] sm:$0xff]  }
  0x23   : > { %8826 = vst [vmem:[#allocation3_spill] sm:$0xff] %v7464_v25  ;;  %8827 = vst [vmem:[#allocation4_spill] sm:$0xff] %v7467_v24 }
  0x24   : > { %v7178_v52 = vpop.eup %7177 }
  0x25   : > { %v220_v8 = vrot.slane %v7178_v52, %v7242_v10 }
  0x27   : > { %v221_v48 = vcombine.high %v220_v8, %v220_v8  ;;  %v7451_v8 = vld [vmem:[%s7238_s23 + $0x150] sm:$0xff]  }
  0x29   : > { %v228_v37 = vrot.slane %v221_v48, %v7242_v10  ;;  %v7458_v10 = vld [vmem:[%s7238_s23 + $0x158] sm:$0xff]  }
  0x2a   : > { %8825 = vst [vmem:[#allocation2_spill] sm:$0xff] %v7458_v10 }
  0x2b   : > { %v230_v48 = vmul.f32 %v228_v37, %v202_v43  ;;  %v8829_v37 = vunpack.c.l.bf16 %v7252_v14 }
  0x2d   : > { %v231_v35 = vmul.f32 %v230_v48, %v7224_v2  ;;  %v7479_v52 = vrot.slane %v230_v48, %v1020_v12 }
  0x2f   : > { %v232_v22 = vsub.f32 %v203_v47, %v231_v35  ;;  %v1023_v2 = vmul.f32 %v5016_v16, %v7479_v52  ;;  %v1024_v48 = vmul.f32 %v5017_v17, %v7479_v52  ;;  %v1025_v55 = vmul.f32 %v5020_v18, %v7479_v52 }
  0x30   : > { %v1026_v23 = vmul.f32 %v8828_v31, %v7479_v52  ;;  %v1027_v35 = vmul.f32 %v8829_v37, %v7479_v52  ;;  %v8830_v47 = vunpack.c.h.bf16 %v7252_v14  ;;  %v1029_v17 = vmul.f32 %v8831_v11, %v7479_v52 }
  0x31   : > { %v7510_v30 = vrot.slane %v232_v22, %v1020_v12  ;;  %v1030_v18 = vmul.f32 %v8832_v13, %v7479_v52  ;;  %v8833_v31 = vunpack.c.l.bf16 %v7261_v20  ;;  %v8834_v14 = vunpack.c.h.bf16 %v7261_v20 }
  0x32   : > { %v1028_v16 = vmul.f32 %v8830_v47, %v7479_v52  ;;  %v1033_v11 = vmul.f32 %v8835_v36, %v7479_v52  ;;  %v1034_v12 = vmul.f32 %v8836_v7, %v7479_v52  ;;  %v1035_v22 = vmul.f32 %v8837_v19, %v7479_v52 }
  0x33   : > { %v1031_v37 = vmul.f32 %v8833_v31, %v7479_v52  ;;  %v1032_v47 = vmul.f32 %v8834_v14, %v7479_v52  ;;  %v8838_v13 = vunpack.c.h.bf16 %v7271_v26  ;;  %v1421_v20 = vadd.f32 %v7510_v30, %v1023_v2 }
  0x34   : > { %v1422_v14 = vadd.f32 %v7510_v30, %v1024_v48  ;;  %v1423_v43 = vadd.f32 %v7510_v30, %v1025_v55  ;;  %v1424_v36 = vadd.f32 %v7510_v30, %v1026_v23  ;;  %v1425_v21 = vadd.f32 %v7510_v30, %v1027_v35 }
  0x35   : > { %v1036_v31 = vmul.f32 %v8838_v13, %v7479_v52  ;;  %v1426_v7 = vadd.f32 %v7510_v30, %v1028_v16  ;;  %v1427_v24 = vadd.f32 %v7510_v30, %v1029_v17  ;;  %v1428_v19 = vadd.f32 %v7510_v30, %v1030_v18 }
  0x36   : > { %v1813_v25 = vmax.f32 %v1421_v20, 0.0  ;;  %v1814_v10 = vmax.f32 %v1422_v14, 0.0  ;;  %v1815_v26 = vmax.f32 %v1423_v43, 0.0  ;;  %v1816_v13 = vmax.f32 %v1424_v36, 0.0 }
  0x37   : > { %v1817_v23 = vmax.f32 %v1425_v21, 0.0  ;;  %v1818_v55 = vmax.f32 %v1426_v7, 0.0  ;;  %v1819_v2 = vmax.f32 %v1427_v24, 0.0  ;;  %v1820_v48 = vmax.f32 %v1428_v19, 0.0 }
  0x38   : > { %v5801_v35 = vpack.c.bf16 %v1814_v10, %v1813_v25  ;;  %v5806_v16 = vpack.c.bf16 %v1816_v13, %v1815_v26  ;;  %v1429_v17 = vadd.f32 %v7510_v30, %v1031_v37  ;;  %v1430_v43 = vadd.f32 %v7510_v30, %v1032_v47 }
  0x39   : > { %v5811_v18 = vpack.c.bf16 %v1818_v55, %v1817_v23  ;;  %v5816_v20 = vpack.c.bf16 %v1820_v48, %v1819_v2  ;;  %v1431_v14 = vadd.f32 %v7510_v30, %v1033_v11  ;;  %v1432_v36 = vadd.f32 %v7510_v30, %v1034_v12 }
  0x3a   : > { %5802 = vst [vmem:[%s7546_s30] sm:$0xff] %v5801_v35   ;;  %6973 = vst [vmem:[%s7546_s30 + $0x8] sm:$0xff] %v5806_v16   ;;  %v1821_v21 = vmax.f32 %v1429_v17, 0.0  ;;  %v1822_v7 = vmax.f32 %v1430_v43, 0.0  ;;  %v1433_v24 = vadd.f32 %v7510_v30, %v1035_v22  ;;  %v1434_v25 = vadd.f32 %v7510_v30, %v1036_v31 }
  0x3b   : > { %6974 = vst [vmem:[%s7546_s30 + $0x10] sm:$0xff] %v5811_v18   ;;  %6975 = vst [vmem:[%s7546_s30 + $0x18] sm:$0xff] %v5816_v20   ;;  %v1823_v10 = vmax.f32 %v1431_v14, 0.0  ;;  %v1824_v37 = vmax.f32 %v1432_v36, 0.0  ;;  %v8839_v47 = vunpack.c.l.bf16 %v7274_v27  ;;  %v8840_v12 = vunpack.c.h.bf16 %v7274_v27 }
  0x3c   : > { %v5821_v26 = vpack.c.bf16 %v1822_v7, %v1821_v21  ;;  %v1825_v13 = vmax.f32 %v1433_v24, 0.0  ;;  %v1826_v23 = vmax.f32 %v1434_v25, 0.0  ;;  %v8841_v22 = vunpack.c.l.bf16 %v7277_v28 }
  0x3d   : > { %v1037_v11 = vmul.f32 %v8839_v47, %v7479_v52  ;;  %v1038_v19 = vmul.f32 %v8840_v12, %v7479_v52  ;;  %v5826_v55 = vpack.c.bf16 %v1824_v37, %v1823_v10  ;;  %v8842_v35 = vunpack.c.h.bf16 %v7277_v28 }
  0x3e   : > { %v1039_v31 = vmul.f32 %v8841_v22, %v7479_v52  ;;  %6976 = vst [vmem:[%s7546_s30 + $0x20] sm:$0xff] %v5821_v26   ;;  %v5831_v27 = vpack.c.bf16 %v1826_v23, %v1825_v13  ;;  %v8843_v43 = vunpack.c.l.bf16 %v7283_v33  ;;  %v8844_v20 = vunpack.c.h.bf16 %v7283_v33 }
  0x3f   : > { %v1435_v2 = vadd.f32 %v7510_v30, %v1037_v11  ;;  %v1436_v48 = vadd.f32 %v7510_v30, %v1038_v19  ;;  %v1040_v16 = vmul.f32 %v8842_v35, %v7479_v52  ;;  %6977 = vst [vmem:[%s7546_s30 + $0x28] sm:$0xff] %v5826_v55   ;;  %v8845_v28 = vunpack.c.l.bf16 %v7286_v34 }
  0x40   : > { %v1437_v17 = vadd.f32 %v7510_v30, %v1039_v31  ;;  %v1041_v18 = vmul.f32 %v8843_v43, %v7479_v52  ;;  %v1042_v14 = vmul.f32 %v8844_v20, %v7479_v52  ;;  %6978 = vst [vmem:[%s7546_s30 + $0x30] sm:$0xff] %v5831_v27   ;;  %v8846_v33 = vunpack.c.h.bf16 %v7286_v34 }
  0x41   : > { %v1827_v36 = vmax.f32 %v1435_v2, 0.0  ;;  %v1828_v21 = vmax.f32 %v1436_v48, 0.0  ;;  %v1438_v7 = vadd.f32 %v7510_v30, %v1040_v16  ;;  %v1043_v24 = vmul.f32 %v8845_v28, %v7479_v52 }
  0x42   : > { %v1829_v25 = vmax.f32 %v1437_v17, 0.0  ;;  %v1439_v10 = vadd.f32 %v7510_v30, %v1041_v18  ;;  %v1440_v37 = vadd.f32 %v7510_v30, %v1042_v14  ;;  %v1044_v47 = vmul.f32 %v8846_v33, %v7479_v52 }
  0x43   : > { %v5836_v11 = vpack.c.bf16 %v1828_v21, %v1827_v36  ;;  %v1830_v12 = vmax.f32 %v1438_v7, 0.0  ;;  %v1441_v19 = vadd.f32 %v7510_v30, %v1043_v24  ;;  %v8847_v26 = vunpack.c.l.bf16 %v7293_v39 }
  0x44   : > { %v1831_v23 = vmax.f32 %v1439_v10, 0.0  ;;  %v1832_v22 = vmax.f32 %v1440_v37, 0.0  ;;  %v1442_v31 = vadd.f32 %v7510_v30, %v1044_v47  ;;  %v8848_v55 = vunpack.c.h.bf16 %v7293_v39 }
  0x45   : > { %v1045_v13 = vmul.f32 %v8847_v26, %v7479_v52  ;;  %6979 = vst [vmem:[%s7546_s30 + $0x38] sm:$0xff] %v5836_v11   ;;  %v5841_v34 = vpack.c.bf16 %v1830_v12, %v1829_v25  ;;  %v1833_v48 = vmax.f32 %v1441_v19, 0.0  ;;  %v8849_v16 = vunpack.c.l.bf16 %v7296_v40 }
  0x46   : > { %v1046_v2 = vmul.f32 %v8848_v55, %v7479_v52  ;;  %v5846_v17 = vpack.c.bf16 %v1832_v22, %v1831_v23  ;;  %v1834_v43 = vmax.f32 %v1442_v31, 0.0  ;;  %v8850_v20 = vunpack.c.h.bf16 %v7296_v40 }
  0x47   : > { %v1443_v35 = vadd.f32 %v7510_v30, %v1045_v13  ;;  %v1047_v27 = vmul.f32 %v8849_v16, %v7479_v52  ;;  %6980 = vst [vmem:[%s7546_s30 + $0x40] sm:$0xff] %v5841_v34   ;;  %v8851_v21 = vunpack.c.l.bf16 %v7302_v44  ;;  %v8852_v28 = vunpack.c.h.bf16 %v7302_v44 }
  0x48   : > { %v1444_v18 = vadd.f32 %v7510_v30, %v1046_v2  ;;  %v1048_v39 = vmul.f32 %v8850_v20, %v7479_v52  ;;  %6981 = vst [vmem:[%s7546_s30 + $0x48] sm:$0xff] %v5846_v17   ;;  %v5851_v25 = vpack.c.bf16 %v1834_v43, %v1833_v48  ;;  %v8853_v37 = vunpack.c.l.bf16 %v7305_v45 }
  0x49   : > { %v1835_v14 = vmax.f32 %v1443_v35, 0.0  ;;  %v1445_v36 = vadd.f32 %v7510_v30, %v1047_v27  ;;  %v1049_v7 = vmul.f32 %v8851_v21, %v7479_v52  ;;  %v1050_v24 = vmul.f32 %v8852_v28, %v7479_v52 }
  0x4a   : > { %v1836_v10 = vmax.f32 %v1444_v18, 0.0  ;;  %v1446_v40 = vadd.f32 %v7510_v30, %v1048_v39  ;;  %v1051_v33 = vmul.f32 %v8853_v37, %v7479_v52  ;;  %v8854_v19 = vunpack.c.h.bf16 %v7305_v45  ;;  %6982 = vst [vmem:[%s7546_s30 + $0x50] sm:$0xff] %v5851_v25  }
  0x4b   : > { %v1837_v47 = vmax.f32 %v1445_v36, 0.0  ;;  %v1447_v11 = vadd.f32 %v7510_v30, %v1049_v7  ;;  %v1448_v12 = vadd.f32 %v7510_v30, %v1050_v24  ;;  %v8855_v22 = vunpack.c.l.bf16 %v7312_v50 }
  0x4c   : > { %v1052_v44 = vmul.f32 %v8854_v19, %v7479_v52  ;;  %v5856_v26 = vpack.c.bf16 %v1836_v10, %v1835_v14  ;;  %v1838_v13 = vmax.f32 %v1446_v40, 0.0  ;;  %v1449_v23 = vadd.f32 %v7510_v30, %v1051_v33 }
  0x4d   : > { %v1053_v31 = vmul.f32 %v8855_v22, %v7479_v52  ;;  %v1839_v55 = vmax.f32 %v1447_v11, 0.0  ;;  %v1840_v2 = vmax.f32 %v1448_v12, 0.0  ;;  %v8856_v48 = vunpack.c.h.bf16 %v7312_v50 }
  0x4e   : > { %v1450_v34 = vadd.f32 %v7510_v30, %v1052_v44  ;;  %6983 = vst [vmem:[%s7546_s30 + $0x58] sm:$0xff] %v5856_v26   ;;  %v5861_v35 = vpack.c.bf16 %v1838_v13, %v1837_v47  ;;  %v1841_v16 = vmax.f32 %v1449_v23, 0.0  ;;  %v8857_v17 = vunpack.c.l.bf16 %v7315_v51 }
  0x4f   : > { %v1054_v45 = vmul.f32 %v8856_v48, %v7479_v52  ;;  %v1451_v27 = vadd.f32 %v7510_v30, %v1053_v31  ;;  %v5866_v18 = vpack.c.bf16 %v1840_v2, %v1839_v55  ;;  %v8858_v14 = vunpack.c.h.bf16 %v7315_v51 }
  0x50   : > { %v1055_v43 = vmul.f32 %v8857_v17, %v7479_v52  ;;  %v1842_v20 = vmax.f32 %v1450_v34, 0.0  ;;  %6984 = vst [vmem:[%s7546_s30 + $0x60] sm:$0xff] %v5861_v35   ;;  %v8859_v7 = vunpack.c.l.bf16 %v7322_v56  ;;  %v8860_v24 = vunpack.c.h.bf16 %v7322_v56 }
  0x51   : > { %v1452_v39 = vadd.f32 %v7510_v30, %v1054_v45  ;;  %v1056_v50 = vmul.f32 %v8858_v14, %v7479_v52  ;;  %v1843_v36 = vmax.f32 %v1451_v27, 0.0  ;;  %6985 = vst [vmem:[%s7546_s30 + $0x68] sm:$0xff] %v5866_v18   ;;  %v8861_v37 = vunpack.c.l.bf16 %v7325_v57 }
  0x52   : > { %v1453_v21 = vadd.f32 %v7510_v30, %v1055_v43  ;;  %v1057_v28 = vmul.f32 %v8859_v7, %v7479_v52  ;;  %v1058_v25 = vmul.f32 %v8860_v24, %v7479_v52  ;;  %v5871_v10 = vpack.c.bf16 %v1842_v20, %v1841_v16 }
  0x53   : > { %v1844_v40 = vmax.f32 %v1452_v39, 0.0  ;;  %v1454_v51 = vadd.f32 %v7510_v30, %v1056_v50  ;;  %v1059_v33 = vmul.f32 %v8861_v37, %v7479_v52  ;;  %v8862_v19 = vunpack.c.h.bf16 %v7325_v57 }
  0x54   : > { %v1845_v47 = vmax.f32 %v1453_v21, 0.0  ;;  %v1455_v11 = vadd.f32 %v7510_v30, %v1057_v28  ;;  %v1456_v12 = vadd.f32 %v7510_v30, %v1058_v25  ;;  %6986 = vst [vmem:[%s7546_s30 + $0x70] sm:$0xff] %v5871_v10   ;;  %v8863_v23 = vunpack.c.l.bf16 %v7332_v62 }
  0x55   : > { %v1060_v56 = vmul.f32 %v8862_v19, %v7479_v52  ;;  %v5876_v44 = vpack.c.bf16 %v1844_v40, %v1843_v36  ;;  %v1846_v26 = vmax.f32 %v1454_v51, 0.0  ;;  %v1457_v13 = vadd.f32 %v7510_v30, %v1059_v33 }
  0x56   : > { %v1061_v22 = vmul.f32 %v8863_v23, %v7479_v52  ;;  %v1847_v31 = vmax.f32 %v1455_v11, 0.0  ;;  %v1848_v55 = vmax.f32 %v1456_v12, 0.0  ;;  %v8864_v34 = vunpack.c.h.bf16 %v7332_v62 }
  0x57   : > { %v1458_v2 = vadd.f32 %v7510_v30, %v1060_v56  ;;  %6987 = vst [vmem:[%s7546_s30 + $0x78] sm:$0xff] %v5876_v44   ;;  %v5881_v48 = vpack.c.bf16 %v1846_v26, %v1845_v47  ;;  %v1849_v45 = vmax.f32 %v1457_v13, 0.0  ;;  %v8865_v16 = vunpack.c.l.bf16 %v7335_v63 }
  0x58   : > { %v1062_v57 = vmul.f32 %v8864_v34, %v7479_v52  ;;  %v1459_v35 = vadd.f32 %v7510_v30, %v1061_v22  ;;  %v5886_v17 = vpack.c.bf16 %v1848_v55, %v1847_v31  ;;  %v8866_v20 = vunpack.c.h.bf16 %v7335_v63 }
  0x59   : > { %v1063_v27 = vmul.f32 %v8865_v16, %v7479_v52  ;;  %v1850_v43 = vmax.f32 %v1458_v2, 0.0  ;;  %6988 = vst [vmem:[%s7546_s30 + $0x80] sm:$0xff] %v5881_v48   ;;  %v8867_v50 = vunpack.c.l.bf16 %v7342_v5  ;;  %v8868_v21 = vunpack.c.h.bf16 %v7342_v5 }
  0x5a   : > { %v1460_v18 = vadd.f32 %v7510_v30, %v1062_v57  ;;  %v1064_v62 = vmul.f32 %v8866_v20, %v7479_v52  ;;  %v1851_v39 = vmax.f32 %v1459_v35, 0.0  ;;  %6989 = vst [vmem:[%s7546_s30 + $0x88] sm:$0xff] %v5886_v17   ;;  %v8869_v25 = vunpack.c.l.bf16 %v7345_v6 }
  0x5b   : > { %v1461_v14 = vadd.f32 %v7510_v30, %v1063_v27  ;;  %v1065_v36 = vmul.f32 %v8867_v50, %v7479_v52  ;;  %v1066_v7 = vmul.f32 %v8868_v21, %v7479_v52  ;;  %v5891_v28 = vpack.c.bf16 %v1850_v43, %v1849_v45 }
  0x5c   : > { %v1852_v24 = vmax.f32 %v1460_v18, 0.0  ;;  %v1462_v63 = vadd.f32 %v7510_v30, %v1064_v62  ;;  %v1067_v10 = vmul.f32 %v8869_v25, %v7479_v52  ;;  %v8870_v33 = vunpack.c.h.bf16 %v7345_v6 }
  0x5d   : > { %v1853_v40 = vmax.f32 %v1461_v14, 0.0  ;;  %v1463_v51 = vadd.f32 %v7510_v30, %v1065_v36  ;;  %v1464_v37 = vadd.f32 %v7510_v30, %v1066_v7  ;;  %6990 = vst [vmem:[%s7546_s30 + $0x90] sm:$0xff] %v5891_v28   ;;  %v8871_v19 = vunpack.c.l.bf16 %v7352_v1 }
  0x5e   : > { %v1068_v5 = vmul.f32 %v8870_v33, %v7479_v52  ;;  %v5896_v47 = vpack.c.bf16 %v1852_v24, %v1851_v39  ;;  %v1854_v11 = vmax.f32 %v1462_v63, 0.0  ;;  %v1465_v12 = vadd.f32 %v7510_v30, %v1067_v10 }
  0x5f   : > { %v1069_v56 = vmul.f32 %v8871_v19, %v7479_v52  ;;  %v1855_v44 = vmax.f32 %v1463_v51, 0.0  ;;  %v1856_v26 = vmax.f32 %v1464_v37, 0.0  ;;  %v8872_v23 = vunpack.c.h.bf16 %v7352_v1 }
  0x60   : > { %v1466_v13 = vadd.f32 %v7510_v30, %v1068_v5  ;;  %6991 = vst [vmem:[%s7546_s30 + $0x98] sm:$0xff] %v5896_v47   ;;  %v5901_v22 = vpack.c.bf16 %v1854_v11, %v1853_v40  ;;  %v1857_v31 = vmax.f32 %v1465_v12, 0.0  ;;  %v8873_v2 = vunpack.c.l.bf16 %v7355_v0 }
  0x61   : > { %v1070_v6 = vmul.f32 %v8872_v23, %v7479_v52  ;;  %v1467_v55 = vadd.f32 %v7510_v30, %v1069_v56  ;;  %v5906_v57 = vpack.c.bf16 %v1856_v26, %v1855_v44  ;;  %v8874_v35 = vunpack.c.h.bf16 %v7355_v0 }
  0x62   : > { %v1071_v34 = vmul.f32 %v8873_v2, %v7479_v52  ;;  %v1858_v48 = vmax.f32 %v1466_v13, 0.0  ;;  %6992 = vst [vmem:[%s7546_s30 + $0xa0] sm:$0xff] %v5901_v22   ;;  %v8875_v17 = vunpack.c.l.bf16 %v7362_v60  ;;  %v8876_v18 = vunpack.c.h.bf16 %v7362_v60 }
  0x63   : > { %v1468_v45 = vadd.f32 %v7510_v30, %v1070_v6  ;;  %v1072_v1 = vmul.f32 %v8874_v35, %v7479_v52  ;;  %v1859_v16 = vmax.f32 %v1467_v55, 0.0  ;;  %6993 = vst [vmem:[%s7546_s30 + $0xa8] sm:$0xff] %v5906_v57   ;;  %v8877_v14 = vunpack.c.l.bf16 %v7365_v9 }
  0x64   : > { %v1469_v27 = vadd.f32 %v7510_v30, %v1071_v34  ;;  %v1073_v43 = vmul.f32 %v8875_v17, %v7479_v52  ;;  %v1074_v20 = vmul.f32 %v8876_v18, %v7479_v52  ;;  %v5911_v62 = vpack.c.bf16 %v1858_v48, %v1857_v31 }
  0x65   : > { %v1860_v39 = vmax.f32 %v1468_v45, 0.0  ;;  %v1470_v0 = vadd.f32 %v7510_v30, %v1072_v1  ;;  %v1075_v50 = vmul.f32 %v8877_v14, %v7479_v52  ;;  %v8878_v28 = vunpack.c.h.bf16 %v7365_v9 }
  0x66   : > { %v1861_v36 = vmax.f32 %v1469_v27, 0.0  ;;  %v1471_v21 = vadd.f32 %v7510_v30, %v1073_v43  ;;  %v1472_v7 = vadd.f32 %v7510_v30, %v1074_v20  ;;  %6994 = vst [vmem:[%s7546_s30 + $0xb0] sm:$0xff] %v5911_v62   ;;  %v8879_v10 = vunpack.c.l.bf16 %v7372_v58 }
  0x67   : > { %v1076_v60 = vmul.f32 %v8878_v28, %v7479_v52  ;;  %v5916_v24 = vpack.c.bf16 %v1860_v39, %v1859_v16  ;;  %v1862_v63 = vmax.f32 %v1470_v0, 0.0  ;;  %v1473_v25 = vadd.f32 %v7510_v30, %v1075_v50 }
  0x68   : > { %v1077_v40 = vmul.f32 %v8879_v10, %v7479_v52  ;;  %v1863_v51 = vmax.f32 %v1471_v21, 0.0  ;;  %v1864_v37 = vmax.f32 %v1472_v7, 0.0  ;;  %v8880_v5 = vunpack.c.h.bf16 %v7372_v58 }
  0x69   : > { %v1474_v33 = vadd.f32 %v7510_v30, %v1076_v60  ;;  %6995 = vst [vmem:[%s7546_s30 + $0xb8] sm:$0xff] %v5916_v24   ;;  %v5921_v47 = vpack.c.bf16 %v1862_v63, %v1861_v36  ;;  %v1865_v11 = vmax.f32 %v1473_v25, 0.0  ;;  %v8881_v19 = vunpack.c.l.bf16 %v7375_v3 }
  0x6a   : > { %v1078_v9 = vmul.f32 %v8880_v5, %v7479_v52  ;;  %v1475_v12 = vadd.f32 %v7510_v30, %v1077_v40  ;;  %v5926_v44 = vpack.c.bf16 %v1864_v37, %v1863_v51  ;;  %v8882_v23 = vunpack.c.h.bf16 %v7375_v3 }
  0x6b   : > { %v1079_v56 = vmul.f32 %v8881_v19, %v7479_v52  ;;  %v1866_v26 = vmax.f32 %v1474_v33, 0.0  ;;  %6996 = vst [vmem:[%s7546_s30 + $0xc0] sm:$0xff] %v5921_v47   ;;  %v8883_v31 = vunpack.c.l.bf16 %v7382_v54  ;;  %v8884_v2 = vunpack.c.h.bf16 %v7382_v54 }
  0x6c   : > { %v1476_v13 = vadd.f32 %v7510_v30, %v1078_v9  ;;  %v1080_v58 = vmul.f32 %v8882_v23, %v7479_v52  ;;  %v1867_v6 = vmax.f32 %v1475_v12, 0.0  ;;  %6997 = vst [vmem:[%s7546_s30 + $0xc8] sm:$0xff] %v5926_v44   ;;  %v8885_v45 = vunpack.c.l.bf16 %v7389_v53 }
  0x6d   : > { %v1477_v22 = vadd.f32 %v7510_v30, %v1079_v56  ;;  %v1081_v55 = vmul.f32 %v8883_v31, %v7479_v52  ;;  %v1082_v34 = vmul.f32 %v8884_v2, %v7479_v52  ;;  %v5931_v57 = vpack.c.bf16 %v1866_v26, %v1865_v11 }
  0x6e   : > { %v1868_v48 = vmax.f32 %v1476_v13, 0.0  ;;  %v1478_v3 = vadd.f32 %v7510_v30, %v1080_v58  ;;  %v1083_v35 = vmul.f32 %v8885_v45, %v7479_v52  ;;  %v8886_v17 = vunpack.c.h.bf16 %v7389_v53 }
  0x6f   : > { %v1869_v1 = vmax.f32 %v1477_v22, 0.0  ;;  %v1479_v16 = vadd.f32 %v7510_v30, %v1081_v55  ;;  %v1480_v27 = vadd.f32 %v7510_v30, %v1082_v34  ;;  %6998 = vst [vmem:[%s7546_s30 + $0xd0] sm:$0xff] %v5931_v57   ;;  %v8887_v62 = vunpack.c.l.bf16 %v7392_v61 }
  0x70   : > { %v1084_v54 = vmul.f32 %v8886_v17, %v7479_v52  ;;  %v5936_v43 = vpack.c.bf16 %v1868_v48, %v1867_v6  ;;  %v1870_v18 = vmax.f32 %v1478_v3, 0.0  ;;  %v1481_v20 = vadd.f32 %v7510_v30, %v1083_v35 }
  0x71   : > { %v1085_v39 = vmul.f32 %v8887_v62, %v7479_v52  ;;  %v1871_v0 = vmax.f32 %v1479_v16, 0.0  ;;  %v1872_v14 = vmax.f32 %v1480_v27, 0.0  ;;  %v8888_v36 = vunpack.c.h.bf16 %v7392_v61 }
  0x72   : > { %v1482_v50 = vadd.f32 %v7510_v30, %v1084_v54  ;;  %6999 = vst [vmem:[%s7546_s30 + $0xd8] sm:$0xff] %v5936_v43   ;;  %v5941_v21 = vpack.c.bf16 %v1870_v18, %v1869_v1  ;;  %v1873_v7 = vmax.f32 %v1481_v20, 0.0  ;;  %v8889_v60 = vunpack.c.l.bf16 %v7399_v49 }
  0x73   : > { %v1086_v53 = vmul.f32 %v8888_v36, %v7479_v52  ;;  %v1483_v28 = vadd.f32 %v7510_v30, %v1085_v39  ;;  %v5946_v63 = vpack.c.bf16 %v1872_v14, %v1871_v0  ;;  %v8890_v40 = vunpack.c.h.bf16 %v7399_v49 }
  0x74   : > { %v1087_v24 = vmul.f32 %v8889_v60, %v7479_v52  ;;  %v1874_v25 = vmax.f32 %v1482_v50, 0.0  ;;  %7000 = vst [vmem:[%s7546_s30 + $0xe0] sm:$0xff] %v5941_v21   ;;  %v8891_v33 = vunpack.c.l.bf16 %v7402_v15  ;;  %v8892_v9 = vunpack.c.h.bf16 %v7402_v15 }
  0x75   : > { %v1484_v10 = vadd.f32 %v7510_v30, %v1086_v53  ;;  %v1088_v61 = vmul.f32 %v8890_v40, %v7479_v52  ;;  %v1875_v51 = vmax.f32 %v1483_v28, 0.0  ;;  %7001 = vst [vmem:[%s7546_s30 + $0xe8] sm:$0xff] %v5946_v63   ;;  %v8893_v19 = vunpack.c.l.bf16 %v7409_v46 }
  0x76   : > { %v1485_v37 = vadd.f32 %v7510_v30, %v1087_v24  ;;  %v1089_v5 = vmul.f32 %v8891_v33, %v7479_v52  ;;  %v1090_v47 = vmul.f32 %v8892_v9, %v7479_v52  ;;  %v5951_v11 = vpack.c.bf16 %v1874_v25, %v1873_v7 }
  0x77   : > { %v1876_v12 = vmax.f32 %v1484_v10, 0.0  ;;  %v1486_v49 = vadd.f32 %v7510_v30, %v1088_v61  ;;  %v1091_v56 = vmul.f32 %v8893_v19, %v7479_v52  ;;  %v8894_v23 = vunpack.c.h.bf16 %v7409_v46 }
  0x78   : > { %v1877_v44 = vmax.f32 %v1485_v37, 0.0  ;;  %v1487_v26 = vadd.f32 %v7510_v30, %v1089_v5  ;;  %v1488_v13 = vadd.f32 %v7510_v30, %v1090_v47  ;;  %7002 = vst [vmem:[%s7546_s30 + $0xf0] sm:$0xff] %v5951_v11   ;;  %v8895_v31 = vunpack.c.l.bf16 %v7412_v29 }
  0x79   : > { %v1092_v15 = vmul.f32 %v8894_v23, %v7479_v52  ;;  %v5956_v58 = vpack.c.bf16 %v1876_v12, %v1875_v51  ;;  %v1878_v6 = vmax.f32 %v1486_v49, 0.0  ;;  %v1489_v22 = vadd.f32 %v7510_v30, %v1091_v56 }
  0x7a   : > { %v1093_v55 = vmul.f32 %v8895_v31, %v7479_v52  ;;  %v1879_v2 = vmax.f32 %v1487_v26, 0.0  ;;  %v1880_v34 = vmax.f32 %v1488_v13, 0.0  ;;  %v8896_v48 = vunpack.c.h.bf16 %v7412_v29 }
  0x7b   : > { %v1490_v57 = vadd.f32 %v7510_v30, %v1092_v15  ;;  %7003 = vst [vmem:[%s7546_s30 + $0xf8] sm:$0xff] %v5956_v58   ;;  %v5961_v3 = vpack.c.bf16 %v1878_v6, %v1877_v44  ;;  %v1881_v45 = vmax.f32 %v1489_v22, 0.0  ;;  %v8897_v1 = vunpack.c.l.bf16 %v7419_v42 }
  0x7c   : > { %v1094_v46 = vmul.f32 %v8896_v48, %v7479_v52  ;;  %v1491_v35 = vadd.f32 %v7510_v30, %v1093_v55  ;;  %v5966_v27 = vpack.c.bf16 %v1880_v34, %v1879_v2  ;;  %v8898_v43 = vunpack.c.h.bf16 %v7419_v42 }
  0x7d   : > { %v1095_v16 = vmul.f32 %v8897_v1, %v7479_v52  ;;  %v1882_v17 = vmax.f32 %v1490_v57, 0.0  ;;  %7004 = vst [vmem:[%s7546_s30 + $0x100] sm:$0xff] %v5961_v3   ;;  %v8899_v62 = vunpack.c.l.bf16 %v7425_v4  ;;  %v8900_v0 = vunpack.c.h.bf16 %v7425_v4 }
  0x7e   : > { %v1492_v54 = vadd.f32 %v7510_v30, %v1094_v46  ;;  %v1096_v29 = vmul.f32 %v8898_v43, %v7479_v52  ;;  %v1883_v18 = vmax.f32 %v1491_v35, 0.0  ;;  %7005 = vst [vmem:[%s7546_s30 + $0x108] sm:$0xff] %v5966_v27   ;;  %v8901_v53 = vunpack.c.l.bf16 %v7428_v38 }
  0x7f   : > { %v1493_v20 = vadd.f32 %v7510_v30, %v1095_v16  ;;  %v1097_v39 = vmul.f32 %v8899_v62, %v7479_v52  ;;  %v1098_v14 = vmul.f32 %v8900_v0, %v7479_v52  ;;  %v5971_v50 = vpack.c.bf16 %v1882_v17, %v1881_v45  ;;  %v8911_v16 = vld [vmem:[#allocation2_spill] sm:$0xff]  ;;  %v8914_v0 = vld [vmem:[#allocation3_spill] sm:$0xff] }
  0x80   : > { %v1884_v36 = vmax.f32 %v1492_v54, 0.0  ;;  %v1494_v42 = vadd.f32 %v7510_v30, %v1096_v29  ;;  %v1099_v21 = vmul.f32 %v8901_v53, %v7479_v52  ;;  %v8902_v24 = vunpack.c.h.bf16 %v7428_v38 }
  0x81   : > { %v1885_v7 = vmax.f32 %v1493_v20, 0.0  ;;  %v1495_v28 = vadd.f32 %v7510_v30, %v1097_v39  ;;  %v1496_v60 = vadd.f32 %v7510_v30, %v1098_v14  ;;  %7006 = vst [vmem:[%s7546_s30 + $0x110] sm:$0xff] %v5971_v50   ;;  %v8903_v40 = vunpack.c.l.bf16 %v7438_v59 }
  0x82   : > { %v1100_v4 = vmul.f32 %v8902_v24, %v7479_v52  ;;  %v5976_v63 = vpack.c.bf16 %v1884_v36, %v1883_v18  ;;  %v1886_v25 = vmax.f32 %v1494_v42, 0.0  ;;  %v1497_v10 = vadd.f32 %v7510_v30, %v1099_v21  ;;  %v6823_v36 = vld [vmem:[%s7238_s23 + $0x170] sm:$0xff]  }
  0x83   : > { %v1101_v61 = vmul.f32 %v8903_v40, %v7479_v52  ;;  %v1887_v51 = vmax.f32 %v1495_v28, 0.0  ;;  %v1888_v37 = vmax.f32 %v1496_v60, 0.0  ;;  %v8904_v5 = vunpack.c.h.bf16 %v7438_v59  ;;  %v6824_v40 = vld [vmem:[%s7238_s23 + $0x178] sm:$0xff]  }
  0x84   : > { %v1498_v33 = vadd.f32 %v7510_v30, %v1100_v4  ;;  %7007 = vst [vmem:[%s7546_s30 + $0x118] sm:$0xff] %v5976_v63   ;;  %v5981_v9 = vpack.c.bf16 %v1886_v25, %v1885_v7  ;;  %v1889_v47 = vmax.f32 %v1497_v10, 0.0  ;;  %v8905_v12 = vunpack.c.l.bf16 %v7441_v41  ;;  %v8917_v4 = vld [vmem:[#allocation4_spill] sm:$0xff] }
  0x85   : > { %v1102_v38 = vmul.f32 %v8904_v5, %v7479_v52  ;;  %v1499_v11 = vadd.f32 %v7510_v30, %v1101_v61  ;;  %v5986_v19 = vpack.c.bf16 %v1888_v37, %v1887_v51  ;;  %v8906_v26 = vunpack.c.h.bf16 %v7441_v41 }
  0x86   : > { %v1103_v49 = vmul.f32 %v8905_v12, %v7479_v52  ;;  %v1890_v56 = vmax.f32 %v1498_v33, 0.0  ;;  %7008 = vst [vmem:[%s7546_s30 + $0x120] sm:$0xff] %v5981_v9   ;;  %v8907_v15 = vunpack.c.l.bf16 %v7448_v32  ;;  %v8908_v6 = vunpack.c.h.bf16 %v7448_v32 }
  0x87   : > { %v1500_v44 = vadd.f32 %v7510_v30, %v1102_v38  ;;  %v1104_v59 = vmul.f32 %v8906_v26, %v7479_v52  ;;  %v1891_v13 = vmax.f32 %v1499_v11, 0.0  ;;  %7009 = vst [vmem:[%s7546_s30 + $0x128] sm:$0xff] %v5986_v19   ;;  %v8909_v2 = vunpack.c.l.bf16 %v7451_v8  ;;  %v6825_v11 = vld [vmem:[%s7238_s23 + $0x180] sm:$0xff]  }
  0x88   : > { %v1501_v23 = vadd.f32 %v7510_v30, %v1103_v49  ;;  %v1105_v58 = vmul.f32 %v8907_v15, %v7479_v52  ;;  %v1106_v22 = vmul.f32 %v8908_v6, %v7479_v52  ;;  %v5991_v31 = vpack.c.bf16 %v1890_v56, %v1889_v47 }
  0x89   : > { %v1892_v55 = vmax.f32 %v1500_v44, 0.0  ;;  %v1502_v41 = vadd.f32 %v7510_v30, %v1104_v59  ;;  %v1107_v34 = vmul.f32 %v8909_v2, %v7479_v52  ;;  %v8910_v3 = vunpack.c.h.bf16 %v7451_v8 }
  0x8a   : > { %v1893_v57 = vmax.f32 %v1501_v23, 0.0  ;;  %v1503_v48 = vadd.f32 %v7510_v30, %v1105_v58  ;;  %v1504_v46 = vadd.f32 %v7510_v30, %v1106_v22  ;;  %7010 = vst [vmem:[%s7546_s30 + $0x130] sm:$0xff] %v5991_v31   ;;  %v8912_v27 = vunpack.c.l.bf16 %v8911_v16  ;;  %v6826_v23 = vld [vmem:[%s7238_s23 + $0x188] sm:$0xff]  }
  0x8b   : > { %v1108_v32 = vmul.f32 %v8910_v3, %v7479_v52  ;;  %v5996_v45 = vpack.c.bf16 %v1892_v55, %v1891_v13  ;;  %v1894_v35 = vmax.f32 %v1502_v41, 0.0  ;;  %v1505_v1 = vadd.f32 %v7510_v30, %v1107_v34  ;;  %v6827_v3 = vld [vmem:[%s7238_s23 + $0x190] sm:$0xff]  }
  0x8c   : > { %v1109_v17 = vmul.f32 %v8912_v27, %v7479_v52  ;;  %v1895_v54 = vmax.f32 %v1503_v48, 0.0  ;;  %v1896_v43 = vmax.f32 %v1504_v46, 0.0  ;;  %v8913_v18 = vunpack.c.h.bf16 %v8911_v16 }
  0x8d   : > { %v1506_v29 = vadd.f32 %v7510_v30, %v1108_v32  ;;  %7011 = vst [vmem:[%s7546_s30 + $0x138] sm:$0xff] %v5996_v45   ;;  %v6001_v20 = vpack.c.bf16 %v1894_v35, %v1893_v57  ;;  %v1897_v62 = vmax.f32 %v1505_v1, 0.0  ;;  %v8915_v14 = vunpack.c.l.bf16 %v8914_v0 }
  0x8e   : > { %v1110_v8 = vmul.f32 %v8913_v18, %v7479_v52  ;;  %v1507_v39 = vadd.f32 %v7510_v30, %v1109_v17  ;;  %v6006_v42 = vpack.c.bf16 %v1896_v43, %v1895_v54  ;;  %v8916_v7 = vunpack.c.h.bf16 %v8914_v0  ;;  %v6828_v43 = vld [vmem:[%s7238_s23 + $0x198] sm:$0xff]  }
  0x8f   : > { %v1111_v50 = vmul.f32 %v8915_v14, %v7479_v52  ;;  %v1898_v53 = vmax.f32 %v1506_v29, 0.0  ;;  %7012 = vst [vmem:[%s7546_s30 + $0x140] sm:$0xff] %v6001_v20   ;;  %v5197_v63 = vunpack.c.h.bf16 %v8917_v4  ;;  %v8918_v25 = vunpack.c.l.bf16 %v8917_v4  ;;  %v6830_v4 = vld [vmem:[%s7238_s23 + $0x1a8] sm:$0xff]  }
  0x90   : > { %v1508_v21 = vadd.f32 %v7510_v30, %v1110_v8  ;;  %v1112_v28 = vmul.f32 %v8916_v7, %v7479_v52  ;;  %v1899_v60 = vmax.f32 %v1507_v39, 0.0  ;;  %7013 = vst [vmem:[%s7546_s30 + $0x148] sm:$0xff] %v6006_v42   ;;  %v5200_v33 = vunpack.c.l.bf16 %v6823_v36 }
  0x91   : > { %v1509_v24 = vadd.f32 %v7510_v30, %v1111_v50  ;;  %v1113_v10 = vmul.f32 %v8918_v25, %v7479_v52  ;;  %v6011_v61 = vpack.c.bf16 %v1898_v53, %v1897_v62  ;;  %v1114_v38 = vmul.f32 %v5197_v63, %v7479_v52  ;;  %v6829_v50 = vld [vmem:[%s7238_s23 + $0x1a0] sm:$0xff]  }
  0x92   : > { %v1900_v51 = vmax.f32 %v1508_v21, 0.0  ;;  %v1510_v37 = vadd.f32 %v7510_v30, %v1112_v28  ;;  %v5201_v47 = vunpack.c.h.bf16 %v6823_v36  ;;  %v1115_v19 = vmul.f32 %v5200_v33, %v7479_v52 }
  0x93   : > { %v1901_v5 = vmax.f32 %v1509_v24, 0.0  ;;  %v1511_v9 = vadd.f32 %v7510_v30, %v1113_v10  ;;  %7014 = vst [vmem:[%s7546_s30 + $0x150] sm:$0xff] %v6011_v61   ;;  %v5204_v56 = vunpack.c.l.bf16 %v6824_v40  ;;  %v1512_v44 = vadd.f32 %v7510_v30, %v1114_v38 }
  0x94   : > { %v6016_v12 = vpack.c.bf16 %v1900_v51, %v1899_v60  ;;  %v1902_v49 = vmax.f32 %v1510_v37, 0.0  ;;  %v1116_v59 = vmul.f32 %v5201_v47, %v7479_v52  ;;  %v5205_v13 = vunpack.c.h.bf16 %v6824_v40 }
  0x95   : > { %v1903_v26 = vmax.f32 %v1511_v9, 0.0  ;;  %v1513_v58 = vadd.f32 %v7510_v30, %v1115_v19  ;;  %v1117_v6 = vmul.f32 %v5204_v56, %v7479_v52  ;;  %v5208_v22 = vunpack.c.l.bf16 %v6825_v11 }
  0x96   : > { %7015 = vst [vmem:[%s7546_s30 + $0x158] sm:$0xff] %v6016_v12   ;;  %v6021_v15 = vpack.c.bf16 %v1902_v49, %v1901_v5  ;;  %v1904_v31 = vmax.f32 %v1512_v44, 0.0  ;;  %v1514_v55 = vadd.f32 %v7510_v30, %v1116_v59  ;;  %v1118_v41 = vmul.f32 %v5205_v13, %v7479_v52 }
  0x97   : > { %v5209_v2 = vunpack.c.h.bf16 %v6825_v11  ;;  %v1905_v34 = vmax.f32 %v1513_v58, 0.0  ;;  %v1515_v57 = vadd.f32 %v7510_v30, %v1117_v6  ;;  %v1119_v48 = vmul.f32 %v5208_v22, %v7479_v52  ;;  %v6831_v11 = vld [vmem:[%s7238_s23 + $0x1b0] sm:$0xff]  }
  0x98   : > { %7016 = vst [vmem:[%s7546_s30 + $0x160] sm:$0xff] %v6021_v15   ;;  %v5212_v46 = vunpack.c.l.bf16 %v6826_v23  ;;  %v6026_v32 = vpack.c.bf16 %v1904_v31, %v1903_v26  ;;  %v1906_v45 = vmax.f32 %v1514_v55, 0.0  ;;  %v1516_v35 = vadd.f32 %v7510_v30, %v1118_v41 }
  0x99   : > { %v1120_v1 = vmul.f32 %v5209_v2, %v7479_v52  ;;  %v1907_v16 = vmax.f32 %v1515_v57, 0.0  ;;  %v1517_v27 = vadd.f32 %v7510_v30, %v1119_v48  ;;  %v5213_v17 = vunpack.c.h.bf16 %v6826_v23  ;;  %v6832_v23 = vld [vmem:[%s7238_s23 + $0x1b8] sm:$0xff]  }
  0x9a   : > { %v1121_v54 = vmul.f32 %v5212_v46, %v7479_v52  ;;  %7017 = vst [vmem:[%s7546_s30 + $0x168] sm:$0xff] %v6026_v32   ;;  %v6031_v29 = vpack.c.bf16 %v1906_v45, %v1905_v34  ;;  %v1908_v18 = vmax.f32 %v1516_v35, 0.0  ;;  %v5216_v20 = vunpack.c.l.bf16 %v6827_v3  ;;  %v6833_v34 = vld [vmem:[%s7238_s23 + $0x1c0] sm:$0xff]  }
  0x9b   : > { %v1518_v8 = vadd.f32 %v7510_v30, %v1120_v1  ;;  %v1909_v62 = vmax.f32 %v1517_v27, 0.0  ;;  %v1122_v39 = vmul.f32 %v5213_v17, %v7479_v52  ;;  %v5217_v14 = vunpack.c.h.bf16 %v6827_v3 }
  0x9c   : > { %v1519_v0 = vadd.f32 %v7510_v30, %v1121_v54  ;;  %7018 = vst [vmem:[%s7546_s30 + $0x170] sm:$0xff] %v6031_v29   ;;  %v6036_v36 = vpack.c.bf16 %v1908_v18, %v1907_v16  ;;  %v1123_v53 = vmul.f32 %v5216_v20, %v7479_v52  ;;  %v5220_v21 = vunpack.c.l.bf16 %v6828_v43  ;;  %v6834_v16 = vld [vmem:[%s7238_s23 + $0x1c8] sm:$0xff]  }
  0x9d   : > { %v1910_v42 = vmax.f32 %v1518_v8, 0.0  ;;  %v1520_v7 = vadd.f32 %v7510_v30, %v1122_v39  ;;  %v1124_v60 = vmul.f32 %v5217_v14, %v7479_v52  ;;  %v5221_v24 = vunpack.c.h.bf16 %v6828_v43 }
  0x9e   : > { %v1911_v28 = vmax.f32 %v1519_v0, 0.0  ;;  %7019 = vst [vmem:[%s7546_s30 + $0x178] sm:$0xff] %v6036_v36   ;;  %v1521_v25 = vadd.f32 %v7510_v30, %v1123_v53  ;;  %v1125_v10 = vmul.f32 %v5220_v21, %v7479_v52  ;;  %v5224_v40 = vunpack.c.l.bf16 %v6829_v50 }
  0x9f   : > { %v6041_v63 = vpack.c.bf16 %v1910_v42, %v1909_v62  ;;  %v1912_v61 = vmax.f32 %v1520_v7, 0.0  ;;  %v1522_v51 = vadd.f32 %v7510_v30, %v1124_v60  ;;  %v1126_v37 = vmul.f32 %v5221_v24, %v7479_v52 }
  0xa0   : > { %v5225_v33 = vunpack.c.h.bf16 %v6829_v50  ;;  %v1913_v5 = vmax.f32 %v1521_v25, 0.0  ;;  %v1523_v38 = vadd.f32 %v7510_v30, %v1125_v10  ;;  %v1127_v9 = vmul.f32 %v5224_v40, %v7479_v52  ;;  %v6835_v50 = vld [vmem:[%s7238_s23 + $0x1d0] sm:$0xff]  }
  0xa1   : > { %7020 = vst [vmem:[%s7546_s30 + $0x180] sm:$0xff] %v6041_v63   ;;  %v5228_v47 = vunpack.c.l.bf16 %v6830_v4  ;;  %v6046_v12 = vpack.c.bf16 %v1912_v61, %v1911_v28  ;;  %v1914_v49 = vmax.f32 %v1522_v51, 0.0  ;;  %v1524_v19 = vadd.f32 %v7510_v30, %v1126_v37 }
  0xa2   : > { %v1128_v56 = vmul.f32 %v5225_v33, %v7479_v52  ;;  %v1915_v44 = vmax.f32 %v1523_v38, 0.0  ;;  %v1525_v26 = vadd.f32 %v7510_v30, %v1127_v9  ;;  %v5229_v59 = vunpack.c.h.bf16 %v6830_v4  ;;  %v6836_v4 = vld [vmem:[%s7238_s23 + $0x1d8] sm:$0xff]  }
  0xa3   : > { %v1129_v13 = vmul.f32 %v5228_v47, %v7479_v52  ;;  %7021 = vst [vmem:[%s7546_s30 + $0x188] sm:$0xff] %v6046_v12   ;;  %v6051_v15 = vpack.c.bf16 %v1914_v49, %v1913_v5  ;;  %v1916_v58 = vmax.f32 %v1524_v19, 0.0  ;;  %v5232_v22 = vunpack.c.l.bf16 %v6831_v11  ;;  %v6837_v5 = vld [vmem:[%s7238_s23 + $0x1e0] sm:$0xff]  }
  0xa4   : > { %v1526_v6 = vadd.f32 %v7510_v30, %v1128_v56  ;;  %v1917_v31 = vmax.f32 %v1525_v26, 0.0  ;;  %v1130_v55 = vmul.f32 %v5229_v59, %v7479_v52  ;;  %v5233_v2 = vunpack.c.h.bf16 %v6831_v11 }
  0xa5   : > { %v1527_v41 = vadd.f32 %v7510_v30, %v1129_v13  ;;  %7022 = vst [vmem:[%s7546_s30 + $0x190] sm:$0xff] %v6051_v15   ;;  %v6056_v57 = vpack.c.bf16 %v1916_v58, %v1915_v44  ;;  %v1131_v46 = vmul.f32 %v5232_v22, %v7479_v52  ;;  %v5236_v3 = vunpack.c.l.bf16 %v6832_v23  ;;  %v6838_v44 = vld [vmem:[%s7238_s23 + $0x1e8] sm:$0xff]  }
  0xa6   : > { %v1918_v48 = vmax.f32 %v1526_v6, 0.0  ;;  %v1528_v32 = vadd.f32 %v7510_v30, %v1130_v55  ;;  %v1132_v35 = vmul.f32 %v5233_v2, %v7479_v52  ;;  %v5237_v1 = vunpack.c.h.bf16 %v6832_v23 }
  0xa7   : > { %v1919_v45 = vmax.f32 %v1527_v41, 0.0  ;;  %7023 = vst [vmem:[%s7546_s30 + $0x198] sm:$0xff] %v6056_v57   ;;  %v1529_v17 = vadd.f32 %v7510_v30, %v1131_v46  ;;  %v1133_v54 = vmul.f32 %v5236_v3, %v7479_v52  ;;  %v5240_v43 = vunpack.c.l.bf16 %v6833_v34 }
  0xa8   : > { %v6061_v27 = vpack.c.bf16 %v1918_v48, %v1917_v31  ;;  %v1920_v29 = vmax.f32 %v1528_v32, 0.0  ;;  %v1530_v18 = vadd.f32 %v7510_v30, %v1132_v35  ;;  %v1134_v8 = vmul.f32 %v5237_v1, %v7479_v52 }
  0xa9   : > { %v5241_v20 = vunpack.c.h.bf16 %v6833_v34  ;;  %v1921_v62 = vmax.f32 %v1529_v17, 0.0  ;;  %v1531_v39 = vadd.f32 %v7510_v30, %v1133_v54  ;;  %v1135_v0 = vmul.f32 %v5240_v43, %v7479_v52  ;;  %v6839_v34 = vld [vmem:[%s7238_s23 + $0x1f0] sm:$0xff]  }
  0xaa   : > { %7024 = vst [vmem:[%s7546_s30 + $0x1a0] sm:$0xff] %v6061_v27   ;;  %v5244_v14 = vunpack.c.l.bf16 %v6834_v16  ;;  %v6066_v36 = vpack.c.bf16 %v1920_v29, %v1919_v45  ;;  %v1922_v42 = vmax.f32 %v1530_v18, 0.0  ;;  %v1532_v53 = vadd.f32 %v7510_v30, %v1134_v8 }
  0xab   : > { %v1136_v21 = vmul.f32 %v5241_v20, %v7479_v52  ;;  %v1923_v7 = vmax.f32 %v1531_v39, 0.0  ;;  %v1533_v28 = vadd.f32 %v7510_v30, %v1135_v0  ;;  %v5245_v60 = vunpack.c.h.bf16 %v6834_v16  ;;  %v6840_v16 = vld [vmem:[%s7238_s23 + $0x1f8] sm:$0xff]  }
  0xac   : > { %v1137_v24 = vmul.f32 %v5244_v14, %v7479_v52  ;;  %7025 = vst [vmem:[%s7546_s30 + $0x1a8] sm:$0xff] %v6066_v36   ;;  %v6071_v63 = vpack.c.bf16 %v1922_v42, %v1921_v62  ;;  %v1924_v25 = vmax.f32 %v1532_v53, 0.0  ;;  %v5248_v40 = vunpack.c.l.bf16 %v6835_v50  ;;  %v6841_v62 = vld [vmem:[%s7238_s23 + $0x200] sm:$0xff]  }
  0xad   : > { %v1534_v10 = vadd.f32 %v7510_v30, %v1136_v21  ;;  %v1925_v61 = vmax.f32 %v1533_v28, 0.0  ;;  %v1138_v51 = vmul.f32 %v5245_v60, %v7479_v52  ;;  %v5249_v33 = vunpack.c.h.bf16 %v6835_v50 }
  0xae   : > { %v1535_v37 = vadd.f32 %v7510_v30, %v1137_v24  ;;  %7026 = vst [vmem:[%s7546_s30 + $0x1b0] sm:$0xff] %v6071_v63   ;;  %v6076_v38 = vpack.c.bf16 %v1924_v25, %v1923_v7  ;;  %v1139_v47 = vmul.f32 %v5248_v40, %v7479_v52  ;;  %v5252_v11 = vunpack.c.l.bf16 %v6836_v4  ;;  %v6842_v7 = vld [vmem:[%s7238_s23 + $0x208] sm:$0xff]  }
  0xaf   : > { %v1926_v9 = vmax.f32 %v1534_v10, 0.0  ;;  %v1536_v12 = vadd.f32 %v7510_v30, %v1138_v51  ;;  %v1140_v19 = vmul.f32 %v5249_v33, %v7479_v52  ;;  %v5253_v56 = vunpack.c.h.bf16 %v6836_v4 }
  0xb0   : > { %v1927_v49 = vmax.f32 %v1535_v37, 0.0  ;;  %7027 = vst [vmem:[%s7546_s30 + $0x1b8] sm:$0xff] %v6076_v38   ;;  %v1537_v59 = vadd.f32 %v7510_v30, %v1139_v47  ;;  %v1141_v13 = vmul.f32 %v5252_v11, %v7479_v52  ;;  %v5256_v23 = vunpack.c.l.bf16 %v6837_v5 }
  0xb1   : > { %v6081_v26 = vpack.c.bf16 %v1926_v9, %v1925_v61  ;;  %v1928_v15 = vmax.f32 %v1536_v12, 0.0  ;;  %v1538_v58 = vadd.f32 %v7510_v30, %v1140_v19  ;;  %v1142_v6 = vmul.f32 %v5253_v56, %v7479_v52 }
  0xb2   : > { %v5257_v22 = vunpack.c.h.bf16 %v6837_v5  ;;  %v1929_v31 = vmax.f32 %v1537_v59, 0.0  ;;  %v1539_v55 = vadd.f32 %v7510_v30, %v1141_v13  ;;  %v1143_v41 = vmul.f32 %v5256_v23, %v7479_v52  ;;  %v6843_v5 = vld [vmem:[%s7238_s23 + $0x210] sm:$0xff]  }
  0xb3   : > { %7028 = vst [vmem:[%s7546_s30 + $0x1c0] sm:$0xff] %v6081_v26   ;;  %v5260_v2 = vunpack.c.l.bf16 %v6838_v44  ;;  %v6086_v57 = vpack.c.bf16 %v1928_v15, %v1927_v49  ;;  %v1930_v48 = vmax.f32 %v1538_v58, 0.0  ;;  %v1540_v46 = vadd.f32 %v7510_v30, %v1142_v6 }
  0xb4   : > { %v1144_v3 = vmul.f32 %v5257_v22, %v7479_v52  ;;  %v1931_v32 = vmax.f32 %v1539_v55, 0.0  ;;  %v1541_v45 = vadd.f32 %v7510_v30, %v1143_v41  ;;  %v5261_v35 = vunpack.c.h.bf16 %v6838_v44  ;;  %v6844_v44 = vld [vmem:[%s7238_s23 + $0x218] sm:$0xff]  }
  0xb5   : > { %v1145_v1 = vmul.f32 %v5260_v2, %v7479_v52  ;;  %7029 = vst [vmem:[%s7546_s30 + $0x1c8] sm:$0xff] %v6086_v57   ;;  %v6091_v27 = vpack.c.bf16 %v1930_v48, %v1929_v31  ;;  %v1932_v17 = vmax.f32 %v1540_v46, 0.0  ;;  %v5264_v43 = vunpack.c.l.bf16 %v6839_v34  ;;  %v6845_v31 = vld [vmem:[%s7238_s23 + $0x220] sm:$0xff]  }
  0xb6   : > { %v1542_v54 = vadd.f32 %v7510_v30, %v1144_v3  ;;  %v1933_v29 = vmax.f32 %v1541_v45, 0.0  ;;  %v1146_v18 = vmul.f32 %v5261_v35, %v7479_v52  ;;  %v5265_v20 = vunpack.c.h.bf16 %v6839_v34 }
  0xb7   : > { %v1543_v8 = vadd.f32 %v7510_v30, %v1145_v1  ;;  %7030 = vst [vmem:[%s7546_s30 + $0x1d0] sm:$0xff] %v6091_v27   ;;  %v6096_v39 = vpack.c.bf16 %v1932_v17, %v1931_v32  ;;  %v1147_v14 = vmul.f32 %v5264_v43, %v7479_v52  ;;  %v5268_v50 = vunpack.c.l.bf16 %v6840_v16  ;;  %v6846_v32 = vld [vmem:[%s7238_s23 + $0x228] sm:$0xff]  }
  0xb8   : > { %v1934_v0 = vmax.f32 %v1542_v54, 0.0  ;;  %v1544_v36 = vadd.f32 %v7510_v30, %v1146_v18  ;;  %v1148_v53 = vmul.f32 %v5265_v20, %v7479_v52  ;;  %v5269_v21 = vunpack.c.h.bf16 %v6840_v16 }
  0xb9   : > { %v1935_v42 = vmax.f32 %v1543_v8, 0.0  ;;  %7031 = vst [vmem:[%s7546_s30 + $0x1d8] sm:$0xff] %v6096_v39   ;;  %v1545_v60 = vadd.f32 %v7510_v30, %v1147_v14  ;;  %v1149_v24 = vmul.f32 %v5268_v50, %v7479_v52  ;;  %v5272_v4 = vunpack.c.l.bf16 %v6841_v62 }
  0xba   : > { %v6101_v28 = vpack.c.bf16 %v1934_v0, %v1933_v29  ;;  %v1936_v63 = vmax.f32 %v1544_v36, 0.0  ;;  %v1546_v25 = vadd.f32 %v7510_v30, %v1148_v53  ;;  %v1150_v10 = vmul.f32 %v5269_v21, %v7479_v52 }
  0xbb   : > { %v5273_v40 = vunpack.c.h.bf16 %v6841_v62  ;;  %v1937_v61 = vmax.f32 %v1545_v60, 0.0  ;;  %v1547_v51 = vadd.f32 %v7510_v30, %v1149_v24  ;;  %v1151_v37 = vmul.f32 %v5272_v4, %v7479_v52  ;;  %v6847_v62 = vld [vmem:[%s7238_s23 + $0x230] sm:$0xff]  }
  0xbc   : > { %7032 = vst [vmem:[%s7546_s30 + $0x1e0] sm:$0xff] %v6101_v28   ;;  %v5276_v33 = vunpack.c.l.bf16 %v6842_v7  ;;  %v6106_v38 = vpack.c.bf16 %v1936_v63, %v1935_v42  ;;  %v1938_v9 = vmax.f32 %v1546_v25, 0.0  ;;  %v1548_v47 = vadd.f32 %v7510_v30, %v1150_v10 }
  0xbd   : > { %v1152_v11 = vmul.f32 %v5273_v40, %v7479_v52  ;;  %v1939_v12 = vmax.f32 %v1547_v51, 0.0  ;;  %v1549_v49 = vadd.f32 %v7510_v30, %v1151_v37  ;;  %v5277_v19 = vunpack.c.h.bf16 %v6842_v7  ;;  %v6848_v7 = vld [vmem:[%s7238_s23 + $0x238] sm:$0xff]  }
  0xbe   : > { %v1153_v56 = vmul.f32 %v5276_v33, %v7479_v52  ;;  %7033 = vst [vmem:[%s7546_s30 + $0x1e8] sm:$0xff] %v6106_v38   ;;  %v6111_v26 = vpack.c.bf16 %v1938_v9, %v1937_v61  ;;  %v1940_v59 = vmax.f32 %v1548_v47, 0.0  ;;  %v5280_v23 = vunpack.c.l.bf16 %v6843_v5  ;;  %v6849_v61 = vld [vmem:[%s7238_s23 + $0x240] sm:$0xff]  }
  0xbf   : > { %v1550_v13 = vadd.f32 %v7510_v30, %v1152_v11  ;;  %v1941_v15 = vmax.f32 %v1549_v49, 0.0  ;;  %v1154_v58 = vmul.f32 %v5277_v19, %v7479_v52  ;;  %v5281_v22 = vunpack.c.h.bf16 %v6843_v5 }
  0xc0   : > { %v1551_v6 = vadd.f32 %v7510_v30, %v1153_v56  ;;  %7034 = vst [vmem:[%s7546_s30 + $0x1f0] sm:$0xff] %v6111_v26   ;;  %v6116_v55 = vpack.c.bf16 %v1940_v59, %v1939_v12  ;;  %v1155_v2 = vmul.f32 %v5280_v23, %v7479_v52  ;;  %v5284_v34 = vunpack.c.l.bf16 %v6844_v44  ;;  %v6850_v12 = vld [vmem:[%s7238_s23 + $0x248] sm:$0xff]  }
  0xc1   : > { %v1942_v41 = vmax.f32 %v1550_v13, 0.0  ;;  %v1552_v57 = vadd.f32 %v7510_v30, %v1154_v58  ;;  %v1156_v46 = vmul.f32 %v5281_v22, %v7479_v52  ;;  %v5285_v3 = vunpack.c.h.bf16 %v6844_v44 }
  0xc2   : > { %v1943_v48 = vmax.f32 %v1551_v6, 0.0  ;;  %7035 = vst [vmem:[%s7546_s30 + $0x1f8] sm:$0xff] %v6116_v55   ;;  %v1553_v35 = vadd.f32 %v7510_v30, %v1155_v2  ;;  %v1157_v1 = vmul.f32 %v5284_v34, %v7479_v52  ;;  %v5288_v16 = vunpack.c.l.bf16 %v6845_v31 }
  0xc3   : > { %v6121_v45 = vpack.c.bf16 %v1942_v41, %v1941_v15  ;;  %v1944_v27 = vmax.f32 %v1552_v57, 0.0  ;;  %v1554_v17 = vadd.f32 %v7510_v30, %v1156_v46  ;;  %v1158_v54 = vmul.f32 %v5285_v3, %v7479_v52 }
  0xc4   : > { %v5289_v43 = vunpack.c.h.bf16 %v6845_v31  ;;  %v1945_v29 = vmax.f32 %v1553_v35, 0.0  ;;  %v1555_v18 = vadd.f32 %v7510_v30, %v1157_v1  ;;  %v1159_v8 = vmul.f32 %v5288_v16, %v7479_v52  ;;  %v6851_v31 = vld [vmem:[%s7238_s23 + $0x250] sm:$0xff]  }
  0xc5   : > { %7036 = vst [vmem:[%s7546_s30 + $0x200] sm:$0xff] %v6121_v45   ;;  %v5292_v20 = vunpack.c.l.bf16 %v6846_v32  ;;  %v6126_v39 = vpack.c.bf16 %v1944_v27, %v1943_v48  ;;  %v1946_v0 = vmax.f32 %v1554_v17, 0.0  ;;  %v1556_v14 = vadd.f32 %v7510_v30, %v1158_v54 }
  0xc6   : > { %v1160_v50 = vmul.f32 %v5289_v43, %v7479_v52  ;;  %v1947_v36 = vmax.f32 %v1555_v18, 0.0  ;;  %v1557_v42 = vadd.f32 %v7510_v30, %v1159_v8  ;;  %v5293_v53 = vunpack.c.h.bf16 %v6846_v32  ;;  %v6852_v32 = vld [vmem:[%s7238_s23 + $0x258] sm:$0xff]  }
  0xc7   : > { %v1161_v21 = vmul.f32 %v5292_v20, %v7479_v52  ;;  %7037 = vst [vmem:[%s7546_s30 + $0x208] sm:$0xff] %v6126_v39   ;;  %v6131_v28 = vpack.c.bf16 %v1946_v0, %v1945_v29  ;;  %v1948_v60 = vmax.f32 %v1556_v14, 0.0  ;;  %v5296_v4 = vunpack.c.l.bf16 %v6847_v62  ;;  %v6853_v29 = vld [vmem:[%s7238_s23 + $0x260] sm:$0xff]  }
  0xc8   : > { %v1558_v24 = vadd.f32 %v7510_v30, %v1160_v50  ;;  %v1949_v63 = vmax.f32 %v1557_v42, 0.0  ;;  %v1162_v25 = vmul.f32 %v5293_v53, %v7479_v52  ;;  %v5297_v40 = vunpack.c.h.bf16 %v6847_v62 }
  0xc9   : > { %v1559_v10 = vadd.f32 %v7510_v30, %v1161_v21  ;;  %7038 = vst [vmem:[%s7546_s30 + $0x210] sm:$0xff] %v6131_v28   ;;  %v6136_v51 = vpack.c.bf16 %v1948_v60, %v1947_v36  ;;  %v1163_v33 = vmul.f32 %v5296_v4, %v7479_v52  ;;  %v5300_v5 = vunpack.c.l.bf16 %v6848_v7  ;;  %v6854_v36 = vld [vmem:[%s7238_s23 + $0x268] sm:$0xff]  }
  0xca   : > { %v1950_v37 = vmax.f32 %v1558_v24, 0.0  ;;  %v1560_v38 = vadd.f32 %v7510_v30, %v1162_v25  ;;  %v1164_v47 = vmul.f32 %v5297_v40, %v7479_v52  ;;  %v5301_v11 = vunpack.c.h.bf16 %v6848_v7 }
  0xcb   : > { %v1951_v9 = vmax.f32 %v1559_v10, 0.0  ;;  %7039 = vst [vmem:[%s7546_s30 + $0x218] sm:$0xff] %v6136_v51   ;;  %v1561_v19 = vadd.f32 %v7510_v30, %v1163_v33  ;;  %v1165_v56 = vmul.f32 %v5300_v5, %v7479_v52  ;;  %v5304_v44 = vunpack.c.l.bf16 %v6849_v61 }
  0xcc   : > { %v6141_v49 = vpack.c.bf16 %v1950_v37, %v1949_v63  ;;  %v1952_v26 = vmax.f32 %v1560_v38, 0.0  ;;  %v1562_v59 = vadd.f32 %v7510_v30, %v1164_v47  ;;  %v1166_v13 = vmul.f32 %v5301_v11, %v7479_v52 }
  0xcd   : > { %v5305_v23 = vunpack.c.h.bf16 %v6849_v61  ;;  %v1953_v15 = vmax.f32 %v1561_v19, 0.0  ;;  %v1563_v58 = vadd.f32 %v7510_v30, %v1165_v56  ;;  %v1167_v6 = vmul.f32 %v5304_v44, %v7479_v52  ;;  %v6855_v61 = vld [vmem:[%s7238_s23 + $0x270] sm:$0xff]  }
  0xce   : > { %7040 = vst [vmem:[%s7546_s30 + $0x220] sm:$0xff] %v6141_v49   ;;  %v5308_v22 = vunpack.c.l.bf16 %v6850_v12  ;;  %v6146_v55 = vpack.c.bf16 %v1952_v26, %v1951_v9  ;;  %v1954_v41 = vmax.f32 %v1562_v59, 0.0  ;;  %v1564_v2 = vadd.f32 %v7510_v30, %v1166_v13 }
  0xcf   : > { %v1168_v34 = vmul.f32 %v5305_v23, %v7479_v52  ;;  %v1955_v57 = vmax.f32 %v1563_v58, 0.0  ;;  %v1565_v48 = vadd.f32 %v7510_v30, %v1167_v6  ;;  %v5309_v46 = vunpack.c.h.bf16 %v6850_v12  ;;  %v6856_v12 = vld [vmem:[%s7238_s23 + $0x278] sm:$0xff]  }
  0xd0   : > { %v1169_v3 = vmul.f32 %v5308_v22, %v7479_v52  ;;  %7041 = vst [vmem:[%s7546_s30 + $0x228] sm:$0xff] %v6146_v55   ;;  %v6151_v45 = vpack.c.bf16 %v1954_v41, %v1953_v15  ;;  %v1956_v35 = vmax.f32 %v1564_v2, 0.0  ;;  %v5312_v16 = vunpack.c.l.bf16 %v6851_v31  ;;  %v6857_v15 = vld [vmem:[%s7238_s23 + $0x280] sm:$0xff]  }
  0xd1   : > { %v1566_v1 = vadd.f32 %v7510_v30, %v1168_v34  ;;  %v1957_v27 = vmax.f32 %v1565_v48, 0.0  ;;  %v1170_v17 = vmul.f32 %v5309_v46, %v7479_v52  ;;  %v5313_v43 = vunpack.c.h.bf16 %v6851_v31 }
  0xd2   : > { %v1567_v54 = vadd.f32 %v7510_v30, %v1169_v3  ;;  %7042 = vst [vmem:[%s7546_s30 + $0x230] sm:$0xff] %v6151_v45   ;;  %v6156_v18 = vpack.c.bf16 %v1956_v35, %v1955_v57  ;;  %v1171_v20 = vmul.f32 %v5312_v16, %v7479_v52  ;;  %v5316_v62 = vunpack.c.l.bf16 %v6852_v32  ;;  %v6858_v57 = vld [vmem:[%s7238_s23 + $0x288] sm:$0xff]  }
  0xd3   : > { %v1958_v8 = vmax.f32 %v1566_v1, 0.0  ;;  %v1568_v39 = vadd.f32 %v7510_v30, %v1170_v17  ;;  %v1172_v14 = vmul.f32 %v5313_v43, %v7479_v52  ;;  %v5317_v50 = vunpack.c.h.bf16 %v6852_v32 }
  0xd4   : > { %v1959_v0 = vmax.f32 %v1567_v54, 0.0  ;;  %7043 = vst [vmem:[%s7546_s30 + $0x238] sm:$0xff] %v6156_v18   ;;  %v1569_v53 = vadd.f32 %v7510_v30, %v1171_v20  ;;  %v1173_v21 = vmul.f32 %v5316_v62, %v7479_v52  ;;  %v5320_v7 = vunpack.c.l.bf16 %v6853_v29 }
  0xd5   : > { %v6161_v42 = vpack.c.bf16 %v1958_v8, %v1957_v27  ;;  %v1960_v28 = vmax.f32 %v1568_v39, 0.0  ;;  %v1570_v60 = vadd.f32 %v7510_v30, %v1172_v14  ;;  %v1174_v24 = vmul.f32 %v5317_v50, %v7479_v52 }
  0xd6   : > { %v5321_v4 = vunpack.c.h.bf16 %v6853_v29  ;;  %v1961_v63 = vmax.f32 %v1569_v53, 0.0  ;;  %v1571_v25 = vadd.f32 %v7510_v30, %v1173_v21  ;;  %v1175_v10 = vmul.f32 %v5320_v7, %v7479_v52  ;;  %v6859_v29 = vld [vmem:[%s7238_s23 + $0x290] sm:$0xff]  }
  0xd7   : > { %7044 = vst [vmem:[%s7546_s30 + $0x240] sm:$0xff] %v6161_v42   ;;  %v5324_v40 = vunpack.c.l.bf16 %v6854_v36  ;;  %v6166_v51 = vpack.c.bf16 %v1960_v28, %v1959_v0  ;;  %v1962_v37 = vmax.f32 %v1570_v60, 0.0  ;;  %v1572_v33 = vadd.f32 %v7510_v30, %v1174_v24 }
  0xd8   : > { %v1176_v5 = vmul.f32 %v5321_v4, %v7479_v52  ;;  %v1963_v38 = vmax.f32 %v1571_v25, 0.0  ;;  %v1573_v9 = vadd.f32 %v7510_v30, %v1175_v10  ;;  %v5325_v47 = vunpack.c.h.bf16 %v6854_v36  ;;  %v6860_v36 = vld [vmem:[%s7238_s23 + $0x298] sm:$0xff]  }
  0xd9   : > { %v1177_v11 = vmul.f32 %v5324_v40, %v7479_v52  ;;  %7045 = vst [vmem:[%s7546_s30 + $0x248] sm:$0xff] %v6166_v51   ;;  %v6171_v49 = vpack.c.bf16 %v1962_v37, %v1961_v63  ;;  %v1964_v19 = vmax.f32 %v1572_v33, 0.0  ;;  %v5328_v44 = vunpack.c.l.bf16 %v6855_v61  ;;  %v6861_v63 = vld [vmem:[%s7238_s23 + $0x2a0] sm:$0xff]  }
  0xda   : > { %v1574_v56 = vadd.f32 %v7510_v30, %v1176_v5  ;;  %v1965_v26 = vmax.f32 %v1573_v9, 0.0  ;;  %v1178_v59 = vmul.f32 %v5325_v47, %v7479_v52  ;;  %v5329_v23 = vunpack.c.h.bf16 %v6855_v61 }
  0xdb   : > { %v1575_v13 = vadd.f32 %v7510_v30, %v1177_v11  ;;  %7046 = vst [vmem:[%s7546_s30 + $0x250] sm:$0xff] %v6171_v49   ;;  %v6176_v58 = vpack.c.bf16 %v1964_v19, %v1963_v38  ;;  %v1179_v22 = vmul.f32 %v5328_v44, %v7479_v52  ;;  %v5332_v31 = vunpack.c.l.bf16 %v6856_v12  ;;  %v6862_v38 = vld [vmem:[%s7238_s23 + $0x2a8] sm:$0xff]  }
  0xdc   : > { %v1966_v6 = vmax.f32 %v1574_v56, 0.0  ;;  %v1576_v55 = vadd.f32 %v7510_v30, %v1178_v59  ;;  %v1180_v2 = vmul.f32 %v5329_v23, %v7479_v52  ;;  %v5333_v34 = vunpack.c.h.bf16 %v6856_v12 }
  0xdd   : > { %v1967_v41 = vmax.f32 %v1575_v13, 0.0  ;;  %7047 = vst [vmem:[%s7546_s30 + $0x258] sm:$0xff] %v6176_v58   ;;  %v1577_v46 = vadd.f32 %v7510_v30, %v1179_v22  ;;  %v1181_v3 = vmul.f32 %v5332_v31, %v7479_v52  ;;  %v5336_v32 = vunpack.c.l.bf16 %v6857_v15 }
  0xde   : > { %v6181_v48 = vpack.c.bf16 %v1966_v6, %v1965_v26  ;;  %v1968_v45 = vmax.f32 %v1576_v55, 0.0  ;;  %v1578_v35 = vadd.f32 %v7510_v30, %v1180_v2  ;;  %v1182_v1 = vmul.f32 %v5333_v34, %v7479_v52 }
  0xdf   : > { %v5337_v16 = vunpack.c.h.bf16 %v6857_v15  ;;  %v1969_v27 = vmax.f32 %v1577_v46, 0.0  ;;  %v1579_v17 = vadd.f32 %v7510_v30, %v1181_v3  ;;  %v1183_v54 = vmul.f32 %v5336_v32, %v7479_v52  ;;  %v6863_v15 = vld [vmem:[%s7238_s23 + $0x2b0] sm:$0xff]  }
  0xe0   : > { %7048 = vst [vmem:[%s7546_s30 + $0x260] sm:$0xff] %v6181_v48   ;;  %v5340_v43 = vunpack.c.l.bf16 %v6858_v57  ;;  %v6186_v18 = vpack.c.bf16 %v1968_v45, %v1967_v41  ;;  %v1970_v8 = vmax.f32 %v1578_v35, 0.0  ;;  %v1580_v20 = vadd.f32 %v7510_v30, %v1182_v1 }
  0xe1   : > { %v1184_v62 = vmul.f32 %v5337_v16, %v7479_v52  ;;  %v1971_v39 = vmax.f32 %v1579_v17, 0.0  ;;  %v1581_v0 = vadd.f32 %v7510_v30, %v1183_v54  ;;  %v5341_v14 = vunpack.c.h.bf16 %v6858_v57  ;;  %v6864_v57 = vld [vmem:[%s7238_s23 + $0x2b8] sm:$0xff]  }
  0xe2   : > { %v1185_v50 = vmul.f32 %v5340_v43, %v7479_v52  ;;  %7049 = vst [vmem:[%s7546_s30 + $0x268] sm:$0xff] %v6186_v18   ;;  %v6191_v42 = vpack.c.bf16 %v1970_v8, %v1969_v27  ;;  %v1972_v53 = vmax.f32 %v1580_v20, 0.0  ;;  %v5344_v7 = vunpack.c.l.bf16 %v6859_v29  ;;  %v6865_v27 = vld [vmem:[%s7238_s23 + $0x2c0] sm:$0xff]  }
  0xe3   : > { %v1582_v21 = vadd.f32 %v7510_v30, %v1184_v62  ;;  %v1973_v28 = vmax.f32 %v1581_v0, 0.0  ;;  %v1186_v60 = vmul.f32 %v5341_v14, %v7479_v52  ;;  %v5345_v4 = vunpack.c.h.bf16 %v6859_v29 }
  0xe4   : > { %v1583_v24 = vadd.f32 %v7510_v30, %v1185_v50  ;;  %7050 = vst [vmem:[%s7546_s30 + $0x270] sm:$0xff] %v6191_v42   ;;  %v6196_v25 = vpack.c.bf16 %v1972_v53, %v1971_v39  ;;  %v1187_v40 = vmul.f32 %v5344_v7, %v7479_v52  ;;  %v5348_v61 = vunpack.c.l.bf16 %v6860_v36  ;;  %v6866_v39 = vld [vmem:[%s7238_s23 + $0x2c8] sm:$0xff]  }
  0xe5   : > { %v1974_v10 = vmax.f32 %v1582_v21, 0.0  ;;  %v1584_v51 = vadd.f32 %v7510_v30, %v1186_v60  ;;  %v1188_v33 = vmul.f32 %v5345_v4, %v7479_v52  ;;  %v5349_v5 = vunpack.c.h.bf16 %v6860_v36 }
  0xe6   : > { %v1975_v37 = vmax.f32 %v1583_v24, 0.0  ;;  %7051 = vst [vmem:[%s7546_s30 + $0x278] sm:$0xff] %v6196_v25   ;;  %v1585_v47 = vadd.f32 %v7510_v30, %v1187_v40  ;;  %v1189_v11 = vmul.f32 %v5348_v61, %v7479_v52  ;;  %v5352_v12 = vunpack.c.l.bf16 %v6861_v63 }
  0xe7   : > { %v6201_v9 = vpack.c.bf16 %v1974_v10, %v1973_v28  ;;  %v1976_v49 = vmax.f32 %v1584_v51, 0.0  ;;  %v1586_v19 = vadd.f32 %v7510_v30, %v1188_v33  ;;  %v1190_v56 = vmul.f32 %v5349_v5, %v7479_v52 }
  0xe8   : > { %v5353_v44 = vunpack.c.h.bf16 %v6861_v63  ;;  %v1977_v26 = vmax.f32 %v1585_v47, 0.0  ;;  %v1587_v59 = vadd.f32 %v7510_v30, %v1189_v11  ;;  %v1191_v13 = vmul.f32 %v5352_v12, %v7479_v52  ;;  %v6867_v63 = vld [vmem:[%s7238_s23 + $0x2d0] sm:$0xff]  }
  0xe9   : > { %7052 = vst [vmem:[%s7546_s30 + $0x280] sm:$0xff] %v6201_v9   ;;  %v5356_v23 = vunpack.c.l.bf16 %v6862_v38  ;;  %v6206_v58 = vpack.c.bf16 %v1976_v49, %v1975_v37  ;;  %v1978_v6 = vmax.f32 %v1586_v19, 0.0  ;;  %v1588_v22 = vadd.f32 %v7510_v30, %v1190_v56 }
  0xea   : > { %v1192_v31 = vmul.f32 %v5353_v44, %v7479_v52  ;;  %v1979_v55 = vmax.f32 %v1587_v59, 0.0  ;;  %v1589_v41 = vadd.f32 %v7510_v30, %v1191_v13  ;;  %v5357_v2 = vunpack.c.h.bf16 %v6862_v38  ;;  %v6868_v38 = vld [vmem:[%s7238_s23 + $0x2d8] sm:$0xff]  }
  0xeb   : > { %v1193_v34 = vmul.f32 %v5356_v23, %v7479_v52  ;;  %7053 = vst [vmem:[%s7546_s30 + $0x288] sm:$0xff] %v6206_v58   ;;  %v6211_v48 = vpack.c.bf16 %v1978_v6, %v1977_v26  ;;  %v1980_v46 = vmax.f32 %v1588_v22, 0.0  ;;  %v5360_v32 = vunpack.c.l.bf16 %v6863_v15  ;;  %v6869_v26 = vld [vmem:[%s7238_s23 + $0x2e0] sm:$0xff]  }
  0xec   : > { %v1590_v3 = vadd.f32 %v7510_v30, %v1192_v31  ;;  %v1981_v45 = vmax.f32 %v1589_v41, 0.0  ;;  %v1194_v35 = vmul.f32 %v5357_v2, %v7479_v52  ;;  %v5361_v16 = vunpack.c.h.bf16 %v6863_v15 }
  0xed   : > { %v1591_v1 = vadd.f32 %v7510_v30, %v1193_v34  ;;  %7054 = vst [vmem:[%s7546_s30 + $0x290] sm:$0xff] %v6211_v48   ;;  %v6216_v17 = vpack.c.bf16 %v1980_v46, %v1979_v55  ;;  %v1195_v43 = vmul.f32 %v5360_v32, %v7479_v52  ;;  %v5364_v29 = vunpack.c.l.bf16 %v6864_v57  ;;  %v6870_v55 = vld [vmem:[%s7238_s23 + $0x2e8] sm:$0xff]  }
  0xee   : > { %v1982_v54 = vmax.f32 %v1590_v3, 0.0  ;;  %v1592_v18 = vadd.f32 %v7510_v30, %v1194_v35  ;;  %v1196_v20 = vmul.f32 %v5361_v16, %v7479_v52  ;;  %v5365_v62 = vunpack.c.h.bf16 %v6864_v57 }
  0xef   : > { %v1983_v8 = vmax.f32 %v1591_v1, 0.0  ;;  %7055 = vst [vmem:[%s7546_s30 + $0x298] sm:$0xff] %v6216_v17   ;;  %v1593_v14 = vadd.f32 %v7510_v30, %v1195_v43  ;;  %v1197_v50 = vmul.f32 %v5364_v29, %v7479_v52  ;;  %v5368_v36 = vunpack.c.l.bf16 %v6865_v27 }
  0xf0   : > { %v6221_v0 = vpack.c.bf16 %v1982_v54, %v1981_v45  ;;  %v1984_v42 = vmax.f32 %v1592_v18, 0.0  ;;  %v1594_v53 = vadd.f32 %v7510_v30, %v1196_v20  ;;  %v1198_v21 = vmul.f32 %v5365_v62, %v7479_v52 }
  0xf1   : > { %v5369_v7 = vunpack.c.h.bf16 %v6865_v27  ;;  %v1985_v28 = vmax.f32 %v1593_v14, 0.0  ;;  %v1595_v60 = vadd.f32 %v7510_v30, %v1197_v50  ;;  %v1199_v24 = vmul.f32 %v5368_v36, %v7479_v52  ;;  %v6871_v27 = vld [vmem:[%s7238_s23 + $0x2f0] sm:$0xff]  }
  0xf2   : > { %7056 = vst [vmem:[%s7546_s30 + $0x2a0] sm:$0xff] %v6221_v0   ;;  %v5372_v4 = vunpack.c.l.bf16 %v6866_v39  ;;  %v6226_v25 = vpack.c.bf16 %v1984_v42, %v1983_v8  ;;  %v1986_v10 = vmax.f32 %v1594_v53, 0.0  ;;  %v1596_v40 = vadd.f32 %v7510_v30, %v1198_v21 }
  0xf3   : > { %v1200_v61 = vmul.f32 %v5369_v7, %v7479_v52  ;;  %v1987_v51 = vmax.f32 %v1595_v60, 0.0  ;;  %v1597_v37 = vadd.f32 %v7510_v30, %v1199_v24  ;;  %v5373_v33 = vunpack.c.h.bf16 %v6866_v39  ;;  %v6872_v39 = vld [vmem:[%s7238_s23 + $0x2f8] sm:$0xff]  }
  0xf4   : > { %v1201_v5 = vmul.f32 %v5372_v4, %v7479_v52  ;;  %7057 = vst [vmem:[%s7546_s30 + $0x2a8] sm:$0xff] %v6226_v25   ;;  %v6231_v9 = vpack.c.bf16 %v1986_v10, %v1985_v28  ;;  %v1988_v47 = vmax.f32 %v1596_v40, 0.0  ;;  %v5376_v12 = vunpack.c.l.bf16 %v6867_v63  ;;  %v6873_v28 = vld [vmem:[%s7238_s23 + $0x300] sm:$0xff]  }
  0xf5   : > { %v1598_v11 = vadd.f32 %v7510_v30, %v1200_v61  ;;  %v1989_v49 = vmax.f32 %v1597_v37, 0.0  ;;  %v1202_v19 = vmul.f32 %v5373_v33, %v7479_v52  ;;  %v5377_v44 = vunpack.c.h.bf16 %v6867_v63 }
  0xf6   : > { %v1599_v56 = vadd.f32 %v7510_v30, %v1201_v5  ;;  %7058 = vst [vmem:[%s7546_s30 + $0x2b0] sm:$0xff] %v6231_v9   ;;  %v6236_v59 = vpack.c.bf16 %v1988_v47, %v1987_v51  ;;  %v1203_v23 = vmul.f32 %v5376_v12, %v7479_v52  ;;  %v5380_v15 = vunpack.c.l.bf16 %v6868_v38  ;;  %v6874_v51 = vld [vmem:[%s7238_s23 + $0x308] sm:$0xff]  }
  0xf7   : > { %v1990_v13 = vmax.f32 %v1598_v11, 0.0  ;;  %v1600_v58 = vadd.f32 %v7510_v30, %v1202_v19  ;;  %v1204_v22 = vmul.f32 %v5377_v44, %v7479_v52  ;;  %v5381_v31 = vunpack.c.h.bf16 %v6868_v38 }
  0xf8   : > { %v1991_v6 = vmax.f32 %v1599_v56, 0.0  ;;  %7059 = vst [vmem:[%s7546_s30 + $0x2b8] sm:$0xff] %v6236_v59   ;;  %v1601_v2 = vadd.f32 %v7510_v30, %v1203_v23  ;;  %v1205_v34 = vmul.f32 %v5380_v15, %v7479_v52  ;;  %v5384_v57 = vunpack.c.l.bf16 %v6869_v26 }
  0xf9   : > { %v6241_v41 = vpack.c.bf16 %v1990_v13, %v1989_v49  ;;  %v1992_v48 = vmax.f32 %v1600_v58, 0.0  ;;  %v1602_v46 = vadd.f32 %v7510_v30, %v1204_v22  ;;  %v1206_v3 = vmul.f32 %v5381_v31, %v7479_v52 }
  0xfa   : > { %v5385_v32 = vunpack.c.h.bf16 %v6869_v26  ;;  %v1993_v45 = vmax.f32 %v1601_v2, 0.0  ;;  %v1603_v35 = vadd.f32 %v7510_v30, %v1205_v34  ;;  %v1207_v1 = vmul.f32 %v5384_v57, %v7479_v52  ;;  %v6875_v26 = vld [vmem:[%s7238_s23 + $0x310] sm:$0xff]  }
  0xfb   : > { %7060 = vst [vmem:[%s7546_s30 + $0x2c0] sm:$0xff] %v6241_v41   ;;  %v5388_v16 = vunpack.c.l.bf16 %v6870_v55  ;;  %v6246_v17 = vpack.c.bf16 %v1992_v48, %v1991_v6  ;;  %v1994_v54 = vmax.f32 %v1602_v46, 0.0  ;;  %v1604_v43 = vadd.f32 %v7510_v30, %v1206_v3 }
  0xfc   : > { %v1208_v29 = vmul.f32 %v5385_v32, %v7479_v52  ;;  %v1995_v18 = vmax.f32 %v1603_v35, 0.0  ;;  %v1605_v8 = vadd.f32 %v7510_v30, %v1207_v1  ;;  %v5389_v20 = vunpack.c.h.bf16 %v6870_v55  ;;  %v6876_v55 = vld [vmem:[%s7238_s23 + $0x318] sm:$0xff]  }
  0xfd   : > { %v1209_v62 = vmul.f32 %v5388_v16, %v7479_v52  ;;  %7061 = vst [vmem:[%s7546_s30 + $0x2c8] sm:$0xff] %v6246_v17   ;;  %v6251_v0 = vpack.c.bf16 %v1994_v54, %v1993_v45  ;;  %v1996_v14 = vmax.f32 %v1604_v43, 0.0  ;;  %v5392_v36 = vunpack.c.l.bf16 %v6871_v27  ;;  %v6877_v45 = vld [vmem:[%s7238_s23 + $0x320] sm:$0xff]  }
  0xfe   : > { %v1606_v50 = vadd.f32 %v7510_v30, %v1208_v29  ;;  %v1997_v42 = vmax.f32 %v1605_v8, 0.0  ;;  %v1210_v53 = vmul.f32 %v5389_v20, %v7479_v52  ;;  %v5393_v7 = vunpack.c.h.bf16 %v6871_v27 }
  0xff   : > { %v1607_v21 = vadd.f32 %v7510_v30, %v1209_v62  ;;  %7062 = vst [vmem:[%s7546_s30 + $0x2d0] sm:$0xff] %v6251_v0   ;;  %v6256_v60 = vpack.c.bf16 %v1996_v14, %v1995_v18  ;;  %v1211_v4 = vmul.f32 %v5392_v36, %v7479_v52  ;;  %v5396_v63 = vunpack.c.l.bf16 %v6872_v39  ;;  %v6878_v18 = vld [vmem:[%s7238_s23 + $0x328] sm:$0xff]  }
 0x100   : > { %v1998_v24 = vmax.f32 %v1606_v50, 0.0  ;;  %v1608_v25 = vadd.f32 %v7510_v30, %v1210_v53  ;;  %v1212_v40 = vmul.f32 %v5393_v7, %v7479_v52  ;;  %v5397_v61 = vunpack.c.h.bf16 %v6872_v39 }
 0x101   : > { %v1999_v10 = vmax.f32 %v1607_v21, 0.0  ;;  %7063 = vst [vmem:[%s7546_s30 + $0x2d8] sm:$0xff] %v6256_v60   ;;  %v1609_v33 = vadd.f32 %v7510_v30, %v1211_v4  ;;  %v1213_v5 = vmul.f32 %v5396_v63, %v7479_v52  ;;  %v5400_v38 = vunpack.c.l.bf16 %v6873_v28 }
 0x102   : > { %v6261_v37 = vpack.c.bf16 %v1998_v24, %v1997_v42  ;;  %v2000_v9 = vmax.f32 %v1608_v25, 0.0  ;;  %v1610_v47 = vadd.f32 %v7510_v30, %v1212_v40  ;;  %v1214_v11 = vmul.f32 %v5397_v61, %v7479_v52 }
 0x103   : > { %v5401_v12 = vunpack.c.h.bf16 %v6873_v28  ;;  %v2001_v49 = vmax.f32 %v1609_v33, 0.0  ;;  %v1611_v19 = vadd.f32 %v7510_v30, %v1213_v5  ;;  %v1215_v56 = vmul.f32 %v5400_v38, %v7479_v52  ;;  %v6879_v28 = vld [vmem:[%s7238_s23 + $0x330] sm:$0xff]  }
 0x104   : > { %7064 = vst [vmem:[%s7546_s30 + $0x2e0] sm:$0xff] %v6261_v37   ;;  %v5404_v44 = vunpack.c.l.bf16 %v6874_v51  ;;  %v6266_v59 = vpack.c.bf16 %v2000_v9, %v1999_v10  ;;  %v2002_v13 = vmax.f32 %v1610_v47, 0.0  ;;  %v1612_v23 = vadd.f32 %v7510_v30, %v1214_v11 }
 0x105   : > { %v1216_v15 = vmul.f32 %v5401_v12, %v7479_v52  ;;  %v2003_v58 = vmax.f32 %v1611_v19, 0.0  ;;  %v1613_v6 = vadd.f32 %v7510_v30, %v1215_v56  ;;  %v5405_v22 = vunpack.c.h.bf16 %v6874_v51  ;;  %v6880_v51 = vld [vmem:[%s7238_s23 + $0x338] sm:$0xff]  }
 0x106   : > { %v1217_v31 = vmul.f32 %v5404_v44, %v7479_v52  ;;  %7065 = vst [vmem:[%s7546_s30 + $0x2e8] sm:$0xff] %v6266_v59   ;;  %v6271_v41 = vpack.c.bf16 %v2002_v13, %v2001_v49  ;;  %v2004_v2 = vmax.f32 %v1612_v23, 0.0  ;;  %v5408_v57 = vunpack.c.l.bf16 %v6875_v26  ;;  %v6881_v49 = vld [vmem:[%s7238_s23 + $0x340] sm:$0xff]  }
 0x107   : > { %v1614_v34 = vadd.f32 %v7510_v30, %v1216_v15  ;;  %v2005_v48 = vmax.f32 %v1613_v6, 0.0  ;;  %v1218_v46 = vmul.f32 %v5405_v22, %v7479_v52  ;;  %v5409_v32 = vunpack.c.h.bf16 %v6875_v26 }
 0x108   : > { %v1615_v3 = vadd.f32 %v7510_v30, %v1217_v31  ;;  %7066 = vst [vmem:[%s7546_s30 + $0x2f0] sm:$0xff] %v6271_v41   ;;  %v6276_v35 = vpack.c.bf16 %v2004_v2, %v2003_v58  ;;  %v1219_v16 = vmul.f32 %v5408_v57, %v7479_v52  ;;  %v5412_v27 = vunpack.c.l.bf16 %v6876_v55  ;;  %v6882_v58 = vld [vmem:[%s7238_s23 + $0x348] sm:$0xff]  }
 0x109   : > { %v2006_v1 = vmax.f32 %v1614_v34, 0.0  ;;  %v1616_v17 = vadd.f32 %v7510_v30, %v1218_v46  ;;  %v1220_v43 = vmul.f32 %v5409_v32, %v7479_v52  ;;  %v5413_v29 = vunpack.c.h.bf16 %v6876_v55 }
 0x10a   : > { %v2007_v54 = vmax.f32 %v1615_v3, 0.0  ;;  %7067 = vst [vmem:[%s7546_s30 + $0x2f8] sm:$0xff] %v6276_v35   ;;  %v1617_v20 = vadd.f32 %v7510_v30, %v1219_v16  ;;  %v1221_v62 = vmul.f32 %v5412_v27, %v7479_v52  ;;  %v5416_v39 = vunpack.c.l.bf16 %v6877_v45 }
 0x10b   : > { %v6281_v8 = vpack.c.bf16 %v2006_v1, %v2005_v48  ;;  %v2008_v0 = vmax.f32 %v1616_v17, 0.0  ;;  %v1618_v14 = vadd.f32 %v7510_v30, %v1220_v43  ;;  %v1222_v50 = vmul.f32 %v5413_v29, %v7479_v52 }
 0x10c   : > { %v5417_v36 = vunpack.c.h.bf16 %v6877_v45  ;;  %v2009_v42 = vmax.f32 %v1617_v20, 0.0  ;;  %v1619_v53 = vadd.f32 %v7510_v30, %v1221_v62  ;;  %v1223_v21 = vmul.f32 %v5416_v39, %v7479_v52  ;;  %v6883_v45 = vld [vmem:[%s7238_s23 + $0x350] sm:$0xff]  }
 0x10d   : > { %7068 = vst [vmem:[%s7546_s30 + $0x300] sm:$0xff] %v6281_v8   ;;  %v5420_v7 = vunpack.c.l.bf16 %v6878_v18  ;;  %v6286_v60 = vpack.c.bf16 %v2008_v0, %v2007_v54  ;;  %v2010_v24 = vmax.f32 %v1618_v14, 0.0  ;;  %v1620_v4 = vadd.f32 %v7510_v30, %v1222_v50 }
 0x10e   : > { %v1224_v63 = vmul.f32 %v5417_v36, %v7479_v52  ;;  %v2011_v25 = vmax.f32 %v1619_v53, 0.0  ;;  %v1621_v10 = vadd.f32 %v7510_v30, %v1223_v21  ;;  %v5421_v40 = vunpack.c.h.bf16 %v6878_v18  ;;  %v6884_v18 = vld [vmem:[%s7238_s23 + $0x358] sm:$0xff]  }
 0x10f   : > { %v1225_v61 = vmul.f32 %v5420_v7, %v7479_v52  ;;  %7069 = vst [vmem:[%s7546_s30 + $0x308] sm:$0xff] %v6286_v60   ;;  %v6291_v37 = vpack.c.bf16 %v2010_v24, %v2009_v42  ;;  %v2012_v33 = vmax.f32 %v1620_v4, 0.0  ;;  %v5424_v38 = vunpack.c.l.bf16 %v6879_v28  ;;  %v6885_v42 = vld [vmem:[%s7238_s23 + $0x360] sm:$0xff]  }
 0x110   : > { %v1622_v5 = vadd.f32 %v7510_v30, %v1224_v63  ;;  %v2013_v9 = vmax.f32 %v1621_v10, 0.0  ;;  %v1226_v47 = vmul.f32 %v5421_v40, %v7479_v52  ;;  %v5425_v12 = vunpack.c.h.bf16 %v6879_v28 }
 0x111   : > { %v1623_v11 = vadd.f32 %v7510_v30, %v1225_v61  ;;  %7070 = vst [vmem:[%s7546_s30 + $0x310] sm:$0xff] %v6291_v37   ;;  %v6296_v19 = vpack.c.bf16 %v2012_v33, %v2011_v25  ;;  %v1227_v44 = vmul.f32 %v5424_v38, %v7479_v52  ;;  %v5428_v26 = vunpack.c.l.bf16 %v6880_v51  ;;  %v6886_v25 = vld [vmem:[%s7238_s23 + $0x368] sm:$0xff]  }
 0x112   : > { %v2014_v56 = vmax.f32 %v1622_v5, 0.0  ;;  %v1624_v59 = vadd.f32 %v7510_v30, %v1226_v47  ;;  %v1228_v23 = vmul.f32 %v5425_v12, %v7479_v52  ;;  %v5429_v15 = vunpack.c.h.bf16 %v6880_v51 }
 0x113   : > { %v2015_v13 = vmax.f32 %v1623_v11, 0.0  ;;  %7071 = vst [vmem:[%s7546_s30 + $0x318] sm:$0xff] %v6296_v19   ;;  %v1625_v22 = vadd.f32 %v7510_v30, %v1227_v44  ;;  %v1229_v31 = vmul.f32 %v5428_v26, %v7479_v52  ;;  %v5432_v55 = vunpack.c.l.bf16 %v6881_v49 }
 0x114   : > { %v6301_v6 = vpack.c.bf16 %v2014_v56, %v2013_v9  ;;  %v2016_v41 = vmax.f32 %v1624_v59, 0.0  ;;  %v1626_v2 = vadd.f32 %v7510_v30, %v1228_v23  ;;  %v1230_v34 = vmul.f32 %v5429_v15, %v7479_v52 }
 0x115   : > { %v5433_v57 = vunpack.c.h.bf16 %v6881_v49  ;;  %v2017_v48 = vmax.f32 %v1625_v22, 0.0  ;;  %v1627_v46 = vadd.f32 %v7510_v30, %v1229_v31  ;;  %v1231_v3 = vmul.f32 %v5432_v55, %v7479_v52  ;;  %v6887_v49 = vld [vmem:[%s7238_s23 + $0x370] sm:$0xff]  }
 0x116   : > { %7072 = vst [vmem:[%s7546_s30 + $0x320] sm:$0xff] %v6301_v6   ;;  %v5436_v32 = vunpack.c.l.bf16 %v6882_v58  ;;  %v6306_v35 = vpack.c.bf16 %v2016_v41, %v2015_v13  ;;  %v2018_v1 = vmax.f32 %v1626_v2, 0.0  ;;  %v1628_v16 = vadd.f32 %v7510_v30, %v1230_v34 }
 0x117   : > { %v1232_v27 = vmul.f32 %v5433_v57, %v7479_v52  ;;  %v2019_v17 = vmax.f32 %v1627_v46, 0.0  ;;  %v1629_v54 = vadd.f32 %v7510_v30, %v1231_v3  ;;  %v5437_v43 = vunpack.c.h.bf16 %v6882_v58  ;;  %v6888_v58 = vld [vmem:[%s7238_s23 + $0x378] sm:$0xff]  }
 0x118   : > { %v1233_v29 = vmul.f32 %v5436_v32, %v7479_v52  ;;  %7073 = vst [vmem:[%s7546_s30 + $0x328] sm:$0xff] %v6306_v35   ;;  %v6311_v8 = vpack.c.bf16 %v2018_v1, %v2017_v48  ;;  %v2020_v20 = vmax.f32 %v1628_v16, 0.0  ;;  %v5440_v39 = vunpack.c.l.bf16 %v6883_v45  ;;  %v6889_v48 = vld [vmem:[%s7238_s23 + $0x380] sm:$0xff]  }
 0x119   : > { %v1630_v62 = vadd.f32 %v7510_v30, %v1232_v27  ;;  %v2021_v0 = vmax.f32 %v1629_v54, 0.0  ;;  %v1234_v14 = vmul.f32 %v5437_v43, %v7479_v52  ;;  %v5441_v36 = vunpack.c.h.bf16 %v6883_v45 }
 0x11a   : > { %v1631_v50 = vadd.f32 %v7510_v30, %v1233_v29  ;;  %7074 = vst [vmem:[%s7546_s30 + $0x330] sm:$0xff] %v6311_v8   ;;  %v6316_v53 = vpack.c.bf16 %v2020_v20, %v2019_v17  ;;  %v1235_v7 = vmul.f32 %v5440_v39, %v7479_v52  ;;  %v5444_v28 = vunpack.c.l.bf16 %v6884_v18  ;;  %v6890_v17 = vld [vmem:[%s7238_s23 + $0x388] sm:$0xff]  }
 0x11b   : > { %v2022_v21 = vmax.f32 %v1630_v62, 0.0  ;;  %v1632_v60 = vadd.f32 %v7510_v30, %v1234_v14  ;;  %v1236_v4 = vmul.f32 %v5441_v36, %v7479_v52  ;;  %v5445_v63 = vunpack.c.h.bf16 %v6884_v18 }
 0x11c   : > { %v2023_v24 = vmax.f32 %v1631_v50, 0.0  ;;  %7075 = vst [vmem:[%s7546_s30 + $0x338] sm:$0xff] %v6316_v53   ;;  %v1633_v40 = vadd.f32 %v7510_v30, %v1235_v7  ;;  %v1237_v61 = vmul.f32 %v5444_v28, %v7479_v52  ;;  %v5448_v51 = vunpack.c.l.bf16 %v6885_v42 }
 0x11d   : > { %v6321_v10 = vpack.c.bf16 %v2022_v21, %v2021_v0  ;;  %v2024_v37 = vmax.f32 %v1632_v60, 0.0  ;;  %v1634_v33 = vadd.f32 %v7510_v30, %v1236_v4  ;;  %v1238_v5 = vmul.f32 %v5445_v63, %v7479_v52 }
 0x11e   : > { %v5449_v38 = vunpack.c.h.bf16 %v6885_v42  ;;  %v2025_v9 = vmax.f32 %v1633_v40, 0.0  ;;  %v1635_v47 = vadd.f32 %v7510_v30, %v1237_v61  ;;  %v1239_v11 = vmul.f32 %v5448_v51, %v7479_v52  ;;  %v6891_v42 = vld [vmem:[%s7238_s23 + $0x390] sm:$0xff]  }
 0x11f   : > { %7076 = vst [vmem:[%s7546_s30 + $0x340] sm:$0xff] %v6321_v10   ;;  %v5452_v12 = vunpack.c.l.bf16 %v6886_v25  ;;  %v6326_v19 = vpack.c.bf16 %v2024_v37, %v2023_v24  ;;  %v2026_v56 = vmax.f32 %v1634_v33, 0.0  ;;  %v1636_v44 = vadd.f32 %v7510_v30, %v1238_v5 }
 0x120   : > { %v1240_v26 = vmul.f32 %v5449_v38, %v7479_v52  ;;  %v2027_v59 = vmax.f32 %v1635_v47, 0.0  ;;  %v1637_v13 = vadd.f32 %v7510_v30, %v1239_v11  ;;  %v5453_v23 = vunpack.c.h.bf16 %v6886_v25  ;;  %v6892_v25 = vld [vmem:[%s7238_s23 + $0x398] sm:$0xff]  }
 0x121   : > { %v1241_v15 = vmul.f32 %v5452_v12, %v7479_v52  ;;  %7077 = vst [vmem:[%s7546_s30 + $0x348] sm:$0xff] %v6326_v19   ;;  %v6331_v6 = vpack.c.bf16 %v2026_v56, %v2025_v9  ;;  %v2028_v22 = vmax.f32 %v1636_v44, 0.0  ;;  %v5456_v55 = vunpack.c.l.bf16 %v6887_v49  ;;  %v6893_v9 = vld [vmem:[%s7238_s23 + $0x3a0] sm:$0xff]  }
 0x122   : > { %v1638_v31 = vadd.f32 %v7510_v30, %v1240_v26  ;;  %v2029_v41 = vmax.f32 %v1637_v13, 0.0  ;;  %v1242_v2 = vmul.f32 %v5453_v23, %v7479_v52  ;;  %v5457_v57 = vunpack.c.h.bf16 %v6887_v49 }
 0x123   : > { %v1639_v34 = vadd.f32 %v7510_v30, %v1241_v15  ;;  %7078 = vst [vmem:[%s7546_s30 + $0x350] sm:$0xff] %v6331_v6   ;;  %v6336_v46 = vpack.c.bf16 %v2028_v22, %v2027_v59  ;;  %v1243_v32 = vmul.f32 %v5456_v55, %v7479_v52  ;;  %v5460_v45 = vunpack.c.l.bf16 %v6888_v58  ;;  %v6894_v59 = vld [vmem:[%s7238_s23 + $0x3a8] sm:$0xff]  }
 0x124   : > { %v2030_v3 = vmax.f32 %v1638_v31, 0.0  ;;  %v1640_v35 = vadd.f32 %v7510_v30, %v1242_v2  ;;  %v1244_v16 = vmul.f32 %v5457_v57, %v7479_v52  ;;  %v5461_v27 = vunpack.c.h.bf16 %v6888_v58 }
 0x125   : > { %v2031_v1 = vmax.f32 %v1639_v34, 0.0  ;;  %7079 = vst [vmem:[%s7546_s30 + $0x358] sm:$0xff] %v6336_v46   ;;  %v1641_v43 = vadd.f32 %v7510_v30, %v1243_v32  ;;  %v1245_v29 = vmul.f32 %v5460_v45, %v7479_v52  ;;  %v5464_v18 = vunpack.c.l.bf16 %v6889_v48 }
 0x126   : > { %v6341_v54 = vpack.c.bf16 %v2030_v3, %v2029_v41  ;;  %v2032_v8 = vmax.f32 %v1640_v35, 0.0  ;;  %v1642_v20 = vadd.f32 %v7510_v30, %v1244_v16  ;;  %v1246_v62 = vmul.f32 %v5461_v27, %v7479_v52 }
 0x127   : > { %v5465_v39 = vunpack.c.h.bf16 %v6889_v48  ;;  %v2033_v0 = vmax.f32 %v1641_v43, 0.0  ;;  %v1643_v14 = vadd.f32 %v7510_v30, %v1245_v29  ;;  %v1247_v50 = vmul.f32 %v5464_v18, %v7479_v52  ;;  %v6895_v48 = vld [vmem:[%s7238_s23 + $0x3b0] sm:$0xff]  }
 0x128   : > { %7080 = vst [vmem:[%s7546_s30 + $0x360] sm:$0xff] %v6341_v54   ;;  %v5468_v36 = vunpack.c.l.bf16 %v6890_v17  ;;  %v6346_v53 = vpack.c.bf16 %v2032_v8, %v2031_v1  ;;  %v2034_v21 = vmax.f32 %v1642_v20, 0.0  ;;  %v1644_v7 = vadd.f32 %v7510_v30, %v1246_v62 }
 0x129   : > { %v1248_v28 = vmul.f32 %v5465_v39, %v7479_v52  ;;  %v2035_v60 = vmax.f32 %v1643_v14, 0.0  ;;  %v1645_v24 = vadd.f32 %v7510_v30, %v1247_v50  ;;  %v5469_v4 = vunpack.c.h.bf16 %v6890_v17  ;;  %v6896_v17 = vld [vmem:[%s7238_s23 + $0x3b8] sm:$0xff]  }
 0x12a   : > { %v1249_v63 = vmul.f32 %v5468_v36, %v7479_v52  ;;  %7081 = vst [vmem:[%s7546_s30 + $0x368] sm:$0xff] %v6346_v53   ;;  %v6351_v10 = vpack.c.bf16 %v2034_v21, %v2033_v0  ;;  %v2036_v40 = vmax.f32 %v1644_v7, 0.0  ;;  %v5472_v51 = vunpack.c.l.bf16 %v6891_v42  ;;  %v6897_v0 = vld [vmem:[%s7238_s23 + $0x3c0] sm:$0xff]  }
 0x12b   : > { %v1646_v61 = vadd.f32 %v7510_v30, %v1248_v28  ;;  %v2037_v37 = vmax.f32 %v1645_v24, 0.0  ;;  %v1250_v33 = vmul.f32 %v5469_v4, %v7479_v52  ;;  %v5473_v38 = vunpack.c.h.bf16 %v6891_v42 }
 0x12c   : > { %v1647_v5 = vadd.f32 %v7510_v30, %v1249_v63  ;;  %7082 = vst [vmem:[%s7546_s30 + $0x370] sm:$0xff] %v6351_v10   ;;  %v6356_v47 = vpack.c.bf16 %v2036_v40, %v2035_v60  ;;  %v1251_v12 = vmul.f32 %v5472_v51, %v7479_v52  ;;  %v5476_v49 = vunpack.c.l.bf16 %v6892_v25  ;;  %v6898_v60 = vld [vmem:[%s7238_s23 + $0x3c8] sm:$0xff]  }
 0x12d   : > { %v2038_v11 = vmax.f32 %v1646_v61, 0.0  ;;  %v1648_v19 = vadd.f32 %v7510_v30, %v1250_v33  ;;  %v1252_v44 = vmul.f32 %v5473_v38, %v7479_v52  ;;  %v5477_v26 = vunpack.c.h.bf16 %v6892_v25 }
 0x12e   : > { %v2039_v56 = vmax.f32 %v1647_v5, 0.0  ;;  %7083 = vst [vmem:[%s7546_s30 + $0x378] sm:$0xff] %v6356_v47   ;;  %v1649_v23 = vadd.f32 %v7510_v30, %v1251_v12  ;;  %v1253_v15 = vmul.f32 %v5476_v49, %v7479_v52  ;;  %v5480_v58 = vunpack.c.l.bf16 %v6893_v9 }
 0x12f   : > { %v6361_v13 = vpack.c.bf16 %v2038_v11, %v2037_v37  ;;  %v2040_v6 = vmax.f32 %v1648_v19, 0.0  ;;  %v1650_v22 = vadd.f32 %v7510_v30, %v1252_v44  ;;  %v1254_v31 = vmul.f32 %v5477_v26, %v7479_v52 }
 0x130   : > { %v5481_v55 = vunpack.c.h.bf16 %v6893_v9  ;;  %v2041_v41 = vmax.f32 %v1649_v23, 0.0  ;;  %v1651_v2 = vadd.f32 %v7510_v30, %v1253_v15  ;;  %v1255_v34 = vmul.f32 %v5480_v58, %v7479_v52  ;;  %v6899_v9 = vld [vmem:[%s7238_s23 + $0x3d0] sm:$0xff]  }
 0x131   : > { %7084 = vst [vmem:[%s7546_s30 + $0x380] sm:$0xff] %v6361_v13   ;;  %v5484_v57 = vunpack.c.l.bf16 %v6894_v59  ;;  %v6366_v46 = vpack.c.bf16 %v2040_v6, %v2039_v56  ;;  %v2042_v3 = vmax.f32 %v1650_v22, 0.0  ;;  %v1652_v32 = vadd.f32 %v7510_v30, %v1254_v31 }
 0x132   : > { %v1256_v45 = vmul.f32 %v5481_v55, %v7479_v52  ;;  %v2043_v35 = vmax.f32 %v1651_v2, 0.0  ;;  %v1653_v1 = vadd.f32 %v7510_v30, %v1255_v34  ;;  %v5485_v16 = vunpack.c.h.bf16 %v6894_v59  ;;  %v6900_v59 = vld [vmem:[%s7238_s23 + $0x3d8] sm:$0xff]  }
 0x133   : > { %v1257_v27 = vmul.f32 %v5484_v57, %v7479_v52  ;;  %7085 = vst [vmem:[%s7546_s30 + $0x388] sm:$0xff] %v6366_v46   ;;  %v6371_v54 = vpack.c.bf16 %v2042_v3, %v2041_v41  ;;  %v2044_v43 = vmax.f32 %v1652_v32, 0.0  ;;  %v5488_v18 = vunpack.c.l.bf16 %v6895_v48  ;;  %v6901_v41 = vld [vmem:[%s7238_s23 + $0x3e0] sm:$0xff]  }
 0x134   : > { %v1654_v29 = vadd.f32 %v7510_v30, %v1256_v45  ;;  %v2045_v8 = vmax.f32 %v1653_v1, 0.0  ;;  %v1258_v20 = vmul.f32 %v5485_v16, %v7479_v52  ;;  %v5489_v39 = vunpack.c.h.bf16 %v6895_v48 }
 0x135   : > { %v1655_v62 = vadd.f32 %v7510_v30, %v1257_v27  ;;  %7086 = vst [vmem:[%s7546_s30 + $0x390] sm:$0xff] %v6371_v54   ;;  %v6376_v14 = vpack.c.bf16 %v2044_v43, %v2043_v35  ;;  %v1259_v36 = vmul.f32 %v5488_v18, %v7479_v52  ;;  %v5492_v42 = vunpack.c.l.bf16 %v6896_v17  ;;  %v6902_v35 = vld [vmem:[%s7238_s23 + $0x3e8] sm:$0xff]  }
 0x136   : > { %v2046_v50 = vmax.f32 %v1654_v29, 0.0  ;;  %v1656_v53 = vadd.f32 %v7510_v30, %v1258_v20  ;;  %v1260_v7 = vmul.f32 %v5489_v39, %v7479_v52  ;;  %v5493_v28 = vunpack.c.h.bf16 %v6896_v17 }
 0x137   : > { %v2047_v21 = vmax.f32 %v1655_v62, 0.0  ;;  %7087 = vst [vmem:[%s7546_s30 + $0x398] sm:$0xff] %v6376_v14   ;;  %v1657_v4 = vadd.f32 %v7510_v30, %v1259_v36  ;;  %v1261_v63 = vmul.f32 %v5492_v42, %v7479_v52  ;;  %v5496_v25 = vunpack.c.l.bf16 %v6897_v0 }
 0x138   : > { %v6381_v24 = vpack.c.bf16 %v2046_v50, %v2045_v8  ;;  %v2048_v10 = vmax.f32 %v1656_v53, 0.0  ;;  %v1658_v40 = vadd.f32 %v7510_v30, %v1260_v7  ;;  %v1262_v61 = vmul.f32 %v5493_v28, %v7479_v52 }
 0x139   : > { %v5497_v51 = vunpack.c.h.bf16 %v6897_v0  ;;  %v2049_v37 = vmax.f32 %v1657_v4, 0.0  ;;  %v1659_v33 = vadd.f32 %v7510_v30, %v1261_v63  ;;  %v1263_v5 = vmul.f32 %v5496_v25, %v7479_v52  ;;  %v6903_v0 = vld [vmem:[%s7238_s23 + $0x3f0] sm:$0xff]  }
 0x13a   : > { %7088 = vst [vmem:[%s7546_s30 + $0x3a0] sm:$0xff] %v6381_v24   ;;  %v5500_v38 = vunpack.c.l.bf16 %v6898_v60  ;;  %v6386_v47 = vpack.c.bf16 %v2048_v10, %v2047_v21  ;;  %v2050_v11 = vmax.f32 %v1658_v40, 0.0  ;;  %v1660_v12 = vadd.f32 %v7510_v30, %v1262_v61 }
 0x13b   : > { %v1264_v49 = vmul.f32 %v5497_v51, %v7479_v52  ;;  %v2051_v19 = vmax.f32 %v1659_v33, 0.0  ;;  %v1661_v56 = vadd.f32 %v7510_v30, %v1263_v5  ;;  %v5501_v44 = vunpack.c.h.bf16 %v6898_v60  ;;  %v6904_v60 = vld [vmem:[%s7238_s23 + $0x3f8] sm:$0xff]  }
 0x13c   : > { %v1265_v26 = vmul.f32 %v5500_v38, %v7479_v52  ;;  %7089 = vst [vmem:[%s7546_s30 + $0x3a8] sm:$0xff] %v6386_v47   ;;  %v6391_v13 = vpack.c.bf16 %v2050_v11, %v2049_v37  ;;  %v2052_v23 = vmax.f32 %v1660_v12, 0.0  ;;  %v5504_v58 = vunpack.c.l.bf16 %v6899_v9  ;;  %v6905_v37 = vld [vmem:[%s7238_s23 + $0x400] sm:$0xff]  }
 0x13d   : > { %v1662_v15 = vadd.f32 %v7510_v30, %v1264_v49  ;;  %v2053_v6 = vmax.f32 %v1661_v56, 0.0  ;;  %v1266_v22 = vmul.f32 %v5501_v44, %v7479_v52  ;;  %v5505_v55 = vunpack.c.h.bf16 %v6899_v9 }
 0x13e   : > { %v1663_v31 = vadd.f32 %v7510_v30, %v1265_v26  ;;  %7090 = vst [vmem:[%s7546_s30 + $0x3b0] sm:$0xff] %v6391_v13   ;;  %v6396_v2 = vpack.c.bf16 %v2052_v23, %v2051_v19  ;;  %v1267_v57 = vmul.f32 %v5504_v58, %v7479_v52  ;;  %v5508_v48 = vunpack.c.l.bf16 %v6900_v59  ;;  %v6906_v19 = vld [vmem:[%s7238_s23 + $0x408] sm:$0xff]  }
 0x13f   : > { %v2054_v34 = vmax.f32 %v1662_v15, 0.0  ;;  %v1664_v46 = vadd.f32 %v7510_v30, %v1266_v22  ;;  %v1268_v32 = vmul.f32 %v5505_v55, %v7479_v52  ;;  %v5509_v45 = vunpack.c.h.bf16 %v6900_v59 }
 0x140   : > { %v2055_v3 = vmax.f32 %v1663_v31, 0.0  ;;  %7091 = vst [vmem:[%s7546_s30 + $0x3b8] sm:$0xff] %v6396_v2   ;;  %v1665_v16 = vadd.f32 %v7510_v30, %v1267_v57  ;;  %v1269_v27 = vmul.f32 %v5508_v48, %v7479_v52  ;;  %v5512_v17 = vunpack.c.l.bf16 %v6901_v41 }
 0x141   : > { %v6401_v1 = vpack.c.bf16 %v2054_v34, %v2053_v6  ;;  %v2056_v54 = vmax.f32 %v1664_v46, 0.0  ;;  %v1666_v43 = vadd.f32 %v7510_v30, %v1268_v32  ;;  %v1270_v29 = vmul.f32 %v5509_v45, %v7479_v52 }
 0x142   : > { %v5513_v18 = vunpack.c.h.bf16 %v6901_v41  ;;  %v2057_v8 = vmax.f32 %v1665_v16, 0.0  ;;  %v1667_v20 = vadd.f32 %v7510_v30, %v1269_v27  ;;  %v1271_v62 = vmul.f32 %v5512_v17, %v7479_v52  ;;  %v6907_v41 = vld [vmem:[%s7238_s23 + $0x410] sm:$0xff]  }
 0x143   : > { %7092 = vst [vmem:[%s7546_s30 + $0x3c0] sm:$0xff] %v6401_v1   ;;  %v5516_v39 = vunpack.c.l.bf16 %v6902_v35  ;;  %v6406_v14 = vpack.c.bf16 %v2056_v54, %v2055_v3  ;;  %v2058_v50 = vmax.f32 %v1666_v43, 0.0  ;;  %v1668_v36 = vadd.f32 %v7510_v30, %v1270_v29 }
 0x144   : > { %v1272_v42 = vmul.f32 %v5513_v18, %v7479_v52  ;;  %v2059_v53 = vmax.f32 %v1667_v20, 0.0  ;;  %v1669_v21 = vadd.f32 %v7510_v30, %v1271_v62  ;;  %v5517_v7 = vunpack.c.h.bf16 %v6902_v35  ;;  %v6908_v35 = vld [vmem:[%s7238_s23 + $0x418] sm:$0xff]  }
 0x145   : > { %v1273_v28 = vmul.f32 %v5516_v39, %v7479_v52  ;;  %7093 = vst [vmem:[%s7546_s30 + $0x3c8] sm:$0xff] %v6406_v14   ;;  %v6411_v24 = vpack.c.bf16 %v2058_v50, %v2057_v8  ;;  %v2060_v4 = vmax.f32 %v1668_v36, 0.0  ;;  %v5520_v25 = vunpack.c.l.bf16 %v6903_v0  ;;  %v6909_v8 = vld [vmem:[%s7238_s23 + $0x420] sm:$0xff]  }
 0x146   : > { %v1670_v63 = vadd.f32 %v7510_v30, %v1272_v42  ;;  %v2061_v10 = vmax.f32 %v1669_v21, 0.0  ;;  %v1274_v40 = vmul.f32 %v5517_v7, %v7479_v52  ;;  %v5521_v51 = vunpack.c.h.bf16 %v6903_v0 }
 0x147   : > { %v1671_v61 = vadd.f32 %v7510_v30, %v1273_v28  ;;  %7094 = vst [vmem:[%s7546_s30 + $0x3d0] sm:$0xff] %v6411_v24   ;;  %v6416_v33 = vpack.c.bf16 %v2060_v4, %v2059_v53  ;;  %v1275_v38 = vmul.f32 %v5520_v25, %v7479_v52  ;;  %v5524_v9 = vunpack.c.l.bf16 %v6904_v60  ;;  %v6910_v53 = vld [vmem:[%s7238_s23 + $0x428] sm:$0xff]  }
 0x148   : > { %v2062_v5 = vmax.f32 %v1670_v63, 0.0  ;;  %v1672_v47 = vadd.f32 %v7510_v30, %v1274_v40  ;;  %v1276_v12 = vmul.f32 %v5521_v51, %v7479_v52  ;;  %v5525_v49 = vunpack.c.h.bf16 %v6904_v60 }
 0x149   : > { %v2063_v11 = vmax.f32 %v1671_v61, 0.0  ;;  %7095 = vst [vmem:[%s7546_s30 + $0x3d8] sm:$0xff] %v6416_v33   ;;  %v1673_v44 = vadd.f32 %v7510_v30, %v1275_v38  ;;  %v1277_v26 = vmul.f32 %v5524_v9, %v7479_v52  ;;  %v5528_v59 = vunpack.c.l.bf16 %v6905_v37 }
 0x14a   : > { %v6421_v56 = vpack.c.bf16 %v2062_v5, %v2061_v10  ;;  %v2064_v13 = vmax.f32 %v1672_v47, 0.0  ;;  %v1674_v23 = vadd.f32 %v7510_v30, %v1276_v12  ;;  %v1278_v15 = vmul.f32 %v5525_v49, %v7479_v52 }
 0x14b   : > { %v5529_v58 = vunpack.c.h.bf16 %v6905_v37  ;;  %v2065_v6 = vmax.f32 %v1673_v44, 0.0  ;;  %v1675_v22 = vadd.f32 %v7510_v30, %v1277_v26  ;;  %v1279_v31 = vmul.f32 %v5528_v59, %v7479_v52  ;;  %v6911_v37 = vld [vmem:[%s7238_s23 + $0x430] sm:$0xff]  }
 0x14c   : > { %7096 = vst [vmem:[%s7546_s30 + $0x3e0] sm:$0xff] %v6421_v56   ;;  %v5532_v55 = vunpack.c.l.bf16 %v6906_v19  ;;  %v6426_v2 = vpack.c.bf16 %v2064_v13, %v2063_v11  ;;  %v2066_v34 = vmax.f32 %v1674_v23, 0.0  ;;  %v1676_v57 = vadd.f32 %v7510_v30, %v1278_v15 }
 0x14d   : > { %v1280_v48 = vmul.f32 %v5529_v58, %v7479_v52  ;;  %v2067_v46 = vmax.f32 %v1675_v22, 0.0  ;;  %v1677_v3 = vadd.f32 %v7510_v30, %v1279_v31  ;;  %v5533_v32 = vunpack.c.h.bf16 %v6906_v19  ;;  %v6912_v19 = vld [vmem:[%s7238_s23 + $0x438] sm:$0xff]  }
 0x14e   : > { %v1281_v45 = vmul.f32 %v5532_v55, %v7479_v52  ;;  %7097 = vst [vmem:[%s7546_s30 + $0x3e8] sm:$0xff] %v6426_v2   ;;  %v6431_v1 = vpack.c.bf16 %v2066_v34, %v2065_v6  ;;  %v2068_v16 = vmax.f32 %v1676_v57, 0.0  ;;  %v5536_v17 = vunpack.c.l.bf16 %v6907_v41  ;;  %v6913_v6 = vld [vmem:[%s7238_s23 + $0x440] sm:$0xff]  }
 0x14f   : > { %v1678_v27 = vadd.f32 %v7510_v30, %v1280_v48  ;;  %v2069_v54 = vmax.f32 %v1677_v3, 0.0  ;;  %v1282_v43 = vmul.f32 %v5533_v32, %v7479_v52  ;;  %v5537_v18 = vunpack.c.h.bf16 %v6907_v41 }
 0x150   : > { %v1679_v29 = vadd.f32 %v7510_v30, %v1281_v45  ;;  %7098 = vst [vmem:[%s7546_s30 + $0x3f0] sm:$0xff] %v6431_v1   ;;  %v6436_v20 = vpack.c.bf16 %v2068_v16, %v2067_v46  ;;  %v1283_v39 = vmul.f32 %v5536_v17, %v7479_v52  ;;  %v5540_v0 = vunpack.c.l.bf16 %v6908_v35  ;;  %v6914_v46 = vld [vmem:[%s7238_s23 + $0x448] sm:$0xff]  }
 0x151   : > { %v2070_v62 = vmax.f32 %v1678_v27, 0.0  ;;  %v1680_v14 = vadd.f32 %v7510_v30, %v1282_v43  ;;  %v1284_v36 = vmul.f32 %v5537_v18, %v7479_v52  ;;  %v5541_v42 = vunpack.c.h.bf16 %v6908_v35 }
 0x152   : > { %v2071_v50 = vmax.f32 %v1679_v29, 0.0  ;;  %7099 = vst [vmem:[%s7546_s30 + $0x3f8] sm:$0xff] %v6436_v20   ;;  %v1681_v7 = vadd.f32 %v7510_v30, %v1283_v39  ;;  %v1285_v28 = vmul.f32 %v5540_v0, %v7479_v52  ;;  %v5544_v60 = vunpack.c.l.bf16 %v6909_v8 }
 0x153   : > { %v6441_v21 = vpack.c.bf16 %v2070_v62, %v2069_v54  ;;  %v2072_v24 = vmax.f32 %v1680_v14, 0.0  ;;  %v1682_v4 = vadd.f32 %v7510_v30, %v1284_v36  ;;  %v1286_v63 = vmul.f32 %v5541_v42, %v7479_v52 }
 0x154   : > { %v5545_v25 = vunpack.c.h.bf16 %v6909_v8  ;;  %v2073_v10 = vmax.f32 %v1681_v7, 0.0  ;;  %v1683_v40 = vadd.f32 %v7510_v30, %v1285_v28  ;;  %v1287_v61 = vmul.f32 %v5544_v60, %v7479_v52  ;;  %v6915_v8 = vld [vmem:[%s7238_s23 + $0x450] sm:$0xff]  }
 0x155   : > { %7100 = vst [vmem:[%s7546_s30 + $0x400] sm:$0xff] %v6441_v21   ;;  %v5548_v51 = vunpack.c.l.bf16 %v6910_v53  ;;  %v6446_v33 = vpack.c.bf16 %v2072_v24, %v2071_v50  ;;  %v2074_v5 = vmax.f32 %v1682_v4, 0.0  ;;  %v1684_v38 = vadd.f32 %v7510_v30, %v1286_v63 }
 0x156   : > { %v1288_v9 = vmul.f32 %v5545_v25, %v7479_v52  ;;  %v2075_v47 = vmax.f32 %v1683_v40, 0.0  ;;  %v1685_v11 = vadd.f32 %v7510_v30, %v1287_v61  ;;  %v5549_v12 = vunpack.c.h.bf16 %v6910_v53  ;;  %v6916_v53 = vld [vmem:[%s7238_s23 + $0x458] sm:$0xff]  }
 0x157   : > { %v1289_v49 = vmul.f32 %v5548_v51, %v7479_v52  ;;  %7101 = vst [vmem:[%s7546_s30 + $0x408] sm:$0xff] %v6446_v33   ;;  %v6451_v56 = vpack.c.bf16 %v2074_v5, %v2073_v10  ;;  %v2076_v44 = vmax.f32 %v1684_v38, 0.0  ;;  %v5552_v59 = vunpack.c.l.bf16 %v6911_v37  ;;  %v6917_v10 = vld [vmem:[%s7238_s23 + $0x460] sm:$0xff]  }
 0x158   : > { %v1686_v26 = vadd.f32 %v7510_v30, %v1288_v9  ;;  %v2077_v13 = vmax.f32 %v1685_v11, 0.0  ;;  %v1290_v23 = vmul.f32 %v5549_v12, %v7479_v52  ;;  %v5553_v58 = vunpack.c.h.bf16 %v6911_v37 }
 0x159   : > { %v1687_v15 = vadd.f32 %v7510_v30, %v1289_v49  ;;  %7102 = vst [vmem:[%s7546_s30 + $0x410] sm:$0xff] %v6451_v56   ;;  %v6456_v22 = vpack.c.bf16 %v2076_v44, %v2075_v47  ;;  %v1291_v55 = vmul.f32 %v5552_v59, %v7479_v52  ;;  %v5556_v41 = vunpack.c.l.bf16 %v6912_v19  ;;  %v6918_v47 = vld [vmem:[%s7238_s23 + $0x468] sm:$0xff]  }
 0x15a   : > { %v2078_v31 = vmax.f32 %v1686_v26, 0.0  ;;  %v1688_v2 = vadd.f32 %v7510_v30, %v1290_v23  ;;  %v1292_v57 = vmul.f32 %v5553_v58, %v7479_v52  ;;  %v5557_v48 = vunpack.c.h.bf16 %v6912_v19 }
 0x15b   : > { %v2079_v34 = vmax.f32 %v1687_v15, 0.0  ;;  %7103 = vst [vmem:[%s7546_s30 + $0x418] sm:$0xff] %v6456_v22   ;;  %v1689_v32 = vadd.f32 %v7510_v30, %v1291_v55  ;;  %v1293_v45 = vmul.f32 %v5556_v41, %v7479_v52  ;;  %v5560_v35 = vunpack.c.l.bf16 %v6913_v6 }
 0x15c   : > { %v6461_v3 = vpack.c.bf16 %v2078_v31, %v2077_v13  ;;  %v2080_v1 = vmax.f32 %v1688_v2, 0.0  ;;  %v1690_v16 = vadd.f32 %v7510_v30, %v1292_v57  ;;  %v1294_v27 = vmul.f32 %v5557_v48, %v7479_v52 }
 0x15d   : > { %v5561_v17 = vunpack.c.h.bf16 %v6913_v6  ;;  %v2081_v54 = vmax.f32 %v1689_v32, 0.0  ;;  %v1691_v43 = vadd.f32 %v7510_v30, %v1293_v45  ;;  %v1295_v29 = vmul.f32 %v5560_v35, %v7479_v52  ;;  %v6919_v6 = vld [vmem:[%s7238_s23 + $0x470] sm:$0xff]  }
 0x15e   : > { %7104 = vst [vmem:[%s7546_s30 + $0x420] sm:$0xff] %v6461_v3   ;;  %v5564_v18 = vunpack.c.l.bf16 %v6914_v46  ;;  %v6466_v20 = vpack.c.bf16 %v2080_v1, %v2079_v34  ;;  %v2082_v62 = vmax.f32 %v1690_v16, 0.0  ;;  %v1692_v39 = vadd.f32 %v7510_v30, %v1294_v27 }
 0x15f   : > { %v1296_v0 = vmul.f32 %v5561_v17, %v7479_v52  ;;  %v2083_v14 = vmax.f32 %v1691_v43, 0.0  ;;  %v1693_v50 = vadd.f32 %v7510_v30, %v1295_v29  ;;  %v5565_v36 = vunpack.c.h.bf16 %v6914_v46  ;;  %v6920_v46 = vld [vmem:[%s7238_s23 + $0x478] sm:$0xff]  }
 0x160   : > { %v1297_v42 = vmul.f32 %v5564_v18, %v7479_v52  ;;  %7105 = vst [vmem:[%s7546_s30 + $0x428] sm:$0xff] %v6466_v20   ;;  %v6471_v21 = vpack.c.bf16 %v2082_v62, %v2081_v54  ;;  %v2084_v7 = vmax.f32 %v1692_v39, 0.0  ;;  %v5568_v60 = vunpack.c.l.bf16 %v6915_v8  ;;  %v6921_v54 = vld [vmem:[%s7238_s23 + $0x480] sm:$0xff]  }
 0x161   : > { %v1694_v28 = vadd.f32 %v7510_v30, %v1296_v0  ;;  %v2085_v24 = vmax.f32 %v1693_v50, 0.0  ;;  %v1298_v4 = vmul.f32 %v5565_v36, %v7479_v52  ;;  %v5569_v25 = vunpack.c.h.bf16 %v6915_v8 }
 0x162   : > { %v1695_v63 = vadd.f32 %v7510_v30, %v1297_v42  ;;  %7106 = vst [vmem:[%s7546_s30 + $0x430] sm:$0xff] %v6471_v21   ;;  %v6476_v40 = vpack.c.bf16 %v2084_v7, %v2083_v14  ;;  %v1299_v51 = vmul.f32 %v5568_v60, %v7479_v52  ;;  %v5572_v37 = vunpack.c.l.bf16 %v6916_v53  ;;  %v6922_v14 = vld [vmem:[%s7238_s23 + $0x488] sm:$0xff]  }
 0x163   : > { %v2086_v61 = vmax.f32 %v1694_v28, 0.0  ;;  %v1696_v33 = vadd.f32 %v7510_v30, %v1298_v4  ;;  %v1300_v38 = vmul.f32 %v5569_v25, %v7479_v52  ;;  %v5573_v9 = vunpack.c.h.bf16 %v6916_v53 }
 0x164   : > { %v2087_v5 = vmax.f32 %v1695_v63, 0.0  ;;  %7107 = vst [vmem:[%s7546_s30 + $0x438] sm:$0xff] %v6476_v40   ;;  %v1697_v12 = vadd.f32 %v7510_v30, %v1299_v51  ;;  %v1301_v49 = vmul.f32 %v5572_v37, %v7479_v52  ;;  %v5576_v19 = vunpack.c.l.bf16 %v6917_v10 }
 0x165   : > { %v6481_v11 = vpack.c.bf16 %v2086_v61, %v2085_v24  ;;  %v2088_v56 = vmax.f32 %v1696_v33, 0.0  ;;  %v1698_v44 = vadd.f32 %v7510_v30, %v1300_v38  ;;  %v1302_v26 = vmul.f32 %v5573_v9, %v7479_v52 }
 0x166   : > { %v5577_v59 = vunpack.c.h.bf16 %v6917_v10  ;;  %v2089_v13 = vmax.f32 %v1697_v12, 0.0  ;;  %v1699_v23 = vadd.f32 %v7510_v30, %v1301_v49  ;;  %v1303_v15 = vmul.f32 %v5576_v19, %v7479_v52  ;;  %v6923_v10 = vld [vmem:[%s7238_s23 + $0x490] sm:$0xff]  }
 0x167   : > { %7108 = vst [vmem:[%s7546_s30 + $0x440] sm:$0xff] %v6481_v11   ;;  %v5580_v58 = vunpack.c.l.bf16 %v6918_v47  ;;  %v6486_v22 = vpack.c.bf16 %v2088_v56, %v2087_v5  ;;  %v2090_v31 = vmax.f32 %v1698_v44, 0.0  ;;  %v1700_v55 = vadd.f32 %v7510_v30, %v1302_v26 }
 0x168   : > { %v1304_v41 = vmul.f32 %v5577_v59, %v7479_v52  ;;  %v2091_v2 = vmax.f32 %v1699_v23, 0.0  ;;  %v1701_v34 = vadd.f32 %v7510_v30, %v1303_v15  ;;  %v5581_v57 = vunpack.c.h.bf16 %v6918_v47  ;;  %v6924_v47 = vld [vmem:[%s7238_s23 + $0x498] sm:$0xff]  }
 0x169   : > { %v1305_v48 = vmul.f32 %v5580_v58, %v7479_v52  ;;  %7109 = vst [vmem:[%s7546_s30 + $0x448] sm:$0xff] %v6486_v22   ;;  %v6491_v3 = vpack.c.bf16 %v2090_v31, %v2089_v13  ;;  %v2092_v32 = vmax.f32 %v1700_v55, 0.0  ;;  %v5584_v35 = vunpack.c.l.bf16 %v6919_v6  ;;  %v6925_v13 = vld [vmem:[%s7238_s23 + $0x4a0] sm:$0xff]  }
 0x16a   : > { %v1702_v45 = vadd.f32 %v7510_v30, %v1304_v41  ;;  %v2093_v1 = vmax.f32 %v1701_v34, 0.0  ;;  %v1306_v16 = vmul.f32 %v5581_v57, %v7479_v52  ;;  %v5585_v17 = vunpack.c.h.bf16 %v6919_v6 }
 0x16b   : > { %v1703_v27 = vadd.f32 %v7510_v30, %v1305_v48  ;;  %7110 = vst [vmem:[%s7546_s30 + $0x450] sm:$0xff] %v6491_v3   ;;  %v6496_v43 = vpack.c.bf16 %v2092_v32, %v2091_v2  ;;  %v1307_v18 = vmul.f32 %v5584_v35, %v7479_v52  ;;  %v5588_v8 = vunpack.c.l.bf16 %v6920_v46  ;;  %v6926_v2 = vld [vmem:[%s7238_s23 + $0x4a8] sm:$0xff]  }
 0x16c   : > { %v2094_v29 = vmax.f32 %v1702_v45, 0.0  ;;  %v1704_v20 = vadd.f32 %v7510_v30, %v1306_v16  ;;  %v1308_v39 = vmul.f32 %v5585_v17, %v7479_v52  ;;  %v5589_v0 = vunpack.c.h.bf16 %v6920_v46 }
 0x16d   : > { %v2095_v62 = vmax.f32 %v1703_v27, 0.0  ;;  %7111 = vst [vmem:[%s7546_s30 + $0x458] sm:$0xff] %v6496_v43   ;;  %v1705_v36 = vadd.f32 %v7510_v30, %v1307_v18  ;;  %v1309_v42 = vmul.f32 %v5588_v8, %v7479_v52  ;;  %v5592_v53 = vunpack.c.l.bf16 %v6921_v54 }
 0x16e   : > { %v6501_v50 = vpack.c.bf16 %v2094_v29, %v2093_v1  ;;  %v2096_v21 = vmax.f32 %v1704_v20, 0.0  ;;  %v1706_v7 = vadd.f32 %v7510_v30, %v1308_v39  ;;  %v1310_v28 = vmul.f32 %v5589_v0, %v7479_v52 }
 0x16f   : > { %v5593_v60 = vunpack.c.h.bf16 %v6921_v54  ;;  %v2097_v24 = vmax.f32 %v1705_v36, 0.0  ;;  %v1707_v4 = vadd.f32 %v7510_v30, %v1309_v42  ;;  %v1311_v63 = vmul.f32 %v5592_v53, %v7479_v52  ;;  %v6927_v54 = vld [vmem:[%s7238_s23 + $0x4b0] sm:$0xff]  }
 0x170   : > { %7112 = vst [vmem:[%s7546_s30 + $0x460] sm:$0xff] %v6501_v50   ;;  %v5596_v25 = vunpack.c.l.bf16 %v6922_v14  ;;  %v6506_v40 = vpack.c.bf16 %v2096_v21, %v2095_v62  ;;  %v2098_v61 = vmax.f32 %v1706_v7, 0.0  ;;  %v1708_v51 = vadd.f32 %v7510_v30, %v1310_v28 }
 0x171   : > { %v1312_v37 = vmul.f32 %v5593_v60, %v7479_v52  ;;  %v2099_v33 = vmax.f32 %v1707_v4, 0.0  ;;  %v1709_v5 = vadd.f32 %v7510_v30, %v1311_v63  ;;  %v5597_v38 = vunpack.c.h.bf16 %v6922_v14  ;;  %v6928_v14 = vld [vmem:[%s7238_s23 + $0x4b8] sm:$0xff]  }
 0x172   : > { %v1313_v9 = vmul.f32 %v5596_v25, %v7479_v52  ;;  %7113 = vst [vmem:[%s7546_s30 + $0x468] sm:$0xff] %v6506_v40   ;;  %v6511_v11 = vpack.c.bf16 %v2098_v61, %v2097_v24  ;;  %v2100_v12 = vmax.f32 %v1708_v51, 0.0  ;;  %v5600_v19 = vunpack.c.l.bf16 %v6923_v10  ;;  %v6929_v24 = vld [vmem:[%s7238_s23 + $0x4c0] sm:$0xff]  }
 0x173   : > { %v1710_v49 = vadd.f32 %v7510_v30, %v1312_v37  ;;  %v2101_v56 = vmax.f32 %v1709_v5, 0.0  ;;  %v1314_v44 = vmul.f32 %v5597_v38, %v7479_v52  ;;  %v5601_v59 = vunpack.c.h.bf16 %v6923_v10 }
 0x174   : > { %v1711_v26 = vadd.f32 %v7510_v30, %v1313_v9  ;;  %7114 = vst [vmem:[%s7546_s30 + $0x470] sm:$0xff] %v6511_v11   ;;  %v6516_v23 = vpack.c.bf16 %v2100_v12, %v2099_v33  ;;  %v1315_v58 = vmul.f32 %v5600_v19, %v7479_v52  ;;  %v5604_v6 = vunpack.c.l.bf16 %v6924_v47  ;;  %v6930_v33 = vld [vmem:[%s7238_s23 + $0x4c8] sm:$0xff]  }
 0x175   : > { %v2102_v15 = vmax.f32 %v1710_v49, 0.0  ;;  %v1712_v22 = vadd.f32 %v7510_v30, %v1314_v44  ;;  %v1316_v55 = vmul.f32 %v5601_v59, %v7479_v52  ;;  %v5605_v41 = vunpack.c.h.bf16 %v6924_v47 }
 0x176   : > { %v2103_v31 = vmax.f32 %v1711_v26, 0.0  ;;  %7115 = vst [vmem:[%s7546_s30 + $0x478] sm:$0xff] %v6516_v23   ;;  %v1713_v57 = vadd.f32 %v7510_v30, %v1315_v58  ;;  %v1317_v48 = vmul.f32 %v5604_v6, %v7479_v52  ;;  %v5608_v46 = vunpack.c.l.bf16 %v6925_v13 }
 0x177   : > { %v6521_v34 = vpack.c.bf16 %v2102_v15, %v2101_v56  ;;  %v2104_v3 = vmax.f32 %v1712_v22, 0.0  ;;  %v1714_v32 = vadd.f32 %v7510_v30, %v1316_v55  ;;  %v1318_v45 = vmul.f32 %v5605_v41, %v7479_v52 }
 0x178   : > { %v5609_v35 = vunpack.c.h.bf16 %v6925_v13  ;;  %v2105_v1 = vmax.f32 %v1713_v57, 0.0  ;;  %v1715_v16 = vadd.f32 %v7510_v30, %v1317_v48  ;;  %v1319_v27 = vmul.f32 %v5608_v46, %v7479_v52  ;;  %v6931_v13 = vld [vmem:[%s7238_s23 + $0x4d0] sm:$0xff]  }
 0x179   : > { %7116 = vst [vmem:[%s7546_s30 + $0x480] sm:$0xff] %v6521_v34   ;;  %v5612_v17 = vunpack.c.l.bf16 %v6926_v2  ;;  %v6526_v43 = vpack.c.bf16 %v2104_v3, %v2103_v31  ;;  %v2106_v29 = vmax.f32 %v1714_v32, 0.0  ;;  %v1716_v18 = vadd.f32 %v7510_v30, %v1318_v45 }
 0x17a   : > { %v1320_v8 = vmul.f32 %v5609_v35, %v7479_v52  ;;  %v2107_v20 = vmax.f32 %v1715_v16, 0.0  ;;  %v1717_v62 = vadd.f32 %v7510_v30, %v1319_v27  ;;  %v5613_v39 = vunpack.c.h.bf16 %v6926_v2  ;;  %v6932_v2 = vld [vmem:[%s7238_s23 + $0x4d8] sm:$0xff]  }
 0x17b   : > { %v1321_v0 = vmul.f32 %v5612_v17, %v7479_v52  ;;  %7117 = vst [vmem:[%s7546_s30 + $0x488] sm:$0xff] %v6526_v43   ;;  %v6531_v50 = vpack.c.bf16 %v2106_v29, %v2105_v1  ;;  %v2108_v36 = vmax.f32 %v1716_v18, 0.0  ;;  %v5616_v53 = vunpack.c.l.bf16 %v6927_v54  ;;  %v6933_v1 = vld [vmem:[%s7238_s23 + $0x4e0] sm:$0xff]  }
 0x17c   : > { %v1718_v42 = vadd.f32 %v7510_v30, %v1320_v8  ;;  %v2109_v21 = vmax.f32 %v1717_v62, 0.0  ;;  %v1322_v7 = vmul.f32 %v5613_v39, %v7479_v52  ;;  %v5617_v60 = vunpack.c.h.bf16 %v6927_v54 }
 0x17d   : > { %v1719_v28 = vadd.f32 %v7510_v30, %v1321_v0  ;;  %7118 = vst [vmem:[%s7546_s30 + $0x490] sm:$0xff] %v6531_v50   ;;  %v6536_v4 = vpack.c.bf16 %v2108_v36, %v2107_v20  ;;  %v1323_v25 = vmul.f32 %v5616_v53, %v7479_v52  ;;  %v5620_v10 = vunpack.c.l.bf16 %v6928_v14  ;;  %v6934_v20 = vld [vmem:[%s7238_s23 + $0x4e8] sm:$0xff]  }
 0x17e   : > { %v2110_v63 = vmax.f32 %v1718_v42, 0.0  ;;  %v1720_v40 = vadd.f32 %v7510_v30, %v1322_v7  ;;  %v1324_v51 = vmul.f32 %v5617_v60, %v7479_v52  ;;  %v5621_v37 = vunpack.c.h.bf16 %v6928_v14 }
 0x17f   : > { %v2111_v61 = vmax.f32 %v1719_v28, 0.0  ;;  %7119 = vst [vmem:[%s7546_s30 + $0x498] sm:$0xff] %v6536_v4   ;;  %v1721_v38 = vadd.f32 %v7510_v30, %v1323_v25  ;;  %v1325_v9 = vmul.f32 %v5620_v10, %v7479_v52  ;;  %v5624_v47 = vunpack.c.l.bf16 %v6929_v24 }
 0x180   : > { %v6541_v5 = vpack.c.bf16 %v2110_v63, %v2109_v21  ;;  %v2112_v11 = vmax.f32 %v1720_v40, 0.0  ;;  %v1722_v12 = vadd.f32 %v7510_v30, %v1324_v51  ;;  %v1326_v49 = vmul.f32 %v5621_v37, %v7479_v52 }
 0x181   : > { %v5625_v19 = vunpack.c.h.bf16 %v6929_v24  ;;  %v2113_v56 = vmax.f32 %v1721_v38, 0.0  ;;  %v1723_v44 = vadd.f32 %v7510_v30, %v1325_v9  ;;  %v1327_v26 = vmul.f32 %v5624_v47, %v7479_v52  ;;  %v6935_v24 = vld [vmem:[%s7238_s23 + $0x4f0] sm:$0xff]  }
 0x182   : > { %7120 = vst [vmem:[%s7546_s30 + $0x4a0] sm:$0xff] %v6541_v5   ;;  %v5628_v59 = vunpack.c.l.bf16 %v6930_v33  ;;  %v6546_v23 = vpack.c.bf16 %v2112_v11, %v2111_v61  ;;  %v2114_v15 = vmax.f32 %v1722_v12, 0.0  ;;  %v1724_v58 = vadd.f32 %v7510_v30, %v1326_v49 }
 0x183   : > { %v1328_v6 = vmul.f32 %v5625_v19, %v7479_v52  ;;  %v2115_v22 = vmax.f32 %v1723_v44, 0.0  ;;  %v1725_v31 = vadd.f32 %v7510_v30, %v1327_v26  ;;  %v5629_v55 = vunpack.c.h.bf16 %v6930_v33  ;;  %v6936_v33 = vld [vmem:[%s7238_s23 + $0x4f8] sm:$0xff]  }
 0x184   : > { %v1329_v41 = vmul.f32 %v5628_v59, %v7479_v52  ;;  %7121 = vst [vmem:[%s7546_s30 + $0x4a8] sm:$0xff] %v6546_v23   ;;  %v6551_v34 = vpack.c.bf16 %v2114_v15, %v2113_v56  ;;  %v2116_v57 = vmax.f32 %v1724_v58, 0.0  ;;  %v5632_v46 = vunpack.c.l.bf16 %v6931_v13  ;;  %v6937_v56 = vld [vmem:[%s7238_s23 + $0x500] sm:$0xff]  }
 0x185   : > { %v1726_v48 = vadd.f32 %v7510_v30, %v1328_v6  ;;  %v2117_v3 = vmax.f32 %v1725_v31, 0.0  ;;  %v1330_v32 = vmul.f32 %v5629_v55, %v7479_v52  ;;  %v5633_v35 = vunpack.c.h.bf16 %v6931_v13 }
 0x186   : > { %v1727_v45 = vadd.f32 %v7510_v30, %v1329_v41  ;;  %7122 = vst [vmem:[%s7546_s30 + $0x4b0] sm:$0xff] %v6551_v34   ;;  %v6556_v16 = vpack.c.bf16 %v2116_v57, %v2115_v22  ;;  %v1331_v17 = vmul.f32 %v5632_v46, %v7479_v52  ;;  %v5636_v54 = vunpack.c.l.bf16 %v6932_v2  ;;  %v6938_v22 = vld [vmem:[%s7238_s23 + $0x508] sm:$0xff]  }
 0x187   : > { %v2118_v27 = vmax.f32 %v1726_v48, 0.0  ;;  %v1728_v43 = vadd.f32 %v7510_v30, %v1330_v32  ;;  %v1332_v18 = vmul.f32 %v5633_v35, %v7479_v52  ;;  %v5637_v8 = vunpack.c.h.bf16 %v6932_v2 }
 0x188   : > { %v2119_v29 = vmax.f32 %v1727_v45, 0.0  ;;  %7123 = vst [vmem:[%s7546_s30 + $0x4b8] sm:$0xff] %v6556_v16   ;;  %v1729_v39 = vadd.f32 %v7510_v30, %v1331_v17  ;;  %v1333_v0 = vmul.f32 %v5636_v54, %v7479_v52  ;;  %v5640_v14 = vunpack.c.l.bf16 %v6933_v1 }
 0x189   : > { %v6561_v62 = vpack.c.bf16 %v2118_v27, %v2117_v3  ;;  %v2120_v50 = vmax.f32 %v1728_v43, 0.0  ;;  %v1730_v36 = vadd.f32 %v7510_v30, %v1332_v18  ;;  %v1334_v42 = vmul.f32 %v5637_v8, %v7479_v52 }
 0x18a   : > { %v5641_v53 = vunpack.c.h.bf16 %v6933_v1  ;;  %v2121_v21 = vmax.f32 %v1729_v39, 0.0  ;;  %v1731_v7 = vadd.f32 %v7510_v30, %v1333_v0  ;;  %v1335_v28 = vmul.f32 %v5640_v14, %v7479_v52  ;;  %v6939_v1 = vld [vmem:[%s7238_s23 + $0x510] sm:$0xff]  }
 0x18b   : > { %7124 = vst [vmem:[%s7546_s30 + $0x4c0] sm:$0xff] %v6561_v62   ;;  %v5644_v60 = vunpack.c.l.bf16 %v6934_v20  ;;  %v6566_v4 = vpack.c.bf16 %v2120_v50, %v2119_v29  ;;  %v2122_v63 = vmax.f32 %v1730_v36, 0.0  ;;  %v1732_v25 = vadd.f32 %v7510_v30, %v1334_v42 }
 0x18c   : > { %v1336_v10 = vmul.f32 %v5641_v53, %v7479_v52  ;;  %v2123_v40 = vmax.f32 %v1731_v7, 0.0  ;;  %v1733_v61 = vadd.f32 %v7510_v30, %v1335_v28  ;;  %v5645_v51 = vunpack.c.h.bf16 %v6934_v20  ;;  %v6940_v20 = vld [vmem:[%s7238_s23 + $0x518] sm:$0xff]  }
 0x18d   : > { %v1337_v37 = vmul.f32 %v5644_v60, %v7479_v52  ;;  %7125 = vst [vmem:[%s7546_s30 + $0x4c8] sm:$0xff] %v6566_v4   ;;  %v6571_v5 = vpack.c.bf16 %v2122_v63, %v2121_v21  ;;  %v2124_v38 = vmax.f32 %v1732_v25, 0.0  ;;  %v5648_v47 = vunpack.c.l.bf16 %v6935_v24  ;;  %v6941_v21 = vld [vmem:[%s7238_s23 + $0x520] sm:$0xff]  }
 0x18e   : > { %v1734_v9 = vadd.f32 %v7510_v30, %v1336_v10  ;;  %v2125_v11 = vmax.f32 %v1733_v61, 0.0  ;;  %v1338_v12 = vmul.f32 %v5645_v51, %v7479_v52  ;;  %v5649_v19 = vunpack.c.h.bf16 %v6935_v24 }
 0x18f   : > { %v1735_v49 = vadd.f32 %v7510_v30, %v1337_v37  ;;  %7126 = vst [vmem:[%s7546_s30 + $0x4d0] sm:$0xff] %v6571_v5   ;;  %v6576_v44 = vpack.c.bf16 %v2124_v38, %v2123_v40  ;;  %v1339_v59 = vmul.f32 %v5648_v47, %v7479_v52  ;;  %v5652_v13 = vunpack.c.l.bf16 %v6936_v33  ;;  %v6942_v40 = vld [vmem:[%s7238_s23 + $0x528] sm:$0xff]  }
 0x190   : > { %v2126_v26 = vmax.f32 %v1734_v9, 0.0  ;;  %v1736_v23 = vadd.f32 %v7510_v30, %v1338_v12  ;;  %v1340_v58 = vmul.f32 %v5649_v19, %v7479_v52  ;;  %v5653_v6 = vunpack.c.h.bf16 %v6936_v33 }
 0x191   : > { %v2127_v15 = vmax.f32 %v1735_v49, 0.0  ;;  %7127 = vst [vmem:[%s7546_s30 + $0x4d8] sm:$0xff] %v6576_v44   ;;  %v1737_v55 = vadd.f32 %v7510_v30, %v1339_v59  ;;  %v1341_v41 = vmul.f32 %v5652_v13, %v7479_v52  ;;  %v5656_v2 = vunpack.c.l.bf16 %v6937_v56 }
 0x192   : > { %v6581_v31 = vpack.c.bf16 %v2126_v26, %v2125_v11  ;;  %v2128_v34 = vmax.f32 %v1736_v23, 0.0  ;;  %v1738_v57 = vadd.f32 %v7510_v30, %v1340_v58  ;;  %v1342_v48 = vmul.f32 %v5653_v6, %v7479_v52 }
 0x193   : > { %v5657_v46 = vunpack.c.h.bf16 %v6937_v56  ;;  %v2129_v3 = vmax.f32 %v1737_v55, 0.0  ;;  %v1739_v32 = vadd.f32 %v7510_v30, %v1341_v41  ;;  %v1343_v45 = vmul.f32 %v5656_v2, %v7479_v52  ;;  %v6943_v56 = vld [vmem:[%s7238_s23 + $0x530] sm:$0xff]  }
 0x194   : > { %7128 = vst [vmem:[%s7546_s30 + $0x4e0] sm:$0xff] %v6581_v31   ;;  %v5660_v35 = vunpack.c.l.bf16 %v6938_v22  ;;  %v6586_v16 = vpack.c.bf16 %v2128_v34, %v2127_v15  ;;  %v2130_v27 = vmax.f32 %v1738_v57, 0.0  ;;  %v1740_v17 = vadd.f32 %v7510_v30, %v1342_v48 }
 0x195   : > { %v1344_v54 = vmul.f32 %v5657_v46, %v7479_v52  ;;  %v2131_v43 = vmax.f32 %v1739_v32, 0.0  ;;  %v1741_v29 = vadd.f32 %v7510_v30, %v1343_v45  ;;  %v5661_v18 = vunpack.c.h.bf16 %v6938_v22  ;;  %v6944_v22 = vld [vmem:[%s7238_s23 + $0x538] sm:$0xff]  }
 0x196   : > { %v1345_v8 = vmul.f32 %v5660_v35, %v7479_v52  ;;  %7129 = vst [vmem:[%s7546_s30 + $0x4e8] sm:$0xff] %v6586_v16   ;;  %v6591_v62 = vpack.c.bf16 %v2130_v27, %v2129_v3  ;;  %v2132_v39 = vmax.f32 %v1740_v17, 0.0  ;;  %v5664_v14 = vunpack.c.l.bf16 %v6939_v1  ;;  %v6945_v3 = vld [vmem:[%s7238_s23 + $0x540] sm:$0xff]  }
 0x197   : > { %v1742_v0 = vadd.f32 %v7510_v30, %v1344_v54  ;;  %v2133_v50 = vmax.f32 %v1741_v29, 0.0  ;;  %v1346_v36 = vmul.f32 %v5661_v18, %v7479_v52  ;;  %v5665_v53 = vunpack.c.h.bf16 %v6939_v1 }
 0x198   : > { %v1743_v42 = vadd.f32 %v7510_v30, %v1345_v8  ;;  %7130 = vst [vmem:[%s7546_s30 + $0x4f0] sm:$0xff] %v6591_v62   ;;  %v6596_v7 = vpack.c.bf16 %v2132_v39, %v2131_v43  ;;  %v1347_v60 = vmul.f32 %v5664_v14, %v7479_v52  ;;  %v5668_v24 = vunpack.c.l.bf16 %v6940_v20  ;;  %v6946_v43 = vld [vmem:[%s7238_s23 + $0x548] sm:$0xff]  }
 0x199   : > { %v2134_v28 = vmax.f32 %v1742_v0, 0.0  ;;  %v1744_v4 = vadd.f32 %v7510_v30, %v1346_v36  ;;  %v1348_v25 = vmul.f32 %v5665_v53, %v7479_v52  ;;  %v5669_v10 = vunpack.c.h.bf16 %v6940_v20 }
 0x19a   : > { %v2135_v63 = vmax.f32 %v1743_v42, 0.0  ;;  %7131 = vst [vmem:[%s7546_s30 + $0x4f8] sm:$0xff] %v6596_v7   ;;  %v1745_v51 = vadd.f32 %v7510_v30, %v1347_v60  ;;  %v1349_v37 = vmul.f32 %v5668_v24, %v7479_v52  ;;  %v5672_v33 = vunpack.c.l.bf16 %v6941_v21 }
 0x19b   : > { %v6601_v61 = vpack.c.bf16 %v2134_v28, %v2133_v50  ;;  %v2136_v5 = vmax.f32 %v1744_v4, 0.0  ;;  %v1746_v38 = vadd.f32 %v7510_v30, %v1348_v25  ;;  %v1350_v9 = vmul.f32 %v5669_v10, %v7479_v52 }
 0x19c   : > { %v5673_v47 = vunpack.c.h.bf16 %v6941_v21  ;;  %v2137_v11 = vmax.f32 %v1745_v51, 0.0  ;;  %v1747_v12 = vadd.f32 %v7510_v30, %v1349_v37  ;;  %v1351_v49 = vmul.f32 %v5672_v33, %v7479_v52  ;;  %v6947_v21 = vld [vmem:[%s7238_s23 + $0x550] sm:$0xff]  }
 0x19d   : > { %7132 = vst [vmem:[%s7546_s30 + $0x500] sm:$0xff] %v6601_v61   ;;  %v5676_v19 = vunpack.c.l.bf16 %v6942_v40  ;;  %v6606_v44 = vpack.c.bf16 %v2136_v5, %v2135_v63  ;;  %v2138_v26 = vmax.f32 %v1746_v38, 0.0  ;;  %v1748_v59 = vadd.f32 %v7510_v30, %v1350_v9 }
 0x19e   : > { %v1352_v13 = vmul.f32 %v5673_v47, %v7479_v52  ;;  %v2139_v23 = vmax.f32 %v1747_v12, 0.0  ;;  %v1749_v15 = vadd.f32 %v7510_v30, %v1351_v49  ;;  %v5677_v58 = vunpack.c.h.bf16 %v6942_v40  ;;  %v6948_v40 = vld [vmem:[%s7238_s23 + $0x558] sm:$0xff]  }
 0x19f   : > { %v1353_v6 = vmul.f32 %v5676_v19, %v7479_v52  ;;  %7133 = vst [vmem:[%s7546_s30 + $0x508] sm:$0xff] %v6606_v44   ;;  %v6611_v31 = vpack.c.bf16 %v2138_v26, %v2137_v11  ;;  %v2140_v55 = vmax.f32 %v1748_v59, 0.0  ;;  %v5680_v2 = vunpack.c.l.bf16 %v6943_v56  ;;  %v6949_v11 = vld [vmem:[%s7238_s23 + $0x560] sm:$0xff]  }
 0x1a0   : > { %v1750_v41 = vadd.f32 %v7510_v30, %v1352_v13  ;;  %v2141_v34 = vmax.f32 %v1749_v15, 0.0  ;;  %v1354_v57 = vmul.f32 %v5677_v58, %v7479_v52  ;;  %v5681_v46 = vunpack.c.h.bf16 %v6943_v56 }
 0x1a1   : > { %v1751_v48 = vadd.f32 %v7510_v30, %v1353_v6  ;;  %7134 = vst [vmem:[%s7546_s30 + $0x510] sm:$0xff] %v6611_v31   ;;  %v6616_v32 = vpack.c.bf16 %v2140_v55, %v2139_v23  ;;  %v1355_v35 = vmul.f32 %v5680_v2, %v7479_v52  ;;  %v5684_v1 = vunpack.c.l.bf16 %v6944_v22  ;;  %v6950_v23 = vld [vmem:[%s7238_s23 + $0x568] sm:$0xff]  }
 0x1a2   : > { %v2142_v45 = vmax.f32 %v1750_v41, 0.0  ;;  %v1752_v16 = vadd.f32 %v7510_v30, %v1354_v57  ;;  %v1356_v17 = vmul.f32 %v5681_v46, %v7479_v52  ;;  %v5685_v54 = vunpack.c.h.bf16 %v6944_v22 }
 0x1a3   : > { %v2143_v27 = vmax.f32 %v1751_v48, 0.0  ;;  %7135 = vst [vmem:[%s7546_s30 + $0x518] sm:$0xff] %v6616_v32   ;;  %v1753_v18 = vadd.f32 %v7510_v30, %v1355_v35  ;;  %v1357_v8 = vmul.f32 %v5684_v1, %v7479_v52  ;;  %v5688_v20 = vunpack.c.l.bf16 %v6945_v3 }
 0x1a4   : > { %v6621_v29 = vpack.c.bf16 %v2142_v45, %v2141_v34  ;;  %v2144_v62 = vmax.f32 %v1752_v16, 0.0  ;;  %v1754_v39 = vadd.f32 %v7510_v30, %v1356_v17  ;;  %v1358_v0 = vmul.f32 %v5685_v54, %v7479_v52 }
 0x1a5   : > { %v5689_v14 = vunpack.c.h.bf16 %v6945_v3  ;;  %v2145_v50 = vmax.f32 %v1753_v18, 0.0  ;;  %v1755_v36 = vadd.f32 %v7510_v30, %v1357_v8  ;;  %v1359_v42 = vmul.f32 %v5688_v20, %v7479_v52  ;;  %v6951_v3 = vld [vmem:[%s7238_s23 + $0x570] sm:$0xff]  }
 0x1a6   : > { %7136 = vst [vmem:[%s7546_s30 + $0x520] sm:$0xff] %v6621_v29   ;;  %v5692_v53 = vunpack.c.l.bf16 %v6946_v43  ;;  %v6626_v7 = vpack.c.bf16 %v2144_v62, %v2143_v27  ;;  %v2146_v28 = vmax.f32 %v1754_v39, 0.0  ;;  %v1756_v60 = vadd.f32 %v7510_v30, %v1358_v0 }
 0x1a7   : > { %v1360_v24 = vmul.f32 %v5689_v14, %v7479_v52  ;;  %v2147_v4 = vmax.f32 %v1755_v36, 0.0  ;;  %v1757_v63 = vadd.f32 %v7510_v30, %v1359_v42  ;;  %v5693_v25 = vunpack.c.h.bf16 %v6946_v43  ;;  %v6952_v43 = vld [vmem:[%s7238_s23 + $0x578] sm:$0xff]  }
 0x1a8   : > { %v1361_v10 = vmul.f32 %v5692_v53, %v7479_v52  ;;  %7137 = vst [vmem:[%s7546_s30 + $0x528] sm:$0xff] %v6626_v7   ;;  %v6631_v61 = vpack.c.bf16 %v2146_v28, %v2145_v50  ;;  %v2148_v51 = vmax.f32 %v1756_v60, 0.0  ;;  %v5696_v33 = vunpack.c.l.bf16 %v6947_v21  ;;  %v6953_v50 = vld [vmem:[%s7238_s23 + $0x580] sm:$0xff]  }
 0x1a9   : > { %v1758_v37 = vadd.f32 %v7510_v30, %v1360_v24  ;;  %v2149_v5 = vmax.f32 %v1757_v63, 0.0  ;;  %v1362_v38 = vmul.f32 %v5693_v25, %v7479_v52  ;;  %v5697_v47 = vunpack.c.h.bf16 %v6947_v21 }
 0x1aa   : > { %v1759_v9 = vadd.f32 %v7510_v30, %v1361_v10  ;;  %7138 = vst [vmem:[%s7546_s30 + $0x530] sm:$0xff] %v6631_v61   ;;  %v6636_v12 = vpack.c.bf16 %v2148_v51, %v2147_v4  ;;  %v1363_v19 = vmul.f32 %v5696_v33, %v7479_v52  ;;  %v5700_v56 = vunpack.c.l.bf16 %v6948_v40  ;;  %v6954_v4 = vld [vmem:[%s7238_s23 + $0x588] sm:$0xff]  }
 0x1ab   : > { %v2150_v49 = vmax.f32 %v1758_v37, 0.0  ;;  %v1760_v44 = vadd.f32 %v7510_v30, %v1362_v38  ;;  %v1364_v59 = vmul.f32 %v5697_v47, %v7479_v52  ;;  %v5701_v13 = vunpack.c.h.bf16 %v6948_v40 }
 0x1ac   : > { %v2151_v26 = vmax.f32 %v1759_v9, 0.0  ;;  %7139 = vst [vmem:[%s7546_s30 + $0x538] sm:$0xff] %v6636_v12   ;;  %v1761_v58 = vadd.f32 %v7510_v30, %v1363_v19  ;;  %v1365_v6 = vmul.f32 %v5700_v56, %v7479_v52  ;;  %v5704_v22 = vunpack.c.l.bf16 %v6949_v11 }
 0x1ad   : > { %v6641_v15 = vpack.c.bf16 %v2150_v49, %v2149_v5  ;;  %v2152_v31 = vmax.f32 %v1760_v44, 0.0  ;;  %v1762_v55 = vadd.f32 %v7510_v30, %v1364_v59  ;;  %v1366_v41 = vmul.f32 %v5701_v13, %v7479_v52 }
 0x1ae   : > { %v5705_v2 = vunpack.c.h.bf16 %v6949_v11  ;;  %v2153_v34 = vmax.f32 %v1761_v58, 0.0  ;;  %v1763_v57 = vadd.f32 %v7510_v30, %v1365_v6  ;;  %v1367_v48 = vmul.f32 %v5704_v22, %v7479_v52  ;;  %v6955_v11 = vld [vmem:[%s7238_s23 + $0x590] sm:$0xff]  }
 0x1af   : > { %7140 = vst [vmem:[%s7546_s30 + $0x540] sm:$0xff] %v6641_v15   ;;  %v5708_v46 = vunpack.c.l.bf16 %v6950_v23  ;;  %v6646_v32 = vpack.c.bf16 %v2152_v31, %v2151_v26  ;;  %v2154_v45 = vmax.f32 %v1762_v55, 0.0  ;;  %v1764_v35 = vadd.f32 %v7510_v30, %v1366_v41 }
 0x1b0   : > { %v1368_v1 = vmul.f32 %v5705_v2, %v7479_v52  ;;  %v2155_v16 = vmax.f32 %v1763_v57, 0.0  ;;  %v1765_v27 = vadd.f32 %v7510_v30, %v1367_v48  ;;  %v5709_v17 = vunpack.c.h.bf16 %v6950_v23  ;;  %v6956_v23 = vld [vmem:[%s7238_s23 + $0x598] sm:$0xff]  }
 0x1b1   : > { %v1369_v54 = vmul.f32 %v5708_v46, %v7479_v52  ;;  %7141 = vst [vmem:[%s7546_s30 + $0x548] sm:$0xff] %v6646_v32   ;;  %v6651_v29 = vpack.c.bf16 %v2154_v45, %v2153_v34  ;;  %v2156_v18 = vmax.f32 %v1764_v35, 0.0  ;;  %v5712_v20 = vunpack.c.l.bf16 %v6951_v3  ;;  %v6957_v34 = vld [vmem:[%s7238_s23 + $0x5a0] sm:$0xff]  }
 0x1b2   : > { %v1766_v8 = vadd.f32 %v7510_v30, %v1368_v1  ;;  %v2157_v62 = vmax.f32 %v1765_v27, 0.0  ;;  %v1370_v39 = vmul.f32 %v5709_v17, %v7479_v52  ;;  %v5713_v14 = vunpack.c.h.bf16 %v6951_v3 }
 0x1b3   : > { %v1767_v0 = vadd.f32 %v7510_v30, %v1369_v54  ;;  %7142 = vst [vmem:[%s7546_s30 + $0x550] sm:$0xff] %v6651_v29   ;;  %v6656_v36 = vpack.c.bf16 %v2156_v18, %v2155_v16  ;;  %v1371_v53 = vmul.f32 %v5712_v20, %v7479_v52  ;;  %v5716_v21 = vunpack.c.l.bf16 %v6952_v43  ;;  %v6958_v16 = vld [vmem:[%s7238_s23 + $0x5a8] sm:$0xff]  }
 0x1b4   : > { %v2158_v42 = vmax.f32 %v1766_v8, 0.0  ;;  %v1768_v7 = vadd.f32 %v7510_v30, %v1370_v39  ;;  %v1372_v60 = vmul.f32 %v5713_v14, %v7479_v52  ;;  %v5717_v24 = vunpack.c.h.bf16 %v6952_v43 }
 0x1b5   : > { %v2159_v28 = vmax.f32 %v1767_v0, 0.0  ;;  %7143 = vst [vmem:[%s7546_s30 + $0x558] sm:$0xff] %v6656_v36   ;;  %v1769_v25 = vadd.f32 %v7510_v30, %v1371_v53  ;;  %v1373_v10 = vmul.f32 %v5716_v21, %v7479_v52  ;;  %v5720_v40 = vunpack.c.l.bf16 %v6953_v50 }
 0x1b6   : > { %v6661_v63 = vpack.c.bf16 %v2158_v42, %v2157_v62  ;;  %v2160_v61 = vmax.f32 %v1768_v7, 0.0  ;;  %v1770_v51 = vadd.f32 %v7510_v30, %v1372_v60  ;;  %v1374_v37 = vmul.f32 %v5717_v24, %v7479_v52 }
 0x1b7   : > { %v5721_v33 = vunpack.c.h.bf16 %v6953_v50  ;;  %v2161_v5 = vmax.f32 %v1769_v25, 0.0  ;;  %v1771_v38 = vadd.f32 %v7510_v30, %v1373_v10  ;;  %v1375_v9 = vmul.f32 %v5720_v40, %v7479_v52  ;;  %v6959_v50 = vld [vmem:[%s7238_s23 + $0x5b0] sm:$0xff]  }
 0x1b8   : > { %7144 = vst [vmem:[%s7546_s30 + $0x560] sm:$0xff] %v6661_v63   ;;  %v5724_v47 = vunpack.c.l.bf16 %v6954_v4  ;;  %v6666_v12 = vpack.c.bf16 %v2160_v61, %v2159_v28  ;;  %v2162_v49 = vmax.f32 %v1770_v51, 0.0  ;;  %v1772_v19 = vadd.f32 %v7510_v30, %v1374_v37 }
 0x1b9   : > { %v1376_v56 = vmul.f32 %v5721_v33, %v7479_v52  ;;  %v2163_v44 = vmax.f32 %v1771_v38, 0.0  ;;  %v1773_v26 = vadd.f32 %v7510_v30, %v1375_v9  ;;  %v5725_v59 = vunpack.c.h.bf16 %v6954_v4  ;;  %v6960_v4 = vld [vmem:[%s7238_s23 + $0x5b8] sm:$0xff]  }
 0x1ba   : > { %v1377_v13 = vmul.f32 %v5724_v47, %v7479_v52  ;;  %7145 = vst [vmem:[%s7546_s30 + $0x568] sm:$0xff] %v6666_v12   ;;  %v6671_v15 = vpack.c.bf16 %v2162_v49, %v2161_v5  ;;  %v2164_v58 = vmax.f32 %v1772_v19, 0.0  ;;  %v5728_v22 = vunpack.c.l.bf16 %v6955_v11  ;;  %v6961_v5 = vld [vmem:[%s7238_s23 + $0x5c0] sm:$0xff]  }
 0x1bb   : > { %v1774_v6 = vadd.f32 %v7510_v30, %v1376_v56  ;;  %v2165_v31 = vmax.f32 %v1773_v26, 0.0  ;;  %v1378_v55 = vmul.f32 %v5725_v59, %v7479_v52  ;;  %v5729_v2 = vunpack.c.h.bf16 %v6955_v11 }
 0x1bc   : > { %v1775_v41 = vadd.f32 %v7510_v30, %v1377_v13  ;;  %7146 = vst [vmem:[%s7546_s30 + $0x570] sm:$0xff] %v6671_v15   ;;  %v6676_v57 = vpack.c.bf16 %v2164_v58, %v2163_v44  ;;  %v1379_v46 = vmul.f32 %v5728_v22, %v7479_v52  ;;  %v5732_v3 = vunpack.c.l.bf16 %v6956_v23  ;;  %v6962_v44 = vld [vmem:[%s7238_s23 + $0x5c8] sm:$0xff]  }
 0x1bd   : > { %v2166_v48 = vmax.f32 %v1774_v6, 0.0  ;;  %v1776_v32 = vadd.f32 %v7510_v30, %v1378_v55  ;;  %v1380_v35 = vmul.f32 %v5729_v2, %v7479_v52  ;;  %v5733_v1 = vunpack.c.h.bf16 %v6956_v23 }
 0x1be   : > { %v2167_v45 = vmax.f32 %v1775_v41, 0.0  ;;  %7147 = vst [vmem:[%s7546_s30 + $0x578] sm:$0xff] %v6676_v57   ;;  %v1777_v17 = vadd.f32 %v7510_v30, %v1379_v46  ;;  %v1381_v54 = vmul.f32 %v5732_v3, %v7479_v52  ;;  %v5736_v43 = vunpack.c.l.bf16 %v6957_v34 }
 0x1bf   : > { %v6681_v27 = vpack.c.bf16 %v2166_v48, %v2165_v31  ;;  %v2168_v29 = vmax.f32 %v1776_v32, 0.0  ;;  %v1778_v18 = vadd.f32 %v7510_v30, %v1380_v35  ;;  %v1382_v8 = vmul.f32 %v5733_v1, %v7479_v52 }
 0x1c0   : > { %v5737_v20 = vunpack.c.h.bf16 %v6957_v34  ;;  %v2169_v62 = vmax.f32 %v1777_v17, 0.0  ;;  %v1779_v39 = vadd.f32 %v7510_v30, %v1381_v54  ;;  %v1383_v0 = vmul.f32 %v5736_v43, %v7479_v52  ;;  %v6963_v34 = vld [vmem:[%s7238_s23 + $0x5d0] sm:$0xff]  }
 0x1c1   : > { %7148 = vst [vmem:[%s7546_s30 + $0x580] sm:$0xff] %v6681_v27   ;;  %v5740_v14 = vunpack.c.l.bf16 %v6958_v16  ;;  %v6686_v36 = vpack.c.bf16 %v2168_v29, %v2167_v45  ;;  %v2170_v42 = vmax.f32 %v1778_v18, 0.0  ;;  %v1780_v53 = vadd.f32 %v7510_v30, %v1382_v8 }
 0x1c2   : > { %v1384_v21 = vmul.f32 %v5737_v20, %v7479_v52  ;;  %v2171_v7 = vmax.f32 %v1779_v39, 0.0  ;;  %v1781_v28 = vadd.f32 %v7510_v30, %v1383_v0  ;;  %v5741_v60 = vunpack.c.h.bf16 %v6958_v16  ;;  %v6964_v16 = vld [vmem:[%s7238_s23 + $0x5d8] sm:$0xff]  }
 0x1c3   : > { %v1385_v24 = vmul.f32 %v5740_v14, %v7479_v52  ;;  %7149 = vst [vmem:[%s7546_s30 + $0x588] sm:$0xff] %v6686_v36   ;;  %v6691_v63 = vpack.c.bf16 %v2170_v42, %v2169_v62  ;;  %v2172_v25 = vmax.f32 %v1780_v53, 0.0  ;;  %v5744_v40 = vunpack.c.l.bf16 %v6959_v50  ;;  %v6965_v62 = vld [vmem:[%s7238_s23 + $0x5e0] sm:$0xff]  }
 0x1c4   : > { %v1782_v10 = vadd.f32 %v7510_v30, %v1384_v21  ;;  %v2173_v61 = vmax.f32 %v1781_v28, 0.0  ;;  %v1386_v51 = vmul.f32 %v5741_v60, %v7479_v52  ;;  %v5745_v33 = vunpack.c.h.bf16 %v6959_v50 }
 0x1c5   : > { %v1783_v37 = vadd.f32 %v7510_v30, %v1385_v24  ;;  %7150 = vst [vmem:[%s7546_s30 + $0x590] sm:$0xff] %v6691_v63   ;;  %v6696_v38 = vpack.c.bf16 %v2172_v25, %v2171_v7  ;;  %v1387_v47 = vmul.f32 %v5744_v40, %v7479_v52  ;;  %v5748_v11 = vunpack.c.l.bf16 %v6960_v4  ;;  %v6966_v7 = vld [vmem:[%s7238_s23 + $0x5e8] sm:$0xff]  }
 0x1c6   : > { %v2174_v9 = vmax.f32 %v1782_v10, 0.0  ;;  %v1784_v12 = vadd.f32 %v7510_v30, %v1386_v51  ;;  %v1388_v19 = vmul.f32 %v5745_v33, %v7479_v52  ;;  %v5749_v56 = vunpack.c.h.bf16 %v6960_v4 }
 0x1c7   : > { %v2175_v49 = vmax.f32 %v1783_v37, 0.0  ;;  %7151 = vst [vmem:[%s7546_s30 + $0x598] sm:$0xff] %v6696_v38   ;;  %v1785_v59 = vadd.f32 %v7510_v30, %v1387_v47  ;;  %v1389_v13 = vmul.f32 %v5748_v11, %v7479_v52  ;;  %v5752_v23 = vunpack.c.l.bf16 %v6961_v5 }
 0x1c8   : > { %v6701_v26 = vpack.c.bf16 %v2174_v9, %v2173_v61  ;;  %v2176_v15 = vmax.f32 %v1784_v12, 0.0  ;;  %v1786_v58 = vadd.f32 %v7510_v30, %v1388_v19  ;;  %v1390_v6 = vmul.f32 %v5749_v56, %v7479_v52 }
 0x1c9   : > { %v5753_v22 = vunpack.c.h.bf16 %v6961_v5  ;;  %v2177_v31 = vmax.f32 %v1785_v59, 0.0  ;;  %v1787_v55 = vadd.f32 %v7510_v30, %v1389_v13  ;;  %v1391_v41 = vmul.f32 %v5752_v23, %v7479_v52  ;;  %v6967_v5 = vld [vmem:[%s7238_s23 + $0x5f0] sm:$0xff]  }
 0x1ca   : > { %7152 = vst [vmem:[%s7546_s30 + $0x5a0] sm:$0xff] %v6701_v26   ;;  %v5756_v2 = vunpack.c.l.bf16 %v6962_v44  ;;  %v6706_v57 = vpack.c.bf16 %v2176_v15, %v2175_v49  ;;  %v2178_v48 = vmax.f32 %v1786_v58, 0.0  ;;  %v1788_v46 = vadd.f32 %v7510_v30, %v1390_v6 }
 0x1cb   : > { %v1392_v3 = vmul.f32 %v5753_v22, %v7479_v52  ;;  %v2179_v32 = vmax.f32 %v1787_v55, 0.0  ;;  %v1789_v45 = vadd.f32 %v7510_v30, %v1391_v41  ;;  %v5757_v35 = vunpack.c.h.bf16 %v6962_v44  ;;  %v6968_v44 = vld [vmem:[%s7238_s23 + $0x5f8] sm:$0xff]  }
 0x1cc   : > { %v1393_v1 = vmul.f32 %v5756_v2, %v7479_v52  ;;  %7153 = vst [vmem:[%s7546_s30 + $0x5a8] sm:$0xff] %v6706_v57   ;;  %v6711_v27 = vpack.c.bf16 %v2178_v48, %v2177_v31  ;;  %v2180_v17 = vmax.f32 %v1788_v46, 0.0  ;;  %v5760_v43 = vunpack.c.l.bf16 %v6963_v34  ;;  %v6969_v31 = vld [vmem:[%s7238_s23 + $0x600] sm:$0xff]  }
 0x1cd   : > { %v1790_v54 = vadd.f32 %v7510_v30, %v1392_v3  ;;  %v2181_v29 = vmax.f32 %v1789_v45, 0.0  ;;  %v1394_v18 = vmul.f32 %v5757_v35, %v7479_v52  ;;  %v5761_v20 = vunpack.c.h.bf16 %v6963_v34 }
 0x1ce   : > { %v1791_v8 = vadd.f32 %v7510_v30, %v1393_v1  ;;  %7154 = vst [vmem:[%s7546_s30 + $0x5b0] sm:$0xff] %v6711_v27   ;;  %v6716_v39 = vpack.c.bf16 %v2180_v17, %v2179_v32  ;;  %v1395_v14 = vmul.f32 %v5760_v43, %v7479_v52  ;;  %v5764_v50 = vunpack.c.l.bf16 %v6964_v16  ;;  %v6970_v32 = vld [vmem:[%s7238_s23 + $0x608] sm:$0xff]  }
 0x1cf   : > { %v2182_v0 = vmax.f32 %v1790_v54, 0.0  ;;  %v1792_v36 = vadd.f32 %v7510_v30, %v1394_v18  ;;  %v1396_v53 = vmul.f32 %v5761_v20, %v7479_v52  ;;  %v5765_v21 = vunpack.c.h.bf16 %v6964_v16 }
 0x1d0   : > { %v2183_v42 = vmax.f32 %v1791_v8, 0.0  ;;  %7155 = vst [vmem:[%s7546_s30 + $0x5b8] sm:$0xff] %v6716_v39   ;;  %v1793_v60 = vadd.f32 %v7510_v30, %v1395_v14  ;;  %v1397_v24 = vmul.f32 %v5764_v50, %v7479_v52  ;;  %v5768_v4 = vunpack.c.l.bf16 %v6965_v62 }
 0x1d1   : > { %v6721_v28 = vpack.c.bf16 %v2182_v0, %v2181_v29  ;;  %v2184_v63 = vmax.f32 %v1792_v36, 0.0  ;;  %v1794_v25 = vadd.f32 %v7510_v30, %v1396_v53  ;;  %v1398_v10 = vmul.f32 %v5765_v21, %v7479_v52 }
 0x1d2   : > { %v5769_v40 = vunpack.c.h.bf16 %v6965_v62  ;;  %v2185_v61 = vmax.f32 %v1793_v60, 0.0  ;;  %v1795_v51 = vadd.f32 %v7510_v30, %v1397_v24  ;;  %v1399_v37 = vmul.f32 %v5768_v4, %v7479_v52  ;;  %v6971_v62 = vld [vmem:[%s7238_s23 + $0x610] sm:$0xff]  }
 0x1d3   : > { %7156 = vst [vmem:[%s7546_s30 + $0x5c0] sm:$0xff] %v6721_v28   ;;  %v5772_v33 = vunpack.c.l.bf16 %v6966_v7  ;;  %v6726_v38 = vpack.c.bf16 %v2184_v63, %v2183_v42  ;;  %v2186_v9 = vmax.f32 %v1794_v25, 0.0  ;;  %v1796_v47 = vadd.f32 %v7510_v30, %v1398_v10 }
 0x1d4   : > { %v1400_v11 = vmul.f32 %v5769_v40, %v7479_v52  ;;  %v2187_v12 = vmax.f32 %v1795_v51, 0.0  ;;  %v1797_v49 = vadd.f32 %v7510_v30, %v1399_v37  ;;  %v5773_v19 = vunpack.c.h.bf16 %v6966_v7  ;;  %v6972_v7 = vld [vmem:[%s7238_s23 + $0x618] sm:$0xff]  }
 0x1d5   : > { %v1401_v56 = vmul.f32 %v5772_v33, %v7479_v52  ;;  %7157 = vst [vmem:[%s7546_s30 + $0x5c8] sm:$0xff] %v6726_v38   ;;  %v6731_v26 = vpack.c.bf16 %v2186_v9, %v2185_v61  ;;  %v2188_v59 = vmax.f32 %v1796_v47, 0.0  ;;  %v5776_v23 = vunpack.c.l.bf16 %v6967_v5 }
 0x1d6   : > { %v1798_v13 = vadd.f32 %v7510_v30, %v1400_v11  ;;  %v2189_v15 = vmax.f32 %v1797_v49, 0.0  ;;  %v1402_v58 = vmul.f32 %v5773_v19, %v7479_v52  ;;  %v5777_v22 = vunpack.c.h.bf16 %v6967_v5 }
 0x1d7   : > { %v1799_v6 = vadd.f32 %v7510_v30, %v1401_v56  ;;  %7158 = vst [vmem:[%s7546_s30 + $0x5d0] sm:$0xff] %v6731_v26   ;;  %v6736_v55 = vpack.c.bf16 %v2188_v59, %v2187_v12  ;;  %v1403_v2 = vmul.f32 %v5776_v23, %v7479_v52  ;;  %v5780_v34 = vunpack.c.l.bf16 %v6968_v44 }
 0x1d8   : > { %v2190_v41 = vmax.f32 %v1798_v13, 0.0  ;;  %v1800_v57 = vadd.f32 %v7510_v30, %v1402_v58  ;;  %v1404_v46 = vmul.f32 %v5777_v22, %v7479_v52  ;;  %v5781_v3 = vunpack.c.h.bf16 %v6968_v44 }
 0x1d9   : > { %v2191_v48 = vmax.f32 %v1799_v6, 0.0  ;;  %7159 = vst [vmem:[%s7546_s30 + $0x5d8] sm:$0xff] %v6736_v55   ;;  %v1801_v35 = vadd.f32 %v7510_v30, %v1403_v2  ;;  %v1405_v1 = vmul.f32 %v5780_v34, %v7479_v52  ;;  %v5784_v16 = vunpack.c.l.bf16 %v6969_v31 }
 0x1da   : > { %v6741_v45 = vpack.c.bf16 %v2190_v41, %v2189_v15  ;;  %v2192_v27 = vmax.f32 %v1800_v57, 0.0  ;;  %v1802_v17 = vadd.f32 %v7510_v30, %v1404_v46  ;;  %v1406_v54 = vmul.f32 %v5781_v3, %v7479_v52 }
 0x1db   : > { %v5785_v43 = vunpack.c.h.bf16 %v6969_v31  ;;  %v2193_v29 = vmax.f32 %v1801_v35, 0.0  ;;  %v1803_v18 = vadd.f32 %v7510_v30, %v1405_v1  ;;  %v1407_v8 = vmul.f32 %v5784_v16, %v7479_v52 }
 0x1dc   : > { %7160 = vst [vmem:[%s7546_s30 + $0x5e0] sm:$0xff] %v6741_v45   ;;  %v5788_v20 = vunpack.c.l.bf16 %v6970_v32  ;;  %v6746_v39 = vpack.c.bf16 %v2192_v27, %v2191_v48  ;;  %v2194_v0 = vmax.f32 %v1802_v17, 0.0  ;;  %v1804_v14 = vadd.f32 %v7510_v30, %v1406_v54 }
 0x1dd   : > { %v1408_v50 = vmul.f32 %v5785_v43, %v7479_v52  ;;  %v2195_v36 = vmax.f32 %v1803_v18, 0.0  ;;  %v1805_v42 = vadd.f32 %v7510_v30, %v1407_v8  ;;  %v5789_v53 = vunpack.c.h.bf16 %v6970_v32 }
 0x1de   : > { %v1409_v21 = vmul.f32 %v5788_v20, %v7479_v52  ;;  %7161 = vst [vmem:[%s7546_s30 + $0x5e8] sm:$0xff] %v6746_v39   ;;  %v6751_v28 = vpack.c.bf16 %v2194_v0, %v2193_v29  ;;  %v2196_v60 = vmax.f32 %v1804_v14, 0.0  ;;  %v5792_v4 = vunpack.c.l.bf16 %v6971_v62 }
 0x1df   : > { %v1806_v24 = vadd.f32 %v7510_v30, %v1408_v50  ;;  %v2197_v63 = vmax.f32 %v1805_v42, 0.0  ;;  %v1410_v25 = vmul.f32 %v5789_v53, %v7479_v52  ;;  %v5793_v40 = vunpack.c.h.bf16 %v6971_v62 }
 0x1e0   : > { %v1807_v10 = vadd.f32 %v7510_v30, %v1409_v21  ;;  %7162 = vst [vmem:[%s7546_s30 + $0x5f0] sm:$0xff] %v6751_v28   ;;  %v6756_v61 = vpack.c.bf16 %v2196_v60, %v2195_v36  ;;  %v1411_v37 = vmul.f32 %v5792_v4, %v7479_v52  ;;  %v5796_v33 = vunpack.c.l.bf16 %v6972_v7 }
 0x1e1   : > { %v2198_v51 = vmax.f32 %v1806_v24, 0.0  ;;  %v1808_v5 = vadd.f32 %v7510_v30, %v1410_v25  ;;  %v1412_v9 = vmul.f32 %v5793_v40, %v7479_v52  ;;  %v5797_v47 = vunpack.c.h.bf16 %v6972_v7 }
 0x1e2   : > { %v2199_v38 = vmax.f32 %v1807_v10, 0.0  ;;  %7163 = vst [vmem:[%s7546_s30 + $0x5f8] sm:$0xff] %v6756_v61   ;;  %v1809_v12 = vadd.f32 %v7510_v30, %v1411_v37  ;;  %v1413_v49 = vmul.f32 %v5796_v33, %v7479_v52 }
 0x1e3   : > { %v6761_v11 = vpack.c.bf16 %v2198_v51, %v2197_v63  ;;  %v2200_v19 = vmax.f32 %v1808_v5, 0.0  ;;  %v1810_v56 = vadd.f32 %v7510_v30, %v1412_v9  ;;  %v1414_v44 = vmul.f32 %v5797_v47, %v7479_v52 }
 0x1e4   : > { %v2201_v26 = vmax.f32 %v1809_v12, 0.0  ;;  %v1811_v59 = vadd.f32 %v7510_v30, %v1413_v49 }
 0x1e5   : > { %7164 = vst [vmem:[%s7546_s30 + $0x600] sm:$0xff] %v6761_v11   ;;  %v6766_v13 = vpack.c.bf16 %v2200_v19, %v2199_v38  ;;  %v2202_v23 = vmax.f32 %v1810_v56, 0.0  ;;  %v1812_v15 = vadd.f32 %v7510_v30, %v1414_v44 }
 0x1e6   : > { %v2203_v58 = vmax.f32 %v1811_v59, 0.0 }
 0x1e7   : > { %7165 = vst [vmem:[%s7546_s30 + $0x608] sm:$0xff] %v6766_v13   ;;  %v6771_v6 = vpack.c.bf16 %v2202_v23, %v2201_v26  ;;  %v2204_v22 = vmax.f32 %v1812_v15, 0.0 }
 0x1e9   : > { %7166 = vst [vmem:[%s7546_s30 + $0x610] sm:$0xff] %v6771_v6   ;;  %v6776_v31 = vpack.c.bf16 %v2204_v22, %v2203_v58 }
 0x1eb   : > { %7167 = vst [vmem:[%s7546_s30 + $0x618] sm:$0xff] %v6776_v31  }
 0x1ec PF: > { %s14_s15 = sadd.s32 1, %s7185_s15  }
 0x1ed   : > { %p11_p4 = scmp.ge.s32.totalorder %s14_s15, 4  }
 0x1ef   :  { %13 = sbr.rel (!%p11_p4) target bundleno = 1 (0x1), region = 66 }

// kernel: stem_fwd.5
= control target key start
LH: loop header
LB: loop body
LE: loop exit
PB: predicated region body
PF: predicated region fallthrough
CT: control target
= control target key end

     0   :  { %s2877_s15 = smov 0   ;;  %s2879_s16 = smov 0   ;;  %s4945_s0 = inlined_call_operand.vmem [shape: bf16[1,3656,64], index: 0, kind: input, shape index: {}]   ;;  %s4946_s1 = inlined_call_operand.vmem [shape: bf16[1,3656,64], index: 1, kind: input, shape index: {}]   ;;  %s4947_s2 = inlined_call_operand.vmem [shape: bf16[1,3656,64], index: 2, kind: input, shape index: {}]   ;;  %s4948_s3 = inlined_call_operand.vmem [shape: bf16[1,3656,64], index: 3, kind: input, shape index: {}]   ;;  %s4949_s4 = inlined_call_operand.vmem [shape: bf16[1,3584,64], index: 4, kind: output, shape index: {}]  }
   0x1   :  { %s2881_s17 = smov 0  }
   0x2 LB: > { %s23_s18 = sadd.s32 1, %s2846_s16  ;;  %p2794_p0 = scmp.ge.s32.totalorder %s2850_s17, 1  ;;  %s2850_s17 = sphi %s2881_s17, %s14_s17   ;;  %s2846_s16 = sphi %s2879_s16, %s4954_s16   ;;  %s2842_s15 = sphi %s2877_s15, %s4953_s15  }
   0x3   : > { %p24_p1 = scmp.ge.s32.totalorder %s23_s18, 7  ;;  %p206_p2 = scmp.lt.s32.totalorder %s2850_s17, 8 }
   0x5   : > { %s4956_s18 = smov (%p24_p1, %s23_s18), 0  ;;  %p207_p3 = pnand %p2794_p0, %p206_p2 }
   0x6   : > { %s2797_s19 = sshll.u32 (!%p207_p3), %s2842_s15, 9  ;;  %vm359_vm0 = vsmask.f32 (!%p207_p3), 3328  ;;  %vm360_vm1 = vsmask.f32 (!%p207_p3), 7440  ;;  %s2795_s28 = sshll.u32 (!%p207_p3), %s2842_s15, 6 }
   0x7   : > { %210 = sbr.rel (%p207_p3) target bundleno = 390 (0x186), region = 36  ;;  %s282_s20 = sshra.s32 (!%p207_p3), %s2797_s19, 3  ;;  %vm2939_vm2 = vmor (!%p207_p3), %vm359_vm0, %vm360_vm1  ;;  %vm2585_vm3 = vcmask (!%p207_p3), 519168  }
   0x8   : > { %s2898_s21 = sshll.u32 (!%p207_p3), %s282_s20, 2  ;;  %p2976_p4 = scmp.lt.s32.totalorder (!%p207_p3), %s2795_s28, 447 }
   0x9   : > { %s2904_s24 = scalar_lea.vmem (!%p207_p3), %s4945_s0, %s2898_s21  ;;  %s2914_s27 = scalar_lea.vmem (!%p207_p3), %s4947_s2, %s2898_s21 }
   0xa   : > { %v286_v0 = vld [vmem:[%s2904_s24] sm:$0xf] (!%p207_p3)  ;;  %v2908_v1 = vld [vmem:[%s2904_s24 + $0x4] sm:$0xf] (!%p207_p3)  ;;  %v2945_v23 = vld [vmem:[%s2904_s24 + $0x8] sm:$0xf] (!%p207_p3)  ;;  %s2965_s5 = scalar_lea.vmem (!%p207_p3), %s4946_s1, %s2898_s21  ;;  %s3020_s9 = scalar_lea.vmem (!%p207_p3), %s4948_s3, %s2898_s21 }
   0xb   : > { %v2917_v2 = vld [vmem:[%s2904_s24 + $0x20] sm:$0xf] (!%p207_p3)  ;;  %v2920_v3 = vld [vmem:[%s2904_s24 + $0x24] sm:$0xf] (!%p207_p3)  ;;  %v363_v4 = vshrl.u32 (!%p207_p3), %v286_v0, 16  ;;  %v366_v5 = vshll.u32 (!%p207_p3), %v286_v0, 16 }
   0xc   : > { %v372_v6 = vshll.u32 (!%p207_p3), %v2908_v1, 16  ;;  %v442_v7 = vshll.u32 (!%p207_p3), %v2917_v2, 16  ;;  %v446_v8 = vshrl.u32 (!%p207_p3), %v2917_v2, 16  ;;  %v452_v11 = vshll.u32 (!%p207_p3), %v2920_v3, 16  ;;  %v2927_v12 = vld [vmem:[%s2914_s27] sm:$0xf] (!%p207_p3) }
   0xd   : > { %v365_v9 = vrot.slane (!%p207_p3), %v363_v4, 4  ;;  %v368_v10 = vrot.slane (!%p207_p3), %v366_v5, 5  ;;  %v2932_v16 = vld [vmem:[%s2914_s27 + $0x4] sm:$0xf] (!%p207_p3)  ;;  %v1684_v18 = vshrl.u32 (!%p207_p3), %v2927_v12, 16  ;;  %v1687_v19 = vshll.u32 (!%p207_p3), %v2927_v12, 16 }
   0xe   : > { %v374_v13 = vrot.slane %v372_v6, 5  ;;  %v2929_v14 = vrot.slane %v442_v7, 5  ;;  %v448_v15 = vrot.slane %v446_v8, 4  ;;  %v1693_v20 = vshll.u32 %v2932_v16, 16  ;;  %v2948_v24 = vld [vmem:[%s2904_s24 + $0x28] sm:$0xf] }
   0xf   : > { %v369_v17 = vor.u32 %v368_v10, %v365_v9  ;;  %v376_v25 = vshrl.u32 %v2908_v1, 16  ;;  %v456_v26 = vshrl.u32 %v2920_v3, 16  ;;  %v454_v28 = vrot.slane %v452_v11, 5  ;;  %v2958_v38 = vld [vmem:[%s2914_s27 + $0x8] sm:$0xf]  ;;  %s4958_s28 = smov (!%p2976_p4, %s2795_s28), 447 }
  0x10   : > { %v449_v22 = vor.u32 %v448_v15, %v2929_v14  ;;  %v1686_v29 = vrot.slane %v1684_v18, 4  ;;  %v1689_v30 = vrot.slane %v1687_v19, 5  ;;  %v382_v33 = vshll.u32 %v2945_v23, 16  ;;  %v2972_v47 = vld [vmem:[%s2904_s24 + $0xc] sm:$0xf]  ;;  %s2796_s10 = sshll.u32 %s4958_s28, 2 }
  0x11   : > { %v370_v27 = vrot.slane %v369_v17, 4  ;;  %v378_v32 = vrot.slane %v376_v25, 4  ;;  %v458_v34 = vrot.slane %v456_v26, 4  ;;  %v462_v37 = vshll.u32 %v2948_v24, 16  ;;  %v1352_v52 = vld [vmem:[%s2965_s5] sm:$0xf]  ;;  %s3047_s13 = scalar_lea.vmem %s4949_s4, %s2796_s10 }
  0x12   : > { %v450_v31 = vrot.slane %v449_v22, 4  ;;  %v1690_v36 = vor.u32 %v1689_v30, %v1686_v29  ;;  %v1697_v39 = vshrl.u32 %v2932_v16, 16  ;;  %v1695_v41 = vrot.slane %v1693_v20, 5  ;;  %v3004_v6 = vld [vmem:[%s2904_s24 + $0x2c] sm:$0xf] }
  0x13   : > { %v375_v35 = vsel %vm2939_vm2, %v370_v27, %v374_v13  ;;  %v379_v42 = vor.u32 %v378_v32, %v374_v13  ;;  %v384_v45 = vrot.slane %v382_v33, 5  ;;  %v459_v46 = vor.u32 %v458_v34, %v454_v28  ;;  %v3008_v8 = vld [vmem:[%s2965_s5 + $0x20] sm:$0xf]  ;;  %v3012_v11 = vld [vmem:[%s2914_s27 + $0xc] sm:$0xf] }
  0x14   : > { %v1070_v40 = vmax.bf16 %v375_v35, %v286_v0  ;;  %v2969_v43 = vsel %vm2939_vm2, %v450_v31, %v454_v28  ;;  %v1691_v44 = vrot.slane %v1690_v36, 4  ;;  %v1699_v50 = vrot.slane %v1697_v39, 4  ;;  %v1353_v18 = vld [vmem:[%s2965_s5 + $0x4] sm:$0xf]  ;;  %v3026_v22 = vld [vmem:[%s2904_s24 + $0x10] sm:$0xf] }
  0x15   : > { %v380_v49 = vrot.slane %v379_v42, 4  ;;  %v1703_v51 = vshll.u32 %v2958_v38, 16  ;;  %v460_v53 = vrot.slane %v459_v46, 4  ;;  %v464_v54 = vrot.slane %v462_v37, 5  ;;  %v2457_v33 = vld [vmem:[%s3020_s9] sm:$0xf] }
  0x16   : > { %v1134_v48 = vmax.bf16 %v1070_v40, %v2917_v2  ;;  %v386_v55 = vshrl.u32 %v2945_v23, 16  ;;  %v1700_v58 = vor.u32 %v1699_v50, %v1695_v41  ;;  %v392_v59 = vshll.u32 %v2972_v47, 16  ;;  %v3041_v40 = vld [vmem:[%s2965_s5 + $0x24] sm:$0xf] }
  0x17   : > { %v385_v57 = vsel %vm2939_vm2, %v380_v49, %v384_v45  ;;  %v1078_v60 = vmax.bf16 %v2969_v43, %v2917_v2  ;;  %v2992_v61 = vsel %vm2939_vm2, %v460_v53, %v464_v54  ;;  %v1696_v4 = vsel %vm2939_vm2, %v1691_v44, %v1695_v41 }
  0x18   : > { %v1286_v56 = vmax.bf16 %v1134_v48, %v2969_v43  ;;  %v1071_v62 = vmax.bf16 %v385_v57, %v2908_v1  ;;  %v388_v63 = vrot.slane %v386_v55, 4  ;;  %v1705_v5 = vrot.slane %v1703_v51, 5  ;;  %v3051_v48 = vld [vmem:[%s2904_s24 + $0x30] sm:$0xf]  ;;  %v1354_v55 = vld [vmem:[%s2965_s5 + $0x8] sm:$0xf] }
  0x19   : > { %v466_v7 = vshrl.u32 %v2948_v24, 16  ;;  %v1701_v9 = vrot.slane %v1700_v58, 4  ;;  %v1707_v13 = vshrl.u32 %v2958_v38, 16  ;;  %v1079_v17 = vmax.bf16 %v2992_v61, %v2920_v3  ;;  %v3062_v58 = vld [vmem:[%s2914_s27 + $0x10] sm:$0xf] }
  0x1a   : > { %v1424_v0 = vmax.bf16 %v1352_v52, %v1286_v56  ;;  %v1135_v1 = vmax.bf16 %v1071_v62, %v2920_v3  ;;  %v389_v10 = vor.u32 %v388_v63, %v384_v45  ;;  %v394_v19 = vrot.slane %v392_v59, 5  ;;  %v2458_v59 = vld [vmem:[%s3020_s9 + $0x4] sm:$0xf] }
  0x1b   : > { %v468_v20 = vrot.slane %v466_v7, 4  ;;  %v472_v27 = vshll.u32 %v3004_v6, 16  ;;  %v1709_v28 = vrot.slane %v1707_v13, 4  ;;  %v1713_v31 = vshll.u32 %v3012_v11, 16 }
  0x1c   : > { %v1488_v15 = vmax.bf16 %v1424_v0, %v3008_v8  ;;  %v1287_v25 = vmax.bf16 %v1135_v1, %v2992_v61  ;;  %v390_v26 = vrot.slane %v389_v10, 4  ;;  %v396_v32 = vshrl.u32 %v2972_v47, 16  ;;  %v3071_v1 = vld [vmem:[%s2904_s24 + $0x14] sm:$0xf] }
  0x1d   : > { %v469_v30 = vor.u32 %v468_v20, %v464_v54  ;;  %v1706_v35 = vsel %vm2939_vm2, %v1701_v9, %v1705_v5  ;;  %v402_v37 = vshll.u32 %v3026_v22, 16  ;;  %v474_v45 = vrot.slane %v472_v27, 5  ;;  %v3078_v20 = vld [vmem:[%s2965_s5 + $0x28] sm:$0xf] }
  0x1e   : > { %v1619_v29 = vmax.bf16 %v2927_v12, %v1488_v15  ;;  %v1425_v34 = vmax.bf16 %v1353_v18, %v1287_v25  ;;  %v395_v36 = vsel %vm2939_vm2, %v390_v26, %v394_v19  ;;  %v398_v42 = vrot.slane %v396_v32, 4 }
  0x1f   : > { %v470_v12 = vrot.slane %v469_v30, 4  ;;  %v1072_v41 = vmax.bf16 %v395_v36, %v2945_v23  ;;  %v1710_v46 = vor.u32 %v1709_v28, %v1705_v5  ;;  %v476_v49 = vshrl.u32 %v3004_v6, 16  ;;  %v3082_v28 = vld [vmem:[%s2904_s24 + $0x34] sm:$0xf] }
  0x20   : > { %v2391_v39 = vmax.bf16 %v1696_v4, %v1619_v29  ;;  %v1489_v44 = vmax.bf16 %v1425_v34, %v3041_v40  ;;  %v1715_v51 = vrot.slane %v1713_v31, 5  ;;  %v399_v52 = vor.u32 %v398_v42, %v394_v19  ;;  %v3102_v42 = vld [vmem:[%s2914_s27 + $0x14] sm:$0xf] }
  0x21   : > { %v1136_v23 = vmax.bf16 %v1072_v41, %v2948_v24  ;;  %v3058_v54 = vsel %vm2939_vm2, %v470_v12, %v474_v45  ;;  %v404_v56 = vrot.slane %v402_v37, 5  ;;  %v478_v57 = vrot.slane %v476_v49, 4 }
  0x22   : > { %v2521_v50 = vmax.bf16 %v2457_v33, %v2391_v39  ;;  %v1620_v53 = vmax.bf16 %v2932_v16, %v1489_v44  ;;  %v400_v63 = vrot.slane %v399_v52, 4  ;;  %v482_v0 = vshll.u32 %v3051_v48, 16  ;;  %v1355_v39 = vld [vmem:[%s2965_s5 + $0xc] sm:$0xf]  ;;  %v2459_v44 = vld [vmem:[%s3020_s9 + $0x8] sm:$0xf] }
  0x23   : > { %v1288_v62 = vmax.bf16 %v1136_v23, %v3058_v54  ;;  %v1717_v16 = vshrl.u32 %v3012_v11, 16  ;;  %v1711_v5 = vrot.slane %v1710_v46, 4  ;;  %v479_v7 = vor.u32 %v478_v57, %v474_v45 }
  0x24   : > { %2586 = vst.msk [vmem:[%s3047_s13] sm:$0xf] %vm2585_vm3, %v2521_v50  ;;  %v2392_v4 = vmax.bf16 %v1706_v35, %v1620_v53  ;;  %v406_v9 = vshrl.u32 %v3026_v22, 16  ;;  %v405_v13 = vsel %vm2939_vm2, %v400_v63, %v404_v56  ;;  %v1723_v18 = vshll.u32 %v3062_v58, 16  ;;  %v3108_v53 = vld [vmem:[%s2904_s24 + $0x18] sm:$0xf] }
  0x25   : > { %v1426_v10 = vmax.bf16 %v1354_v55, %v1288_v62  ;;  %v1719_v15 = vrot.slane %v1717_v16, 4  ;;  %v480_v25 = vrot.slane %v479_v7, 4  ;;  %v484_v26 = vrot.slane %v482_v0, 5  ;;  %v3113_v63 = vld [vmem:[%s2965_s5 + $0x2c] sm:$0xf] }
  0x26   : > { %v2522_v19 = vmax.bf16 %v2458_v59, %v2392_v4  ;;  %v1073_v27 = vmax.bf16 %v405_v13, %v2972_v47  ;;  %v408_v31 = vrot.slane %v406_v9, 4  ;;  %v412_v32 = vshll.u32 %v3071_v1, 16 }
  0x27   : > { %v1490_v29 = vmax.bf16 %v1426_v10, %v3078_v20  ;;  %v1720_v30 = vor.u32 %v1719_v15, %v1715_v51  ;;  %v1080_v33 = vmax.bf16 %v3058_v54, %v2948_v24  ;;  %v1716_v34 = vsel %vm2939_vm2, %v1711_v5, %v1715_v51  ;;  %v3120_v10 = vld [vmem:[%s2904_s24 + $0x38] sm:$0xf] }
  0x28   : > { %2587 = vst.msk [vmem:[%s3047_s13 + $0x4] sm:$0xf] %vm2585_vm3, %v2522_v19  ;;  %v1137_v47 = vmax.bf16 %v1073_v27, %v3004_v6  ;;  %v486_v35 = vshrl.u32 %v3051_v48, 16  ;;  %v3097_v37 = vsel %vm2939_vm2, %v480_v25, %v484_v26  ;;  %v409_v12 = vor.u32 %v408_v31, %v404_v56  ;;  %v2460_v31 = vld [vmem:[%s3020_s9 + $0xc] sm:$0xf] }
  0x29   : > { %v1621_v36 = vmax.bf16 %v2958_v38, %v1490_v29  ;;  %v492_v41 = vshll.u32 %v3082_v28, 16  ;;  %v1721_v46 = vrot.slane %v1720_v30, 4  ;;  %v1725_v49 = vrot.slane %v1723_v18, 5  ;;  %v3133_v30 = vld [vmem:[%s2914_s27 + $0x18] sm:$0xf] }
  0x2a   : > { %v1289_v45 = vmax.bf16 %v1137_v47, %v3097_v37  ;;  %v488_v50 = vrot.slane %v486_v35, 4  ;;  %v410_v51 = vrot.slane %v409_v12, 4  ;;  %v414_v38 = vrot.slane %v412_v32, 5 }
  0x2b   : > { %v2393_v23 = vmax.bf16 %v1716_v34, %v1621_v36  ;;  %v1727_v52 = vshrl.u32 %v3062_v58, 16  ;;  %v1733_v57 = vshll.u32 %v3102_v42, 16  ;;  %v416_v59 = vshrl.u32 %v3071_v1, 16  ;;  %v1356_v34 = vld [vmem:[%s2965_s5 + $0x10] sm:$0xf] }
  0x2c   : > { %v1427_v55 = vmax.bf16 %v1355_v39, %v1289_v45  ;;  %v489_v56 = vor.u32 %v488_v50, %v484_v26  ;;  %v415_v0 = vsel %vm2939_vm2, %v410_v51, %v414_v38  ;;  %v494_v16 = vrot.slane %v492_v41, 5  ;;  %v3149_v51 = vld [vmem:[%s2965_s5 + $0x30] sm:$0xf] }
  0x2d   : > { %v2523_v62 = vmax.bf16 %v2459_v44, %v2393_v23  ;;  %v1729_v4 = vrot.slane %v1727_v52, 4  ;;  %v1074_v9 = vmax.bf16 %v415_v0, %v3026_v22  ;;  %v422_v13 = vshll.u32 %v3108_v53, 16  ;;  %v3145_v44 = vld [vmem:[%s2904_s24 + $0x1c] sm:$0xf] }
  0x2e   : > { %v1491_v5 = vmax.bf16 %v1427_v55, %v3113_v63  ;;  %v490_v7 = vrot.slane %v489_v56, 4  ;;  %v1726_v15 = vsel %vm2939_vm2, %v1721_v46, %v1725_v49  ;;  %v418_v19 = vrot.slane %v416_v59, 4 }
  0x2f   : > { %2588 = vst.msk [vmem:[%s3047_s13 + $0x8] sm:$0xf] %vm2585_vm3, %v2523_v62  ;;  %v1730_v18 = vor.u32 %v1729_v4, %v1725_v49  ;;  %v496_v25 = vshrl.u32 %v3082_v28, 16  ;;  %v1081_v26 = vmax.bf16 %v3097_v37, %v3004_v6  ;;  %v1138_v22 = vmax.bf16 %v1074_v9, %v3051_v48  ;;  %v3155_v62 = vld [vmem:[%s2904_s24 + $0x3c] sm:$0xf] }
  0x30   : > { %v1622_v27 = vmax.bf16 %v3012_v11, %v1491_v5  ;;  %v1735_v29 = vrot.slane %v1733_v57, 5  ;;  %v3138_v32 = vsel %vm2939_vm2, %v490_v7, %v494_v16  ;;  %v419_v47 = vor.u32 %v418_v19, %v414_v38  ;;  %v3168_v19 = vld [vmem:[%s2914_s27 + $0x1c] sm:$0xf] }
  0x31   : > { %v498_v35 = vrot.slane %v496_v25, 4  ;;  %v502_v36 = vshll.u32 %v3120_v10, 16  ;;  %v1290_v12 = vmax.bf16 %v1138_v22, %v3138_v32  ;;  %v424_v11 = vrot.slane %v422_v13, 5 }
  0x32   : > { %v2394_v39 = vmax.bf16 %v1726_v15, %v1622_v27  ;;  %v1737_v41 = vshrl.u32 %v3102_v42, 16  ;;  %v1731_v45 = vrot.slane %v1730_v18, 4  ;;  %v420_v46 = vrot.slane %v419_v47, 4  ;;  %v2461_v27 = vld [vmem:[%s3020_s9 + $0x10] sm:$0xf] }
  0x33   : > { %v499_v49 = vor.u32 %v498_v35, %v494_v16  ;;  %v1743_v50 = vshll.u32 %v3133_v30, 16  ;;  %v1428_v38 = vmax.bf16 %v1356_v34, %v1290_v12  ;;  %v426_v55 = vshrl.u32 %v3108_v53, 16  ;;  %v1357_v34 = vld [vmem:[%s2965_s5 + $0x14] sm:$0xf] }
  0x34   : > { %v2524_v23 = vmax.bf16 %v2460_v31, %v2394_v39  ;;  %v1739_v52 = vrot.slane %v1737_v41, 4  ;;  %v425_v56 = vsel %vm2939_vm2, %v420_v46, %v424_v11  ;;  %v504_v59 = vrot.slane %v502_v36, 5 }
  0x35   : > { %v500_v57 = vrot.slane %v499_v49, 4  ;;  %v432_v0 = vshll.u32 %v3145_v44, 16  ;;  %v1492_v16 = vmax.bf16 %v1428_v38, %v3149_v51  ;;  %v1075_v4 = vmax.bf16 %v425_v56, %v3071_v1  ;;  %v3188_v56 = vld [vmem:[%s2965_s5 + $0x34] sm:$0xf] }
  0x36   : > { %2589 = vst.msk [vmem:[%s3047_s13 + $0xc] sm:$0xf] %vm2585_vm3, %v2524_v23  ;;  %v1740_v5 = vor.u32 %v1739_v52, %v1735_v29  ;;  %v428_v7 = vrot.slane %v426_v55, 4  ;;  %v1082_v9 = vmax.bf16 %v3138_v32, %v3051_v48  ;;  %v1736_v13 = vsel %vm2939_vm2, %v1731_v45, %v1735_v29 }
  0x37   : > { %v1745_v15 = vrot.slane %v1743_v50, 5  ;;  %v506_v18 = vshrl.u32 %v3120_v10, 16  ;;  %v1623_v25 = vmax.bf16 %v3062_v58, %v1492_v16  ;;  %v3174_v1 = vsel %vm2939_vm2, %v500_v57, %v504_v59  ;;  %v3183_v50 = vld [vmem:[%s2904_s24 + $0x40] sm:$0xf] }
  0x38   : > { %v1139_v22 = vmax.bf16 %v1075_v4, %v3082_v28  ;;  %v512_v31 = vshll.u32 %v3155_v62, 16  ;;  %v429_v47 = vor.u32 %v428_v7, %v424_v11  ;;  %v434_v29 = vrot.slane %v432_v0, 5 }
  0x39   : > { %v508_v35 = vrot.slane %v506_v18, 4  ;;  %v1747_v36 = vshrl.u32 %v3133_v30, 16  ;;  %v2395_v39 = vmax.bf16 %v1736_v13, %v1623_v25  ;;  %v1741_v12 = vrot.slane %v1740_v5, 4 }
  0x3a   : > { %v1291_v58 = vmax.bf16 %v1139_v22, %v3174_v1  ;;  %v1753_v41 = vshll.u32 %v3168_v19, 16  ;;  %v430_v45 = vrot.slane %v429_v47, 4  ;;  %v436_v23 = vshrl.u32 %v3145_v44, 16  ;;  %v2462_v47 = vld [vmem:[%s3020_s9 + $0x14] sm:$0xf] }
  0x3b   : > { %v509_v46 = vor.u32 %v508_v35, %v504_v59  ;;  %v1749_v49 = vrot.slane %v1747_v36, 4  ;;  %v2525_v11 = vmax.bf16 %v2461_v27, %v2395_v39  ;;  %v514_v52 = vrot.slane %v512_v31, 5  ;;  %v3206_v36 = vld [vmem:[%s2914_s27 + $0x20] sm:$0xf] }
  0x3c   : > { %v1429_v38 = vmax.bf16 %v1357_v34, %v1291_v58  ;;  %v516_v55 = vshrl.u32 %v3155_v62, 16  ;;  %v435_v57 = vsel %vm2939_vm2, %v430_v45, %v434_v29  ;;  %v438_v59 = vrot.slane %v436_v23, 4 }
  0x3d   : > { %v510_v0 = vrot.slane %v509_v46, 4  ;;  %v1750_v16 = vor.u32 %v1749_v49, %v1745_v15  ;;  %2590 = vst.msk [vmem:[%s3047_s13 + $0x10] sm:$0xf] %vm2585_vm3, %v2525_v11  ;;  %v1076_v5 = vmax.bf16 %v435_v57, %v3108_v53  ;;  %v522_v13 = vshll.u32 %v3183_v50, 16  ;;  %v3215_v49 = vld [vmem:[%s2904_s24 + $0x44] sm:$0xf] }
  0x3e   : > { %v1493_v4 = vmax.bf16 %v1429_v38, %v3188_v56  ;;  %v518_v7 = vrot.slane %v516_v55, 4  ;;  %v1746_v18 = vsel %vm2939_vm2, %v1741_v12, %v1745_v15  ;;  %v1755_v25 = vrot.slane %v1753_v41, 5  ;;  %v1358_v15 = vld [vmem:[%s2965_s5 + $0x18] sm:$0xf] }
  0x3f   : > { %v439_v27 = vor.u32 %v438_v59, %v434_v29  ;;  %v1757_v22 = vshrl.u32 %v3168_v19, 16  ;;  %v1083_v31 = vmax.bf16 %v3174_v1, %v3082_v28  ;;  %v1140_v35 = vmax.bf16 %v1076_v5, %v3120_v10  ;;  %v3228_v59 = vld [vmem:[%s2914_s27 + $0x24] sm:$0xf] }
  0x40   : > { %v1624_v34 = vmax.bf16 %v3102_v42, %v1493_v4  ;;  %v519_v53 = vor.u32 %v518_v7, %v514_v52  ;;  %v3210_v39 = vsel %vm2939_vm2, %v510_v0, %v514_v52  ;;  %v1751_v29 = vrot.slane %v1750_v16, 4  ;;  %v3233_v4 = vld [vmem:[%s2965_s5 + $0x38] sm:$0xf] }
  0x41   : > { %v440_v58 = vrot.slane %v439_v27, 4  ;;  %v1759_v12 = vrot.slane %v1757_v22, 4  ;;  %v1292_v45 = vmax.bf16 %v1140_v35, %v3210_v39  ;;  %v524_v46 = vrot.slane %v522_v13, 5 }
  0x42   : > { %v2396_v41 = vmax.bf16 %v1746_v18, %v1624_v34  ;;  %v520_v42 = vrot.slane %v519_v53, 4  ;;  %v1763_v38 = vshll.u32 %v3206_v36, 16  ;;  %v526_v52 = vshrl.u32 %v3183_v50, 16  ;;  %v1359_v34 = vld [vmem:[%s2965_s5 + $0x1c] sm:$0xf] }
  0x43   : > { %v445_v23 = vsel %vm2939_vm2, %v440_v58, %v2929_v14  ;;  %v1760_v11 = vor.u32 %v1759_v12, %v1755_v25  ;;  %v1430_v57 = vmax.bf16 %v1358_v15, %v1292_v45  ;;  %v1084_v14 = vmax.bf16 %v3210_v39, %v3120_v10  ;;  %v3248_v58 = vld [vmem:[%s2904_s24 + $0x48] sm:$0xf] }
  0x44   : > { %v2526_v55 = vmax.bf16 %v2462_v47, %v2396_v41  ;;  %v3224_v0 = vsel %vm2939_vm2, %v520_v42, %v524_v46  ;;  %v1077_v16 = vmax.bf16 %v445_v23, %v3145_v44  ;;  %v528_v7 = vrot.slane %v526_v52, 4  ;;  %v2463_v41 = vld [vmem:[%s3020_s9 + $0x18] sm:$0xf] }
  0x45   : > { %v1761_v5 = vrot.slane %v1760_v11, 4  ;;  %v532_v13 = vshll.u32 %v3215_v49, 16  ;;  %v1494_v18 = vmax.bf16 %v1430_v57, %v3233_v4  ;;  %v1756_v44 = vsel %vm2939_vm2, %v1751_v29, %v1755_v25 }
  0x46   : > { %2591 = vst.msk [vmem:[%s3047_s13 + $0x14] sm:$0xf] %vm2585_vm3, %v2526_v55  ;;  %v1085_v27 = vmax.bf16 %v3224_v0, %v3155_v62  ;;  %v1141_v22 = vmax.bf16 %v1077_v16, %v3155_v62  ;;  %v1765_v47 = vrot.slane %v1763_v38, 5  ;;  %v529_v35 = vor.u32 %v528_v7, %v524_v46  ;;  %v3261_v38 = vld [vmem:[%s2914_s27 + $0x28] sm:$0xf] }
  0x47   : > { %v1767_v53 = vshrl.u32 %v3206_v36, 16  ;;  %v1773_v15 = vshll.u32 %v3228_v59, 16  ;;  %v1625_v12 = vmax.bf16 %v3133_v30, %v1494_v18  ;;  %v1142_v29 = vmax.bf16 %v1078_v60, %v3183_v50  ;;  %v3265_v16 = vld [vmem:[%s2965_s5 + $0x3c] sm:$0xf] }
  0x48   : > { %v1293_v25 = vmax.bf16 %v1141_v22, %v3224_v0  ;;  %v536_v45 = vshrl.u32 %v3215_v49, 16  ;;  %v1766_v42 = vsel %vm2939_vm2, %v1761_v5, %v1765_v47  ;;  %v530_v46 = vrot.slane %v529_v35, 4  ;;  %v3276_v22 = vld [vmem:[%s2904_s24 + $0x4c] sm:$0xf] }
  0x49   : > { %v534_v23 = vrot.slane %v532_v13, 5  ;;  %v1769_v11 = vrot.slane %v1767_v53, 4  ;;  %v2397_v30 = vmax.bf16 %v1756_v44, %v1625_v12  ;;  %v542_v57 = vshll.u32 %v3248_v58, 16 }
  0x4a   : > { %v1431_v52 = vmax.bf16 %v1359_v34, %v1293_v25  ;;  %v538_v55 = vrot.slane %v536_v45, 4  ;;  %v1775_v60 = vrot.slane %v1773_v15, 5  ;;  %v1777_v5 = vshrl.u32 %v3228_v59, 16  ;;  %v2464_v45 = vld [vmem:[%s3020_s9 + $0x1c] sm:$0xf] }
  0x4b   : > { %v3269_v2 = vsel %vm2939_vm2, %v530_v46, %v534_v23  ;;  %v1770_v43 = vor.u32 %v1769_v11, %v1765_v47  ;;  %v2527_v7 = vmax.bf16 %v2463_v41, %v2397_v30  ;;  %v1783_v44 = vshll.u32 %v3261_v38, 16 }
  0x4c   : > { %v1495_v13 = vmax.bf16 %v1431_v52, %v3265_v16  ;;  %v1294_v18 = vmax.bf16 %v1142_v29, %v3269_v2  ;;  %v539_v35 = vor.u32 %v538_v55, %v534_v23  ;;  %v1143_v47 = vmax.bf16 %v1079_v17, %v3215_v49  ;;  %v3288_v29 = vld [vmem:[%s2914_s27 + $0x2c] sm:$0xf]  ;;  %v3294_v23 = vld [vmem:[%s2965_s5 + $0x40] sm:$0xf] }
  0x4d   : > { %v1771_v34 = vrot.slane %v1770_v43, 4  ;;  %v1779_v53 = vrot.slane %v1777_v5, 4  ;;  %2592 = vst.msk [vmem:[%s3047_s13 + $0x18] sm:$0xf] %vm2585_vm3, %v2527_v7  ;;  %v544_v41 = vrot.slane %v542_v57, 5  ;;  %v546_v25 = vshrl.u32 %v3248_v58, 16 }
  0x4e   : > { %v1626_v15 = vmax.bf16 %v3168_v19, %v1495_v13  ;;  %v1432_v12 = vmax.bf16 %v3008_v8, %v1294_v18  ;;  %v1086_v46 = vmax.bf16 %v3269_v2, %v3183_v50  ;;  %v540_v3 = vrot.slane %v539_v35, 4  ;;  %v2465_v18 = vld [vmem:[%s3020_s9 + $0x20] sm:$0xf] }
  0x4f   : > { %v1780_v61 = vor.u32 %v1779_v53, %v1775_v60  ;;  %v552_v17 = vshll.u32 %v3276_v22, 16  ;;  %v1785_v11 = vrot.slane %v1783_v44, 5  ;;  %v548_v30 = vrot.slane %v546_v25, 4 }
  0x50   : > { %v2398_v19 = vmax.bf16 %v1766_v42, %v1626_v15  ;;  %v1496_v8 = vmax.bf16 %v1432_v12, %v3294_v23  ;;  %v1776_v52 = vsel %vm2939_vm2, %v1771_v34, %v1775_v60  ;;  %v3302_v55 = vsel %vm2939_vm2, %v540_v3, %v544_v41  ;;  %v3313_v60 = vld [vmem:[%s2904_s24 + $0x50] sm:$0xf]  ;;  %v3319_v12 = vld [vmem:[%s2965_s5 + $0x44] sm:$0xf] }
  0x51   : > { %v1787_v57 = vshrl.u32 %v3261_v38, 16  ;;  %v1793_v43 = vshll.u32 %v3288_v29, 16  ;;  %v1295_v7 = vmax.bf16 %v1143_v47, %v3302_v55  ;;  %v1144_v13 = vmax.bf16 %v1080_v33, %v3248_v58 }
  0x52   : > { %v2528_v5 = vmax.bf16 %v2464_v45, %v2398_v19  ;;  %v1627_v42 = vmax.bf16 %v3206_v36, %v1496_v8  ;;  %v1781_v44 = vrot.slane %v1780_v61, 4  ;;  %v549_v34 = vor.u32 %v548_v30, %v544_v41  ;;  %v3325_v45 = vld [vmem:[%s2914_s27 + $0x30] sm:$0xf] }
  0x53   : > { %v554_v35 = vrot.slane %v552_v17, 5  ;;  %v1789_v53 = vrot.slane %v1787_v57, 4  ;;  %v1433_v36 = vmax.bf16 %v3041_v40, %v1295_v7  ;;  %v1795_v47 = vrot.slane %v1793_v43, 5  ;;  %v2466_v7 = vld [vmem:[%s3020_s9 + $0x24] sm:$0xf] }
  0x54   : > { %2593 = vst.msk [vmem:[%s3047_s13 + $0x1c] sm:$0xf] %vm2585_vm3, %v2528_v5  ;;  %v2399_v15 = vmax.bf16 %v1776_v52, %v1627_v42  ;;  %v556_v24 = vshrl.u32 %v3276_v22, 16  ;;  %v550_v54 = vrot.slane %v549_v34, 4  ;;  %v562_v25 = vshll.u32 %v3313_v60, 16 }
  0x55   : > { %v1790_v33 = vor.u32 %v1789_v53, %v1785_v11  ;;  %v1797_v41 = vshrl.u32 %v3288_v29, 16  ;;  %v1087_v61 = vmax.bf16 %v3302_v55, %v3215_v49  ;;  %v1497_v40 = vmax.bf16 %v1433_v36, %v3319_v12  ;;  %v3347_v42 = vld [vmem:[%s2904_s24 + $0x54] sm:$0xf]  ;;  %v3354_v53 = vld [vmem:[%s2965_s5 + $0x48] sm:$0xf] }
  0x56   : > { %v2529_v3 = vmax.bf16 %v2465_v18, %v2399_v15  ;;  %v558_v17 = vrot.slane %v556_v24, 4  ;;  %v1786_v19 = vsel %vm2939_vm2, %v1781_v44, %v1785_v11  ;;  %v3335_v8 = vsel %vm2939_vm2, %v550_v54, %v554_v35  ;;  %v3359_v24 = vld [vmem:[%s2914_s27 + $0x34] sm:$0xf]  ;;  %v3544_v55 = vld [vmem:[%s2965_s5 + $0x60] sm:$0xf] }
  0x57   : > { %v1145_v30 = vmax.bf16 %v1081_v26, %v3276_v22  ;;  %v1799_v52 = vrot.slane %v1797_v41, 4  ;;  %v1628_v57 = vmax.bf16 %v3228_v59, %v1497_v40  ;;  %v1296_v43 = vmax.bf16 %v1144_v13, %v3335_v8 }
  0x58   : > { %2594 = vst.msk [vmem:[%s3047_s13 + $0x20] sm:$0xf] %vm2585_vm3, %v2529_v3  ;;  %v559_v5 = vor.u32 %v558_v17, %v554_v35  ;;  %v1803_v11 = vshll.u32 %v3325_v45, 16  ;;  %v1791_v18 = vrot.slane %v1790_v33, 4  ;;  %v564_v44 = vrot.slane %v562_v25, 5 }
  0x59   : > { %v1800_v34 = vor.u32 %v1799_v52, %v1795_v47  ;;  %v566_v6 = vshrl.u32 %v3313_v60, 16  ;;  %v2400_v37 = vmax.bf16 %v1786_v19, %v1628_v57  ;;  %v1088_v26 = vmax.bf16 %v3335_v8, %v3248_v58  ;;  %v3375_v52 = vld [vmem:[%s2904_s24 + $0x58] sm:$0xf] }
  0x5a   : > { %v1434_v59 = vmax.bf16 %v3078_v20, %v1296_v43  ;;  %v560_v13 = vrot.slane %v559_v5, 4  ;;  %v572_v36 = vshll.u32 %v3347_v42, 16  ;;  %v1807_v54 = vshrl.u32 %v3325_v45, 16 }
  0x5b   : > { %v1801_v35 = vrot.slane %v1800_v34, 4  ;;  %v568_v15 = vrot.slane %v566_v6, 4  ;;  %v2530_v33 = vmax.bf16 %v2466_v7, %v2400_v37  ;;  %v1805_v3 = vrot.slane %v1803_v11, 5  ;;  %v3391_v6 = vld [vmem:[%s2914_s27 + $0x38] sm:$0xf] }
  0x5c   : > { %v1498_v25 = vmax.bf16 %v1434_v59, %v3354_v53  ;;  %v3365_v41 = vsel %vm2939_vm2, %v560_v13, %v564_v44  ;;  %v1796_v20 = vsel %vm2939_vm2, %v1791_v18, %v1795_v47  ;;  %v1146_v19 = vmax.bf16 %v1082_v9, %v3313_v60  ;;  %v3387_v18 = vld [vmem:[%s2965_s5 + $0x4c] sm:$0xf] }
  0x5d   : > { %v1297_v40 = vmax.bf16 %v1145_v30, %v3365_v41  ;;  %v569_v17 = vor.u32 %v568_v15, %v564_v44  ;;  %2595 = vst.msk [vmem:[%s3047_s13 + $0x24] sm:$0xf] %vm2585_vm3, %v2530_v33  ;;  %v1809_v43 = vrot.slane %v1807_v54, 4  ;;  %v1813_v5 = vshll.u32 %v3359_v24, 16  ;;  %v2467_v30 = vld [vmem:[%s3020_s9 + $0x28] sm:$0xf] }
  0x5e   : > { %v1629_v57 = vmax.bf16 %v3261_v38, %v1498_v25  ;;  %v576_v47 = vshrl.u32 %v3347_v42, 16  ;;  %v1806_v48 = vsel %vm2939_vm2, %v1801_v35, %v1805_v3  ;;  %v574_v9 = vrot.slane %v572_v36, 5  ;;  %v3400_v35 = vld [vmem:[%s2904_s24 + $0x5c] sm:$0xf] }
  0x5f   : > { %v1435_v11 = vmax.bf16 %v3113_v63, %v1297_v40  ;;  %v570_v32 = vrot.slane %v569_v17, 4  ;;  %v1810_v44 = vor.u32 %v1809_v43, %v1805_v3  ;;  %v582_v38 = vshll.u32 %v3375_v52, 16  ;;  %v2468_v17 = vld [vmem:[%s3020_s9 + $0x2c] sm:$0xf] }
  0x60   : > { %v2401_v7 = vmax.bf16 %v1796_v20, %v1629_v57  ;;  %v578_v34 = vrot.slane %v576_v47, 4  ;;  %v1815_v59 = vrot.slane %v1813_v5, 5  ;;  %v1817_v13 = vshrl.u32 %v3359_v24, 16 }
  0x61   : > { %v1499_v37 = vmax.bf16 %v1435_v11, %v3387_v18  ;;  %v3396_v63 = vsel %vm2939_vm2, %v570_v32, %v574_v9  ;;  %v1811_v54 = vrot.slane %v1810_v44, 4  ;;  %v1147_v33 = vmax.bf16 %v1083_v31, %v3347_v42  ;;  %v3418_v31 = vld [vmem:[%s2965_s5 + $0x50] sm:$0xf] }
  0x62   : > { %v2531_v15 = vmax.bf16 %v2467_v30, %v2401_v7  ;;  %v1298_v36 = vmax.bf16 %v1146_v19, %v3396_v63  ;;  %v579_v3 = vor.u32 %v578_v34, %v574_v9  ;;  %v1819_v20 = vrot.slane %v1817_v13, 4  ;;  %v3424_v9 = vld [vmem:[%s2914_s27 + $0x3c] sm:$0xf] }
  0x63   : > { %v1630_v25 = vmax.bf16 %v3288_v29, %v1499_v37  ;;  %v1823_v40 = vshll.u32 %v3391_v6, 16  ;;  %v584_v43 = vrot.slane %v582_v38, 5  ;;  %v586_v19 = vshrl.u32 %v3375_v52, 16 }
  0x64   : > { %2596 = vst.msk [vmem:[%s3047_s13 + $0x28] sm:$0xf] %vm2585_vm3, %v2531_v15  ;;  %v1436_v57 = vmax.bf16 %v3149_v51, %v1298_v36  ;;  %v592_v5 = vshll.u32 %v3400_v35, 16  ;;  %v1089_v28 = vmax.bf16 %v3365_v41, %v3276_v22  ;;  %v580_v29 = vrot.slane %v579_v3, 4  ;;  %v2469_v36 = vld [vmem:[%s3020_s9 + $0x30] sm:$0xf] }
  0x65   : > { %v2402_v1 = vmax.bf16 %v1806_v48, %v1630_v25  ;;  %v1820_v47 = vor.u32 %v1819_v20, %v1815_v59  ;;  %v1816_v51 = vsel %vm2939_vm2, %v1811_v54, %v1815_v59  ;;  %v1825_v11 = vrot.slane %v1823_v40, 5  ;;  %v3434_v59 = vld [vmem:[%s2904_s24 + $0x60] sm:$0xf] }
  0x66   : > { %v1500_v30 = vmax.bf16 %v1436_v57, %v3418_v31  ;;  %v588_v32 = vrot.slane %v586_v19, 4  ;;  %v3428_v48 = vsel %vm2939_vm2, %v580_v29, %v584_v43  ;;  %v1827_v34 = vshrl.u32 %v3391_v6, 16  ;;  %v3449_v57 = vld [vmem:[%s2965_s5 + $0x54] sm:$0xf]  ;;  %v3455_v19 = vld [vmem:[%s2914_s27 + $0x40] sm:$0xf] }
  0x67   : > { %v2532_v7 = vmax.bf16 %v2468_v17, %v2402_v1  ;;  %v1821_v44 = vrot.slane %v1820_v47, 4  ;;  %v1299_v37 = vmax.bf16 %v1147_v33, %v3428_v48  ;;  %v594_v15 = vrot.slane %v592_v5, 5  ;;  %v3463_v47 = vld [vmem:[%s2904_s24 + $0x64] sm:$0xf] }
  0x68   : > { %v1631_v38 = vmax.bf16 %v3325_v45, %v1500_v30  ;;  %v589_v13 = vor.u32 %v588_v32, %v584_v43  ;;  %v1148_v54 = vmax.bf16 %v1084_v14, %v3375_v52  ;;  %v1829_v25 = vrot.slane %v1827_v34, 4 }
  0x69   : > { %2597 = vst.msk [vmem:[%s3047_s13 + $0x2c] sm:$0xf] %vm2585_vm3, %v2532_v7  ;;  %v1833_v3 = vshll.u32 %v3424_v9, 16  ;;  %v596_v45 = vshrl.u32 %v3400_v35, 16  ;;  %v1090_v33 = vmax.bf16 %v3396_v63, %v3313_v60  ;;  %v1437_v40 = vmax.bf16 %v3188_v56, %v1299_v37  ;;  %v2470_v37 = vld [vmem:[%s3020_s9 + $0x34] sm:$0xf] }
  0x6a   : > { %v2403_v20 = vmax.bf16 %v1816_v51, %v1631_v38  ;;  %v590_v17 = vrot.slane %v589_v13, 4  ;;  %v1826_v10 = vsel %vm2939_vm2, %v1821_v44, %v1825_v11  ;;  %v1830_v39 = vor.u32 %v1829_v25, %v1825_v11 }
  0x6b   : > { %v598_v14 = vrot.slane %v596_v45, 4  ;;  %v602_v43 = vshll.u32 %v3434_v59, 16  ;;  %v1501_v1 = vmax.bf16 %v1437_v40, %v3449_v57  ;;  %v1835_v29 = vrot.slane %v1833_v3, 5  ;;  %v3485_v3 = vld [vmem:[%s2914_s27 + $0x44] sm:$0xf] }
  0x6c   : > { %v2533_v5 = vmax.bf16 %v2469_v36, %v2403_v20  ;;  %v3460_v56 = vsel %vm2939_vm2, %v590_v17, %v594_v15  ;;  %v1831_v51 = vrot.slane %v1830_v39, 4  ;;  %v1149_v32 = vmax.bf16 %v1085_v27, %v3400_v35  ;;  %v3480_v27 = vld [vmem:[%s2965_s5 + $0x58] sm:$0xf]  ;;  %v3493_v17 = vld [vmem:[%s2904_s24 + $0x68] sm:$0xf] }
  0x6d   : > { %v1300_v30 = vmax.bf16 %v1148_v54, %v3460_v56  ;;  %v599_v11 = vor.u32 %v598_v14, %v594_v15  ;;  %v1632_v7 = vmax.bf16 %v3359_v24, %v1501_v1  ;;  %v1837_v44 = vshrl.u32 %v3424_v9, 16 }
  0x6e   : > { %2598 = vst.msk [vmem:[%s3047_s13 + $0x30] sm:$0xf] %vm2585_vm3, %v2533_v5  ;;  %v1843_v34 = vshll.u32 %v3455_v19, 16  ;;  %v606_v38 = vshrl.u32 %v3434_v59, 16  ;;  %v604_v36 = vrot.slane %v602_v43, 5  ;;  %v612_v62 = vshll.u32 %v3463_v47, 16 }
  0x6f   : > { %v1438_v13 = vmax.bf16 %v3233_v4, %v1300_v30  ;;  %v600_v15 = vrot.slane %v599_v11, 4  ;;  %v2404_v0 = vmax.bf16 %v1826_v10, %v1632_v7  ;;  %v1836_v24 = vsel %vm2939_vm2, %v1831_v51, %v1835_v29  ;;  %v2471_v11 = vld [vmem:[%s3020_s9 + $0x38] sm:$0xf] }
  0x70   : > { %v1839_v54 = vrot.slane %v1837_v44, 4  ;;  %v608_v25 = vrot.slane %v606_v38, 4  ;;  %v1845_v20 = vrot.slane %v1843_v34, 5  ;;  %v614_v40 = vrot.slane %v612_v62, 5 }
  0x71   : > { %v1502_v45 = vmax.bf16 %v1438_v13, %v3480_v27  ;;  %v3490_v4 = vsel %vm2939_vm2, %v600_v15, %v604_v36  ;;  %v2534_v10 = vmax.bf16 %v2470_v37, %v2404_v0  ;;  %v1150_v43 = vmax.bf16 %v1086_v46, %v3434_v59  ;;  %v3518_v15 = vld [vmem:[%s2914_s27 + $0x48] sm:$0xf] }
  0x72   : > { %v1301_v39 = vmax.bf16 %v1149_v32, %v3490_v4  ;;  %v1840_v14 = vor.u32 %v1839_v54, %v1835_v29  ;;  %v609_v1 = vor.u32 %v608_v25, %v604_v36  ;;  %v1847_v30 = vshrl.u32 %v3455_v19, 16  ;;  %v3525_v54 = vld [vmem:[%s2904_s24 + $0x6c] sm:$0xf] }
  0x73   : > { %v1633_v5 = vmax.bf16 %v3391_v6, %v1502_v45  ;;  %v1853_v51 = vshll.u32 %v3485_v3, 16  ;;  %2599 = vst.msk [vmem:[%s3047_s13 + $0x34] sm:$0xf] %vm2585_vm3, %v2534_v10  ;;  %v616_v29 = vshrl.u32 %v3463_v47, 16  ;;  %v622_v50 = vshll.u32 %v3493_v17, 16 }
  0x74   : > { %v1439_v7 = vmax.bf16 %v3265_v16, %v1301_v39  ;;  %v1841_v32 = vrot.slane %v1840_v14, 4  ;;  %v1091_v2 = vmax.bf16 %v3428_v48, %v3347_v42  ;;  %v3512_v6 = vld [vmem:[%s2965_s5 + $0x5c] sm:$0xf]  ;;  %v610_v44 = vrot.slane %v609_v1, 4  ;;  %v3672_v48 = vld [vmem:[%s2965_s5 + $0x70] sm:$0xf] }
  0x75   : > { %v2405_v46 = vmax.bf16 %v1836_v24, %v1633_v5  ;;  %v1849_v34 = vrot.slane %v1847_v30, 4  ;;  %v1855_v37 = vrot.slane %v1853_v51, 5  ;;  %v618_v13 = vrot.slane %v616_v29, 4  ;;  %v2472_v14 = vld [vmem:[%s3020_s9 + $0x3c] sm:$0xf] }
  0x76   : > { %v1503_v38 = vmax.bf16 %v1439_v7, %v3512_v6  ;;  %v1846_v16 = vsel %vm2939_vm2, %v1841_v32, %v1845_v20  ;;  %v3522_v62 = vsel %vm2939_vm2, %v610_v44, %v614_v40  ;;  %v624_v24 = vrot.slane %v622_v50, 5  ;;  %v3549_v32 = vld [vmem:[%s2914_s27 + $0x4c] sm:$0xf] }
  0x77   : > { %v2535_v36 = vmax.bf16 %v2471_v11, %v2405_v46  ;;  %v1850_v0 = vor.u32 %v1849_v34, %v1845_v20  ;;  %v1302_v45 = vmax.bf16 %v1150_v43, %v3522_v62  ;;  %v619_v10 = vor.u32 %v618_v13, %v614_v40  ;;  %v3558_v13 = vld [vmem:[%s2904_s24 + $0x70] sm:$0xf] }
  0x78   : > { %v1634_v25 = vmax.bf16 %v3424_v9, %v1503_v38  ;;  %v1151_v39 = vmax.bf16 %v1087_v61, %v3463_v47  ;;  %v1857_v20 = vshrl.u32 %v3485_v3, 16  ;;  %v1863_v1 = vshll.u32 %v3518_v15, 16 }
  0x79   : > { %2600 = vst.msk [vmem:[%s3047_s13 + $0x38] sm:$0xf] %vm2585_vm3, %v2535_v36  ;;  %v1851_v5 = vrot.slane %v1850_v0, 4  ;;  %v626_v30 = vshrl.u32 %v3493_v17, 16  ;;  %v1440_v43 = vmax.bf16 %v3294_v23, %v1302_v45  ;;  %v620_v40 = vrot.slane %v619_v10, 4 }
  0x7a   : > { %v2406_v9 = vmax.bf16 %v1846_v16, %v1634_v25  ;;  %v632_v51 = vshll.u32 %v3525_v54, 16  ;;  %v1092_v49 = vmax.bf16 %v3460_v56, %v3375_v52  ;;  %v1859_v11 = vrot.slane %v1857_v20, 4  ;;  %v3575_v20 = vld [vmem:[%s2965_s5 + $0x64] sm:$0xf] }
  0x7b   : > { %v1856_v61 = vsel %vm2939_vm2, %v1851_v5, %v1855_v37  ;;  %v628_v7 = vrot.slane %v626_v30, 4  ;;  %v1504_v23 = vmax.bf16 %v1440_v43, %v3544_v55  ;;  %v3554_v50 = vsel %vm2939_vm2, %v620_v40, %v624_v24 }
  0x7c   : > { %v2536_v29 = vmax.bf16 %v2472_v14, %v2406_v9  ;;  %v1865_v46 = vrot.slane %v1863_v1, 5  ;;  %v1303_v44 = vmax.bf16 %v1151_v39, %v3554_v50  ;;  %v1860_v34 = vor.u32 %v1859_v11, %v1855_v37  ;;  %v2473_v37 = vld [vmem:[%s3020_s9 + $0x40] sm:$0xf]  ;;  %v3584_v9 = vld [vmem:[%s2914_s27 + $0x50] sm:$0xf] }
  0x7d   : > { %v629_v38 = vor.u32 %v628_v7, %v624_v24  ;;  %v634_v16 = vrot.slane %v632_v51, 5  ;;  %v1635_v36 = vmax.bf16 %v3455_v19, %v1504_v23  ;;  %v1152_v0 = vmax.bf16 %v1088_v26, %v3493_v17  ;;  %v3590_v11 = vld [vmem:[%s2904_s24 + $0x74] sm:$0xf] }
  0x7e   : > { %2601 = vst.msk [vmem:[%s3047_s13 + $0x3c] sm:$0xf] %vm2585_vm3, %v2536_v29  ;;  %v1867_v25 = vshrl.u32 %v3518_v15, 16  ;;  %v1873_v45 = vshll.u32 %v3549_v32, 16  ;;  %v1441_v24 = vmax.bf16 %v3319_v12, %v1303_v44  ;;  %v1861_v10 = vrot.slane %v1860_v34, 4 }
  0x7f   : > { %v630_v39 = vrot.slane %v629_v38, 4  ;;  %v636_v14 = vshrl.u32 %v3525_v54, 16  ;;  %v1093_v19 = vmax.bf16 %v3490_v4, %v3400_v35  ;;  %v2407_v5 = vmax.bf16 %v1856_v61, %v1635_v36  ;;  %v2474_v34 = vld [vmem:[%s3020_s9 + $0x44] sm:$0xf] }
  0x80   : > { %v1869_v58 = vrot.slane %v1867_v25, 4  ;;  %v642_v8 = vshll.u32 %v3558_v13, 16  ;;  %v1505_v26 = vmax.bf16 %v1441_v24, %v3575_v20  ;;  %v1875_v1 = vrot.slane %v1873_v45, 5  ;;  %v3614_v24 = vld [vmem:[%s2914_s27 + $0x54] sm:$0xf] }
  0x81   : > { %v3581_v12 = vsel %vm2939_vm2, %v630_v39, %v634_v16  ;;  %v638_v30 = vrot.slane %v636_v14, 4  ;;  %v2537_v43 = vmax.bf16 %v2473_v37, %v2407_v5  ;;  %v1866_v40 = vsel %vm2939_vm2, %v1861_v10, %v1865_v46 }
  0x82   : > { %v1304_v51 = vmax.bf16 %v1152_v0, %v3581_v12  ;;  %v1870_v61 = vor.u32 %v1869_v58, %v1865_v46  ;;  %v1636_v7 = vmax.bf16 %v3485_v3, %v1505_v26  ;;  %v644_v23 = vrot.slane %v642_v8, 5  ;;  %v3604_v3 = vld [vmem:[%s2965_s5 + $0x68] sm:$0xf] }
  0x83   : > { %v639_v29 = vor.u32 %v638_v30, %v634_v16  ;;  %v1153_v44 = vmax.bf16 %v1089_v28, %v3525_v54  ;;  %2602 = vst.msk [vmem:[%s3047_s13 + $0x40] sm:$0xf] %vm2585_vm3, %v2537_v43  ;;  %v1877_v46 = vshrl.u32 %v3549_v32, 16  ;;  %v1883_v0 = vshll.u32 %v3584_v9, 16  ;;  %v3623_v43 = vld [vmem:[%s2904_s24 + $0x78] sm:$0xf] }
  0x84   : > { %v1442_v38 = vmax.bf16 %v3354_v53, %v1304_v51  ;;  %v1871_v36 = vrot.slane %v1870_v61, 4  ;;  %v2408_v25 = vmax.bf16 %v1866_v40, %v1636_v7  ;;  %v646_v45 = vshrl.u32 %v3558_v13, 16  ;;  %v2475_v40 = vld [vmem:[%s3020_s9 + $0x48] sm:$0xf] }
  0x85   : > { %v640_v16 = vrot.slane %v639_v29, 4  ;;  %v652_v22 = vshll.u32 %v3590_v11, 16  ;;  %v1094_v41 = vmax.bf16 %v3522_v62, %v3434_v59  ;;  %v1879_v37 = vrot.slane %v1877_v46, 4 }
  0x86   : > { %v1506_v53 = vmax.bf16 %v1442_v38, %v3604_v3  ;;  %v1876_v28 = vsel %vm2939_vm2, %v1871_v36, %v1875_v1  ;;  %v2538_v10 = vmax.bf16 %v2474_v34, %v2408_v25  ;;  %v1885_v14 = vrot.slane %v1883_v0, 5  ;;  %v3639_v38 = vld [vmem:[%s2965_s5 + $0x6c] sm:$0xf]  ;;  %v3644_v25 = vld [vmem:[%s2914_s27 + $0x58] sm:$0xf] }
  0x87   : > { %v3618_v39 = vsel %vm2939_vm2, %v640_v16, %v644_v23  ;;  %v648_v5 = vrot.slane %v646_v45, 4  ;;  %v1880_v26 = vor.u32 %v1879_v37, %v1875_v1  ;;  %v654_v30 = vrot.slane %v652_v22, 5 }
  0x88   : > { %v1637_v58 = vmax.bf16 %v3518_v15, %v1506_v53  ;;  %v1305_v8 = vmax.bf16 %v1153_v44, %v3618_v39  ;;  %2603 = vst.msk [vmem:[%s3047_s13 + $0x44] sm:$0xf] %vm2585_vm3, %v2538_v10  ;;  %v1154_v61 = vmax.bf16 %v1090_v33, %v3558_v13  ;;  %v1887_v7 = vshrl.u32 %v3584_v9, 16 }
  0x89   : > { %v649_v51 = vor.u32 %v648_v5, %v644_v23  ;;  %v1893_v15 = vshll.u32 %v3614_v24, 16  ;;  %v1881_v44 = vrot.slane %v1880_v26, 4  ;;  %v656_v34 = vshrl.u32 %v3590_v11, 16 }
  0x8a   : > { %v2409_v29 = vmax.bf16 %v1876_v28, %v1637_v58  ;;  %v1443_v1 = vmax.bf16 %v3387_v18, %v1305_v8  ;;  %v1095_v23 = vmax.bf16 %v3554_v50, %v3463_v47  ;;  %v1889_v63 = vrot.slane %v1887_v7, 4  ;;  %v3653_v28 = vld [vmem:[%s2904_s24 + $0x7c] sm:$0xf]  ;;  %v2476_v8 = vld [vmem:[%s3020_s9 + $0x4c] sm:$0xf] }
  0x8b   : > { %v650_v60 = vrot.slane %v649_v51, 4  ;;  %v662_v33 = vshll.u32 %v3623_v43, 16  ;;  %v1895_v0 = vrot.slane %v1893_v15, 5  ;;  %v658_v18 = vrot.slane %v656_v34, 4  ;;  %v3800_v50 = vld [vmem:[%s2965_s5 + $0x80] sm:$0xf] }
  0x8c   : > { %v2539_v36 = vmax.bf16 %v2475_v40, %v2409_v29  ;;  %v1507_v46 = vmax.bf16 %v1443_v1, %v3639_v38  ;;  %v1886_v16 = vsel %vm2939_vm2, %v1881_v44, %v1885_v14  ;;  %v1890_v22 = vor.u32 %v1889_v63, %v1885_v14  ;;  %v3677_v1 = vld [vmem:[%s2914_s27 + $0x5c] sm:$0xf] }
  0x8d   : > { %v3650_v45 = vsel %vm2939_vm2, %v650_v60, %v654_v30  ;;  %v664_v53 = vrot.slane %v662_v33, 5  ;;  %v659_v5 = vor.u32 %v658_v18, %v654_v30  ;;  %v1155_v58 = vmax.bf16 %v1091_v2, %v3590_v11  ;;  %v3686_v18 = vld [vmem:[%s2904_s24 + $0x80] sm:$0xf] }
  0x8e   : > { %2604 = vst.msk [vmem:[%s3047_s13 + $0x48] sm:$0xf] %vm2585_vm3, %v2539_v36  ;;  %v1638_v37 = vmax.bf16 %v3549_v32, %v1507_v46  ;;  %v1306_v10 = vmax.bf16 %v1154_v61, %v3650_v45  ;;  %v1891_v26 = vrot.slane %v1890_v22, 4  ;;  %v1897_v14 = vshrl.u32 %v3614_v24, 16 }
  0x8f   : > { %v1903_v40 = vshll.u32 %v3644_v25, 16  ;;  %v666_v51 = vshrl.u32 %v3623_v43, 16  ;;  %v660_v15 = vrot.slane %v659_v5, 4  ;;  %v672_v30 = vshll.u32 %v3653_v28, 16 }
  0x90   : > { %v2410_v7 = vmax.bf16 %v1886_v16, %v1638_v37  ;;  %v1444_v32 = vmax.bf16 %v3418_v31, %v1306_v10  ;;  %v1096_v42 = vmax.bf16 %v3581_v12, %v3493_v17  ;;  %v1896_v2 = vsel %vm2939_vm2, %v1891_v26, %v1895_v0 }
  0x91   : > { %v1899_v61 = vrot.slane %v1897_v14, 4  ;;  %v668_v29 = vrot.slane %v666_v51, 4  ;;  %v3682_v34 = vsel %vm2939_vm2, %v660_v15, %v664_v53  ;;  %v1905_v60 = vrot.slane %v1903_v40, 5  ;;  %v3703_v14 = vld [vmem:[%s2965_s5 + $0x74] sm:$0xf] }
  0x92   : > { %v2540_v44 = vmax.bf16 %v2476_v8, %v2410_v7  ;;  %v1508_v31 = vmax.bf16 %v1444_v32, %v3672_v48  ;;  %v1307_v63 = vmax.bf16 %v1155_v58, %v3682_v34  ;;  %v674_v46 = vrot.slane %v672_v30, 5  ;;  %v3712_v7 = vld [vmem:[%s2914_s27 + $0x60] sm:$0xf] }
  0x93   : > { %v1900_v33 = vor.u32 %v1899_v61, %v1895_v0  ;;  %v669_v36 = vor.u32 %v668_v29, %v664_v53  ;;  %v1156_v22 = vmax.bf16 %v1092_v49, %v3623_v43  ;;  %v1907_v37 = vshrl.u32 %v3644_v25, 16  ;;  %v2477_v0 = vld [vmem:[%s3020_s9 + $0x50] sm:$0xf]  ;;  %v3718_v61 = vld [vmem:[%s2904_s24 + $0x84] sm:$0xf] }
  0x94   : > { %2605 = vst.msk [vmem:[%s3047_s13 + $0x4c] sm:$0xf] %vm2585_vm3, %v2540_v44  ;;  %v1639_v16 = vmax.bf16 %v3584_v9, %v1508_v31  ;;  %v1913_v10 = vshll.u32 %v3677_v1, 16  ;;  %v1445_v53 = vmax.bf16 %v3449_v57, %v1307_v63  ;;  %v676_v8 = vshrl.u32 %v3653_v28, 16 }
  0x95   : > { %v1901_v5 = vrot.slane %v1900_v33, 4  ;;  %v670_v58 = vrot.slane %v669_v36, 4  ;;  %v1097_v9 = vmax.bf16 %v3618_v39, %v3525_v54  ;;  %v1909_v52 = vrot.slane %v1907_v37, 4  ;;  %v2478_v33 = vld [vmem:[%s3020_s9 + $0x54] sm:$0xf] }
  0x96   : > { %v2411_v26 = vmax.bf16 %v1896_v2, %v1639_v16  ;;  %v682_v56 = vshll.u32 %v3686_v18, 16  ;;  %v1509_v49 = vmax.bf16 %v1445_v53, %v3703_v14  ;;  %v1915_v40 = vrot.slane %v1913_v10, 5  ;;  %v3742_v53 = vld [vmem:[%s2914_s27 + $0x64] sm:$0xf] }
  0x97   : > { %v3709_v57 = vsel %vm2939_vm2, %v670_v58, %v674_v46  ;;  %v678_v51 = vrot.slane %v676_v8, 4  ;;  %v1906_v15 = vsel %vm2939_vm2, %v1901_v5, %v1905_v60  ;;  %v1910_v2 = vor.u32 %v1909_v52, %v1905_v60 }
  0x98   : > { %v2541_v32 = vmax.bf16 %v2477_v0, %v2411_v26  ;;  %v1308_v30 = vmax.bf16 %v1156_v22, %v3709_v57  ;;  %v1640_v29 = vmax.bf16 %v3614_v24, %v1509_v49  ;;  %v684_v31 = vrot.slane %v682_v56, 5  ;;  %v3732_v24 = vld [vmem:[%s2965_s5 + $0x78] sm:$0xf] }
  0x99   : > { %v679_v44 = vor.u32 %v678_v51, %v674_v46  ;;  %v1157_v63 = vmax.bf16 %v1093_v19, %v3653_v28  ;;  %v1911_v16 = vrot.slane %v1910_v2, 4  ;;  %v1917_v60 = vshrl.u32 %v3677_v1, 16 }
  0x9a   : > { %2606 = vst.msk [vmem:[%s3047_s13 + $0x50] sm:$0xf] %vm2585_vm3, %v2541_v32  ;;  %v1446_v36 = vmax.bf16 %v3480_v27, %v1308_v30  ;;  %v1923_v22 = vshll.u32 %v3712_v7, 16  ;;  %v2412_v37 = vmax.bf16 %v1906_v15, %v1640_v29  ;;  %v686_v10 = vshrl.u32 %v3686_v18, 16  ;;  %v3751_v32 = vld [vmem:[%s2904_s24 + $0x88] sm:$0xf] }
  0x9b   : > { %v680_v46 = vrot.slane %v679_v44, 4  ;;  %v692_v35 = vshll.u32 %v3718_v61, 16  ;;  %v1098_v4 = vmax.bf16 %v3650_v45, %v3558_v13  ;;  %v1916_v19 = vsel %vm2939_vm2, %v1911_v16, %v1915_v40  ;;  %v2479_v15 = vld [vmem:[%s3020_s9 + $0x58] sm:$0xf] }
  0x9c   : > { %v1510_v27 = vmax.bf16 %v1446_v36, %v3732_v24  ;;  %v1919_v0 = vrot.slane %v1917_v60, 4  ;;  %v2542_v5 = vmax.bf16 %v2478_v33, %v2412_v37  ;;  %v1925_v8 = vrot.slane %v1923_v22, 5  ;;  %v3767_v36 = vld [vmem:[%s2965_s5 + $0x7c] sm:$0xf]  ;;  %v3772_v37 = vld [vmem:[%s2914_s27 + $0x68] sm:$0xf] }
  0x9d   : > { %v3746_v58 = vsel %vm2939_vm2, %v680_v46, %v684_v31  ;;  %v688_v26 = vrot.slane %v686_v10, 4  ;;  %v694_v51 = vrot.slane %v692_v35, 5  ;;  %v1158_v2 = vmax.bf16 %v1094_v41, %v3686_v18 }
  0x9e   : > { %v1641_v52 = vmax.bf16 %v3644_v25, %v1510_v27  ;;  %v1309_v56 = vmax.bf16 %v1157_v63, %v3746_v58  ;;  %v1920_v49 = vor.u32 %v1919_v0, %v1915_v40  ;;  %2607 = vst.msk [vmem:[%s3047_s13 + $0x54] sm:$0xf] %vm2585_vm3, %v2542_v5  ;;  %v1927_v29 = vshrl.u32 %v3712_v7, 16 }
  0x9f   : > { %v689_v30 = vor.u32 %v688_v26, %v684_v31  ;;  %v1933_v25 = vshll.u32 %v3742_v53, 16  ;;  %v696_v33 = vshrl.u32 %v3718_v61, 16  ;;  %v1099_v31 = vmax.bf16 %v3682_v34, %v3590_v11  ;;  %v3928_v34 = vld [vmem:[%s2965_s5 + $0x90] sm:$0xf] }
  0xa0   : > { %v2413_v44 = vmax.bf16 %v1916_v19, %v1641_v52  ;;  %v1447_v40 = vmax.bf16 %v3512_v6, %v1309_v56  ;;  %v1921_v63 = vrot.slane %v1920_v49, 4  ;;  %v1929_v62 = vrot.slane %v1927_v29, 4  ;;  %v3781_v19 = vld [vmem:[%s2904_s24 + $0x8c] sm:$0xf]  ;;  %v2480_v56 = vld [vmem:[%s3020_s9 + $0x5c] sm:$0xf] }
  0xa1   : > { %v690_v59 = vrot.slane %v689_v30, 4  ;;  %v702_v41 = vshll.u32 %v3751_v32, 16  ;;  %v1935_v22 = vrot.slane %v1933_v25, 5  ;;  %v698_v6 = vrot.slane %v696_v33, 4 }
  0xa2   : > { %v2543_v16 = vmax.bf16 %v2479_v15, %v2413_v44  ;;  %v1511_v60 = vmax.bf16 %v1447_v40, %v3767_v36  ;;  %v1926_v46 = vsel %vm2939_vm2, %v1921_v63, %v1925_v8  ;;  %v1930_v35 = vor.u32 %v1929_v62, %v1925_v8  ;;  %v3805_v40 = vld [vmem:[%s2914_s27 + $0x6c] sm:$0xf] }
  0xa3   : > { %v3778_v10 = vsel %vm2939_vm2, %v690_v59, %v694_v51  ;;  %v704_v27 = vrot.slane %v702_v41, 5  ;;  %v699_v26 = vor.u32 %v698_v6, %v694_v51  ;;  %v1159_v52 = vmax.bf16 %v1095_v23, %v3718_v61  ;;  %v3814_v6 = vld [vmem:[%s2904_s24 + $0x90] sm:$0xf] }
  0xa4   : > { %2608 = vst.msk [vmem:[%s3047_s13 + $0x58] sm:$0xf] %vm2585_vm3, %v2543_v16  ;;  %v1642_v0 = vmax.bf16 %v3677_v1, %v1511_v60  ;;  %v1310_v5 = vmax.bf16 %v1158_v2, %v3778_v10  ;;  %v1931_v49 = vrot.slane %v1930_v35, 4  ;;  %v1937_v8 = vshrl.u32 %v3742_v53, 16 }
  0xa5   : > { %v1943_v15 = vshll.u32 %v3772_v37, 16  ;;  %v706_v30 = vshrl.u32 %v3751_v32, 16  ;;  %v700_v25 = vrot.slane %v699_v26, 4  ;;  %v712_v51 = vshll.u32 %v3781_v19, 16 }
  0xa6   : > { %v2414_v29 = vmax.bf16 %v1926_v46, %v1642_v0  ;;  %v1448_v1 = vmax.bf16 %v3544_v55, %v1310_v5  ;;  %v1100_v47 = vmax.bf16 %v3709_v57, %v3623_v43  ;;  %v1936_v23 = vsel %vm2939_vm2, %v1931_v49, %v1935_v22 }
  0xa7   : > { %v1939_v2 = vrot.slane %v1937_v8, 4  ;;  %v708_v44 = vrot.slane %v706_v30, 4  ;;  %v3810_v33 = vsel %vm2939_vm2, %v700_v25, %v704_v27  ;;  %v1945_v59 = vrot.slane %v1943_v15, 5  ;;  %v3831_v8 = vld [vmem:[%s2965_s5 + $0x84] sm:$0xf] }
  0xa8   : > { %v2544_v63 = vmax.bf16 %v2480_v56, %v2414_v29  ;;  %v1512_v55 = vmax.bf16 %v1448_v1, %v3800_v50  ;;  %v1311_v62 = vmax.bf16 %v1159_v52, %v3810_v33  ;;  %v714_v60 = vrot.slane %v712_v51, 5  ;;  %v3840_v29 = vld [vmem:[%s2914_s27 + $0x70] sm:$0xf] }
  0xa9   : > { %v1940_v41 = vor.u32 %v1939_v2, %v1935_v22  ;;  %v709_v16 = vor.u32 %v708_v44, %v704_v27  ;;  %v1160_v35 = vmax.bf16 %v1096_v42, %v3751_v32  ;;  %v1947_v0 = vshrl.u32 %v3772_v37, 16  ;;  %v2481_v22 = vld [vmem:[%s3020_s9 + $0x60] sm:$0xf]  ;;  %v3846_v2 = vld [vmem:[%s2904_s24 + $0x94] sm:$0xf] }
  0xaa   : > { %2609 = vst.msk [vmem:[%s3047_s13 + $0x5c] sm:$0xf] %vm2585_vm3, %v2544_v63  ;;  %v1643_v46 = vmax.bf16 %v3712_v7, %v1512_v55  ;;  %v1953_v5 = vshll.u32 %v3805_v40, 16  ;;  %v1449_v27 = vmax.bf16 %v3575_v20, %v1311_v62  ;;  %v716_v56 = vshrl.u32 %v3781_v19, 16 }
  0xab   : > { %v1941_v26 = vrot.slane %v1940_v41, 4  ;;  %v710_v52 = vrot.slane %v709_v16, 4  ;;  %v1101_v7 = vmax.bf16 %v3746_v58, %v3653_v28  ;;  %v1949_v17 = vrot.slane %v1947_v0, 4  ;;  %v2482_v41 = vld [vmem:[%s3020_s9 + $0x64] sm:$0xf] }
  0xac   : > { %v2415_v49 = vmax.bf16 %v1936_v23, %v1643_v46  ;;  %v722_v12 = vshll.u32 %v3814_v6, 16  ;;  %v1513_v42 = vmax.bf16 %v1449_v27, %v3831_v8  ;;  %v1955_v15 = vrot.slane %v1953_v5, 5  ;;  %v3870_v27 = vld [vmem:[%s2914_s27 + $0x74] sm:$0xf] }
  0xad   : > { %v3837_v20 = vsel %vm2939_vm2, %v710_v52, %v714_v60  ;;  %v718_v30 = vrot.slane %v716_v56, 4  ;;  %v1946_v25 = vsel %vm2939_vm2, %v1941_v26, %v1945_v59  ;;  %v1950_v23 = vor.u32 %v1949_v17, %v1945_v59 }
  0xae   : > { %v2545_v1 = vmax.bf16 %v2481_v22, %v2415_v49  ;;  %v1312_v51 = vmax.bf16 %v1160_v35, %v3837_v20  ;;  %v1644_v44 = vmax.bf16 %v3742_v53, %v1513_v42  ;;  %v724_v55 = vrot.slane %v722_v12, 5  ;;  %v3860_v53 = vld [vmem:[%s2965_s5 + $0x88] sm:$0xf] }
  0xaf   : > { %v719_v63 = vor.u32 %v718_v30, %v714_v60  ;;  %v1161_v62 = vmax.bf16 %v1097_v9, %v3781_v19  ;;  %v1951_v46 = vrot.slane %v1950_v23, 4  ;;  %v1957_v59 = vshrl.u32 %v3805_v40, 16 }
  0xb0   : > { %2610 = vst.msk [vmem:[%s3047_s13 + $0x60] sm:$0xf] %vm2585_vm3, %v2545_v1  ;;  %v1450_v16 = vmax.bf16 %v3604_v3, %v1312_v51  ;;  %v1963_v35 = vshll.u32 %v3840_v29, 16  ;;  %v2416_v0 = vmax.bf16 %v1946_v25, %v1644_v44  ;;  %v726_v5 = vshrl.u32 %v3814_v6, 16  ;;  %v3879_v1 = vld [vmem:[%s2904_s24 + $0x98] sm:$0xf] }
  0xb1   : > { %v720_v60 = vrot.slane %v719_v63, 4  ;;  %v732_v54 = vshll.u32 %v3846_v2, 16  ;;  %v1102_v39 = vmax.bf16 %v3778_v10, %v3686_v18  ;;  %v1956_v9 = vsel %vm2939_vm2, %v1951_v46, %v1955_v15  ;;  %v2483_v25 = vld [vmem:[%s3020_s9 + $0x68] sm:$0xf] }
  0xb2   : > { %v1514_v3 = vmax.bf16 %v1450_v16, %v3860_v53  ;;  %v1959_v22 = vrot.slane %v1957_v59, 4  ;;  %v2546_v26 = vmax.bf16 %v2482_v41, %v2416_v0  ;;  %v1965_v56 = vrot.slane %v1963_v35, 5  ;;  %v3895_v16 = vld [vmem:[%s2965_s5 + $0x8c] sm:$0xf]  ;;  %v3900_v0 = vld [vmem:[%s2914_s27 + $0x78] sm:$0xf] }
  0xb3   : > { %v3874_v52 = vsel %vm2939_vm2, %v720_v60, %v724_v55  ;;  %v728_v49 = vrot.slane %v726_v5, 4  ;;  %v734_v30 = vrot.slane %v732_v54, 5  ;;  %v1162_v23 = vmax.bf16 %v1098_v4, %v3814_v6 }
  0xb4   : > { %v1645_v17 = vmax.bf16 %v3772_v37, %v1514_v3  ;;  %v1313_v12 = vmax.bf16 %v1161_v62, %v3874_v52  ;;  %v1960_v42 = vor.u32 %v1959_v22, %v1955_v15  ;;  %2611 = vst.msk [vmem:[%s3047_s13 + $0x64] sm:$0xf] %vm2585_vm3, %v2546_v26  ;;  %v1967_v44 = vshrl.u32 %v3840_v29, 16 }
  0xb5   : > { %v729_v51 = vor.u32 %v728_v49, %v724_v55  ;;  %v1973_v37 = vshll.u32 %v3870_v27, 16  ;;  %v736_v41 = vshrl.u32 %v3846_v2, 16  ;;  %v1103_v55 = vmax.bf16 %v3810_v33, %v3718_v61  ;;  %v4056_v33 = vld [vmem:[%s2965_s5 + $0xa0] sm:$0xf] }
  0xb6   : > { %v2417_v63 = vmax.bf16 %v1956_v9, %v1645_v17  ;;  %v1451_v15 = vmax.bf16 %v3639_v38, %v1313_v12  ;;  %v1961_v62 = vrot.slane %v1960_v42, 4  ;;  %v1969_v45 = vrot.slane %v1967_v44, 4  ;;  %v3909_v9 = vld [vmem:[%s2904_s24 + $0x9c] sm:$0xf]  ;;  %v2484_v12 = vld [vmem:[%s3020_s9 + $0x6c] sm:$0xf] }
  0xb7   : > { %v730_v13 = vrot.slane %v729_v51, 4  ;;  %v742_v4 = vshll.u32 %v3879_v1, 16  ;;  %v1975_v35 = vrot.slane %v1973_v37, 5  ;;  %v738_v38 = vrot.slane %v736_v41, 4 }
  0xb8   : > { %v2547_v46 = vmax.bf16 %v2483_v25, %v2417_v63  ;;  %v1515_v59 = vmax.bf16 %v1451_v15, %v3895_v16  ;;  %v1966_v60 = vsel %vm2939_vm2, %v1961_v62, %v1965_v56  ;;  %v1970_v54 = vor.u32 %v1969_v45, %v1965_v56  ;;  %v3933_v15 = vld [vmem:[%s2914_s27 + $0x7c] sm:$0xf] }
  0xb9   : > { %v3906_v5 = vsel %vm2939_vm2, %v730_v13, %v734_v30  ;;  %v744_v3 = vrot.slane %v742_v4, 5  ;;  %v739_v49 = vor.u32 %v738_v38, %v734_v30  ;;  %v1163_v17 = vmax.bf16 %v1099_v31, %v3846_v2  ;;  %v3942_v38 = vld [vmem:[%s2904_s24 + $0xa0] sm:$0xf] }
  0xba   : > { %2612 = vst.msk [vmem:[%s3047_s13 + $0x68] sm:$0xf] %vm2585_vm3, %v2547_v46  ;;  %v1646_v22 = vmax.bf16 %v3805_v40, %v1515_v59  ;;  %v1314_v26 = vmax.bf16 %v1162_v23, %v3906_v5  ;;  %v1971_v42 = vrot.slane %v1970_v54, 4  ;;  %v1977_v56 = vshrl.u32 %v3870_v27, 16 }
  0xbb   : > { %v1983_v25 = vshll.u32 %v3900_v0, 16  ;;  %v746_v51 = vshrl.u32 %v3879_v1, 16  ;;  %v740_v37 = vrot.slane %v739_v49, 4  ;;  %v752_v30 = vshll.u32 %v3909_v9, 16 }
  0xbc   : > { %v2418_v44 = vmax.bf16 %v1966_v60, %v1646_v22  ;;  %v1452_v40 = vmax.bf16 %v3672_v48, %v1314_v26  ;;  %v1104_v11 = vmax.bf16 %v3837_v20, %v3751_v32  ;;  %v1976_v31 = vsel %vm2939_vm2, %v1971_v42, %v1975_v35 }
  0xbd   : > { %v1979_v23 = vrot.slane %v1977_v56, 4  ;;  %v748_v63 = vrot.slane %v746_v51, 4  ;;  %v3938_v41 = vsel %vm2939_vm2, %v740_v37, %v744_v3  ;;  %v1985_v13 = vrot.slane %v1983_v25, 5  ;;  %v3959_v56 = vld [vmem:[%s2965_s5 + $0x94] sm:$0xf] }
  0xbe   : > { %v2548_v62 = vmax.bf16 %v2484_v12, %v2418_v44  ;;  %v1516_v48 = vmax.bf16 %v1452_v40, %v3928_v34  ;;  %v1315_v45 = vmax.bf16 %v1163_v17, %v3938_v41  ;;  %v754_v59 = vrot.slane %v752_v30, 5  ;;  %v3968_v44 = vld [vmem:[%s2914_s27 + $0x80] sm:$0xf] }
  0xbf   : > { %v1980_v4 = vor.u32 %v1979_v23, %v1975_v35  ;;  %v749_v46 = vor.u32 %v748_v63, %v744_v3  ;;  %v1164_v54 = vmax.bf16 %v1100_v47, %v3879_v1  ;;  %v1987_v22 = vshrl.u32 %v3900_v0, 16  ;;  %v2485_v35 = vld [vmem:[%s3020_s9 + $0x70] sm:$0xf]  ;;  %v3974_v23 = vld [vmem:[%s2904_s24 + $0xa4] sm:$0xf] }
  0xc0   : > { %2613 = vst.msk [vmem:[%s3047_s13 + $0x6c] sm:$0xf] %vm2585_vm3, %v2548_v62  ;;  %v1647_v60 = vmax.bf16 %v3840_v29, %v1516_v48  ;;  %v1993_v26 = vshll.u32 %v3933_v15, 16  ;;  %v1453_v3 = vmax.bf16 %v3703_v14, %v1315_v45  ;;  %v756_v12 = vshrl.u32 %v3909_v9, 16 }
  0xc1   : > { %v1981_v49 = vrot.slane %v1980_v4, 4  ;;  %v750_v17 = vrot.slane %v749_v46, 4  ;;  %v1105_v29 = vmax.bf16 %v3874_v52, %v3781_v19  ;;  %v1989_v43 = vrot.slane %v1987_v22, 4  ;;  %v2486_v4 = vld [vmem:[%s3020_s9 + $0x74] sm:$0xf] }
  0xc2   : > { %v2419_v42 = vmax.bf16 %v1976_v31, %v1647_v60  ;;  %v762_v57 = vshll.u32 %v3942_v38, 16  ;;  %v1517_v47 = vmax.bf16 %v1453_v3, %v3959_v56  ;;  %v1995_v25 = vrot.slane %v1993_v26, 5  ;;  %v3998_v3 = vld [vmem:[%s2914_s27 + $0x84] sm:$0xf] }
  0xc3   : > { %v3965_v14 = vsel %vm2939_vm2, %v750_v17, %v754_v59  ;;  %v758_v51 = vrot.slane %v756_v12, 4  ;;  %v1986_v37 = vsel %vm2939_vm2, %v1981_v49, %v1985_v13  ;;  %v1990_v31 = vor.u32 %v1989_v43, %v1985_v13 }
  0xc4   : > { %v2549_v40 = vmax.bf16 %v2485_v35, %v2419_v42  ;;  %v1316_v30 = vmax.bf16 %v1164_v54, %v3965_v14  ;;  %v1648_v63 = vmax.bf16 %v3870_v27, %v1517_v47  ;;  %v764_v48 = vrot.slane %v762_v57, 5  ;;  %v3988_v27 = vld [vmem:[%s2965_s5 + $0x98] sm:$0xf] }
  0xc5   : > { %v759_v62 = vor.u32 %v758_v51, %v754_v59  ;;  %v1165_v45 = vmax.bf16 %v1101_v7, %v3909_v9  ;;  %v1991_v60 = vrot.slane %v1990_v31, 4  ;;  %v1997_v13 = vshrl.u32 %v3933_v15, 16 }
  0xc6   : > { %2614 = vst.msk [vmem:[%s3047_s13 + $0x70] sm:$0xf] %vm2585_vm3, %v2549_v40  ;;  %v1454_v46 = vmax.bf16 %v3732_v24, %v1316_v30  ;;  %v2003_v54 = vshll.u32 %v3968_v44, 16  ;;  %v2420_v22 = vmax.bf16 %v1986_v37, %v1648_v63  ;;  %v766_v26 = vshrl.u32 %v3942_v38, 16  ;;  %v4007_v40 = vld [vmem:[%s2904_s24 + $0xa8] sm:$0xf] }
  0xc7   : > { %v760_v59 = vrot.slane %v759_v62, 4  ;;  %v772_v28 = vshll.u32 %v3974_v23, 16  ;;  %v1106_v58 = vmax.bf16 %v3906_v5, %v3814_v6  ;;  %v1996_v7 = vsel %vm2939_vm2, %v1991_v60, %v1995_v25  ;;  %v2487_v37 = vld [vmem:[%s3020_s9 + $0x78] sm:$0xf] }
  0xc8   : > { %v1518_v24 = vmax.bf16 %v1454_v46, %v3988_v27  ;;  %v1999_v35 = vrot.slane %v1997_v13, 4  ;;  %v2550_v49 = vmax.bf16 %v2486_v4, %v2420_v22  ;;  %v2005_v12 = vrot.slane %v2003_v54, 5  ;;  %v4023_v46 = vld [vmem:[%s2965_s5 + $0x9c] sm:$0xf]  ;;  %v4028_v22 = vld [vmem:[%s2914_s27 + $0x88] sm:$0xf] }
  0xc9   : > { %v4002_v17 = vsel %vm2939_vm2, %v760_v59, %v764_v48  ;;  %v768_v42 = vrot.slane %v766_v26, 4  ;;  %v774_v51 = vrot.slane %v772_v28, 5  ;;  %v1166_v31 = vmax.bf16 %v1102_v39, %v3942_v38 }
  0xca   : > { %v1649_v43 = vmax.bf16 %v3900_v0, %v1518_v24  ;;  %v1317_v57 = vmax.bf16 %v1165_v45, %v4002_v17  ;;  %v2000_v47 = vor.u32 %v1999_v35, %v1995_v25  ;;  %2615 = vst.msk [vmem:[%s3047_s13 + $0x74] sm:$0xf] %vm2585_vm3, %v2550_v49  ;;  %v2007_v63 = vshrl.u32 %v3968_v44, 16 }
  0xcb   : > { %v769_v30 = vor.u32 %v768_v42, %v764_v48  ;;  %v2013_v0 = vshll.u32 %v3998_v3, 16  ;;  %v776_v4 = vshrl.u32 %v3974_v23, 16  ;;  %v1107_v48 = vmax.bf16 %v3938_v41, %v3846_v2  ;;  %v4184_v41 = vld [vmem:[%s2965_s5 + $0xb0] sm:$0xf] }
  0xcc   : > { %v2421_v62 = vmax.bf16 %v1996_v7, %v1649_v43  ;;  %v1455_v25 = vmax.bf16 %v3767_v36, %v1317_v57  ;;  %v2001_v45 = vrot.slane %v2000_v47, 4  ;;  %v2009_v10 = vrot.slane %v2007_v63, 4  ;;  %v4037_v7 = vld [vmem:[%s2904_s24 + $0xac] sm:$0xf]  ;;  %v2488_v57 = vld [vmem:[%s3020_s9 + $0x7c] sm:$0xf] }
  0xcd   : > { %v770_v18 = vrot.slane %v769_v30, 4  ;;  %v782_v39 = vshll.u32 %v4007_v40, 16  ;;  %v2015_v54 = vrot.slane %v2013_v0, 5  ;;  %v778_v36 = vrot.slane %v776_v4, 4 }
  0xce   : > { %v2551_v60 = vmax.bf16 %v2487_v37, %v2421_v62  ;;  %v1519_v13 = vmax.bf16 %v1455_v25, %v4023_v46  ;;  %v2006_v59 = vsel %vm2939_vm2, %v2001_v45, %v2005_v12  ;;  %v2010_v28 = vor.u32 %v2009_v10, %v2005_v12  ;;  %v4061_v25 = vld [vmem:[%s2914_s27 + $0x8c] sm:$0xf] }
  0xcf   : > { %v4034_v26 = vsel %vm2939_vm2, %v770_v18, %v774_v51  ;;  %v784_v24 = vrot.slane %v782_v39, 5  ;;  %v779_v42 = vor.u32 %v778_v36, %v774_v51  ;;  %v1167_v43 = vmax.bf16 %v1103_v55, %v3974_v23  ;;  %v4070_v36 = vld [vmem:[%s2904_s24 + $0xb0] sm:$0xf] }
  0xd0   : > { %2616 = vst.msk [vmem:[%s3047_s13 + $0x78] sm:$0xf] %vm2585_vm3, %v2551_v60  ;;  %v1650_v35 = vmax.bf16 %v3933_v15, %v1519_v13  ;;  %v1318_v49 = vmax.bf16 %v1166_v31, %v4034_v26  ;;  %v2011_v47 = vrot.slane %v2010_v28, 4  ;;  %v2017_v12 = vshrl.u32 %v3998_v3, 16 }
  0xd1   : > { %v2023_v37 = vshll.u32 %v4028_v22, 16  ;;  %v786_v30 = vshrl.u32 %v4007_v40, 16  ;;  %v780_v0 = vrot.slane %v779_v42, 4  ;;  %v792_v51 = vshll.u32 %v4037_v7, 16 }
  0xd2   : > { %v2422_v63 = vmax.bf16 %v2006_v59, %v1650_v35  ;;  %v1456_v15 = vmax.bf16 %v3800_v50, %v1318_v49  ;;  %v1108_v61 = vmax.bf16 %v3965_v14, %v3879_v1  ;;  %v2016_v55 = vsel %vm2939_vm2, %v2011_v47, %v2015_v54 }
  0xd3   : > { %v2019_v31 = vrot.slane %v2017_v12, 4  ;;  %v788_v62 = vrot.slane %v786_v30, 4  ;;  %v4066_v4 = vsel %vm2939_vm2, %v780_v0, %v784_v24  ;;  %v2025_v18 = vrot.slane %v2023_v37, 5  ;;  %v4087_v12 = vld [vmem:[%s2965_s5 + $0xa4] sm:$0xf] }
  0xd4   : > { %v2552_v45 = vmax.bf16 %v2488_v57, %v2422_v63  ;;  %v1520_v50 = vmax.bf16 %v1456_v15, %v4056_v33  ;;  %v1319_v10 = vmax.bf16 %v1167_v43, %v4066_v4  ;;  %v794_v13 = vrot.slane %v792_v51, 5  ;;  %v4096_v63 = vld [vmem:[%s2914_s27 + $0x90] sm:$0xf] }
  0xd5   : > { %v2020_v39 = vor.u32 %v2019_v31, %v2015_v54  ;;  %v789_v60 = vor.u32 %v788_v62, %v784_v24  ;;  %v1168_v28 = vmax.bf16 %v1104_v11, %v4007_v40  ;;  %v2027_v35 = vshrl.u32 %v4028_v22, 16  ;;  %v2489_v54 = vld [vmem:[%s3020_s9 + $0x80] sm:$0xf]  ;;  %v4102_v31 = vld [vmem:[%s2904_s24 + $0xb4] sm:$0xf] }
  0xd6   : > { %2617 = vst.msk [vmem:[%s3047_s13 + $0x7c] sm:$0xf] %vm2585_vm3, %v2552_v45  ;;  %v1651_v59 = vmax.bf16 %v3968_v44, %v1520_v50  ;;  %v2033_v49 = vshll.u32 %v4061_v25, 16  ;;  %v1457_v24 = vmax.bf16 %v3831_v8, %v1319_v10  ;;  %v796_v57 = vshrl.u32 %v4037_v7, 16 }
  0xd7   : > { %v2021_v42 = vrot.slane %v2020_v39, 4  ;;  %v790_v43 = vrot.slane %v789_v60, 4  ;;  %v1109_v44 = vmax.bf16 %v4002_v17, %v3909_v9  ;;  %v2029_v32 = vrot.slane %v2027_v35, 4  ;;  %v2490_v39 = vld [vmem:[%s3020_s9 + $0x84] sm:$0xf] }
  0xd8   : > { %v2423_v47 = vmax.bf16 %v2016_v55, %v1651_v59  ;;  %v802_v20 = vshll.u32 %v4070_v36, 16  ;;  %v1521_v11 = vmax.bf16 %v1457_v24, %v4087_v12  ;;  %v2035_v37 = vrot.slane %v2033_v49, 5  ;;  %v4126_v24 = vld [vmem:[%s2914_s27 + $0x94] sm:$0xf] }
  0xd9   : > { %v4093_v8 = vsel %vm2939_vm2, %v790_v43, %v794_v13  ;;  %v798_v30 = vrot.slane %v796_v57, 4  ;;  %v2026_v0 = vsel %vm2939_vm2, %v2021_v42, %v2025_v18  ;;  %v2030_v55 = vor.u32 %v2029_v32, %v2025_v18 }
  0xda   : > { %v2553_v15 = vmax.bf16 %v2489_v54, %v2423_v47  ;;  %v1320_v51 = vmax.bf16 %v1168_v28, %v4093_v8  ;;  %v1652_v62 = vmax.bf16 %v3998_v3, %v1521_v11  ;;  %v804_v50 = vrot.slane %v802_v20, 5  ;;  %v4116_v3 = vld [vmem:[%s2965_s5 + $0xa8] sm:$0xf] }
  0xdb   : > { %v799_v45 = vor.u32 %v798_v30, %v794_v13  ;;  %v1169_v10 = vmax.bf16 %v1105_v29, %v4037_v7  ;;  %v2031_v59 = vrot.slane %v2030_v55, 4  ;;  %v2037_v18 = vshrl.u32 %v4061_v25, 16 }
  0xdc   : > { %2618 = vst.msk [vmem:[%s3047_s13 + $0x80] sm:$0xf] %vm2585_vm3, %v2553_v15  ;;  %v1458_v60 = vmax.bf16 %v3860_v53, %v1320_v51  ;;  %v2043_v28 = vshll.u32 %v4096_v63, 16  ;;  %v2424_v35 = vmax.bf16 %v2026_v0, %v1652_v62  ;;  %v806_v49 = vshrl.u32 %v4070_v36, 16  ;;  %v4135_v15 = vld [vmem:[%s2904_s24 + $0xb8] sm:$0xf] }
  0xdd   : > { %v800_v13 = vrot.slane %v799_v45, 4  ;;  %v812_v19 = vshll.u32 %v4102_v31, 16  ;;  %v1110_v52 = vmax.bf16 %v4034_v26, %v3942_v38  ;;  %v2036_v29 = vsel %vm2939_vm2, %v2031_v59, %v2035_v37  ;;  %v2491_v0 = vld [vmem:[%s3020_s9 + $0x88] sm:$0xf] }
  0xde   : > { %v1522_v53 = vmax.bf16 %v1458_v60, %v4116_v3  ;;  %v2039_v54 = vrot.slane %v2037_v18, 4  ;;  %v2554_v42 = vmax.bf16 %v2490_v39, %v2424_v35  ;;  %v2045_v57 = vrot.slane %v2043_v28, 5  ;;  %v4151_v60 = vld [vmem:[%s2965_s5 + $0xac] sm:$0xf]  ;;  %v4156_v35 = vld [vmem:[%s2914_s27 + $0x98] sm:$0xf] }
  0xdf   : > { %v4130_v43 = vsel %vm2939_vm2, %v800_v13, %v804_v50  ;;  %v808_v47 = vrot.slane %v806_v49, 4  ;;  %v814_v30 = vrot.slane %v812_v19, 5  ;;  %v1170_v55 = vmax.bf16 %v1106_v58, %v4070_v36 }
  0xe0   : > { %v1653_v32 = vmax.bf16 %v4028_v22, %v1522_v53  ;;  %v1321_v20 = vmax.bf16 %v1169_v10, %v4130_v43  ;;  %v2040_v11 = vor.u32 %v2039_v54, %v2035_v37  ;;  %2619 = vst.msk [vmem:[%s3047_s13 + $0x84] sm:$0xf] %vm2585_vm3, %v2554_v42  ;;  %v2047_v62 = vshrl.u32 %v4096_v63, 16 }
  0xe1   : > { %v809_v51 = vor.u32 %v808_v47, %v804_v50  ;;  %v2053_v22 = vshll.u32 %v4126_v24, 16  ;;  %v816_v39 = vshrl.u32 %v4102_v31, 16  ;;  %v1111_v50 = vmax.bf16 %v4066_v4, %v3974_v23  ;;  %v4312_v4 = vld [vmem:[%s2965_s5 + $0xc0] sm:$0xf] }
  0xe2   : > { %v2425_v45 = vmax.bf16 %v2036_v29, %v1653_v32  ;;  %v1459_v37 = vmax.bf16 %v3895_v16, %v1321_v20  ;;  %v2041_v10 = vrot.slane %v2040_v11, 4  ;;  %v2049_v5 = vrot.slane %v2047_v62, 4  ;;  %v4165_v29 = vld [vmem:[%s2904_s24 + $0xbc] sm:$0xf]  ;;  %v2492_v20 = vld [vmem:[%s3020_s9 + $0x8c] sm:$0xf] }
  0xe3   : > { %v810_v6 = vrot.slane %v809_v51, 4  ;;  %v822_v58 = vshll.u32 %v4135_v15, 16  ;;  %v2055_v28 = vrot.slane %v2053_v22, 5  ;;  %v818_v16 = vrot.slane %v816_v39, 4 }
  0xe4   : > { %v2555_v59 = vmax.bf16 %v2491_v0, %v2425_v45  ;;  %v1523_v18 = vmax.bf16 %v1459_v37, %v4151_v60  ;;  %v2046_v13 = vsel %vm2939_vm2, %v2041_v10, %v2045_v57  ;;  %v2050_v19 = vor.u32 %v2049_v5, %v2045_v57  ;;  %v4189_v37 = vld [vmem:[%s2914_s27 + $0x9c] sm:$0xf] }
  0xe5   : > { %v4162_v49 = vsel %vm2939_vm2, %v810_v6, %v814_v30  ;;  %v824_v53 = vrot.slane %v822_v58, 5  ;;  %v819_v47 = vor.u32 %v818_v16, %v814_v30  ;;  %v1171_v32 = vmax.bf16 %v1107_v48, %v4102_v31  ;;  %v4198_v16 = vld [vmem:[%s2904_s24 + $0xc0] sm:$0xf] }
  0xe6   : > { %2620 = vst.msk [vmem:[%s3047_s13 + $0x88] sm:$0xf] %vm2585_vm3, %v2555_v59  ;;  %v1654_v54 = vmax.bf16 %v4061_v25, %v1523_v18  ;;  %v1322_v42 = vmax.bf16 %v1170_v55, %v4162_v49  ;;  %v2051_v11 = vrot.slane %v2050_v19, 4  ;;  %v2057_v57 = vshrl.u32 %v4126_v24, 16 }
  0xe7   : > { %v2063_v0 = vshll.u32 %v4156_v35, 16  ;;  %v826_v51 = vshrl.u32 %v4135_v15, 16  ;;  %v820_v22 = vrot.slane %v819_v47, 4  ;;  %v832_v30 = vshll.u32 %v4165_v29, 16 }
  0xe8   : > { %v2426_v62 = vmax.bf16 %v2046_v13, %v1654_v54  ;;  %v1460_v25 = vmax.bf16 %v3928_v34, %v1322_v42  ;;  %v1112_v2 = vmax.bf16 %v4093_v8, %v4007_v40  ;;  %v2056_v48 = vsel %vm2939_vm2, %v2051_v11, %v2055_v28 }
  0xe9   : > { %v2059_v55 = vrot.slane %v2057_v57, 4  ;;  %v828_v45 = vrot.slane %v826_v51, 4  ;;  %v4194_v39 = vsel %vm2939_vm2, %v820_v22, %v824_v53  ;;  %v2065_v6 = vrot.slane %v2063_v0, 5  ;;  %v4215_v57 = vld [vmem:[%s2965_s5 + $0xb4] sm:$0xf] }
  0xea   : > { %v2556_v10 = vmax.bf16 %v2492_v20, %v2426_v62  ;;  %v1524_v34 = vmax.bf16 %v1460_v25, %v4184_v41  ;;  %v1323_v5 = vmax.bf16 %v1171_v32, %v4194_v39  ;;  %v834_v18 = vrot.slane %v832_v30, 5  ;;  %v4224_v62 = vld [vmem:[%s2914_s27 + $0xa0] sm:$0xf] }
  0xeb   : > { %v2060_v58 = vor.u32 %v2059_v55, %v2055_v28  ;;  %v829_v59 = vor.u32 %v828_v45, %v824_v53  ;;  %v1172_v19 = vmax.bf16 %v1108_v61, %v4135_v15  ;;  %v2067_v54 = vshrl.u32 %v4156_v35, 16  ;;  %v2493_v28 = vld [vmem:[%s3020_s9 + $0x90] sm:$0xf]  ;;  %v4230_v55 = vld [vmem:[%s2904_s24 + $0xc4] sm:$0xf] }
  0xec   : > { %2621 = vst.msk [vmem:[%s3047_s13 + $0x8c] sm:$0xf] %vm2585_vm3, %v2556_v10  ;;  %v1655_v13 = vmax.bf16 %v4096_v63, %v1524_v34  ;;  %v2073_v42 = vshll.u32 %v4189_v37, 16  ;;  %v1461_v53 = vmax.bf16 %v3959_v56, %v1323_v5  ;;  %v836_v20 = vshrl.u32 %v4165_v29, 16 }
  0xed   : > { %v2061_v47 = vrot.slane %v2060_v58, 4  ;;  %v830_v32 = vrot.slane %v829_v59, 4  ;;  %v1113_v63 = vmax.bf16 %v4130_v43, %v4037_v7  ;;  %v2069_v1 = vrot.slane %v2067_v54, 4  ;;  %v2494_v58 = vld [vmem:[%s3020_s9 + $0x94] sm:$0xf] }
  0xee   : > { %v2427_v11 = vmax.bf16 %v2056_v48, %v1655_v13  ;;  %v842_v14 = vshll.u32 %v4198_v16, 16  ;;  %v1525_v61 = vmax.bf16 %v1461_v53, %v4215_v57  ;;  %v2075_v0 = vrot.slane %v2073_v42, 5  ;;  %v4254_v53 = vld [vmem:[%s2914_s27 + $0xa4] sm:$0xf] }
  0xef   : > { %v4221_v56 = vsel %vm2939_vm2, %v830_v32, %v834_v18  ;;  %v838_v51 = vrot.slane %v836_v20, 4  ;;  %v2066_v22 = vsel %vm2939_vm2, %v2061_v47, %v2065_v6  ;;  %v2070_v48 = vor.u32 %v2069_v1, %v2065_v6 }
  0xf0   : > { %v2557_v25 = vmax.bf16 %v2493_v28, %v2427_v11  ;;  %v1324_v30 = vmax.bf16 %v1172_v19, %v4221_v56  ;;  %v1656_v45 = vmax.bf16 %v4126_v24, %v1525_v61  ;;  %v844_v34 = vrot.slane %v842_v14, 5  ;;  %v4244_v24 = vld [vmem:[%s2965_s5 + $0xb8] sm:$0xf] }
  0xf1   : > { %v839_v10 = vor.u32 %v838_v51, %v834_v18  ;;  %v1173_v5 = vmax.bf16 %v1109_v44, %v4165_v29  ;;  %v2071_v13 = vrot.slane %v2070_v48, 4  ;;  %v2077_v6 = vshrl.u32 %v4189_v37, 16 }
  0xf2   : > { %2622 = vst.msk [vmem:[%s3047_s13 + $0x90] sm:$0xf] %vm2585_vm3, %v2557_v25  ;;  %v1462_v59 = vmax.bf16 %v3988_v27, %v1324_v30  ;;  %v2083_v19 = vshll.u32 %v4224_v62, 16  ;;  %v2428_v54 = vmax.bf16 %v2066_v22, %v1656_v45  ;;  %v846_v42 = vshrl.u32 %v4198_v16, 16  ;;  %v4263_v25 = vld [vmem:[%s2904_s24 + $0xc8] sm:$0xf] }
  0xf3   : > { %v840_v18 = vrot.slane %v839_v10, 4  ;;  %v852_v9 = vshll.u32 %v4230_v55, 16  ;;  %v1114_v17 = vmax.bf16 %v4162_v49, %v4070_v36  ;;  %v2076_v44 = vsel %vm2939_vm2, %v2071_v13, %v2075_v0  ;;  %v2495_v22 = vld [vmem:[%s3020_s9 + $0x98] sm:$0xf] }
  0xf4   : > { %v1526_v27 = vmax.bf16 %v1462_v59, %v4244_v24  ;;  %v2079_v28 = vrot.slane %v2077_v6, 4  ;;  %v2558_v47 = vmax.bf16 %v2494_v58, %v2428_v54  ;;  %v2085_v20 = vrot.slane %v2083_v19, 5  ;;  %v4279_v59 = vld [vmem:[%s2965_s5 + $0xbc] sm:$0xf]  ;;  %v4284_v54 = vld [vmem:[%s2914_s27 + $0xa8] sm:$0xf] }
  0xf5   : > { %v4258_v32 = vsel %vm2939_vm2, %v840_v18, %v844_v34  ;;  %v848_v11 = vrot.slane %v846_v42, 4  ;;  %v854_v51 = vrot.slane %v852_v9, 5  ;;  %v1174_v48 = vmax.bf16 %v1110_v52, %v4198_v16 }
  0xf6   : > { %v1657_v1 = vmax.bf16 %v4156_v35, %v1526_v27  ;;  %v1325_v14 = vmax.bf16 %v1173_v5, %v4258_v32  ;;  %v2080_v61 = vor.u32 %v2079_v28, %v2075_v0  ;;  %2623 = vst.msk [vmem:[%s3047_s13 + $0x94] sm:$0xf] %vm2585_vm3, %v2558_v47  ;;  %v2087_v45 = vshrl.u32 %v4224_v62, 16 }
  0xf7   : > { %v849_v30 = vor.u32 %v848_v11, %v844_v34  ;;  %v2093_v35 = vshll.u32 %v4254_v53, 16  ;;  %v856_v58 = vshrl.u32 %v4230_v55, 16  ;;  %v1115_v34 = vmax.bf16 %v4194_v39, %v4102_v31  ;;  %v4440_v39 = vld [vmem:[%s2965_s5 + $0xd0] sm:$0xf] }
  0xf8   : > { %v2429_v10 = vmax.bf16 %v2076_v44, %v1657_v1  ;;  %v1463_v0 = vmax.bf16 %v4023_v46, %v1325_v14  ;;  %v2081_v5 = vrot.slane %v2080_v61, 4  ;;  %v2089_v26 = vrot.slane %v2087_v45, 4  ;;  %v4293_v44 = vld [vmem:[%s2904_s24 + $0xcc] sm:$0xf]  ;;  %v2496_v14 = vld [vmem:[%s3020_s9 + $0x9c] sm:$0xf] }
  0xf9   : > { %v850_v38 = vrot.slane %v849_v30, 4  ;;  %v862_v52 = vshll.u32 %v4263_v25, 16  ;;  %v2095_v19 = vrot.slane %v2093_v35, 5  ;;  %v858_v46 = vrot.slane %v856_v58, 4 }
  0xfa   : > { %v2559_v13 = vmax.bf16 %v2495_v22, %v2429_v10  ;;  %v1527_v6 = vmax.bf16 %v1463_v0, %v4279_v59  ;;  %v2086_v18 = vsel %vm2939_vm2, %v2081_v5, %v2085_v20  ;;  %v2090_v9 = vor.u32 %v2089_v26, %v2085_v20  ;;  %v4317_v0 = vld [vmem:[%s2914_s27 + $0xac] sm:$0xf] }
  0xfb   : > { %v4290_v42 = vsel %vm2939_vm2, %v850_v38, %v854_v51  ;;  %v864_v27 = vrot.slane %v862_v52, 5  ;;  %v859_v11 = vor.u32 %v858_v46, %v854_v51  ;;  %v1175_v1 = vmax.bf16 %v1111_v50, %v4230_v55  ;;  %v4326_v46 = vld [vmem:[%s2904_s24 + $0xd0] sm:$0xf] }
  0xfc   : > { %2624 = vst.msk [vmem:[%s3047_s13 + $0x98] sm:$0xf] %vm2585_vm3, %v2559_v13  ;;  %v1658_v28 = vmax.bf16 %v4189_v37, %v1527_v6  ;;  %v1326_v47 = vmax.bf16 %v1174_v48, %v4290_v42  ;;  %v2091_v61 = vrot.slane %v2090_v9, 4  ;;  %v2097_v20 = vshrl.u32 %v4254_v53, 16 }
  0xfd   : > { %v2103_v22 = vshll.u32 %v4284_v54, 16  ;;  %v866_v30 = vshrl.u32 %v4263_v25, 16  ;;  %v860_v35 = vrot.slane %v859_v11, 4  ;;  %v872_v51 = vshll.u32 %v4293_v44, 16 }
  0xfe   : > { %v2430_v45 = vmax.bf16 %v2086_v18, %v1658_v28  ;;  %v1464_v37 = vmax.bf16 %v4056_v33, %v1326_v47  ;;  %v1116_v23 = vmax.bf16 %v4221_v56, %v4135_v15  ;;  %v2096_v50 = vsel %vm2939_vm2, %v2091_v61, %v2095_v19 }
  0xff   : > { %v2099_v48 = vrot.slane %v2097_v20, 4  ;;  %v868_v10 = vrot.slane %v866_v30, 4  ;;  %v4322_v58 = vsel %vm2939_vm2, %v860_v35, %v864_v27  ;;  %v2105_v38 = vrot.slane %v2103_v22, 5  ;;  %v4343_v20 = vld [vmem:[%s2965_s5 + $0xc4] sm:$0xf] }
 0x100   : > { %v2560_v5 = vmax.bf16 %v2496_v14, %v2430_v45  ;;  %v1528_v33 = vmax.bf16 %v1464_v37, %v4312_v4  ;;  %v1327_v26 = vmax.bf16 %v1175_v1, %v4322_v58  ;;  %v874_v6 = vrot.slane %v872_v51, 5  ;;  %v4352_v45 = vld [vmem:[%s2914_s27 + $0xb0] sm:$0xf] }
 0x101   : > { %v2100_v52 = vor.u32 %v2099_v48, %v2095_v19  ;;  %v869_v13 = vor.u32 %v868_v10, %v864_v27  ;;  %v1176_v9 = vmax.bf16 %v1112_v2, %v4263_v25  ;;  %v2107_v28 = vshrl.u32 %v4284_v54, 16  ;;  %v2497_v19 = vld [vmem:[%s3020_s9 + $0xa0] sm:$0xf]  ;;  %v4358_v48 = vld [vmem:[%s2904_s24 + $0xd4] sm:$0xf] }
 0x102   : > { %2625 = vst.msk [vmem:[%s3047_s13 + $0x9c] sm:$0xf] %vm2585_vm3, %v2560_v5  ;;  %v1659_v18 = vmax.bf16 %v4224_v62, %v1528_v33  ;;  %v2113_v47 = vshll.u32 %v4317_v0, 16  ;;  %v1465_v27 = vmax.bf16 %v4087_v12, %v1327_v26  ;;  %v876_v14 = vshrl.u32 %v4293_v44, 16 }
 0x103   : > { %v2101_v11 = vrot.slane %v2100_v52, 4  ;;  %v870_v1 = vrot.slane %v869_v13, 4  ;;  %v1117_v62 = vmax.bf16 %v4258_v32, %v4165_v29  ;;  %v2109_v40 = vrot.slane %v2107_v28, 4  ;;  %v2498_v52 = vld [vmem:[%s3020_s9 + $0xa4] sm:$0xf] }
 0x104   : > { %v2431_v61 = vmax.bf16 %v2096_v50, %v1659_v18  ;;  %v882_v8 = vshll.u32 %v4326_v46, 16  ;;  %v1529_v2 = vmax.bf16 %v1465_v27, %v4343_v20  ;;  %v2115_v22 = vrot.slane %v2113_v47, 5  ;;  %v4382_v27 = vld [vmem:[%s2914_s27 + $0xb4] sm:$0xf] }
 0x105   : > { %v4349_v12 = vsel %vm2939_vm2, %v870_v1, %v874_v6  ;;  %v878_v30 = vrot.slane %v876_v14, 4  ;;  %v2106_v35 = vsel %vm2939_vm2, %v2101_v11, %v2105_v38  ;;  %v2110_v50 = vor.u32 %v2109_v40, %v2105_v38 }
 0x106   : > { %v2561_v37 = vmax.bf16 %v2497_v19, %v2431_v61  ;;  %v1328_v51 = vmax.bf16 %v1176_v9, %v4349_v12  ;;  %v1660_v10 = vmax.bf16 %v4254_v53, %v1529_v2  ;;  %v884_v33 = vrot.slane %v882_v8, 5  ;;  %v4372_v53 = vld [vmem:[%s2965_s5 + $0xc8] sm:$0xf] }
 0x107   : > { %v879_v5 = vor.u32 %v878_v30, %v874_v6  ;;  %v1177_v26 = vmax.bf16 %v1113_v63, %v4293_v44  ;;  %v2111_v18 = vrot.slane %v2110_v50, 4  ;;  %v2117_v38 = vshrl.u32 %v4317_v0, 16 }
 0x108   : > { %2626 = vst.msk [vmem:[%s3047_s13 + $0xa0] sm:$0xf] %vm2585_vm3, %v2561_v37  ;;  %v1466_v13 = vmax.bf16 %v4116_v3, %v1328_v51  ;;  %v2123_v9 = vshll.u32 %v4352_v45, 16  ;;  %v2432_v28 = vmax.bf16 %v2106_v35, %v1660_v10  ;;  %v886_v47 = vshrl.u32 %v4326_v46, 16  ;;  %v4391_v37 = vld [vmem:[%s2904_s24 + $0xd8] sm:$0xf] }
 0x109   : > { %v880_v6 = vrot.slane %v879_v5, 4  ;;  %v892_v7 = vshll.u32 %v4358_v48, 16  ;;  %v1118_v43 = vmax.bf16 %v4290_v42, %v4198_v16  ;;  %v2116_v63 = vsel %vm2939_vm2, %v2111_v18, %v2115_v22  ;;  %v2499_v35 = vld [vmem:[%s3020_s9 + $0xa8] sm:$0xf] }
 0x10a   : > { %v1530_v3 = vmax.bf16 %v1466_v13, %v4372_v53  ;;  %v2119_v19 = vrot.slane %v2117_v38, 4  ;;  %v2562_v11 = vmax.bf16 %v2498_v52, %v2432_v28  ;;  %v2125_v14 = vrot.slane %v2123_v9, 5  ;;  %v4407_v13 = vld [vmem:[%s2965_s5 + $0xcc] sm:$0xf]  ;;  %v4412_v28 = vld [vmem:[%s2914_s27 + $0xb8] sm:$0xf] }
 0x10b   : > { %v4386_v1 = vsel %vm2939_vm2, %v880_v6, %v884_v33  ;;  %v888_v61 = vrot.slane %v886_v47, 4  ;;  %v894_v30 = vrot.slane %v892_v7, 5  ;;  %v1178_v50 = vmax.bf16 %v1114_v17, %v4326_v46 }
 0x10c   : > { %v1661_v40 = vmax.bf16 %v4284_v54, %v1530_v3  ;;  %v1329_v8 = vmax.bf16 %v1177_v26, %v4386_v1  ;;  %v2120_v2 = vor.u32 %v2119_v19, %v2115_v22  ;;  %2627 = vst.msk [vmem:[%s3047_s13 + $0xa4] sm:$0xf] %vm2585_vm3, %v2562_v11  ;;  %v2127_v10 = vshrl.u32 %v4352_v45, 16 }
 0x10d   : > { %v889_v51 = vor.u32 %v888_v61, %v884_v33  ;;  %v2133_v54 = vshll.u32 %v4382_v27, 16  ;;  %v896_v52 = vshrl.u32 %v4358_v48, 16  ;;  %v1119_v33 = vmax.bf16 %v4322_v58, %v4230_v55  ;;  %v4568_v58 = vld [vmem:[%s2965_s5 + $0xe0] sm:$0xf] }
 0x10e   : > { %v2433_v5 = vmax.bf16 %v2116_v63, %v1661_v40  ;;  %v1467_v22 = vmax.bf16 %v4151_v60, %v1329_v8  ;;  %v2121_v26 = vrot.slane %v2120_v2, 4  ;;  %v2129_v49 = vrot.slane %v2127_v10, 4  ;;  %v4421_v63 = vld [vmem:[%s2904_s24 + $0xdc] sm:$0xf]  ;;  %v2500_v8 = vld [vmem:[%s3020_s9 + $0xac] sm:$0xf] }
 0x10f   : > { %v890_v36 = vrot.slane %v889_v51, 4  ;;  %v902_v17 = vshll.u32 %v4391_v37, 16  ;;  %v2135_v9 = vrot.slane %v2133_v54, 5  ;;  %v898_v60 = vrot.slane %v896_v52, 4 }
 0x110   : > { %v2563_v18 = vmax.bf16 %v2499_v35, %v2433_v5  ;;  %v1531_v38 = vmax.bf16 %v1467_v22, %v4407_v13  ;;  %v2126_v6 = vsel %vm2939_vm2, %v2121_v26, %v2125_v14  ;;  %v2130_v7 = vor.u32 %v2129_v49, %v2125_v14  ;;  %v4445_v22 = vld [vmem:[%s2914_s27 + $0xbc] sm:$0xf] }
 0x111   : > { %v4418_v47 = vsel %vm2939_vm2, %v890_v36, %v894_v30  ;;  %v904_v3 = vrot.slane %v902_v17, 5  ;;  %v899_v61 = vor.u32 %v898_v60, %v894_v30  ;;  %v1179_v40 = vmax.bf16 %v1115_v34, %v4358_v48  ;;  %v4454_v60 = vld [vmem:[%s2904_s24 + $0xe0] sm:$0xf] }
 0x112   : > { %2628 = vst.msk [vmem:[%s3047_s13 + $0xa8] sm:$0xf] %vm2585_vm3, %v2563_v18  ;;  %v1662_v19 = vmax.bf16 %v4317_v0, %v1531_v38  ;;  %v1330_v11 = vmax.bf16 %v1178_v50, %v4418_v47  ;;  %v2131_v2 = vrot.slane %v2130_v7, 4  ;;  %v2137_v14 = vshrl.u32 %v4382_v27, 16 }
 0x113   : > { %v2143_v35 = vshll.u32 %v4412_v28, 16  ;;  %v906_v51 = vshrl.u32 %v4391_v37, 16  ;;  %v900_v54 = vrot.slane %v899_v61, 4  ;;  %v912_v30 = vshll.u32 %v4421_v63, 16 }
 0x114   : > { %v2434_v10 = vmax.bf16 %v2126_v6, %v1662_v19  ;;  %v1468_v0 = vmax.bf16 %v4184_v41, %v1330_v11  ;;  %v1120_v31 = vmax.bf16 %v4349_v12, %v4263_v25  ;;  %v2136_v34 = vsel %vm2939_vm2, %v2131_v2, %v2135_v9 }
 0x115   : > { %v2139_v50 = vrot.slane %v2137_v14, 4  ;;  %v908_v5 = vrot.slane %v906_v51, 4  ;;  %v4450_v52 = vsel %vm2939_vm2, %v900_v54, %v904_v3  ;;  %v2145_v36 = vrot.slane %v2143_v35, 5  ;;  %v4471_v14 = vld [vmem:[%s2965_s5 + $0xd4] sm:$0xf] }
 0x116   : > { %v2564_v26 = vmax.bf16 %v2500_v8, %v2434_v10  ;;  %v1532_v41 = vmax.bf16 %v1468_v0, %v4440_v39  ;;  %v1331_v49 = vmax.bf16 %v1179_v40, %v4450_v52  ;;  %v914_v38 = vrot.slane %v912_v30, 5  ;;  %v4480_v10 = vld [vmem:[%s2914_s27 + $0xc0] sm:$0xf] }
 0x117   : > { %v2140_v17 = vor.u32 %v2139_v50, %v2135_v9  ;;  %v909_v18 = vor.u32 %v908_v5, %v904_v3  ;;  %v1180_v7 = vmax.bf16 %v1116_v23, %v4391_v37  ;;  %v2147_v19 = vshrl.u32 %v4412_v28, 16  ;;  %v2501_v9 = vld [vmem:[%s3020_s9 + $0xb0] sm:$0xf]  ;;  %v4486_v50 = vld [vmem:[%s2904_s24 + $0xe4] sm:$0xf] }
 0x118   : > { %2629 = vst.msk [vmem:[%s3047_s13 + $0xac] sm:$0xf] %vm2585_vm3, %v2564_v26  ;;  %v1663_v6 = vmax.bf16 %v4352_v45, %v1532_v41  ;;  %v2153_v11 = vshll.u32 %v4445_v22, 16  ;;  %v1469_v3 = vmax.bf16 %v4215_v57, %v1331_v49  ;;  %v916_v8 = vshrl.u32 %v4421_v63, 16 }
 0x119   : > { %v2141_v61 = vrot.slane %v2140_v17, 4  ;;  %v910_v40 = vrot.slane %v909_v18, 4  ;;  %v1121_v45 = vmax.bf16 %v4386_v1, %v4293_v44  ;;  %v2149_v15 = vrot.slane %v2147_v19, 4  ;;  %v2502_v17 = vld [vmem:[%s3020_s9 + $0xb4] sm:$0xf] }
 0x11a   : > { %v2435_v2 = vmax.bf16 %v2136_v34, %v1663_v6  ;;  %v922_v56 = vshll.u32 %v4454_v60, 16  ;;  %v1533_v23 = vmax.bf16 %v1469_v3, %v4471_v14  ;;  %v2155_v35 = vrot.slane %v2153_v11, 5  ;;  %v4510_v3 = vld [vmem:[%s2914_s27 + $0xc4] sm:$0xf] }
 0x11b   : > { %v4477_v57 = vsel %vm2939_vm2, %v910_v40, %v914_v38  ;;  %v918_v51 = vrot.slane %v916_v8, 4  ;;  %v2146_v54 = vsel %vm2939_vm2, %v2141_v61, %v2145_v36  ;;  %v2150_v34 = vor.u32 %v2149_v15, %v2145_v36 }
 0x11c   : > { %v2565_v0 = vmax.bf16 %v2501_v9, %v2435_v2  ;;  %v1332_v30 = vmax.bf16 %v1180_v7, %v4477_v57  ;;  %v1664_v5 = vmax.bf16 %v4382_v27, %v1533_v23  ;;  %v924_v41 = vrot.slane %v922_v56, 5  ;;  %v4500_v27 = vld [vmem:[%s2965_s5 + $0xd8] sm:$0xf] }
 0x11d   : > { %v919_v26 = vor.u32 %v918_v51, %v914_v38  ;;  %v1181_v49 = vmax.bf16 %v1117_v62, %v4421_v63  ;;  %v2151_v6 = vrot.slane %v2150_v34, 4  ;;  %v2157_v36 = vshrl.u32 %v4445_v22, 16 }
 0x11e   : > { %2630 = vst.msk [vmem:[%s3047_s13 + $0xb0] sm:$0xf] %vm2585_vm3, %v2565_v0  ;;  %v1470_v18 = vmax.bf16 %v4244_v24, %v1332_v30  ;;  %v2163_v7 = vshll.u32 %v4480_v10, 16  ;;  %v2436_v19 = vmax.bf16 %v2146_v54, %v1664_v5  ;;  %v926_v11 = vshrl.u32 %v4454_v60, 16  ;;  %v4519_v0 = vld [vmem:[%s2904_s24 + $0xe8] sm:$0xf] }
 0x11f   : > { %v920_v38 = vrot.slane %v919_v26, 4  ;;  %v932_v29 = vshll.u32 %v4486_v50, 16  ;;  %v1122_v32 = vmax.bf16 %v4418_v47, %v4326_v46  ;;  %v2156_v62 = vsel %vm2939_vm2, %v2151_v6, %v2155_v35  ;;  %v2503_v54 = vld [vmem:[%s3020_s9 + $0xb8] sm:$0xf] }
 0x120   : > { %v1534_v24 = vmax.bf16 %v1470_v18, %v4500_v27  ;;  %v2159_v9 = vrot.slane %v2157_v36, 4  ;;  %v2566_v61 = vmax.bf16 %v2502_v17, %v2436_v19  ;;  %v2165_v8 = vrot.slane %v2163_v7, 5  ;;  %v4535_v18 = vld [vmem:[%s2965_s5 + $0xdc] sm:$0xf]  ;;  %v4540_v19 = vld [vmem:[%s2914_s27 + $0xc8] sm:$0xf] }
 0x121   : > { %v4514_v40 = vsel %vm2939_vm2, %v920_v38, %v924_v41  ;;  %v928_v2 = vrot.slane %v926_v11, 4  ;;  %v934_v51 = vrot.slane %v932_v29, 5  ;;  %v1182_v34 = vmax.bf16 %v1118_v43, %v4454_v60 }
 0x122   : > { %v1665_v15 = vmax.bf16 %v4412_v28, %v1534_v24  ;;  %v1333_v56 = vmax.bf16 %v1181_v49, %v4514_v40  ;;  %v2160_v23 = vor.u32 %v2159_v9, %v2155_v35  ;;  %2631 = vst.msk [vmem:[%s3047_s13 + $0xb4] sm:$0xf] %vm2585_vm3, %v2566_v61  ;;  %v2167_v5 = vshrl.u32 %v4480_v10, 16 }
 0x123   : > { %v929_v30 = vor.u32 %v928_v2, %v924_v41  ;;  %v2173_v28 = vshll.u32 %v4510_v3, 16  ;;  %v936_v17 = vshrl.u32 %v4486_v50, 16  ;;  %v1123_v41 = vmax.bf16 %v4450_v52, %v4358_v48  ;;  %v4696_v52 = vld [vmem:[%s2965_s5 + $0xf0] sm:$0xf] }
 0x124   : > { %v2437_v26 = vmax.bf16 %v2156_v62, %v1665_v15  ;;  %v1471_v35 = vmax.bf16 %v4279_v59, %v1333_v56  ;;  %v2161_v49 = vrot.slane %v2160_v23, 4  ;;  %v2169_v42 = vrot.slane %v2167_v5, 4  ;;  %v4549_v62 = vld [vmem:[%s2904_s24 + $0xec] sm:$0xf]  ;;  %v2504_v56 = vld [vmem:[%s3020_s9 + $0xbc] sm:$0xf] }
 0x125   : > { %v930_v16 = vrot.slane %v929_v30, 4  ;;  %v942_v43 = vshll.u32 %v4519_v0, 16  ;;  %v2175_v7 = vrot.slane %v2173_v28, 5  ;;  %v938_v59 = vrot.slane %v936_v17, 4 }
 0x126   : > { %v2567_v6 = vmax.bf16 %v2503_v54, %v2437_v26  ;;  %v1535_v36 = vmax.bf16 %v1471_v35, %v4535_v18  ;;  %v2166_v38 = vsel %vm2939_vm2, %v2161_v49, %v2165_v8  ;;  %v2170_v29 = vor.u32 %v2169_v42, %v2165_v8  ;;  %v4573_v35 = vld [vmem:[%s2914_s27 + $0xcc] sm:$0xf] }
 0x127   : > { %v4546_v11 = vsel %vm2939_vm2, %v930_v16, %v934_v51  ;;  %v944_v24 = vrot.slane %v942_v43, 5  ;;  %v939_v2 = vor.u32 %v938_v59, %v934_v51  ;;  %v1183_v15 = vmax.bf16 %v1119_v33, %v4486_v50  ;;  %v4582_v59 = vld [vmem:[%s2904_s24 + $0xf0] sm:$0xf] }
 0x128   : > { %2632 = vst.msk [vmem:[%s3047_s13 + $0xb8] sm:$0xf] %vm2585_vm3, %v2567_v6  ;;  %v1666_v9 = vmax.bf16 %v4445_v22, %v1535_v36  ;;  %v1334_v61 = vmax.bf16 %v1182_v34, %v4546_v11  ;;  %v2171_v23 = vrot.slane %v2170_v29, 4  ;;  %v2177_v8 = vshrl.u32 %v4510_v3, 16 }
 0x129   : > { %v2183_v54 = vshll.u32 %v4540_v19, 16  ;;  %v946_v30 = vshrl.u32 %v4519_v0, 16  ;;  %v940_v28 = vrot.slane %v939_v2, 4  ;;  %v952_v51 = vshll.u32 %v4549_v62, 16 }
 0x12a   : > { %v2438_v5 = vmax.bf16 %v2166_v38, %v1666_v9  ;;  %v1472_v22 = vmax.bf16 %v4312_v4, %v1334_v61  ;;  %v1124_v55 = vmax.bf16 %v4477_v57, %v4391_v37  ;;  %v2176_v33 = vsel %vm2939_vm2, %v2171_v23, %v2175_v7 }
 0x12b   : > { %v2179_v34 = vrot.slane %v2177_v8, 4  ;;  %v948_v26 = vrot.slane %v946_v30, 4  ;;  %v4578_v17 = vsel %vm2939_vm2, %v940_v28, %v944_v24  ;;  %v2185_v16 = vrot.slane %v2183_v54, 5  ;;  %v4599_v8 = vld [vmem:[%s2965_s5 + $0xe4] sm:$0xf] }
 0x12c   : > { %v2568_v49 = vmax.bf16 %v2504_v56, %v2438_v5  ;;  %v1536_v4 = vmax.bf16 %v1472_v22, %v4568_v58  ;;  %v1335_v42 = vmax.bf16 %v1183_v15, %v4578_v17  ;;  %v954_v36 = vrot.slane %v952_v51, 5  ;;  %v4608_v5 = vld [vmem:[%s2914_s27 + $0xd0] sm:$0xf] }
 0x12d   : > { %v2180_v43 = vor.u32 %v2179_v34, %v2175_v7  ;;  %v949_v6 = vor.u32 %v948_v26, %v944_v24  ;;  %v1184_v29 = vmax.bf16 %v1120_v31, %v4519_v0  ;;  %v2187_v9 = vshrl.u32 %v4540_v19, 16  ;;  %v2505_v7 = vld [vmem:[%s3020_s9 + $0xc0] sm:$0xf]  ;;  %v4614_v34 = vld [vmem:[%s2904_s24 + $0xf4] sm:$0xf] }
 0x12e   : > { %2633 = vst.msk [vmem:[%s3047_s13 + $0xbc] sm:$0xf] %vm2585_vm3, %v2568_v49  ;;  %v1667_v38 = vmax.bf16 %v4480_v10, %v1536_v4  ;;  %v2193_v61 = vshll.u32 %v4573_v35, 16  ;;  %v1473_v24 = vmax.bf16 %v4343_v20, %v1335_v42  ;;  %v956_v56 = vshrl.u32 %v4549_v62, 16 }
 0x12f   : > { %v2181_v2 = vrot.slane %v2180_v43, 4  ;;  %v950_v15 = vrot.slane %v949_v6, 4  ;;  %v1125_v10 = vmax.bf16 %v4514_v40, %v4421_v63  ;;  %v2189_v25 = vrot.slane %v2187_v9, 4  ;;  %v2506_v43 = vld [vmem:[%s3020_s9 + $0xc4] sm:$0xf] }
 0x130   : > { %v2439_v23 = vmax.bf16 %v2176_v33, %v1667_v38  ;;  %v962_v12 = vshll.u32 %v4582_v59, 16  ;;  %v1537_v31 = vmax.bf16 %v1473_v24, %v4599_v8  ;;  %v2195_v54 = vrot.slane %v2193_v61, 5  ;;  %v4638_v24 = vld [vmem:[%s2914_s27 + $0xd4] sm:$0xf] }
 0x131   : > { %v4605_v20 = vsel %vm2939_vm2, %v950_v15, %v954_v36  ;;  %v958_v30 = vrot.slane %v956_v56, 4  ;;  %v2186_v28 = vsel %vm2939_vm2, %v2181_v2, %v2185_v16  ;;  %v2190_v33 = vor.u32 %v2189_v25, %v2185_v16 }
 0x132   : > { %v2569_v22 = vmax.bf16 %v2505_v7, %v2439_v23  ;;  %v1336_v51 = vmax.bf16 %v1184_v29, %v4605_v20  ;;  %v1668_v26 = vmax.bf16 %v4510_v3, %v1537_v31  ;;  %v964_v4 = vrot.slane %v962_v12, 5  ;;  %v4628_v3 = vld [vmem:[%s2965_s5 + $0xe8] sm:$0xf] }
 0x133   : > { %v959_v49 = vor.u32 %v958_v30, %v954_v36  ;;  %v1185_v42 = vmax.bf16 %v1121_v45, %v4549_v62  ;;  %v2191_v38 = vrot.slane %v2190_v33, 4  ;;  %v2197_v16 = vshrl.u32 %v4573_v35, 16 }
 0x134   : > { %2634 = vst.msk [vmem:[%s3047_s13 + $0xc0] sm:$0xf] %vm2585_vm3, %v2569_v22  ;;  %v1474_v6 = vmax.bf16 %v4372_v53, %v1336_v51  ;;  %v2203_v29 = vshll.u32 %v4608_v5, 16  ;;  %v2440_v9 = vmax.bf16 %v2186_v28, %v1668_v26  ;;  %v966_v61 = vshrl.u32 %v4582_v59, 16  ;;  %v4647_v22 = vld [vmem:[%s2904_s24 + $0xf8] sm:$0xf] }
 0x135   : > { %v960_v36 = vrot.slane %v959_v49, 4  ;;  %v972_v44 = vshll.u32 %v4614_v34, 16  ;;  %v1126_v1 = vmax.bf16 %v4546_v11, %v4454_v60  ;;  %v2196_v45 = vsel %vm2939_vm2, %v2191_v38, %v2195_v54  ;;  %v2507_v28 = vld [vmem:[%s3020_s9 + $0xc8] sm:$0xf] }
 0x136   : > { %v1538_v53 = vmax.bf16 %v1474_v6, %v4628_v3  ;;  %v2199_v7 = vrot.slane %v2197_v16, 4  ;;  %v2570_v2 = vmax.bf16 %v2506_v43, %v2440_v9  ;;  %v2205_v56 = vrot.slane %v2203_v29, 5  ;;  %v4663_v6 = vld [vmem:[%s2965_s5 + $0xec] sm:$0xf]  ;;  %v4668_v9 = vld [vmem:[%s2914_s27 + $0xd8] sm:$0xf] }
 0x137   : > { %v4642_v15 = vsel %vm2939_vm2, %v960_v36, %v964_v4  ;;  %v968_v23 = vrot.slane %v966_v61, 4  ;;  %v974_v30 = vrot.slane %v972_v44, 5  ;;  %v1186_v33 = vmax.bf16 %v1122_v32, %v4582_v59 }
 0x138   : > { %v1669_v25 = vmax.bf16 %v4540_v19, %v1538_v53  ;;  %v1337_v12 = vmax.bf16 %v1185_v42, %v4642_v15  ;;  %v2200_v31 = vor.u32 %v2199_v7, %v2195_v54  ;;  %2635 = vst.msk [vmem:[%s3047_s13 + $0xc4] sm:$0xf] %vm2585_vm3, %v2570_v2  ;;  %v2207_v26 = vshrl.u32 %v4608_v5, 16 }
 0x139   : > { %v969_v51 = vor.u32 %v968_v23, %v964_v4  ;;  %v2213_v19 = vshll.u32 %v4638_v24, 16  ;;  %v976_v43 = vshrl.u32 %v4614_v34, 16  ;;  %v1127_v4 = vmax.bf16 %v4578_v17, %v4486_v50 }
 0x13a   : > { %v2441_v49 = vmax.bf16 %v2196_v45, %v1669_v25  ;;  %v1475_v54 = vmax.bf16 %v4407_v13, %v1337_v12  ;;  %v2201_v42 = vrot.slane %v2200_v31, 4  ;;  %v2209_v47 = vrot.slane %v2207_v26, 4  ;;  %v4677_v45 = vld [vmem:[%s2904_s24 + $0xfc] sm:$0xf]  ;;  %v2508_v12 = vld [vmem:[%s3020_s9 + $0xcc] sm:$0xf] }
 0x13b   : > { %v970_v46 = vrot.slane %v969_v51, 4  ;;  %v982_v32 = vshll.u32 %v4647_v22, 16  ;;  %v2215_v29 = vrot.slane %v2213_v19, 5  ;;  %v978_v13 = vrot.slane %v976_v43, 4 }
 0x13c   : > { %v2571_v38 = vmax.bf16 %v2507_v28, %v2441_v49  ;;  %v1539_v16 = vmax.bf16 %v1475_v54, %v4663_v6  ;;  %v2206_v36 = vsel %vm2939_vm2, %v2201_v42, %v2205_v56  ;;  %v2210_v44 = vor.u32 %v2209_v47, %v2205_v56  ;;  %v4701_v54 = vld [vmem:[%s2914_s27 + $0xdc] sm:$0xf] }
 0x13d   : > { %v4674_v61 = vsel %vm2939_vm2, %v970_v46, %v974_v30  ;;  %v984_v53 = vrot.slane %v982_v32, 5  ;;  %v979_v23 = vor.u32 %v978_v13, %v974_v30  ;;  %v1187_v25 = vmax.bf16 %v1123_v41, %v4614_v34  ;;  %v350_v13 = vld [vmem:[%s2904_s24 + $0x100] sm:$0xf] }
 0x13e   : > { %2636 = vst.msk [vmem:[%s3047_s13 + $0xc8] sm:$0xf] %vm2585_vm3, %v2571_v38  ;;  %v1670_v7 = vmax.bf16 %v4573_v35, %v1539_v16  ;;  %v1338_v2 = vmax.bf16 %v1186_v33, %v4674_v61  ;;  %v2211_v31 = vrot.slane %v2210_v44, 4  ;;  %v2217_v56 = vshrl.u32 %v4638_v24, 16 }
 0x13f   : > { %v2223_v28 = vshll.u32 %v4668_v9, 16  ;;  %v986_v51 = vshrl.u32 %v4647_v22, 16  ;;  %v980_v19 = vrot.slane %v979_v23, 4  ;;  %v992_v30 = vshll.u32 %v4677_v45, 16  ;;  %v2509_v23 = vld [vmem:[%s3020_s9 + $0xd0] sm:$0xf] }
 0x140   : > { %v2442_v26 = vmax.bf16 %v2206_v36, %v1670_v7  ;;  %v1476_v35 = vmax.bf16 %v4440_v39, %v1338_v2  ;;  %v1128_v48 = vmax.bf16 %v4605_v20, %v4519_v0  ;;  %v2216_v41 = vsel %vm2939_vm2, %v2211_v31, %v2215_v29 }
 0x141   : > { %v2219_v33 = vrot.slane %v2217_v56, 4  ;;  %v988_v49 = vrot.slane %v986_v51, 4  ;;  %v4706_v43 = vsel %vm2939_vm2, %v980_v19, %v984_v53  ;;  %v2225_v46 = vrot.slane %v2223_v28, 5  ;;  %v4725_v56 = vld [vmem:[%s2965_s5 + $0xf4] sm:$0xf] }
 0x142   : > { %v2572_v42 = vmax.bf16 %v2508_v12, %v2442_v26  ;;  %v1540_v39 = vmax.bf16 %v1476_v35, %v4696_v52  ;;  %v1339_v47 = vmax.bf16 %v1187_v25, %v4706_v43  ;;  %v994_v16 = vrot.slane %v992_v30, 5 }
 0x143   : > { %v2220_v32 = vor.u32 %v2219_v33, %v2215_v29  ;;  %v989_v38 = vor.u32 %v988_v49, %v984_v53  ;;  %v1188_v44 = vmax.bf16 %v1124_v55, %v4647_v22  ;;  %v2227_v7 = vshrl.u32 %v4668_v9, 16 }
 0x144   : > { %2637 = vst.msk [vmem:[%s3047_s13 + $0xcc] sm:$0xf] %vm2585_vm3, %v2572_v42  ;;  %v1671_v36 = vmax.bf16 %v4608_v5, %v1540_v39  ;;  %v2233_v2 = vshll.u32 %v4701_v54, 16  ;;  %v1477_v29 = vmax.bf16 %v4471_v14, %v1339_v47  ;;  %v996_v12 = vshrl.u32 %v4677_v45, 16  ;;  %v2510_v47 = vld [vmem:[%s3020_s9 + $0xd4] sm:$0xf] }
 0x145   : > { %v2221_v25 = vrot.slane %v2220_v32, 4  ;;  %v990_v53 = vrot.slane %v989_v38, 4  ;;  %v1129_v5 = vmax.bf16 %v4642_v15, %v4549_v62  ;;  %v2229_v37 = vrot.slane %v2227_v7, 4 }
 0x146   : > { %v2443_v31 = vmax.bf16 %v2216_v41, %v1671_v36  ;;  %v1002_v57 = vshll.u32 %v350_v13, 16  ;;  %v1130_v55 = vmax.bf16 %v4674_v61, %v4582_v59  ;;  %v1541_v14 = vmax.bf16 %v1477_v29, %v4725_v56  ;;  %v4738_v41 = vld [vmem:[%s2914_s27 + $0xe0] sm:$0xf] }
 0x147   : > { %v4732_v28 = vsel %vm2939_vm2, %v990_v53, %v994_v16  ;;  %v998_v51 = vrot.slane %v996_v12, 4  ;;  %v2226_v35 = vsel %vm2939_vm2, %v2221_v25, %v2225_v46  ;;  %v2230_v30 = vor.u32 %v2229_v37, %v2225_v46 }
 0x148   : > { %v2573_v26 = vmax.bf16 %v2509_v23, %v2443_v31  ;;  %v1340_v19 = vmax.bf16 %v1188_v44, %v4732_v28  ;;  %v1672_v33 = vmax.bf16 %v4638_v24, %v1541_v14  ;;  %v2235_v49 = vrot.slane %v2233_v2, 5  ;;  %v351_v44 = vld [vmem:[%s2904_s24 + $0x104] sm:$0xf]  ;;  %v4752_v24 = vld [vmem:[%s2965_s5 + $0xf8] sm:$0xf] }
 0x149   : > { %v999_v42 = vor.u32 %v998_v51, %v994_v16  ;;  %v1004_v39 = vrot.slane %v1002_v57, 5  ;;  %v2231_v38 = vrot.slane %v2230_v30, 4  ;;  %v1189_v36 = vmax.bf16 %v1125_v10, %v4677_v45  ;;  %v4761_v10 = vld [vmem:[%s2914_s27 + $0xe4] sm:$0xf] }
 0x14a   : > { %2638 = vst.msk [vmem:[%s3047_s13 + $0xd0] sm:$0xf] %vm2585_vm3, %v2573_v26  ;;  %v1478_v32 = vmax.bf16 %v4500_v27, %v1340_v19  ;;  %v2237_v46 = vshrl.u32 %v4701_v54, 16  ;;  %v2444_v7 = vmax.bf16 %v2226_v35, %v1672_v33  ;;  %v2243_v2 = vshll.u32 %v4738_v41, 16  ;;  %v4773_v26 = vld [vmem:[%s2904_s24 + $0x108] sm:$0xf] }
 0x14b   : > { %v1000_v16 = vrot.slane %v999_v42, 4  ;;  %v1198_v23 = vshrl.u32 %v350_v13, 16  ;;  %v1131_v27 = vmax.bf16 %v4706_v43, %v4614_v34  ;;  %v2236_v63 = vsel %vm2939_vm2, %v2231_v38, %v2235_v49  ;;  %v2511_v35 = vld [vmem:[%s3020_s9 + $0xd8] sm:$0xf] }
 0x14c   : > { %v1542_v29 = vmax.bf16 %v1478_v32, %v4752_v24  ;;  %v2239_v40 = vrot.slane %v2237_v46, 4  ;;  %v2574_v25 = vmax.bf16 %v2510_v47, %v2444_v7  ;;  %v1204_v31 = vshll.u32 %v351_v44, 16  ;;  %v4781_v47 = vld [vmem:[%s2965_s5 + $0xfc] sm:$0xf] }
 0x14d   : > { %v4765_v53 = vsel %vm2939_vm2, %v1000_v16, %v1004_v39  ;;  %v1200_v12 = vrot.slane %v1198_v23, 4  ;;  %v1190_v51 = vmax.bf16 %v1126_v1, %v350_v13  ;;  %v2245_v19 = vrot.slane %v2243_v2, 5 }
 0x14e   : > { %v1673_v37 = vmax.bf16 %v4668_v9, %v1542_v29  ;;  %v1341_v57 = vmax.bf16 %v1189_v36, %v4765_v53  ;;  %v2240_v14 = vor.u32 %v2239_v40, %v2235_v49  ;;  %2639 = vst.msk [vmem:[%s3047_s13 + $0xd4] sm:$0xf] %vm2585_vm3, %v2574_v25  ;;  %v2247_v33 = vshrl.u32 %v4738_v41, 16  ;;  %v4785_v36 = vld [vmem:[%s2914_s27 + $0xe8] sm:$0xf] }
 0x14f   : > { %v1201_v30 = vor.u32 %v1200_v12, %v1004_v39  ;;  %v2253_v42 = vshll.u32 %v4761_v10, 16  ;;  %v1206_v60 = vrot.slane %v1204_v31, 5  ;;  %v1208_v38 = vshrl.u32 %v351_v44, 16  ;;  %v353_v31 = vld [vmem:[%s2904_s24 + $0x10c] sm:$0xf] }
 0x150   : > { %v2445_v9 = vmax.bf16 %v2236_v63, %v1673_v37  ;;  %v1479_v49 = vmax.bf16 %v4535_v18, %v1341_v57  ;;  %v2241_v32 = vrot.slane %v2240_v14, 4  ;;  %v2249_v1 = vrot.slane %v2247_v33, 4  ;;  %v2512_v37 = vld [vmem:[%s3020_s9 + $0xdc] sm:$0xf]  ;;  %v1416_v57 = vld [vmem:[%s2965_s5 + $0x100] sm:$0xf] }
 0x151   : > { %v1202_v11 = vrot.slane %v1201_v30, 4  ;;  %v2255_v13 = vrot.slane %v2253_v42, 5  ;;  %v1214_v18 = vshll.u32 %v4773_v26, 16  ;;  %v1210_v23 = vrot.slane %v1208_v38, 4 }
 0x152   : > { %v2575_v39 = vmax.bf16 %v2511_v35, %v2445_v9  ;;  %v1543_v46 = vmax.bf16 %v1479_v49, %v4781_v47  ;;  %v2246_v7 = vsel %vm2939_vm2, %v2241_v32, %v2245_v19  ;;  %v2250_v2 = vor.u32 %v2249_v1, %v2245_v19 }
 0x153   : > { %v1207_v16 = vsel %vm2939_vm2, %v1202_v11, %v1206_v60  ;;  %v2257_v29 = vshrl.u32 %v4761_v10, 16  ;;  %v1132_v63 = vmax.bf16 %v4732_v28, %v4647_v22  ;;  %v2263_v12 = vshll.u32 %v4785_v36, 16 }
 0x154   : > { %2640 = vst.msk [vmem:[%s3047_s13 + $0xd8] sm:$0xf] %vm2585_vm3, %v2575_v39  ;;  %v1674_v40 = vmax.bf16 %v4701_v54, %v1543_v46  ;;  %v1342_v25 = vmax.bf16 %v1207_v16, %v1190_v51  ;;  %v2251_v14 = vrot.slane %v2250_v2, 4  ;;  %v1191_v35 = vmax.bf16 %v1127_v4, %v351_v44  ;;  %v4809_v51 = vld [vmem:[%s2914_s27 + $0xec] sm:$0xf] }
 0x155   : > { %v1211_v19 = vor.u32 %v1210_v23, %v1206_v60  ;;  %v2259_v30 = vrot.slane %v2257_v29, 4  ;;  %v1216_v9 = vrot.slane %v1214_v18, 5  ;;  %v1218_v54 = vshrl.u32 %v4773_v26, 16  ;;  %v354_v46 = vld [vmem:[%s2904_s24 + $0x110] sm:$0xf] }
 0x156   : > { %v2446_v33 = vmax.bf16 %v2246_v7, %v1674_v40  ;;  %v1480_v42 = vmax.bf16 %v4568_v58, %v1342_v25  ;;  %v2265_v11 = vrot.slane %v2263_v12, 5  ;;  %v1224_v1 = vshll.u32 %v353_v31, 16  ;;  %v2513_v18 = vld [vmem:[%s3020_s9 + $0xe0] sm:$0xf]  ;;  %v4823_v29 = vld [vmem:[%s2914_s27 + $0xf0] sm:$0xf] }
 0x157   : > { %v1212_v49 = vrot.slane %v1211_v19, 4  ;;  %v2260_v32 = vor.u32 %v2259_v30, %v2255_v13  ;;  %v1220_v4 = vrot.slane %v1218_v54, 4  ;;  %v2267_v44 = vshrl.u32 %v4785_v36, 16  ;;  %v1417_v40 = vld [vmem:[%s2965_s5 + $0x104] sm:$0xf] }
 0x158   : > { %v2576_v50 = vmax.bf16 %v2512_v37, %v2446_v33  ;;  %v1544_v17 = vmax.bf16 %v1480_v42, %v1416_v57  ;;  %v2256_v58 = vsel %vm2939_vm2, %v2251_v14, %v2255_v13  ;;  %v2273_v39 = vshll.u32 %v4809_v51, 16 }
 0x159   : > { %v1217_v60 = vsel %vm2939_vm2, %v1212_v49, %v1216_v9  ;;  %v2261_v38 = vrot.slane %v2260_v32, 4  ;;  %v1221_v2 = vor.u32 %v1220_v4, %v1216_v9  ;;  %v2269_v23 = vrot.slane %v2267_v44, 4  ;;  %v355_v32 = vld [vmem:[%s2904_s24 + $0x114] sm:$0xf] }
 0x15a   : > { %2641 = vst.msk [vmem:[%s3047_s13 + $0xdc] sm:$0xf] %vm2585_vm3, %v2576_v50  ;;  %v1675_v7 = vmax.bf16 %v4738_v41, %v1544_v17  ;;  %v1343_v16 = vmax.bf16 %v1217_v60, %v1191_v35  ;;  %v1192_v13 = vmax.bf16 %v1128_v48, %v4773_v26  ;;  %v1226_v25 = vrot.slane %v1224_v1, 5  ;;  %v4839_v1 = vld [vmem:[%s2914_s27 + $0xf4] sm:$0xf] }
 0x15b   : > { %v2275_v12 = vrot.slane %v2273_v39, 5  ;;  %v1228_v37 = vshrl.u32 %v353_v31, 16  ;;  %v1222_v41 = vrot.slane %v1221_v2, 4  ;;  %v2270_v35 = vor.u32 %v2269_v23, %v2265_v11  ;;  %v1418_v17 = vld [vmem:[%s2965_s5 + $0x108] sm:$0xf] }
 0x15c   : > { %v2447_v57 = vmax.bf16 %v2256_v58, %v1675_v7  ;;  %v1481_v14 = vmax.bf16 %v4599_v8, %v1343_v16  ;;  %v1234_v30 = vshll.u32 %v354_v46, 16  ;;  %v2277_v33 = vshrl.u32 %v4809_v51, 16  ;;  %v2514_v58 = vld [vmem:[%s3020_s9 + $0xe4] sm:$0xf] }
 0x15d   : > { %v1230_v19 = vrot.slane %v1228_v37, 4  ;;  %v2283_v42 = vshll.u32 %v4823_v29, 16  ;;  %v2266_v48 = vsel %vm2939_vm2, %v2261_v38, %v2265_v11  ;;  %v1227_v8 = vsel %vm2939_vm2, %v1222_v41, %v1226_v25 }
 0x15e   : > { %v2577_v0 = vmax.bf16 %v2513_v18, %v2447_v57  ;;  %v1545_v20 = vmax.bf16 %v1481_v14, %v1417_v40  ;;  %v1344_v26 = vmax.bf16 %v1227_v8, %v1192_v13  ;;  %v2271_v9 = vrot.slane %v2270_v35, 4  ;;  %v1419_v57 = vld [vmem:[%s2965_s5 + $0x10c] sm:$0xf] }
 0x15f   : > { %v1231_v54 = vor.u32 %v1230_v19, %v1226_v25  ;;  %v2279_v49 = vrot.slane %v2277_v33, 4  ;;  %v1193_v4 = vmax.bf16 %v1129_v5, %v353_v31  ;;  %v1236_v11 = vrot.slane %v1234_v30, 5  ;;  %v356_v25 = vld [vmem:[%s2904_s24 + $0x118] sm:$0xf] }
 0x160   : > { %2642 = vst.msk [vmem:[%s3047_s13 + $0xe0] sm:$0xf] %vm2585_vm3, %v2577_v0  ;;  %v1676_v50 = vmax.bf16 %v4761_v10, %v1545_v20  ;;  %v2285_v44 = vrot.slane %v2283_v42, 5  ;;  %v1482_v60 = vmax.bf16 %v4628_v3, %v1344_v26  ;;  %v1238_v7 = vshrl.u32 %v354_v46, 16  ;;  %v4867_v0 = vld [vmem:[%s2914_s27 + $0xf8] sm:$0xf] }
 0x161   : > { %v1232_v38 = vrot.slane %v1231_v54, 4  ;;  %v2280_v39 = vor.u32 %v2279_v49, %v2275_v12  ;;  %v1244_v16 = vshll.u32 %v355_v32, 16  ;;  %v2287_v2 = vshrl.u32 %v4823_v29, 16  ;;  %v357_v49 = vld [vmem:[%s2904_s24 + $0x11c] sm:$0xf] }
 0x162   : > { %v2448_v18 = vmax.bf16 %v2266_v48, %v1676_v50  ;;  %v2293_v10 = vshll.u32 %v4839_v1, 16  ;;  %v1546_v62 = vmax.bf16 %v1482_v60, %v1418_v17  ;;  %v2276_v15 = vsel %vm2939_vm2, %v2271_v9, %v2275_v12  ;;  %v2515_v12 = vld [vmem:[%s3020_s9 + $0xe8] sm:$0xf] }
 0x163   : > { %v1237_v3 = vsel %vm2939_vm2, %v1232_v38, %v1236_v11  ;;  %v1240_v5 = vrot.slane %v1238_v7, 4  ;;  %v2281_v40 = vrot.slane %v2280_v39, 4  ;;  %v2289_v13 = vrot.slane %v2287_v2, 4 }
 0x164   : > { %v2578_v31 = vmax.bf16 %v2514_v58, %v2448_v18  ;;  %v1345_v23 = vmax.bf16 %v1237_v3, %v1193_v4  ;;  %v1677_v37 = vmax.bf16 %v4785_v36, %v1546_v62  ;;  %v1194_v14 = vmax.bf16 %v1130_v55, %v354_v46  ;;  %v2516_v4 = vld [vmem:[%s3020_s9 + $0xec] sm:$0xf]  ;;  %v4887_v18 = vld [vmem:[%s2914_s27 + $0xfc] sm:$0xf] }
 0x165   : > { %v1241_v41 = vor.u32 %v1240_v5, %v1236_v11  ;;  %v1246_v35 = vrot.slane %v1244_v16, 5  ;;  %v2290_v30 = vor.u32 %v2289_v13, %v2285_v44  ;;  %v2295_v33 = vrot.slane %v2293_v10, 5  ;;  %v1421_v13 = vld [vmem:[%s2965_s5 + $0x114] sm:$0xf] }
 0x166   : > { %2643 = vst.msk [vmem:[%s3047_s13 + $0xe4] sm:$0xf] %vm2585_vm3, %v2578_v31  ;;  %v1483_v19 = vmax.bf16 %v4663_v6, %v1345_v23  ;;  %v1248_v42 = vshrl.u32 %v355_v32, 16  ;;  %v2449_v36 = vmax.bf16 %v2276_v15, %v1677_v37  ;;  %v1254_v48 = vshll.u32 %v356_v25, 16 }
 0x167   : > { %v1242_v20 = vrot.slane %v1241_v41, 4  ;;  %v2297_v59 = vshrl.u32 %v4839_v1, 16  ;;  %v2286_v55 = vsel %vm2939_vm2, %v2281_v40, %v2285_v44  ;;  %v2291_v46 = vrot.slane %v2290_v30, 4  ;;  %v1420_v44 = vld [vmem:[%s2965_s5 + $0x110] sm:$0xf] }
 0x168   : > { %v1547_v61 = vmax.bf16 %v1483_v19, %v1419_v57  ;;  %v1250_v6 = vrot.slane %v1248_v42, 4  ;;  %v2579_v8 = vmax.bf16 %v2515_v12, %v2449_v36  ;;  %v2303_v54 = vshll.u32 %v4867_v0, 16  ;;  %v2517_v41 = vld [vmem:[%s3020_s9 + $0xf0] sm:$0xf] }
 0x169   : > { %v1247_v26 = vsel %vm2939_vm2, %v1242_v20, %v1246_v35  ;;  %v2299_v9 = vrot.slane %v2297_v59, 4  ;;  %v1133_v50 = vmax.bf16 %v4765_v53, %v4677_v45  ;;  %v1195_v60 = vmax.bf16 %v1131_v27, %v355_v32 }
 0x16a   : > { %v1678_v17 = vmax.bf16 %v4809_v51, %v1547_v61  ;;  %v1346_v11 = vmax.bf16 %v1247_v26, %v1194_v14  ;;  %v1251_v58 = vor.u32 %v1250_v6, %v1246_v35  ;;  %2644 = vst.msk [vmem:[%s3047_s13 + $0xe8] sm:$0xf] %vm2585_vm3, %v2579_v8  ;;  %v1256_v38 = vrot.slane %v1254_v48, 5  ;;  %v2518_v26 = vld [vmem:[%s3020_s9 + $0xf4] sm:$0xf] }
 0x16b   : > { %v2300_v39 = vor.u32 %v2299_v9, %v2295_v33  ;;  %v1258_v7 = vshrl.u32 %v356_v25, 16  ;;  %v1264_v51 = vshll.u32 %v357_v49, 16  ;;  %v2296_v2 = vsel %vm2939_vm2, %v2291_v46, %v2295_v33  ;;  %v1422_v46 = vld [vmem:[%s2965_s5 + $0x118] sm:$0xf] }
 0x16c   : > { %v2450_v16 = vmax.bf16 %v2286_v55, %v1678_v17  ;;  %v1484_v45 = vmax.bf16 %v4696_v52, %v1346_v11  ;;  %v1252_v53 = vrot.slane %v1251_v58, 4  ;;  %v2305_v10 = vrot.slane %v2303_v54, 5  ;;  %v358_v52 = vld [vmem:[%s2904_s24 + $0x120] sm:$0xf] }
 0x16d   : > { %v1260_v62 = vrot.slane %v1258_v7, 4  ;;  %v2307_v34 = vshrl.u32 %v4867_v0, 16  ;;  %v2313_v15 = vshll.u32 %v4887_v18, 16  ;;  %v2301_v5 = vrot.slane %v2300_v39, 4  ;;  %v2519_v7 = vld [vmem:[%s3020_s9 + $0xf8] sm:$0xf] }
 0x16e   : > { %v2580_v43 = vmax.bf16 %v2516_v4, %v2450_v16  ;;  %v1548_v27 = vmax.bf16 %v1484_v45, %v1420_v44  ;;  %v1257_v32 = vsel %vm2939_vm2, %v1252_v53, %v1256_v38  ;;  %v1196_v37 = vmax.bf16 %v1132_v63, %v356_v25 }
 0x16f   : > { %v1347_v3 = vmax.bf16 %v1257_v32, %v1195_v60  ;;  %v1261_v31 = vor.u32 %v1260_v62, %v1256_v38  ;;  %v2309_v23 = vrot.slane %v2307_v34, 4  ;;  %v1266_v57 = vrot.slane %v1264_v51, 5  ;;  %v1423_v38 = vld [vmem:[%s2965_s5 + $0x11c] sm:$0xf] }
 0x170   : > { %2645 = vst.msk [vmem:[%s3047_s13 + $0xec] sm:$0xf] %vm2585_vm3, %v2580_v43  ;;  %v1679_v40 = vmax.bf16 %v4823_v29, %v1548_v27  ;;  %v1268_v14 = vshrl.u32 %v357_v49, 16  ;;  %v1274_v30 = vshll.u32 %v358_v52, 16  ;;  %v2315_v42 = vrot.slane %v2313_v15, 5 }
 0x171   : > { %v1485_v35 = vmax.bf16 %v4725_v56, %v1347_v3  ;;  %v1262_v12 = vrot.slane %v1261_v31, 4  ;;  %v2310_v19 = vor.u32 %v2309_v23, %v2305_v10  ;;  %v2317_v29 = vshrl.u32 %v4887_v18, 16  ;;  %v1618_v56 = vld [vmem:[%s2914_s27 + $0x100] sm:$0xf] }
 0x172   : > { %v2451_v33 = vmax.bf16 %v2296_v2, %v1679_v40  ;;  %v1270_v36 = vrot.slane %v1268_v14, 4  ;;  %v2306_v22 = vsel %vm2939_vm2, %v2301_v5, %v2305_v10  ;;  %v1276_v63 = vrot.slane %v1274_v30, 5 }
 0x173   : > { %v1549_v20 = vmax.bf16 %v1485_v35, %v1421_v13  ;;  %v1267_v28 = vsel %vm2939_vm2, %v1262_v12, %v1266_v57  ;;  %v2319_v61 = vrot.slane %v2317_v29, 4  ;;  %v2311_v6 = vrot.slane %v2310_v19, 4 }
 0x174   : > { %v2581_v25 = vmax.bf16 %v2517_v41, %v2451_v33  ;;  %v1348_v48 = vmax.bf16 %v1267_v28, %v1196_v37  ;;  %v1271_v59 = vor.u32 %v1270_v36, %v1266_v57  ;;  %v1197_v8 = vmax.bf16 %v1133_v50, %v357_v49 }
 0x175   : > { %v1680_v55 = vmax.bf16 %v4839_v1, %v1549_v20  ;;  %v2320_v17 = vor.u32 %v2319_v61, %v2315_v42  ;;  %v2323_v4 = vshll.u32 %v1618_v56, 16  ;;  %v2316_v49 = vsel %vm2939_vm2, %v2311_v6, %v2315_v42 }
 0x176   : > { %2646 = vst.msk [vmem:[%s3047_s13 + $0xf0] sm:$0xf] %vm2585_vm3, %v2581_v25  ;;  %v1486_v9 = vmax.bf16 %v4752_v24, %v1348_v48  ;;  %v1272_v54 = vrot.slane %v1271_v59, 4 }
 0x177   : > { %v2452_v11 = vmax.bf16 %v2306_v22, %v1680_v55  ;;  %v2321_v24 = vrot.slane %v2320_v17, 4  ;;  %v2325_v39 = vrot.slane %v2323_v4, 5 }
 0x178   : > { %v1550_v58 = vmax.bf16 %v1486_v9, %v1422_v46  ;;  %v1277_v44 = vsel %vm2939_vm2, %v1272_v54, %v1276_v63 }
 0x179   : > { %v2582_v1 = vmax.bf16 %v2518_v26, %v2452_v11  ;;  %v1349_v50 = vmax.bf16 %v1277_v44, %v1197_v8  ;;  %v2326_v2 = vsel %vm2939_vm2, %v2321_v24, %v2325_v39 }
 0x17a   : > { %v1681_v60 = vmax.bf16 %v4867_v0, %v1550_v58  ;;  %v2520_v0 = vld [vmem:[%s3020_s9 + $0xfc] sm:$0xf] }
 0x17b   : > { %2647 = vst.msk [vmem:[%s3047_s13 + $0xf4] sm:$0xf] %vm2585_vm3, %v2582_v1  ;;  %v1487_v16 = vmax.bf16 %v4781_v47, %v1349_v50 }
 0x17c   : > { %v2453_v45 = vmax.bf16 %v2316_v49, %v1681_v60 }
 0x17d   : > { %v1551_v53 = vmax.bf16 %v1487_v16, %v1423_v38 }
 0x17e   : > { %v2583_v51 = vmax.bf16 %v2519_v7, %v2453_v45 }
 0x17f   : > { %v1682_v10 = vmax.bf16 %v4887_v18, %v1551_v53 }
 0x180   : > { %2648 = vst.msk [vmem:[%s3047_s13 + $0xf8] sm:$0xf] %vm2585_vm3, %v2583_v51 }
 0x181   : > { %v2454_v62 = vmax.bf16 %v2326_v2, %v1682_v10 }
 0x183   : > { %v2584_v34 = vmax.bf16 %v2520_v0, %v2454_v62 }
 0x185   : > { %2649 = vst.msk [vmem:[%s3047_s13 + $0xfc] sm:$0xf] %vm2585_vm3, %v2584_v34 }
 0x186 PF: > { %s14_s17 = sadd.s32 1, %s2850_s17   ;;  %s4953_s15 = smov %s2846_s16 }
 0x187   : > { %p11_p5 = scmp.ge.s32.totalorder %s14_s17, 9   ;;  %s4954_s16 = smov %s4956_s18 }
 0x189   :  { %13 = sbr.rel (!%p11_p5) target bundleno = 2 (0x2), region = 79 }

</bundles_post_ra>
